<compile_context>
chip_gen: v6e
topology: v6e:2x2x1
jax: 0.10.0
libtpu: 0.0.40
codegen_flags: <defaults>
</compile_context>

<pallas_src>
import functools

import jax
import jax.numpy as jnp
import numpy as np
from jax.experimental import pallas as pl
from jax.experimental.pallas import tpu as pltpu


# ------------------------------- fused kernel --------------------------------

_PER_LAYER = 16   # w_q,b_q,w_k,b_k,w_v,b_v,w_o,b_o,ln1_g,ln1_b,w_ff1,b_ff1,w_ff2,b_ff2,ln2_g,ln2_b
_DIN = 4          # din_w1, din_b1, din_w2_row, din_b2
_DNN = 6          # dnn_w1, dnn_b1, dnn_w2, dnn_b2, out_w_row, out_b


def _bst_fused_kernel(*refs, n_layers, num_heads, S, N, E):
    """Rows everywhere are ordered (n, s) = (attention-batch, seq-pos); S=B, N=L.

    refs = [x2, query, other, mask] + n_layers*16 layer params + 4 DIN + 6 DNN + [out]
    """
    f32, bf16 = jnp.float32, jnp.bfloat16
    H = num_heads
    dh = E // H
    SN = S * N

    it = iter(refs)
    x_ref, query_ref, other_ref, mask_ref = (next(it) for _ in range(4))
    layer_refs = [tuple(next(it) for _ in range(_PER_LAYER)) for _ in range(n_layers)]
    din_w1_ref, din_b1_ref, din_w2_ref, din_b2_ref = (next(it) for _ in range(_DIN))
    (dnn_w1_ref, dnn_b1_ref, dnn_w2_ref, dnn_b2_ref,
     out_w_ref, out_b_ref) = (next(it) for _ in range(_DNN))
    out_ref = next(it)

    def mm(a_bf16, w_ref, b_ref, act=None):
        y = jnp.dot(a_bf16, w_ref[...], preferred_element_type=f32) + b_ref[...]
        if act == "relu":
            y = jnp.maximum(y, 0.0)
        return y

    def layernorm(v, g_ref, b_ref, eps=1e-5):
        mu = jnp.mean(v, axis=-1, keepdims=True)
        vc = v - mu
        var = jnp.mean(vc * vc, axis=-1, keepdims=True)
        return vc * jax.lax.rsqrt(var + eps) * g_ref[...] + b_ref[...]

    x = x_ref[...]                                     # (N*S, E) f32, rows (n, s)

    # ---- nn.TransformerEncoder (post-norm, relu, eval mode), layers unrolled ----
    for (w_q, b_q, w_k, b_k, w_v, b_v, w_o, b_o, ln1_g, ln1_b,
         w_f1, b_f1, w_f2, b_f2, ln2_g, ln2_b) in layer_refs:
        xb = x.astype(bf16)                            # single cast feeds q/k/v matmuls
        # q projection already carries the 1/sqrt(dh) scale (folded at prep time).
        q3 = mm(xb, w_q, b_q).reshape(N, S, E)
        k3 = mm(xb, w_k, b_k).reshape(N, S, E)
        v3 = mm(xb, w_v, b_v).reshape(N, S, E)

        w_o_v = w_o[...]                               # (E, E) bf16, hoisted
        proj = None
        for h in range(H):                             # heads unrolled (H=4)
            sl = slice(h * dh, (h + 1) * dh)
            qh = q3[:, :, sl].astype(bf16)             # (N, S, dh), batch-leading
            kh = k3[:, :, sl].astype(bf16)
            vh = v3[:, :, sl].astype(bf16)
            s = jnp.einsum("nid,njd->nij", qh, kh,
                           preferred_element_type=f32)             # (N, S, S)
            s = s - jnp.max(s, axis=-1, keepdims=True)
            p = jnp.exp(s)
            p = p * pl.reciprocal(jnp.sum(p, axis=-1, keepdims=True), approx=True)
            o_h = jnp.einsum("nij,njd->nid", p.astype(bf16), vh,
                             preferred_element_type=f32)           # (N, S, dh)
            # per-head output projection, accumulated (== concat(heads) @ w_o)
            c = jnp.dot(o_h.reshape(SN, dh).astype(bf16), w_o_v[sl, :],
                        preferred_element_type=f32)                # (N*S, E)
            proj = c if proj is None else proj + c
        proj = proj + b_o[...]

        x = layernorm(x + proj, ln1_g, ln1_b)
        ff = mm(x.astype(bf16), w_f1, b_f1, act="relu")
        ff = mm(ff.astype(bf16), w_f2, b_f2)
        x = layernorm(x + ff, ln2_g, ln2_b)

    # ---- DIN local activation unit (query vs transformer outputs) ----
    kb3 = x.reshape(N, S, E)                           # kb3[l, b] == keys[b, l]
    query = query_ref[...]                             # (S=B, E)
    q_exp = jnp.broadcast_to(query[None, :, :], (N, S, E)).reshape(SN, E)

    w1 = din_w1_ref[...]                               # (4E, mid) bf16
    feats = (q_exp, x, q_exp - x, q_exp * x)           # concat([q,k,q-k,q*k]) row-blocks
    hdin = din_b1_ref[...]
    for i, f in enumerate(feats):
        hdin = hdin + jnp.dot(f.astype(bf16), w1[i * E:(i + 1) * E, :],
                              preferred_element_type=f32)
    hdin = jnp.maximum(hdin, 0.0)                      # (N*S, mid)

    mid = hdin.shape[-1]
    h3 = hdin.reshape(N, S, mid)
    scores = jnp.sum(h3 * din_w2_ref[...][None, :, :], axis=-1, keepdims=True)  # (N,S,1)
    scores = scores + din_b2_ref[...]

    mask3 = mask_ref[...]                              # (N=L, S=B, 1), 1.0 where padding
    scores = jnp.where(mask3 > 0.5, -1e9, scores)
    scores = scores - jnp.max(scores, axis=0, keepdims=True)
    pw = jnp.exp(scores)
    pw = pw * pl.reciprocal(jnp.sum(pw, axis=0, keepdims=True), approx=True)
    out_din = jnp.sum(pw * kb3, axis=0)                # (B, E); .view(3,-1) is identity

    # ---- DNN head ----
    other = other_ref[...]                             # (B, 3D)
    d0 = other.shape[-1]
    wd1 = dnn_w1_ref[...]                              # (3D + E, dnn1) bf16
    h1 = (jnp.dot(other.astype(bf16), wd1[:d0, :], preferred_element_type=f32)
          + jnp.dot(out_din.astype(bf16), wd1[d0:, :], preferred_element_type=f32)
          + dnn_b1_ref[...])
    h1 = jnp.maximum(h1, 0.0)                          # (B, dnn1)
    h2 = jnp.dot(h1.astype(bf16), dnn_w2_ref[...],
                 preferred_element_type=f32) + dnn_b2_ref[...]
    h2 = jnp.maximum(h2, 0.0)                          # (B, dnn2)
    logits = jnp.sum(h2 * out_w_ref[...], axis=-1, keepdims=True) + out_b_ref[...]
    out_ref[...] = jax.nn.sigmoid(logits)              # (B, 1)


def bst_fused_call(x2, query, other, mask3, flat_params, *, num_heads, n_layers, S, N, E):
    inputs = (x2, query, other, mask3) + tuple(flat_params)

    def full_spec(a):
        nd = a.ndim
        return pl.BlockSpec(a.shape, lambda i, _nd=nd: (0,) * _nd)

    return pl.pallas_call(
        functools.partial(_bst_fused_kernel, n_layers=n_layers,
                          num_heads=num_heads, S=S, N=N, E=E),
        out_shape=jax.ShapeDtypeStruct((S, 1), jnp.float32),
        grid=(1,),
        in_specs=[full_spec(a) for a in inputs],
        out_specs=pl.BlockSpec((S, 1), lambda i: (0, 0)),
        compiler_params=pltpu.CompilerParams(dimension_semantics=("arbitrary",)),
    )(*inputs)


# ------------------------------ forward / params -----------------------------


def bst_forward(emb, flat_params, user_id, gender, age, item_seq, cate_seq,
                target_item, target_cate, *, num_heads, n_layers):
    # Embedding lookups + concats (plain-JAX glue; gathers stay in XLA).
    u = emb["user"][user_id]
    g = emb["gender"][gender]
    a = emb["age"][age]
    seq_item = emb["item"][item_seq]
    seq_cate = emb["cate"][cate_seq]
    t_item = emb["item"][target_item]
    t_cate = emb["cate"][target_cate]

    other = jnp.concatenate([u, g, a], axis=-1)                 # (B, 3D)
    x = jnp.concatenate([seq_item, seq_cate], axis=-1)          # (B, L, 2D) == (S, N, E)
    query = jnp.concatenate([t_item, t_cate], axis=-1)          # (B, 2D)
    B, L, E = x.shape

    # Reorder once (outside the kernel) so the attention batch axis (L) leads:
    # rows are (l, b); din_padding_mask == (item_seq == 0), also (l, b) ordered.
    x2 = jnp.transpose(x, (1, 0, 2)).reshape(L * B, E).astype(jnp.float32)
    mask3 = jnp.transpose((item_seq == 0).astype(jnp.float32))[:, :, None]   # (L, B, 1)

    return bst_fused_call(x2, query.astype(jnp.float32), other.astype(jnp.float32),
                          mask3, flat_params,
                          num_heads=num_heads, n_layers=n_layers, S=B, N=L, E=E)


def prepare_params(params, *, num_heads):
    """One-time prep: split/scale QKV, cast matmul weights to bf16, reshape biases."""
    f32, bf16 = jnp.float32, jnp.bfloat16

    def row(b):
        return jnp.asarray(b, f32).reshape(1, -1)

    flat = []
    for lp in params["layers"]:
        E = lp["w_in"].shape[1] // 3
        dh = E // num_heads
        scale = 1.0 / float(np.sqrt(dh))
        w_q = lp["w_in"][:, :E] * scale            # fold 1/sqrt(dh) into q projection
        w_k = lp["w_in"][:, E:2 * E]
        w_v = lp["w_in"][:, 2 * E:]
        b_q = lp["b_in"][:E] * scale
        b_k = lp["b_in"][E:2 * E]
        b_v = lp["b_in"][2 * E:]
        flat += [
            w_q.astype(bf16), row(b_q),
            w_k.astype(bf16), row(b_k),
            w_v.astype(bf16), row(b_v),
            lp["w_out"].astype(bf16), row(lp["b_out"]),
            row(lp["ln1_g"]), row(lp["ln1_b"]),
            lp["w_ff1"].astype(bf16), row(lp["b_ff1"]),
            lp["w_ff2"].astype(bf16), row(lp["b_ff2"]),
            row(lp["ln2_g"]), row(lp["ln2_b"]),
        ]
    flat += [
        params["din_w1"].astype(bf16), row(params["din_b1"]),
        row(params["din_w2"]),                      # (mid, 1) -> (1, mid)
        params["din_b2"].reshape(1, 1).astype(f32),
        params["dnn_w1"].astype(bf16), row(params["dnn_b1"]),
        params["dnn_w2"].astype(bf16), row(params["dnn_b2"]),
        row(params["out_w"]),                       # (dnn2, 1) -> (1, dnn2)
        params["out_b"].reshape(1, 1).astype(f32),
    ]
    emb = {"user": params["emb_user"], "gender": params["emb_gender"],
           "age": params["emb_age"], "item": params["emb_item"],
           "cate": params["emb_cate"]}
    return tuple(flat), emb


def init_params(key, cfg):
    D = cfg["embedding_dim"]
    E = 2 * D
    mid = cfg["middle_units"]
    dnn = cfg["dnn_unit_list"]
    vs = cfg["vocab_size_dict"]
    keys = iter(jax.random.split(key, 128))

    def dense(shape):
        return (1.0 / np.sqrt(shape[0])) * jax.random.normal(next(keys), shape, dtype=jnp.float32)

    def emb(n):
        t = 0.05 * jax.random.normal(next(keys), (n + 1, D), dtype=jnp.float32)
        return t.at[0].set(0.0)  # padding_idx=0

    p = {
        "emb_user": emb(vs["user_id"]),
        "emb_gender": emb(vs["gender"]),
        "emb_age": emb(vs["age"]),
        "emb_item": emb(vs["item_id"]),
        "emb_cate": emb(vs["cate_id"]),
        "layers": [],
    }
    for _ in range(cfg["n_layers"]):
        p["layers"].append({
            "w_in": dense((E, 3 * E)), "b_in": jnp.zeros((3 * E,), jnp.float32),
            "w_out": dense((E, E)), "b_out": jnp.zeros((E,), jnp.float32),
            "w_ff1": dense((E, mid)), "b_ff1": jnp.zeros((mid,), jnp.float32),
            "w_ff2": dense((mid, E)), "b_ff2": jnp.zeros((E,), jnp.float32),
            "ln1_g": jnp.ones((E,), jnp.float32), "ln1_b": jnp.zeros((E,), jnp.float32),
            "ln2_g": jnp.ones((E,), jnp.float32), "ln2_b": jnp.zeros((E,), jnp.float32),
        })
    p["din_w1"] = dense((4 * E, mid)); p["din_b1"] = jnp.zeros((mid,), jnp.float32)
    p["din_w2"] = dense((mid, 1)); p["din_b2"] = jnp.zeros((1,), jnp.float32)
    p["dnn_w1"] = dense((dnn[0] * 5, dnn[1])); p["dnn_b1"] = jnp.zeros((dnn[1],), jnp.float32)
    p["dnn_w2"] = dense((dnn[1], dnn[2])); p["dnn_b2"] = jnp.zeros((dnn[2],), jnp.float32)
    p["out_w"] = dense((dnn[2], 1)); p["out_b"] = jnp.zeros((1,), jnp.float32)
    return p


# ---------------------------- pure-JAX reference -----------------------------


def _ref_linear(x, w, b, act=None):
    y = x @ w + b
    if act == "relu":
        y = jnp.maximum(y, 0.0)
    return y


def _ref_layer(src, lp, H):
    S, N, E = src.shape
    dh = E // H
    x2 = src.reshape(S * N, E)
    qkv = _ref_linear(x2, lp["w_in"], lp["b_in"])
    q, k, v = jnp.split(qkv, 3, axis=-1)

    def heads(t):
        return t.reshape(S, N * H, dh).transpose(1, 0, 2)

    qh, kh, vh = heads(q), heads(k), heads(v)
    s = jnp.einsum("bid,bjd->bij", qh, kh) / np.sqrt(dh)
    p = jax.nn.softmax(s, axis=-1)
    o = jnp.einsum("bij,bjd->bid", p, vh)
    attn = o.transpose(1, 0, 2).reshape(S * N, E)
    attn = _ref_linear(attn, lp["w_out"], lp["b_out"])

    def ln(v_, g, b):
        mu = v_.mean(-1, keepdims=True)
        var = ((v_ - mu) ** 2).mean(-1, keepdims=True)
        return (v_ - mu) * jax.lax.rsqrt(var + 1e-5) * g + b

    x = ln(x2 + attn, lp["ln1_g"], lp["ln1_b"])
    ff = _ref_linear(x, lp["w_ff1"], lp["b_ff1"], "relu")
    ff = _ref_linear(ff, lp["w_ff2"], lp["b_ff2"])
    x = ln(x + ff, lp["ln2_g"], lp["ln2_b"])
    return x.reshape(S, N, E)


def bst_reference(params, user_id, gender, age, item_seq, cate_seq,
                  target_item, target_cate, *, num_heads):
    u = params["emb_user"][user_id]
    g = params["emb_gender"][gender]
    a = params["emb_age"][age]
    seq_item = params["emb_item"][item_seq]
    seq_cate = params["emb_cate"][cate_seq]
    t_item = params["emb_item"][target_item]
    t_cate = params["emb_cate"][target_cate]
    other = jnp.concatenate([u, g, a], -1)
    x = jnp.concatenate([seq_item, seq_cate], -1)
    query = jnp.concatenate([t_item, t_cate], -1)
    for lp in params["layers"]:
        x = _ref_layer(x, lp, num_heads)
    keys = x
    B, L, E = keys.shape
    q_exp = jnp.broadcast_to(query[:, None, :], keys.shape)
    att_in = jnp.concatenate([q_exp, keys, q_exp - keys, q_exp * keys], -1).reshape(B * L, 4 * E)
    h = _ref_linear(att_in, params["din_w1"], params["din_b1"], "relu")
    scores = _ref_linear(h, params["din_w2"], params["din_b2"]).reshape(B, L)
    scores = jnp.where(item_seq == 0, -1e9, scores)
    p = jax.nn.softmax(scores, axis=-1)
    out_din = jnp.einsum("bl,ble->be", p, keys).reshape(3, -1)
    input_dnn = jnp.concatenate([other, out_din], -1)
    h1 = _ref_linear(input_dnn, params["dnn_w1"], params["dnn_b1"], "relu")
    h2 = _ref_linear(h1, params["dnn_w2"], params["dnn_b2"], "relu")
    return jax.nn.sigmoid(_ref_linear(h2, params["out_w"], params["out_b"]))


# ---------------------------------- main -------------------------------------

if __name__ == "__main__":
    cfg = dict(
        embedding_dim=32,
        max_seq_length=8,
        num_heads=4,
        middle_units=64,
        n_layers=2,
        dnn_unit_list=[32, 16, 8],   # dnn input = dnn_unit_list[0] * 5 = 5 * embedding_dim
        vocab_size_dict={"user_id": 20, "gender": 2, "age": 10, "item_id": 100, "cate_id": 20},
    )
    B, L = 3, cfg["max_seq_length"]   # B=3 so that output_din.view(3, -1) is consistent

    params = init_params(jax.random.PRNGKey(42), cfg)
    flat_params, emb_tables = prepare_params(params, num_heads=cfg["num_heads"])

    key = jax.random.PRNGKey(0)
    ks = jax.random.split(key, 7)
    vs = cfg["vocab_size_dict"]
    user_id = jax.random.randint(ks[0], (B,), 1, vs["user_id"] + 1)
    gender = jax.random.randint(ks[1], (B,), 1, vs["gender"] + 1)
    age = jax.random.randint(ks[2], (B,), 1, vs["age"] + 1)
    item_seq = jax.random.randint(ks[3], (B, L), 0, vs["item_id"] + 1)   # 0 == padding
    cate_seq = jax.random.randint(ks[4], (B, L), 0, vs["cate_id"] + 1)
    target_item = jax.random.randint(ks[5], (B,), 1, vs["item_id"] + 1)
    target_cate = jax.random.randint(ks[6], (B,), 1, vs["cate_id"] + 1)

    fwd = jax.jit(functools.partial(bst_forward, num_heads=cfg["num_heads"],
                                    n_layers=cfg["n_layers"]))
    out = fwd(emb_tables, flat_params, user_id, gender, age, item_seq, cate_seq,
              target_item, target_cate)
    out = jax.block_until_ready(out)

    ref = bst_reference(params, user_id, gender, age, item_seq, cate_seq,
                        target_item, target_cate, num_heads=cfg["num_heads"])

    assert out.shape == (3, 1), out.shape
    assert bool(jnp.all(jnp.isfinite(out)))
    assert bool(jnp.all((out >= 0.0) & (out <= 1.0)))
    assert bool(jnp.allclose(out, ref, atol=5e-2)), (out, ref)   # bf16/approx-recip tolerance
    print("KERNEL_OK")
</pallas_src>

<mosaic_0001>
module attributes {stable_mosaic.version = 11 : i64} {
  func.func @_bst_fused_kernel(%arg0: i32, %arg1: memref<24x64xf32, #tpu.memory_space<vmem>>, %arg2: memref<3x64xf32, #tpu.memory_space<vmem>>, %arg3: memref<3x96xf32, #tpu.memory_space<vmem>>, %arg4: memref<8x3x1xf32, #tpu.memory_space<vmem>>, %arg5: memref<64x64xbf16, #tpu.memory_space<vmem>>, %arg6: memref<1x64xf32, #tpu.memory_space<vmem>>, %arg7: memref<64x64xbf16, #tpu.memory_space<vmem>>, %arg8: memref<1x64xf32, #tpu.memory_space<vmem>>, %arg9: memref<64x64xbf16, #tpu.memory_space<vmem>>, %arg10: memref<1x64xf32, #tpu.memory_space<vmem>>, %arg11: memref<64x64xbf16, #tpu.memory_space<vmem>>, %arg12: memref<1x64xf32, #tpu.memory_space<vmem>>, %arg13: memref<1x64xf32, #tpu.memory_space<vmem>>, %arg14: memref<1x64xf32, #tpu.memory_space<vmem>>, %arg15: memref<64x64xbf16, #tpu.memory_space<vmem>>, %arg16: memref<1x64xf32, #tpu.memory_space<vmem>>, %arg17: memref<64x64xbf16, #tpu.memory_space<vmem>>, %arg18: memref<1x64xf32, #tpu.memory_space<vmem>>, %arg19: memref<1x64xf32, #tpu.memory_space<vmem>>, %arg20: memref<1x64xf32, #tpu.memory_space<vmem>>, %arg21: memref<64x64xbf16, #tpu.memory_space<vmem>>, %arg22: memref<1x64xf32, #tpu.memory_space<vmem>>, %arg23: memref<64x64xbf16, #tpu.memory_space<vmem>>, %arg24: memref<1x64xf32, #tpu.memory_space<vmem>>, %arg25: memref<64x64xbf16, #tpu.memory_space<vmem>>, %arg26: memref<1x64xf32, #tpu.memory_space<vmem>>, %arg27: memref<64x64xbf16, #tpu.memory_space<vmem>>, %arg28: memref<1x64xf32, #tpu.memory_space<vmem>>, %arg29: memref<1x64xf32, #tpu.memory_space<vmem>>, %arg30: memref<1x64xf32, #tpu.memory_space<vmem>>, %arg31: memref<64x64xbf16, #tpu.memory_space<vmem>>, %arg32: memref<1x64xf32, #tpu.memory_space<vmem>>, %arg33: memref<64x64xbf16, #tpu.memory_space<vmem>>, %arg34: memref<1x64xf32, #tpu.memory_space<vmem>>, %arg35: memref<1x64xf32, #tpu.memory_space<vmem>>, %arg36: memref<1x64xf32, #tpu.memory_space<vmem>>, %arg37: memref<256x64xbf16, #tpu.memory_space<vmem>>, %arg38: memref<1x64xf32, #tpu.memory_space<vmem>>, %arg39: memref<1x64xf32, #tpu.memory_space<vmem>>, %arg40: memref<1x1xf32, #tpu.memory_space<vmem>>, %arg41: memref<160x16xbf16, #tpu.memory_space<vmem>>, %arg42: memref<1x16xf32, #tpu.memory_space<vmem>>, %arg43: memref<16x8xbf16, #tpu.memory_space<vmem>>, %arg44: memref<1x8xf32, #tpu.memory_space<vmem>>, %arg45: memref<1x8xf32, #tpu.memory_space<vmem>>, %arg46: memref<1x1xf32, #tpu.memory_space<vmem>>, %arg47: memref<3x1xf32, #tpu.memory_space<vmem>>) attributes {dimension_semantics = [#tpu.dimension_semantics<arbitrary>], iteration_bounds = array<i64: 1>, scalar_prefetch = 0 : i64, scratch_operands = 0 : i64, tpu.core_type = #tpu.core_type<tc>, window_params = [{pipeline_mode = #tpu.pipeline_mode<synchronous>, transform_indices = @transform_0, window_bounds = array<i64: 24, 64>}, {pipeline_mode = #tpu.pipeline_mode<synchronous>, transform_indices = @transform_1, window_bounds = array<i64: 3, 64>}, {pipeline_mode = #tpu.pipeline_mode<synchronous>, transform_indices = @transform_2, window_bounds = array<i64: 3, 96>}, {pipeline_mode = #tpu.pipeline_mode<synchronous>, transform_indices = @transform_3, window_bounds = array<i64: 8, 3, 1>}, {pipeline_mode = #tpu.pipeline_mode<synchronous>, transform_indices = @transform_4, window_bounds = array<i64: 64, 64>}, {pipeline_mode = #tpu.pipeline_mode<synchronous>, transform_indices = @transform_5, window_bounds = array<i64: 1, 64>}, {pipeline_mode = #tpu.pipeline_mode<synchronous>, transform_indices = @transform_6, window_bounds = array<i64: 64, 64>}, {pipeline_mode = #tpu.pipeline_mode<synchronous>, transform_indices = @transform_7, window_bounds = array<i64: 1, 64>}, {pipeline_mode = #tpu.pipeline_mode<synchronous>, transform_indices = @transform_8, window_bounds = array<i64: 64, 64>}, {pipeline_mode = #tpu.pipeline_mode<synchronous>, transform_indices = @transform_9, window_bounds = array<i64: 1, 64>}, {pipeline_mode = #tpu.pipeline_mode<synchronous>, transform_indices = @transform_10, window_bounds = array<i64: 64, 64>}, {pipeline_mode = #tpu.pipeline_mode<synchronous>, transform_indices = @transform_11, window_bounds = array<i64: 1, 64>}, {pipeline_mode = #tpu.pipeline_mode<synchronous>, transform_indices = @transform_12, window_bounds = array<i64: 1, 64>}, {pipeline_mode = #tpu.pipeline_mode<synchronous>, transform_indices = @transform_13, window_bounds = array<i64: 1, 64>}, {pipeline_mode = #tpu.pipeline_mode<synchronous>, transform_indices = @transform_14, window_bounds = array<i64: 64, 64>}, {pipeline_mode = #tpu.pipeline_mode<synchronous>, transform_indices = @transform_15, window_bounds = array<i64: 1, 64>}, {pipeline_mode = #tpu.pipeline_mode<synchronous>, transform_indices = @transform_16, window_bounds = array<i64: 64, 64>}, {pipeline_mode = #tpu.pipeline_mode<synchronous>, transform_indices = @transform_17, window_bounds = array<i64: 1, 64>}, {pipeline_mode = #tpu.pipeline_mode<synchronous>, transform_indices = @transform_18, window_bounds = array<i64: 1, 64>}, {pipeline_mode = #tpu.pipeline_mode<synchronous>, transform_indices = @transform_19, window_bounds = array<i64: 1, 64>}, {pipeline_mode = #tpu.pipeline_mode<synchronous>, transform_indices = @transform_20, window_bounds = array<i64: 64, 64>}, {pipeline_mode = #tpu.pipeline_mode<synchronous>, transform_indices = @transform_21, window_bounds = array<i64: 1, 64>}, {pipeline_mode = #tpu.pipeline_mode<synchronous>, transform_indices = @transform_22, window_bounds = array<i64: 64, 64>}, {pipeline_mode = #tpu.pipeline_mode<synchronous>, transform_indices = @transform_23, window_bounds = array<i64: 1, 64>}, {pipeline_mode = #tpu.pipeline_mode<synchronous>, transform_indices = @transform_24, window_bounds = array<i64: 64, 64>}, {pipeline_mode = #tpu.pipeline_mode<synchronous>, transform_indices = @transform_25, window_bounds = array<i64: 1, 64>}, {pipeline_mode = #tpu.pipeline_mode<synchronous>, transform_indices = @transform_26, window_bounds = array<i64: 64, 64>}, {pipeline_mode = #tpu.pipeline_mode<synchronous>, transform_indices = @transform_27, window_bounds = array<i64: 1, 64>}, {pipeline_mode = #tpu.pipeline_mode<synchronous>, transform_indices = @transform_28, window_bounds = array<i64: 1, 64>}, {pipeline_mode = #tpu.pipeline_mode<synchronous>, transform_indices = @transform_29, window_bounds = array<i64: 1, 64>}, {pipeline_mode = #tpu.pipeline_mode<synchronous>, transform_indices = @transform_30, window_bounds = array<i64: 64, 64>}, {pipeline_mode = #tpu.pipeline_mode<synchronous>, transform_indices = @transform_31, window_bounds = array<i64: 1, 64>}, {pipeline_mode = #tpu.pipeline_mode<synchronous>, transform_indices = @transform_32, window_bounds = array<i64: 64, 64>}, {pipeline_mode = #tpu.pipeline_mode<synchronous>, transform_indices = @transform_33, window_bounds = array<i64: 1, 64>}, {pipeline_mode = #tpu.pipeline_mode<synchronous>, transform_indices = @transform_34, window_bounds = array<i64: 1, 64>}, {pipeline_mode = #tpu.pipeline_mode<synchronous>, transform_indices = @transform_35, window_bounds = array<i64: 1, 64>}, {pipeline_mode = #tpu.pipeline_mode<synchronous>, transform_indices = @transform_36, window_bounds = array<i64: 256, 64>}, {pipeline_mode = #tpu.pipeline_mode<synchronous>, transform_indices = @transform_37, window_bounds = array<i64: 1, 64>}, {pipeline_mode = #tpu.pipeline_mode<synchronous>, transform_indices = @transform_38, window_bounds = array<i64: 1, 64>}, {pipeline_mode = #tpu.pipeline_mode<synchronous>, transform_indices = @transform_39, window_bounds = array<i64: 1, 1>}, {pipeline_mode = #tpu.pipeline_mode<synchronous>, transform_indices = @transform_40, window_bounds = array<i64: 160, 16>}, {pipeline_mode = #tpu.pipeline_mode<synchronous>, transform_indices = @transform_41, window_bounds = array<i64: 1, 16>}, {pipeline_mode = #tpu.pipeline_mode<synchronous>, transform_indices = @transform_42, window_bounds = array<i64: 16, 8>}, {pipeline_mode = #tpu.pipeline_mode<synchronous>, transform_indices = @transform_43, window_bounds = array<i64: 1, 8>}, {pipeline_mode = #tpu.pipeline_mode<synchronous>, transform_indices = @transform_44, window_bounds = array<i64: 1, 8>}, {pipeline_mode = #tpu.pipeline_mode<synchronous>, transform_indices = @transform_45, window_bounds = array<i64: 1, 1>}, {pipeline_mode = #tpu.pipeline_mode<synchronous>, transform_indices = @transform_46, window_bounds = array<i64: 3, 1>}]} {
    %c0 = arith.constant 0 : index
    %c0_0 = arith.constant 0 : index
    %0 = vector.load %arg1[%c0, %c0_0] : memref<24x64xf32, #tpu.memory_space<vmem>>, vector<24x64xf32>
    %1 = arith.truncf %0 : vector<24x64xf32> to vector<24x64xbf16>
    %c0_1 = arith.constant 0 : index
    %c0_2 = arith.constant 0 : index
    %2 = vector.load %arg5[%c0_1, %c0_2] : memref<64x64xbf16, #tpu.memory_space<vmem>>, vector<64x64xbf16>
    %cst = arith.constant dense<0.000000e+00> : vector<24x64xf32>
    %3 = tpu.matmul %1, %2, %cst {dimension_numbers = #tpu.dot_dimension_numbers<[1], [0], [0], [1], [0, 0, 1, 1], [], []>} : vector<24x64xbf16>, vector<64x64xbf16>, vector<24x64xf32> -> vector<24x64xf32>
    %c0_3 = arith.constant 0 : index
    %c0_4 = arith.constant 0 : index
    %4 = vector.load %arg6[%c0_3, %c0_4] : memref<1x64xf32, #tpu.memory_space<vmem>>, vector<1x64xf32>
    %5 = vector.broadcast %4 : vector<1x64xf32> to vector<24x64xf32>
    %6 = arith.addf %3, %5 : vector<24x64xf32>
    %7 = vector.shape_cast %6 : vector<24x64xf32> to vector<8x3x64xf32>
    %c0_5 = arith.constant 0 : index
    %c0_6 = arith.constant 0 : index
    %8 = vector.load %arg7[%c0_5, %c0_6] : memref<64x64xbf16, #tpu.memory_space<vmem>>, vector<64x64xbf16>
    %cst_7 = arith.constant dense<0.000000e+00> : vector<24x64xf32>
    %9 = tpu.matmul %1, %8, %cst_7 {dimension_numbers = #tpu.dot_dimension_numbers<[1], [0], [0], [1], [0, 0, 1, 1], [], []>} : vector<24x64xbf16>, vector<64x64xbf16>, vector<24x64xf32> -> vector<24x64xf32>
    %c0_8 = arith.constant 0 : index
    %c0_9 = arith.constant 0 : index
    %10 = vector.load %arg8[%c0_8, %c0_9] : memref<1x64xf32, #tpu.memory_space<vmem>>, vector<1x64xf32>
    %11 = vector.broadcast %10 : vector<1x64xf32> to vector<24x64xf32>
    %12 = arith.addf %9, %11 : vector<24x64xf32>
    %13 = vector.shape_cast %12 : vector<24x64xf32> to vector<8x3x64xf32>
    %c0_10 = arith.constant 0 : index
    %c0_11 = arith.constant 0 : index
    %14 = vector.load %arg9[%c0_10, %c0_11] : memref<64x64xbf16, #tpu.memory_space<vmem>>, vector<64x64xbf16>
    %cst_12 = arith.constant dense<0.000000e+00> : vector<24x64xf32>
    %15 = tpu.matmul %1, %14, %cst_12 {dimension_numbers = #tpu.dot_dimension_numbers<[1], [0], [0], [1], [0, 0, 1, 1], [], []>} : vector<24x64xbf16>, vector<64x64xbf16>, vector<24x64xf32> -> vector<24x64xf32>
    %c0_13 = arith.constant 0 : index
    %c0_14 = arith.constant 0 : index
    %16 = vector.load %arg10[%c0_13, %c0_14] : memref<1x64xf32, #tpu.memory_space<vmem>>, vector<1x64xf32>
    %17 = vector.broadcast %16 : vector<1x64xf32> to vector<24x64xf32>
    %18 = arith.addf %15, %17 : vector<24x64xf32>
    %19 = vector.shape_cast %18 : vector<24x64xf32> to vector<8x3x64xf32>
    %c0_15 = arith.constant 0 : index
    %c0_16 = arith.constant 0 : index
    %20 = vector.load %arg11[%c0_15, %c0_16] : memref<64x64xbf16, #tpu.memory_space<vmem>>, vector<64x64xbf16>
    %21 = vector.extract_strided_slice %7 {offsets = [0, 0, 0], sizes = [8, 3, 16], strides = [1, 1, 1]} : vector<8x3x64xf32> to vector<8x3x16xf32>
    %22 = arith.truncf %21 : vector<8x3x16xf32> to vector<8x3x16xbf16>
    %23 = vector.extract_strided_slice %13 {offsets = [0, 0, 0], sizes = [8, 3, 16], strides = [1, 1, 1]} : vector<8x3x64xf32> to vector<8x3x16xf32>
    %24 = arith.truncf %23 : vector<8x3x16xf32> to vector<8x3x16xbf16>
    %25 = vector.extract_strided_slice %19 {offsets = [0, 0, 0], sizes = [8, 3, 16], strides = [1, 1, 1]} : vector<8x3x64xf32> to vector<8x3x16xf32>
    %26 = arith.truncf %25 : vector<8x3x16xf32> to vector<8x3x16xbf16>
    "tpu.trace_start"() <{level = 10 : i32, message = "nid,njd->nij"}> : () -> ()
    %cst_17 = arith.constant dense<0.000000e+00> : vector<8x3x3xf32>
    %27 = tpu.matmul %22, %24, %cst_17 {dimension_numbers = #tpu.dot_dimension_numbers<[2], [2], [1], [1], [0, 0, 0, 1, 1, 1], [0], [0]>} : vector<8x3x16xbf16>, vector<8x3x16xbf16>, vector<8x3x3xf32> -> vector<8x3x3xf32>
    "tpu.trace_stop"() : () -> ()
    %cst_18 = arith.constant dense<0xFF800000> : vector<8x3xf32>
    %28 = vector.multi_reduction <maximumf>, %27, %cst_18 [2] : vector<8x3x3xf32> to vector<8x3xf32>
    %29 = vector.shape_cast %28 : vector<8x3xf32> to vector<8x3x1xf32>
    %30 = vector.broadcast %29 : vector<8x3x1xf32> to vector<8x3x3xf32>
    %31 = arith.subf %27, %30 : vector<8x3x3xf32>
    %32 = math.exp %31 : vector<8x3x3xf32>
    %cst_19 = arith.constant dense<0.000000e+00> : vector<8x3xf32>
    %33 = vector.multi_reduction <add>, %32, %cst_19 [2] : vector<8x3x3xf32> to vector<8x3xf32>
    %34 = vector.shape_cast %33 : vector<8x3xf32> to vector<8x3x1xf32>
    %35 = tpu.reciprocal %34 {approx = true} : vector<8x3x1xf32> -> vector<8x3x1xf32>
    %36 = vector.broadcast %35 : vector<8x3x1xf32> to vector<8x3x3xf32>
    %37 = arith.mulf %32, %36 : vector<8x3x3xf32>
    %38 = arith.truncf %37 : vector<8x3x3xf32> to vector<8x3x3xbf16>
    "tpu.trace_start"() <{level = 10 : i32, message = "nij,njd->nid"}> : () -> ()
    %cst_20 = arith.constant dense<0.000000e+00> : vector<8x3x16xf32>
    %39 = tpu.matmul %38, %26, %cst_20 {dimension_numbers = #tpu.dot_dimension_numbers<[2], [1], [1], [2], [0, 0, 0, 1, 1, 2], [0], [0]>} : vector<8x3x3xbf16>, vector<8x3x16xbf16>, vector<8x3x16xf32> -> vector<8x3x16xf32>
    "tpu.trace_stop"() : () -> ()
    %40 = vector.shape_cast %39 : vector<8x3x16xf32> to vector<24x16xf32>
    %41 = arith.truncf %40 : vector<24x16xf32> to vector<24x16xbf16>
    %42 = vector.extract_strided_slice %20 {offsets = [0, 0], sizes = [16, 64], strides = [1, 1]} : vector<64x64xbf16> to vector<16x64xbf16>
    %cst_21 = arith.constant dense<0.000000e+00> : vector<24x64xf32>
    %43 = tpu.matmul %41, %42, %cst_21 {dimension_numbers = #tpu.dot_dimension_numbers<[1], [0], [0], [1], [0, 0, 1, 1], [], []>} : vector<24x16xbf16>, vector<16x64xbf16>, vector<24x64xf32> -> vector<24x64xf32>
    %44 = vector.extract_strided_slice %7 {offsets = [0, 0, 16], sizes = [8, 3, 16], strides = [1, 1, 1]} : vector<8x3x64xf32> to vector<8x3x16xf32>
    %45 = arith.truncf %44 : vector<8x3x16xf32> to vector<8x3x16xbf16>
    %46 = vector.extract_strided_slice %13 {offsets = [0, 0, 16], sizes = [8, 3, 16], strides = [1, 1, 1]} : vector<8x3x64xf32> to vector<8x3x16xf32>
    %47 = arith.truncf %46 : vector<8x3x16xf32> to vector<8x3x16xbf16>
    %48 = vector.extract_strided_slice %19 {offsets = [0, 0, 16], sizes = [8, 3, 16], strides = [1, 1, 1]} : vector<8x3x64xf32> to vector<8x3x16xf32>
    %49 = arith.truncf %48 : vector<8x3x16xf32> to vector<8x3x16xbf16>
    "tpu.trace_start"() <{level = 10 : i32, message = "nid,njd->nij"}> : () -> ()
    %cst_22 = arith.constant dense<0.000000e+00> : vector<8x3x3xf32>
    %50 = tpu.matmul %45, %47, %cst_22 {dimension_numbers = #tpu.dot_dimension_numbers<[2], [2], [1], [1], [0, 0, 0, 1, 1, 1], [0], [0]>} : vector<8x3x16xbf16>, vector<8x3x16xbf16>, vector<8x3x3xf32> -> vector<8x3x3xf32>
    "tpu.trace_stop"() : () -> ()
    %cst_23 = arith.constant dense<0xFF800000> : vector<8x3xf32>
    %51 = vector.multi_reduction <maximumf>, %50, %cst_23 [2] : vector<8x3x3xf32> to vector<8x3xf32>
    %52 = vector.shape_cast %51 : vector<8x3xf32> to vector<8x3x1xf32>
    %53 = vector.broadcast %52 : vector<8x3x1xf32> to vector<8x3x3xf32>
    %54 = arith.subf %50, %53 : vector<8x3x3xf32>
    %55 = math.exp %54 : vector<8x3x3xf32>
    %cst_24 = arith.constant dense<0.000000e+00> : vector<8x3xf32>
    %56 = vector.multi_reduction <add>, %55, %cst_24 [2] : vector<8x3x3xf32> to vector<8x3xf32>
    %57 = vector.shape_cast %56 : vector<8x3xf32> to vector<8x3x1xf32>
    %58 = tpu.reciprocal %57 {approx = true} : vector<8x3x1xf32> -> vector<8x3x1xf32>
    %59 = vector.broadcast %58 : vector<8x3x1xf32> to vector<8x3x3xf32>
    %60 = arith.mulf %55, %59 : vector<8x3x3xf32>
    %61 = arith.truncf %60 : vector<8x3x3xf32> to vector<8x3x3xbf16>
    "tpu.trace_start"() <{level = 10 : i32, message = "nij,njd->nid"}> : () -> ()
    %cst_25 = arith.constant dense<0.000000e+00> : vector<8x3x16xf32>
    %62 = tpu.matmul %61, %49, %cst_25 {dimension_numbers = #tpu.dot_dimension_numbers<[2], [1], [1], [2], [0, 0, 0, 1, 1, 2], [0], [0]>} : vector<8x3x3xbf16>, vector<8x3x16xbf16>, vector<8x3x16xf32> -> vector<8x3x16xf32>
    "tpu.trace_stop"() : () -> ()
    %63 = vector.shape_cast %62 : vector<8x3x16xf32> to vector<24x16xf32>
    %64 = arith.truncf %63 : vector<24x16xf32> to vector<24x16xbf16>
    %65 = vector.extract_strided_slice %20 {offsets = [16, 0], sizes = [16, 64], strides = [1, 1]} : vector<64x64xbf16> to vector<16x64xbf16>
    %cst_26 = arith.constant dense<0.000000e+00> : vector<24x64xf32>
    %66 = tpu.matmul %64, %65, %cst_26 {dimension_numbers = #tpu.dot_dimension_numbers<[1], [0], [0], [1], [0, 0, 1, 1], [], []>} : vector<24x16xbf16>, vector<16x64xbf16>, vector<24x64xf32> -> vector<24x64xf32>
    %67 = arith.addf %43, %66 : vector<24x64xf32>
    %68 = vector.extract_strided_slice %7 {offsets = [0, 0, 32], sizes = [8, 3, 16], strides = [1, 1, 1]} : vector<8x3x64xf32> to vector<8x3x16xf32>
    %69 = arith.truncf %68 : vector<8x3x16xf32> to vector<8x3x16xbf16>
    %70 = vector.extract_strided_slice %13 {offsets = [0, 0, 32], sizes = [8, 3, 16], strides = [1, 1, 1]} : vector<8x3x64xf32> to vector<8x3x16xf32>
    %71 = arith.truncf %70 : vector<8x3x16xf32> to vector<8x3x16xbf16>
    %72 = vector.extract_strided_slice %19 {offsets = [0, 0, 32], sizes = [8, 3, 16], strides = [1, 1, 1]} : vector<8x3x64xf32> to vector<8x3x16xf32>
    %73 = arith.truncf %72 : vector<8x3x16xf32> to vector<8x3x16xbf16>
    "tpu.trace_start"() <{level = 10 : i32, message = "nid,njd->nij"}> : () -> ()
    %cst_27 = arith.constant dense<0.000000e+00> : vector<8x3x3xf32>
    %74 = tpu.matmul %69, %71, %cst_27 {dimension_numbers = #tpu.dot_dimension_numbers<[2], [2], [1], [1], [0, 0, 0, 1, 1, 1], [0], [0]>} : vector<8x3x16xbf16>, vector<8x3x16xbf16>, vector<8x3x3xf32> -> vector<8x3x3xf32>
    "tpu.trace_stop"() : () -> ()
    %cst_28 = arith.constant dense<0xFF800000> : vector<8x3xf32>
    %75 = vector.multi_reduction <maximumf>, %74, %cst_28 [2] : vector<8x3x3xf32> to vector<8x3xf32>
    %76 = vector.shape_cast %75 : vector<8x3xf32> to vector<8x3x1xf32>
    %77 = vector.broadcast %76 : vector<8x3x1xf32> to vector<8x3x3xf32>
    %78 = arith.subf %74, %77 : vector<8x3x3xf32>
    %79 = math.exp %78 : vector<8x3x3xf32>
    %cst_29 = arith.constant dense<0.000000e+00> : vector<8x3xf32>
    %80 = vector.multi_reduction <add>, %79, %cst_29 [2] : vector<8x3x3xf32> to vector<8x3xf32>
    %81 = vector.shape_cast %80 : vector<8x3xf32> to vector<8x3x1xf32>
    %82 = tpu.reciprocal %81 {approx = true} : vector<8x3x1xf32> -> vector<8x3x1xf32>
    %83 = vector.broadcast %82 : vector<8x3x1xf32> to vector<8x3x3xf32>
    %84 = arith.mulf %79, %83 : vector<8x3x3xf32>
    %85 = arith.truncf %84 : vector<8x3x3xf32> to vector<8x3x3xbf16>
    "tpu.trace_start"() <{level = 10 : i32, message = "nij,njd->nid"}> : () -> ()
    %cst_30 = arith.constant dense<0.000000e+00> : vector<8x3x16xf32>
    %86 = tpu.matmul %85, %73, %cst_30 {dimension_numbers = #tpu.dot_dimension_numbers<[2], [1], [1], [2], [0, 0, 0, 1, 1, 2], [0], [0]>} : vector<8x3x3xbf16>, vector<8x3x16xbf16>, vector<8x3x16xf32> -> vector<8x3x16xf32>
    "tpu.trace_stop"() : () -> ()
    %87 = vector.shape_cast %86 : vector<8x3x16xf32> to vector<24x16xf32>
    %88 = arith.truncf %87 : vector<24x16xf32> to vector<24x16xbf16>
    %89 = vector.extract_strided_slice %20 {offsets = [32, 0], sizes = [16, 64], strides = [1, 1]} : vector<64x64xbf16> to vector<16x64xbf16>
    %cst_31 = arith.constant dense<0.000000e+00> : vector<24x64xf32>
    %90 = tpu.matmul %88, %89, %cst_31 {dimension_numbers = #tpu.dot_dimension_numbers<[1], [0], [0], [1], [0, 0, 1, 1], [], []>} : vector<24x16xbf16>, vector<16x64xbf16>, vector<24x64xf32> -> vector<24x64xf32>
    %91 = arith.addf %67, %90 : vector<24x64xf32>
    %92 = vector.extract_strided_slice %7 {offsets = [0, 0, 48], sizes = [8, 3, 16], strides = [1, 1, 1]} : vector<8x3x64xf32> to vector<8x3x16xf32>
    %93 = arith.truncf %92 : vector<8x3x16xf32> to vector<8x3x16xbf16>
    %94 = vector.extract_strided_slice %13 {offsets = [0, 0, 48], sizes = [8, 3, 16], strides = [1, 1, 1]} : vector<8x3x64xf32> to vector<8x3x16xf32>
    %95 = arith.truncf %94 : vector<8x3x16xf32> to vector<8x3x16xbf16>
    %96 = vector.extract_strided_slice %19 {offsets = [0, 0, 48], sizes = [8, 3, 16], strides = [1, 1, 1]} : vector<8x3x64xf32> to vector<8x3x16xf32>
    %97 = arith.truncf %96 : vector<8x3x16xf32> to vector<8x3x16xbf16>
    "tpu.trace_start"() <{level = 10 : i32, message = "nid,njd->nij"}> : () -> ()
    %cst_32 = arith.constant dense<0.000000e+00> : vector<8x3x3xf32>
    %98 = tpu.matmul %93, %95, %cst_32 {dimension_numbers = #tpu.dot_dimension_numbers<[2], [2], [1], [1], [0, 0, 0, 1, 1, 1], [0], [0]>} : vector<8x3x16xbf16>, vector<8x3x16xbf16>, vector<8x3x3xf32> -> vector<8x3x3xf32>
    "tpu.trace_stop"() : () -> ()
    %cst_33 = arith.constant dense<0xFF800000> : vector<8x3xf32>
    %99 = vector.multi_reduction <maximumf>, %98, %cst_33 [2] : vector<8x3x3xf32> to vector<8x3xf32>
    %100 = vector.shape_cast %99 : vector<8x3xf32> to vector<8x3x1xf32>
    %101 = vector.broadcast %100 : vector<8x3x1xf32> to vector<8x3x3xf32>
    %102 = arith.subf %98, %101 : vector<8x3x3xf32>
    %103 = math.exp %102 : vector<8x3x3xf32>
    %cst_34 = arith.constant dense<0.000000e+00> : vector<8x3xf32>
    %104 = vector.multi_reduction <add>, %103, %cst_34 [2] : vector<8x3x3xf32> to vector<8x3xf32>
    %105 = vector.shape_cast %104 : vector<8x3xf32> to vector<8x3x1xf32>
    %106 = tpu.reciprocal %105 {approx = true} : vector<8x3x1xf32> -> vector<8x3x1xf32>
    %107 = vector.broadcast %106 : vector<8x3x1xf32> to vector<8x3x3xf32>
    %108 = arith.mulf %103, %107 : vector<8x3x3xf32>
    %109 = arith.truncf %108 : vector<8x3x3xf32> to vector<8x3x3xbf16>
    "tpu.trace_start"() <{level = 10 : i32, message = "nij,njd->nid"}> : () -> ()
    %cst_35 = arith.constant dense<0.000000e+00> : vector<8x3x16xf32>
    %110 = tpu.matmul %109, %97, %cst_35 {dimension_numbers = #tpu.dot_dimension_numbers<[2], [1], [1], [2], [0, 0, 0, 1, 1, 2], [0], [0]>} : vector<8x3x3xbf16>, vector<8x3x16xbf16>, vector<8x3x16xf32> -> vector<8x3x16xf32>
    "tpu.trace_stop"() : () -> ()
    %111 = vector.shape_cast %110 : vector<8x3x16xf32> to vector<24x16xf32>
    %112 = arith.truncf %111 : vector<24x16xf32> to vector<24x16xbf16>
    %113 = vector.extract_strided_slice %20 {offsets = [48, 0], sizes = [16, 64], strides = [1, 1]} : vector<64x64xbf16> to vector<16x64xbf16>
    %cst_36 = arith.constant dense<0.000000e+00> : vector<24x64xf32>
    %114 = tpu.matmul %112, %113, %cst_36 {dimension_numbers = #tpu.dot_dimension_numbers<[1], [0], [0], [1], [0, 0, 1, 1], [], []>} : vector<24x16xbf16>, vector<16x64xbf16>, vector<24x64xf32> -> vector<24x64xf32>
    %115 = arith.addf %91, %114 : vector<24x64xf32>
    %c0_37 = arith.constant 0 : index
    %c0_38 = arith.constant 0 : index
    %116 = vector.load %arg12[%c0_37, %c0_38] : memref<1x64xf32, #tpu.memory_space<vmem>>, vector<1x64xf32>
    %117 = vector.broadcast %116 : vector<1x64xf32> to vector<24x64xf32>
    %118 = arith.addf %115, %117 : vector<24x64xf32>
    %119 = arith.addf %0, %118 : vector<24x64xf32>
    %cst_39 = arith.constant dense<0.000000e+00> : vector<24xf32>
    %120 = vector.multi_reduction <add>, %119, %cst_39 [1] : vector<24x64xf32> to vector<24xf32>
    %121 = vector.shape_cast %120 : vector<24xf32> to vector<24x1xf32>
    %cst_40 = arith.constant 6.400000e+01 : f32
    %122 = vector.broadcast %cst_40 : f32 to vector<24x1xf32>
    %123 = arith.divf %121, %122 : vector<24x1xf32>
    %124 = vector.broadcast %123 : vector<24x1xf32> to vector<24x64xf32>
    %125 = arith.subf %119, %124 : vector<24x64xf32>
    %126 = arith.mulf %125, %125 : vector<24x64xf32>
    %cst_41 = arith.constant dense<0.000000e+00> : vector<24xf32>
    %127 = vector.multi_reduction <add>, %126, %cst_41 [1] : vector<24x64xf32> to vector<24xf32>
    %128 = vector.shape_cast %127 : vector<24xf32> to vector<24x1xf32>
    %cst_42 = arith.constant 6.400000e+01 : f32
    %129 = vector.broadcast %cst_42 : f32 to vector<24x1xf32>
    %130 = arith.divf %128, %129 : vector<24x1xf32>
    %cst_43 = arith.constant 9.99999974E-6 : f32
    %131 = vector.broadcast %cst_43 : f32 to vector<24x1xf32>
    %132 = arith.addf %130, %131 : vector<24x1xf32>
    %133 = math.rsqrt %132 : vector<24x1xf32>
    %134 = vector.broadcast %133 : vector<24x1xf32> to vector<24x64xf32>
    %135 = arith.mulf %125, %134 : vector<24x64xf32>
    %c0_44 = arith.constant 0 : index
    %c0_45 = arith.constant 0 : index
    %136 = vector.load %arg13[%c0_44, %c0_45] : memref<1x64xf32, #tpu.memory_space<vmem>>, vector<1x64xf32>
    %137 = vector.broadcast %136 : vector<1x64xf32> to vector<24x64xf32>
    %138 = arith.mulf %135, %137 : vector<24x64xf32>
    %c0_46 = arith.constant 0 : index
    %c0_47 = arith.constant 0 : index
    %139 = vector.load %arg14[%c0_46, %c0_47] : memref<1x64xf32, #tpu.memory_space<vmem>>, vector<1x64xf32>
    %140 = vector.broadcast %139 : vector<1x64xf32> to vector<24x64xf32>
    %141 = arith.addf %138, %140 : vector<24x64xf32>
    %142 = arith.truncf %141 : vector<24x64xf32> to vector<24x64xbf16>
    %c0_48 = arith.constant 0 : index
    %c0_49 = arith.constant 0 : index
    %143 = vector.load %arg15[%c0_48, %c0_49] : memref<64x64xbf16, #tpu.memory_space<vmem>>, vector<64x64xbf16>
    %cst_50 = arith.constant dense<0.000000e+00> : vector<24x64xf32>
    %144 = tpu.matmul %142, %143, %cst_50 {dimension_numbers = #tpu.dot_dimension_numbers<[1], [0], [0], [1], [0, 0, 1, 1], [], []>} : vector<24x64xbf16>, vector<64x64xbf16>, vector<24x64xf32> -> vector<24x64xf32>
    %c0_51 = arith.constant 0 : index
    %c0_52 = arith.constant 0 : index
    %145 = vector.load %arg16[%c0_51, %c0_52] : memref<1x64xf32, #tpu.memory_space<vmem>>, vector<1x64xf32>
    %146 = vector.broadcast %145 : vector<1x64xf32> to vector<24x64xf32>
    %147 = arith.addf %144, %146 : vector<24x64xf32>
    %cst_53 = arith.constant 0.000000e+00 : f32
    %148 = vector.broadcast %cst_53 : f32 to vector<24x64xf32>
    %149 = arith.maximumf %147, %148 : vector<24x64xf32>
    %150 = arith.truncf %149 : vector<24x64xf32> to vector<24x64xbf16>
    %c0_54 = arith.constant 0 : index
    %c0_55 = arith.constant 0 : index
    %151 = vector.load %arg17[%c0_54, %c0_55] : memref<64x64xbf16, #tpu.memory_space<vmem>>, vector<64x64xbf16>
    %cst_56 = arith.constant dense<0.000000e+00> : vector<24x64xf32>
    %152 = tpu.matmul %150, %151, %cst_56 {dimension_numbers = #tpu.dot_dimension_numbers<[1], [0], [0], [1], [0, 0, 1, 1], [], []>} : vector<24x64xbf16>, vector<64x64xbf16>, vector<24x64xf32> -> vector<24x64xf32>
    %c0_57 = arith.constant 0 : index
    %c0_58 = arith.constant 0 : index
    %153 = vector.load %arg18[%c0_57, %c0_58] : memref<1x64xf32, #tpu.memory_space<vmem>>, vector<1x64xf32>
    %154 = vector.broadcast %153 : vector<1x64xf32> to vector<24x64xf32>
    %155 = arith.addf %152, %154 : vector<24x64xf32>
    %156 = arith.addf %141, %155 : vector<24x64xf32>
    %cst_59 = arith.constant dense<0.000000e+00> : vector<24xf32>
    %157 = vector.multi_reduction <add>, %156, %cst_59 [1] : vector<24x64xf32> to vector<24xf32>
    %158 = vector.shape_cast %157 : vector<24xf32> to vector<24x1xf32>
    %cst_60 = arith.constant 6.400000e+01 : f32
    %159 = vector.broadcast %cst_60 : f32 to vector<24x1xf32>
    %160 = arith.divf %158, %159 : vector<24x1xf32>
    %161 = vector.broadcast %160 : vector<24x1xf32> to vector<24x64xf32>
    %162 = arith.subf %156, %161 : vector<24x64xf32>
    %163 = arith.mulf %162, %162 : vector<24x64xf32>
    %cst_61 = arith.constant dense<0.000000e+00> : vector<24xf32>
    %164 = vector.multi_reduction <add>, %163, %cst_61 [1] : vector<24x64xf32> to vector<24xf32>
    %165 = vector.shape_cast %164 : vector<24xf32> to vector<24x1xf32>
    %cst_62 = arith.constant 6.400000e+01 : f32
    %166 = vector.broadcast %cst_62 : f32 to vector<24x1xf32>
    %167 = arith.divf %165, %166 : vector<24x1xf32>
    %cst_63 = arith.constant 9.99999974E-6 : f32
    %168 = vector.broadcast %cst_63 : f32 to vector<24x1xf32>
    %169 = arith.addf %167, %168 : vector<24x1xf32>
    %170 = math.rsqrt %169 : vector<24x1xf32>
    %171 = vector.broadcast %170 : vector<24x1xf32> to vector<24x64xf32>
    %172 = arith.mulf %162, %171 : vector<24x64xf32>
    %c0_64 = arith.constant 0 : index
    %c0_65 = arith.constant 0 : index
    %173 = vector.load %arg19[%c0_64, %c0_65] : memref<1x64xf32, #tpu.memory_space<vmem>>, vector<1x64xf32>
    %174 = vector.broadcast %173 : vector<1x64xf32> to vector<24x64xf32>
    %175 = arith.mulf %172, %174 : vector<24x64xf32>
    %c0_66 = arith.constant 0 : index
    %c0_67 = arith.constant 0 : index
    %176 = vector.load %arg20[%c0_66, %c0_67] : memref<1x64xf32, #tpu.memory_space<vmem>>, vector<1x64xf32>
    %177 = vector.broadcast %176 : vector<1x64xf32> to vector<24x64xf32>
    %178 = arith.addf %175, %177 : vector<24x64xf32>
    %179 = arith.truncf %178 : vector<24x64xf32> to vector<24x64xbf16>
    %c0_68 = arith.constant 0 : index
    %c0_69 = arith.constant 0 : index
    %180 = vector.load %arg21[%c0_68, %c0_69] : memref<64x64xbf16, #tpu.memory_space<vmem>>, vector<64x64xbf16>
    %cst_70 = arith.constant dense<0.000000e+00> : vector<24x64xf32>
    %181 = tpu.matmul %179, %180, %cst_70 {dimension_numbers = #tpu.dot_dimension_numbers<[1], [0], [0], [1], [0, 0, 1, 1], [], []>} : vector<24x64xbf16>, vector<64x64xbf16>, vector<24x64xf32> -> vector<24x64xf32>
    %c0_71 = arith.constant 0 : index
    %c0_72 = arith.constant 0 : index
    %182 = vector.load %arg22[%c0_71, %c0_72] : memref<1x64xf32, #tpu.memory_space<vmem>>, vector<1x64xf32>
    %183 = vector.broadcast %182 : vector<1x64xf32> to vector<24x64xf32>
    %184 = arith.addf %181, %183 : vector<24x64xf32>
    %185 = vector.shape_cast %184 : vector<24x64xf32> to vector<8x3x64xf32>
    %c0_73 = arith.constant 0 : index
    %c0_74 = arith.constant 0 : index
    %186 = vector.load %arg23[%c0_73, %c0_74] : memref<64x64xbf16, #tpu.memory_space<vmem>>, vector<64x64xbf16>
    %cst_75 = arith.constant dense<0.000000e+00> : vector<24x64xf32>
    %187 = tpu.matmul %179, %186, %cst_75 {dimension_numbers = #tpu.dot_dimension_numbers<[1], [0], [0], [1], [0, 0, 1, 1], [], []>} : vector<24x64xbf16>, vector<64x64xbf16>, vector<24x64xf32> -> vector<24x64xf32>
    %c0_76 = arith.constant 0 : index
    %c0_77 = arith.constant 0 : index
    %188 = vector.load %arg24[%c0_76, %c0_77] : memref<1x64xf32, #tpu.memory_space<vmem>>, vector<1x64xf32>
    %189 = vector.broadcast %188 : vector<1x64xf32> to vector<24x64xf32>
    %190 = arith.addf %187, %189 : vector<24x64xf32>
    %191 = vector.shape_cast %190 : vector<24x64xf32> to vector<8x3x64xf32>
    %c0_78 = arith.constant 0 : index
    %c0_79 = arith.constant 0 : index
    %192 = vector.load %arg25[%c0_78, %c0_79] : memref<64x64xbf16, #tpu.memory_space<vmem>>, vector<64x64xbf16>
    %cst_80 = arith.constant dense<0.000000e+00> : vector<24x64xf32>
    %193 = tpu.matmul %179, %192, %cst_80 {dimension_numbers = #tpu.dot_dimension_numbers<[1], [0], [0], [1], [0, 0, 1, 1], [], []>} : vector<24x64xbf16>, vector<64x64xbf16>, vector<24x64xf32> -> vector<24x64xf32>
    %c0_81 = arith.constant 0 : index
    %c0_82 = arith.constant 0 : index
    %194 = vector.load %arg26[%c0_81, %c0_82] : memref<1x64xf32, #tpu.memory_space<vmem>>, vector<1x64xf32>
    %195 = vector.broadcast %194 : vector<1x64xf32> to vector<24x64xf32>
    %196 = arith.addf %193, %195 : vector<24x64xf32>
    %197 = vector.shape_cast %196 : vector<24x64xf32> to vector<8x3x64xf32>
    %c0_83 = arith.constant 0 : index
    %c0_84 = arith.constant 0 : index
    %198 = vector.load %arg27[%c0_83, %c0_84] : memref<64x64xbf16, #tpu.memory_space<vmem>>, vector<64x64xbf16>
    %199 = vector.extract_strided_slice %185 {offsets = [0, 0, 0], sizes = [8, 3, 16], strides = [1, 1, 1]} : vector<8x3x64xf32> to vector<8x3x16xf32>
    %200 = arith.truncf %199 : vector<8x3x16xf32> to vector<8x3x16xbf16>
    %201 = vector.extract_strided_slice %191 {offsets = [0, 0, 0], sizes = [8, 3, 16], strides = [1, 1, 1]} : vector<8x3x64xf32> to vector<8x3x16xf32>
    %202 = arith.truncf %201 : vector<8x3x16xf32> to vector<8x3x16xbf16>
    %203 = vector.extract_strided_slice %197 {offsets = [0, 0, 0], sizes = [8, 3, 16], strides = [1, 1, 1]} : vector<8x3x64xf32> to vector<8x3x16xf32>
    %204 = arith.truncf %203 : vector<8x3x16xf32> to vector<8x3x16xbf16>
    "tpu.trace_start"() <{level = 10 : i32, message = "nid,njd->nij"}> : () -> ()
    %cst_85 = arith.constant dense<0.000000e+00> : vector<8x3x3xf32>
    %205 = tpu.matmul %200, %202, %cst_85 {dimension_numbers = #tpu.dot_dimension_numbers<[2], [2], [1], [1], [0, 0, 0, 1, 1, 1], [0], [0]>} : vector<8x3x16xbf16>, vector<8x3x16xbf16>, vector<8x3x3xf32> -> vector<8x3x3xf32>
    "tpu.trace_stop"() : () -> ()
    %cst_86 = arith.constant dense<0xFF800000> : vector<8x3xf32>
    %206 = vector.multi_reduction <maximumf>, %205, %cst_86 [2] : vector<8x3x3xf32> to vector<8x3xf32>
    %207 = vector.shape_cast %206 : vector<8x3xf32> to vector<8x3x1xf32>
    %208 = vector.broadcast %207 : vector<8x3x1xf32> to vector<8x3x3xf32>
    %209 = arith.subf %205, %208 : vector<8x3x3xf32>
    %210 = math.exp %209 : vector<8x3x3xf32>
    %cst_87 = arith.constant dense<0.000000e+00> : vector<8x3xf32>
    %211 = vector.multi_reduction <add>, %210, %cst_87 [2] : vector<8x3x3xf32> to vector<8x3xf32>
    %212 = vector.shape_cast %211 : vector<8x3xf32> to vector<8x3x1xf32>
    %213 = tpu.reciprocal %212 {approx = true} : vector<8x3x1xf32> -> vector<8x3x1xf32>
    %214 = vector.broadcast %213 : vector<8x3x1xf32> to vector<8x3x3xf32>
    %215 = arith.mulf %210, %214 : vector<8x3x3xf32>
    %216 = arith.truncf %215 : vector<8x3x3xf32> to vector<8x3x3xbf16>
    "tpu.trace_start"() <{level = 10 : i32, message = "nij,njd->nid"}> : () -> ()
    %cst_88 = arith.constant dense<0.000000e+00> : vector<8x3x16xf32>
    %217 = tpu.matmul %216, %204, %cst_88 {dimension_numbers = #tpu.dot_dimension_numbers<[2], [1], [1], [2], [0, 0, 0, 1, 1, 2], [0], [0]>} : vector<8x3x3xbf16>, vector<8x3x16xbf16>, vector<8x3x16xf32> -> vector<8x3x16xf32>
    "tpu.trace_stop"() : () -> ()
    %218 = vector.shape_cast %217 : vector<8x3x16xf32> to vector<24x16xf32>
    %219 = arith.truncf %218 : vector<24x16xf32> to vector<24x16xbf16>
    %220 = vector.extract_strided_slice %198 {offsets = [0, 0], sizes = [16, 64], strides = [1, 1]} : vector<64x64xbf16> to vector<16x64xbf16>
    %cst_89 = arith.constant dense<0.000000e+00> : vector<24x64xf32>
    %221 = tpu.matmul %219, %220, %cst_89 {dimension_numbers = #tpu.dot_dimension_numbers<[1], [0], [0], [1], [0, 0, 1, 1], [], []>} : vector<24x16xbf16>, vector<16x64xbf16>, vector<24x64xf32> -> vector<24x64xf32>
    %222 = vector.extract_strided_slice %185 {offsets = [0, 0, 16], sizes = [8, 3, 16], strides = [1, 1, 1]} : vector<8x3x64xf32> to vector<8x3x16xf32>
    %223 = arith.truncf %222 : vector<8x3x16xf32> to vector<8x3x16xbf16>
    %224 = vector.extract_strided_slice %191 {offsets = [0, 0, 16], sizes = [8, 3, 16], strides = [1, 1, 1]} : vector<8x3x64xf32> to vector<8x3x16xf32>
    %225 = arith.truncf %224 : vector<8x3x16xf32> to vector<8x3x16xbf16>
    %226 = vector.extract_strided_slice %197 {offsets = [0, 0, 16], sizes = [8, 3, 16], strides = [1, 1, 1]} : vector<8x3x64xf32> to vector<8x3x16xf32>
    %227 = arith.truncf %226 : vector<8x3x16xf32> to vector<8x3x16xbf16>
    "tpu.trace_start"() <{level = 10 : i32, message = "nid,njd->nij"}> : () -> ()
    %cst_90 = arith.constant dense<0.000000e+00> : vector<8x3x3xf32>
    %228 = tpu.matmul %223, %225, %cst_90 {dimension_numbers = #tpu.dot_dimension_numbers<[2], [2], [1], [1], [0, 0, 0, 1, 1, 1], [0], [0]>} : vector<8x3x16xbf16>, vector<8x3x16xbf16>, vector<8x3x3xf32> -> vector<8x3x3xf32>
    "tpu.trace_stop"() : () -> ()
    %cst_91 = arith.constant dense<0xFF800000> : vector<8x3xf32>
    %229 = vector.multi_reduction <maximumf>, %228, %cst_91 [2] : vector<8x3x3xf32> to vector<8x3xf32>
    %230 = vector.shape_cast %229 : vector<8x3xf32> to vector<8x3x1xf32>
    %231 = vector.broadcast %230 : vector<8x3x1xf32> to vector<8x3x3xf32>
    %232 = arith.subf %228, %231 : vector<8x3x3xf32>
    %233 = math.exp %232 : vector<8x3x3xf32>
    %cst_92 = arith.constant dense<0.000000e+00> : vector<8x3xf32>
    %234 = vector.multi_reduction <add>, %233, %cst_92 [2] : vector<8x3x3xf32> to vector<8x3xf32>
    %235 = vector.shape_cast %234 : vector<8x3xf32> to vector<8x3x1xf32>
    %236 = tpu.reciprocal %235 {approx = true} : vector<8x3x1xf32> -> vector<8x3x1xf32>
    %237 = vector.broadcast %236 : vector<8x3x1xf32> to vector<8x3x3xf32>
    %238 = arith.mulf %233, %237 : vector<8x3x3xf32>
    %239 = arith.truncf %238 : vector<8x3x3xf32> to vector<8x3x3xbf16>
    "tpu.trace_start"() <{level = 10 : i32, message = "nij,njd->nid"}> : () -> ()
    %cst_93 = arith.constant dense<0.000000e+00> : vector<8x3x16xf32>
    %240 = tpu.matmul %239, %227, %cst_93 {dimension_numbers = #tpu.dot_dimension_numbers<[2], [1], [1], [2], [0, 0, 0, 1, 1, 2], [0], [0]>} : vector<8x3x3xbf16>, vector<8x3x16xbf16>, vector<8x3x16xf32> -> vector<8x3x16xf32>
    "tpu.trace_stop"() : () -> ()
    %241 = vector.shape_cast %240 : vector<8x3x16xf32> to vector<24x16xf32>
    %242 = arith.truncf %241 : vector<24x16xf32> to vector<24x16xbf16>
    %243 = vector.extract_strided_slice %198 {offsets = [16, 0], sizes = [16, 64], strides = [1, 1]} : vector<64x64xbf16> to vector<16x64xbf16>
    %cst_94 = arith.constant dense<0.000000e+00> : vector<24x64xf32>
    %244 = tpu.matmul %242, %243, %cst_94 {dimension_numbers = #tpu.dot_dimension_numbers<[1], [0], [0], [1], [0, 0, 1, 1], [], []>} : vector<24x16xbf16>, vector<16x64xbf16>, vector<24x64xf32> -> vector<24x64xf32>
    %245 = arith.addf %221, %244 : vector<24x64xf32>
    %246 = vector.extract_strided_slice %185 {offsets = [0, 0, 32], sizes = [8, 3, 16], strides = [1, 1, 1]} : vector<8x3x64xf32> to vector<8x3x16xf32>
    %247 = arith.truncf %246 : vector<8x3x16xf32> to vector<8x3x16xbf16>
    %248 = vector.extract_strided_slice %191 {offsets = [0, 0, 32], sizes = [8, 3, 16], strides = [1, 1, 1]} : vector<8x3x64xf32> to vector<8x3x16xf32>
    %249 = arith.truncf %248 : vector<8x3x16xf32> to vector<8x3x16xbf16>
    %250 = vector.extract_strided_slice %197 {offsets = [0, 0, 32], sizes = [8, 3, 16], strides = [1, 1, 1]} : vector<8x3x64xf32> to vector<8x3x16xf32>
    %251 = arith.truncf %250 : vector<8x3x16xf32> to vector<8x3x16xbf16>
    "tpu.trace_start"() <{level = 10 : i32, message = "nid,njd->nij"}> : () -> ()
    %cst_95 = arith.constant dense<0.000000e+00> : vector<8x3x3xf32>
    %252 = tpu.matmul %247, %249, %cst_95 {dimension_numbers = #tpu.dot_dimension_numbers<[2], [2], [1], [1], [0, 0, 0, 1, 1, 1], [0], [0]>} : vector<8x3x16xbf16>, vector<8x3x16xbf16>, vector<8x3x3xf32> -> vector<8x3x3xf32>
    "tpu.trace_stop"() : () -> ()
    %cst_96 = arith.constant dense<0xFF800000> : vector<8x3xf32>
    %253 = vector.multi_reduction <maximumf>, %252, %cst_96 [2] : vector<8x3x3xf32> to vector<8x3xf32>
    %254 = vector.shape_cast %253 : vector<8x3xf32> to vector<8x3x1xf32>
    %255 = vector.broadcast %254 : vector<8x3x1xf32> to vector<8x3x3xf32>
    %256 = arith.subf %252, %255 : vector<8x3x3xf32>
    %257 = math.exp %256 : vector<8x3x3xf32>
    %cst_97 = arith.constant dense<0.000000e+00> : vector<8x3xf32>
    %258 = vector.multi_reduction <add>, %257, %cst_97 [2] : vector<8x3x3xf32> to vector<8x3xf32>
    %259 = vector.shape_cast %258 : vector<8x3xf32> to vector<8x3x1xf32>
    %260 = tpu.reciprocal %259 {approx = true} : vector<8x3x1xf32> -> vector<8x3x1xf32>
    %261 = vector.broadcast %260 : vector<8x3x1xf32> to vector<8x3x3xf32>
    %262 = arith.mulf %257, %261 : vector<8x3x3xf32>
    %263 = arith.truncf %262 : vector<8x3x3xf32> to vector<8x3x3xbf16>
    "tpu.trace_start"() <{level = 10 : i32, message = "nij,njd->nid"}> : () -> ()
    %cst_98 = arith.constant dense<0.000000e+00> : vector<8x3x16xf32>
    %264 = tpu.matmul %263, %251, %cst_98 {dimension_numbers = #tpu.dot_dimension_numbers<[2], [1], [1], [2], [0, 0, 0, 1, 1, 2], [0], [0]>} : vector<8x3x3xbf16>, vector<8x3x16xbf16>, vector<8x3x16xf32> -> vector<8x3x16xf32>
    "tpu.trace_stop"() : () -> ()
    %265 = vector.shape_cast %264 : vector<8x3x16xf32> to vector<24x16xf32>
    %266 = arith.truncf %265 : vector<24x16xf32> to vector<24x16xbf16>
    %267 = vector.extract_strided_slice %198 {offsets = [32, 0], sizes = [16, 64], strides = [1, 1]} : vector<64x64xbf16> to vector<16x64xbf16>
    %cst_99 = arith.constant dense<0.000000e+00> : vector<24x64xf32>
    %268 = tpu.matmul %266, %267, %cst_99 {dimension_numbers = #tpu.dot_dimension_numbers<[1], [0], [0], [1], [0, 0, 1, 1], [], []>} : vector<24x16xbf16>, vector<16x64xbf16>, vector<24x64xf32> -> vector<24x64xf32>
    %269 = arith.addf %245, %268 : vector<24x64xf32>
    %270 = vector.extract_strided_slice %185 {offsets = [0, 0, 48], sizes = [8, 3, 16], strides = [1, 1, 1]} : vector<8x3x64xf32> to vector<8x3x16xf32>
    %271 = arith.truncf %270 : vector<8x3x16xf32> to vector<8x3x16xbf16>
    %272 = vector.extract_strided_slice %191 {offsets = [0, 0, 48], sizes = [8, 3, 16], strides = [1, 1, 1]} : vector<8x3x64xf32> to vector<8x3x16xf32>
    %273 = arith.truncf %272 : vector<8x3x16xf32> to vector<8x3x16xbf16>
    %274 = vector.extract_strided_slice %197 {offsets = [0, 0, 48], sizes = [8, 3, 16], strides = [1, 1, 1]} : vector<8x3x64xf32> to vector<8x3x16xf32>
    %275 = arith.truncf %274 : vector<8x3x16xf32> to vector<8x3x16xbf16>
    "tpu.trace_start"() <{level = 10 : i32, message = "nid,njd->nij"}> : () -> ()
    %cst_100 = arith.constant dense<0.000000e+00> : vector<8x3x3xf32>
    %276 = tpu.matmul %271, %273, %cst_100 {dimension_numbers = #tpu.dot_dimension_numbers<[2], [2], [1], [1], [0, 0, 0, 1, 1, 1], [0], [0]>} : vector<8x3x16xbf16>, vector<8x3x16xbf16>, vector<8x3x3xf32> -> vector<8x3x3xf32>
    "tpu.trace_stop"() : () -> ()
    %cst_101 = arith.constant dense<0xFF800000> : vector<8x3xf32>
    %277 = vector.multi_reduction <maximumf>, %276, %cst_101 [2] : vector<8x3x3xf32> to vector<8x3xf32>
    %278 = vector.shape_cast %277 : vector<8x3xf32> to vector<8x3x1xf32>
    %279 = vector.broadcast %278 : vector<8x3x1xf32> to vector<8x3x3xf32>
    %280 = arith.subf %276, %279 : vector<8x3x3xf32>
    %281 = math.exp %280 : vector<8x3x3xf32>
    %cst_102 = arith.constant dense<0.000000e+00> : vector<8x3xf32>
    %282 = vector.multi_reduction <add>, %281, %cst_102 [2] : vector<8x3x3xf32> to vector<8x3xf32>
    %283 = vector.shape_cast %282 : vector<8x3xf32> to vector<8x3x1xf32>
    %284 = tpu.reciprocal %283 {approx = true} : vector<8x3x1xf32> -> vector<8x3x1xf32>
    %285 = vector.broadcast %284 : vector<8x3x1xf32> to vector<8x3x3xf32>
    %286 = arith.mulf %281, %285 : vector<8x3x3xf32>
    %287 = arith.truncf %286 : vector<8x3x3xf32> to vector<8x3x3xbf16>
    "tpu.trace_start"() <{level = 10 : i32, message = "nij,njd->nid"}> : () -> ()
    %cst_103 = arith.constant dense<0.000000e+00> : vector<8x3x16xf32>
    %288 = tpu.matmul %287, %275, %cst_103 {dimension_numbers = #tpu.dot_dimension_numbers<[2], [1], [1], [2], [0, 0, 0, 1, 1, 2], [0], [0]>} : vector<8x3x3xbf16>, vector<8x3x16xbf16>, vector<8x3x16xf32> -> vector<8x3x16xf32>
    "tpu.trace_stop"() : () -> ()
    %289 = vector.shape_cast %288 : vector<8x3x16xf32> to vector<24x16xf32>
    %290 = arith.truncf %289 : vector<24x16xf32> to vector<24x16xbf16>
    %291 = vector.extract_strided_slice %198 {offsets = [48, 0], sizes = [16, 64], strides = [1, 1]} : vector<64x64xbf16> to vector<16x64xbf16>
    %cst_104 = arith.constant dense<0.000000e+00> : vector<24x64xf32>
    %292 = tpu.matmul %290, %291, %cst_104 {dimension_numbers = #tpu.dot_dimension_numbers<[1], [0], [0], [1], [0, 0, 1, 1], [], []>} : vector<24x16xbf16>, vector<16x64xbf16>, vector<24x64xf32> -> vector<24x64xf32>
    %293 = arith.addf %269, %292 : vector<24x64xf32>
    %c0_105 = arith.constant 0 : index
    %c0_106 = arith.constant 0 : index
    %294 = vector.load %arg28[%c0_105, %c0_106] : memref<1x64xf32, #tpu.memory_space<vmem>>, vector<1x64xf32>
    %295 = vector.broadcast %294 : vector<1x64xf32> to vector<24x64xf32>
    %296 = arith.addf %293, %295 : vector<24x64xf32>
    %297 = arith.addf %178, %296 : vector<24x64xf32>
    %cst_107 = arith.constant dense<0.000000e+00> : vector<24xf32>
    %298 = vector.multi_reduction <add>, %297, %cst_107 [1] : vector<24x64xf32> to vector<24xf32>
    %299 = vector.shape_cast %298 : vector<24xf32> to vector<24x1xf32>
    %cst_108 = arith.constant 6.400000e+01 : f32
    %300 = vector.broadcast %cst_108 : f32 to vector<24x1xf32>
    %301 = arith.divf %299, %300 : vector<24x1xf32>
    %302 = vector.broadcast %301 : vector<24x1xf32> to vector<24x64xf32>
    %303 = arith.subf %297, %302 : vector<24x64xf32>
    %304 = arith.mulf %303, %303 : vector<24x64xf32>
    %cst_109 = arith.constant dense<0.000000e+00> : vector<24xf32>
    %305 = vector.multi_reduction <add>, %304, %cst_109 [1] : vector<24x64xf32> to vector<24xf32>
    %306 = vector.shape_cast %305 : vector<24xf32> to vector<24x1xf32>
    %cst_110 = arith.constant 6.400000e+01 : f32
    %307 = vector.broadcast %cst_110 : f32 to vector<24x1xf32>
    %308 = arith.divf %306, %307 : vector<24x1xf32>
    %cst_111 = arith.constant 9.99999974E-6 : f32
    %309 = vector.broadcast %cst_111 : f32 to vector<24x1xf32>
    %310 = arith.addf %308, %309 : vector<24x1xf32>
    %311 = math.rsqrt %310 : vector<24x1xf32>
    %312 = vector.broadcast %311 : vector<24x1xf32> to vector<24x64xf32>
    %313 = arith.mulf %303, %312 : vector<24x64xf32>
    %c0_112 = arith.constant 0 : index
    %c0_113 = arith.constant 0 : index
    %314 = vector.load %arg29[%c0_112, %c0_113] : memref<1x64xf32, #tpu.memory_space<vmem>>, vector<1x64xf32>
    %315 = vector.broadcast %314 : vector<1x64xf32> to vector<24x64xf32>
    %316 = arith.mulf %313, %315 : vector<24x64xf32>
    %c0_114 = arith.constant 0 : index
    %c0_115 = arith.constant 0 : index
    %317 = vector.load %arg30[%c0_114, %c0_115] : memref<1x64xf32, #tpu.memory_space<vmem>>, vector<1x64xf32>
    %318 = vector.broadcast %317 : vector<1x64xf32> to vector<24x64xf32>
    %319 = arith.addf %316, %318 : vector<24x64xf32>
    %320 = arith.truncf %319 : vector<24x64xf32> to vector<24x64xbf16>
    %c0_116 = arith.constant 0 : index
    %c0_117 = arith.constant 0 : index
    %321 = vector.load %arg31[%c0_116, %c0_117] : memref<64x64xbf16, #tpu.memory_space<vmem>>, vector<64x64xbf16>
    %cst_118 = arith.constant dense<0.000000e+00> : vector<24x64xf32>
    %322 = tpu.matmul %320, %321, %cst_118 {dimension_numbers = #tpu.dot_dimension_numbers<[1], [0], [0], [1], [0, 0, 1, 1], [], []>} : vector<24x64xbf16>, vector<64x64xbf16>, vector<24x64xf32> -> vector<24x64xf32>
    %c0_119 = arith.constant 0 : index
    %c0_120 = arith.constant 0 : index
    %323 = vector.load %arg32[%c0_119, %c0_120] : memref<1x64xf32, #tpu.memory_space<vmem>>, vector<1x64xf32>
    %324 = vector.broadcast %323 : vector<1x64xf32> to vector<24x64xf32>
    %325 = arith.addf %322, %324 : vector<24x64xf32>
    %cst_121 = arith.constant 0.000000e+00 : f32
    %326 = vector.broadcast %cst_121 : f32 to vector<24x64xf32>
    %327 = arith.maximumf %325, %326 : vector<24x64xf32>
    %328 = arith.truncf %327 : vector<24x64xf32> to vector<24x64xbf16>
    %c0_122 = arith.constant 0 : index
    %c0_123 = arith.constant 0 : index
    %329 = vector.load %arg33[%c0_122, %c0_123] : memref<64x64xbf16, #tpu.memory_space<vmem>>, vector<64x64xbf16>
    %cst_124 = arith.constant dense<0.000000e+00> : vector<24x64xf32>
    %330 = tpu.matmul %328, %329, %cst_124 {dimension_numbers = #tpu.dot_dimension_numbers<[1], [0], [0], [1], [0, 0, 1, 1], [], []>} : vector<24x64xbf16>, vector<64x64xbf16>, vector<24x64xf32> -> vector<24x64xf32>
    %c0_125 = arith.constant 0 : index
    %c0_126 = arith.constant 0 : index
    %331 = vector.load %arg34[%c0_125, %c0_126] : memref<1x64xf32, #tpu.memory_space<vmem>>, vector<1x64xf32>
    %332 = vector.broadcast %331 : vector<1x64xf32> to vector<24x64xf32>
    %333 = arith.addf %330, %332 : vector<24x64xf32>
    %334 = arith.addf %319, %333 : vector<24x64xf32>
    %cst_127 = arith.constant dense<0.000000e+00> : vector<24xf32>
    %335 = vector.multi_reduction <add>, %334, %cst_127 [1] : vector<24x64xf32> to vector<24xf32>
    %336 = vector.shape_cast %335 : vector<24xf32> to vector<24x1xf32>
    %cst_128 = arith.constant 6.400000e+01 : f32
    %337 = vector.broadcast %cst_128 : f32 to vector<24x1xf32>
    %338 = arith.divf %336, %337 : vector<24x1xf32>
    %339 = vector.broadcast %338 : vector<24x1xf32> to vector<24x64xf32>
    %340 = arith.subf %334, %339 : vector<24x64xf32>
    %341 = arith.mulf %340, %340 : vector<24x64xf32>
    %cst_129 = arith.constant dense<0.000000e+00> : vector<24xf32>
    %342 = vector.multi_reduction <add>, %341, %cst_129 [1] : vector<24x64xf32> to vector<24xf32>
    %343 = vector.shape_cast %342 : vector<24xf32> to vector<24x1xf32>
    %cst_130 = arith.constant 6.400000e+01 : f32
    %344 = vector.broadcast %cst_130 : f32 to vector<24x1xf32>
    %345 = arith.divf %343, %344 : vector<24x1xf32>
    %cst_131 = arith.constant 9.99999974E-6 : f32
    %346 = vector.broadcast %cst_131 : f32 to vector<24x1xf32>
    %347 = arith.addf %345, %346 : vector<24x1xf32>
    %348 = math.rsqrt %347 : vector<24x1xf32>
    %349 = vector.broadcast %348 : vector<24x1xf32> to vector<24x64xf32>
    %350 = arith.mulf %340, %349 : vector<24x64xf32>
    %c0_132 = arith.constant 0 : index
    %c0_133 = arith.constant 0 : index
    %351 = vector.load %arg35[%c0_132, %c0_133] : memref<1x64xf32, #tpu.memory_space<vmem>>, vector<1x64xf32>
    %352 = vector.broadcast %351 : vector<1x64xf32> to vector<24x64xf32>
    %353 = arith.mulf %350, %352 : vector<24x64xf32>
    %c0_134 = arith.constant 0 : index
    %c0_135 = arith.constant 0 : index
    %354 = vector.load %arg36[%c0_134, %c0_135] : memref<1x64xf32, #tpu.memory_space<vmem>>, vector<1x64xf32>
    %355 = vector.broadcast %354 : vector<1x64xf32> to vector<24x64xf32>
    %356 = arith.addf %353, %355 : vector<24x64xf32>
    %357 = vector.shape_cast %356 : vector<24x64xf32> to vector<8x3x64xf32>
    %c0_136 = arith.constant 0 : index
    %c0_137 = arith.constant 0 : index
    %358 = vector.load %arg2[%c0_136, %c0_137] : memref<3x64xf32, #tpu.memory_space<vmem>>, vector<3x64xf32>
    %359 = vector.shape_cast %358 : vector<3x64xf32> to vector<1x3x64xf32>
    %360 = vector.shape_cast %359 : vector<1x3x64xf32> to vector<1x3x64xf32>
    %361 = vector.broadcast %360 : vector<1x3x64xf32> to vector<8x3x64xf32>
    %362 = vector.shape_cast %361 : vector<8x3x64xf32> to vector<24x64xf32>
    %c0_138 = arith.constant 0 : index
    %c0_139 = arith.constant 0 : index
    %363 = vector.load %arg37[%c0_138, %c0_139] : memref<256x64xbf16, #tpu.memory_space<vmem>>, vector<256x64xbf16>
    %364 = arith.subf %362, %356 : vector<24x64xf32>
    %365 = arith.mulf %362, %356 : vector<24x64xf32>
    %c0_140 = arith.constant 0 : index
    %c0_141 = arith.constant 0 : index
    %366 = vector.load %arg38[%c0_140, %c0_141] : memref<1x64xf32, #tpu.memory_space<vmem>>, vector<1x64xf32>
    %367 = arith.truncf %362 : vector<24x64xf32> to vector<24x64xbf16>
    %368 = vector.extract_strided_slice %363 {offsets = [0, 0], sizes = [64, 64], strides = [1, 1]} : vector<256x64xbf16> to vector<64x64xbf16>
    %cst_142 = arith.constant dense<0.000000e+00> : vector<24x64xf32>
    %369 = tpu.matmul %367, %368, %cst_142 {dimension_numbers = #tpu.dot_dimension_numbers<[1], [0], [0], [1], [0, 0, 1, 1], [], []>} : vector<24x64xbf16>, vector<64x64xbf16>, vector<24x64xf32> -> vector<24x64xf32>
    %370 = vector.broadcast %366 : vector<1x64xf32> to vector<24x64xf32>
    %371 = arith.addf %370, %369 : vector<24x64xf32>
    %372 = arith.truncf %356 : vector<24x64xf32> to vector<24x64xbf16>
    %373 = vector.extract_strided_slice %363 {offsets = [64, 0], sizes = [64, 64], strides = [1, 1]} : vector<256x64xbf16> to vector<64x64xbf16>
    %cst_143 = arith.constant dense<0.000000e+00> : vector<24x64xf32>
    %374 = tpu.matmul %372, %373, %cst_143 {dimension_numbers = #tpu.dot_dimension_numbers<[1], [0], [0], [1], [0, 0, 1, 1], [], []>} : vector<24x64xbf16>, vector<64x64xbf16>, vector<24x64xf32> -> vector<24x64xf32>
    %375 = arith.addf %371, %374 : vector<24x64xf32>
    %376 = arith.truncf %364 : vector<24x64xf32> to vector<24x64xbf16>
    %377 = vector.extract_strided_slice %363 {offsets = [128, 0], sizes = [64, 64], strides = [1, 1]} : vector<256x64xbf16> to vector<64x64xbf16>
    %cst_144 = arith.constant dense<0.000000e+00> : vector<24x64xf32>
    %378 = tpu.matmul %376, %377, %cst_144 {dimension_numbers = #tpu.dot_dimension_numbers<[1], [0], [0], [1], [0, 0, 1, 1], [], []>} : vector<24x64xbf16>, vector<64x64xbf16>, vector<24x64xf32> -> vector<24x64xf32>
    %379 = arith.addf %375, %378 : vector<24x64xf32>
    %380 = arith.truncf %365 : vector<24x64xf32> to vector<24x64xbf16>
    %381 = vector.extract_strided_slice %363 {offsets = [192, 0], sizes = [64, 64], strides = [1, 1]} : vector<256x64xbf16> to vector<64x64xbf16>
    %cst_145 = arith.constant dense<0.000000e+00> : vector<24x64xf32>
    %382 = tpu.matmul %380, %381, %cst_145 {dimension_numbers = #tpu.dot_dimension_numbers<[1], [0], [0], [1], [0, 0, 1, 1], [], []>} : vector<24x64xbf16>, vector<64x64xbf16>, vector<24x64xf32> -> vector<24x64xf32>
    %383 = arith.addf %379, %382 : vector<24x64xf32>
    %cst_146 = arith.constant 0.000000e+00 : f32
    %384 = vector.broadcast %cst_146 : f32 to vector<24x64xf32>
    %385 = arith.maximumf %383, %384 : vector<24x64xf32>
    %386 = vector.shape_cast %385 : vector<24x64xf32> to vector<8x3x64xf32>
    %c0_147 = arith.constant 0 : index
    %c0_148 = arith.constant 0 : index
    %387 = vector.load %arg39[%c0_147, %c0_148] : memref<1x64xf32, #tpu.memory_space<vmem>>, vector<1x64xf32>
    %388 = vector.shape_cast %387 : vector<1x64xf32> to vector<1x1x64xf32>
    %389 = vector.broadcast %388 : vector<1x1x64xf32> to vector<8x3x64xf32>
    %390 = arith.mulf %386, %389 : vector<8x3x64xf32>
    %cst_149 = arith.constant dense<0.000000e+00> : vector<8x3xf32>
    %391 = vector.multi_reduction <add>, %390, %cst_149 [2] : vector<8x3x64xf32> to vector<8x3xf32>
    %392 = vector.shape_cast %391 : vector<8x3xf32> to vector<8x3x1xf32>
    %c0_150 = arith.constant 0 : index
    %c0_151 = arith.constant 0 : index
    %393 = vector.load %arg40[%c0_150, %c0_151] : memref<1x1xf32, #tpu.memory_space<vmem>>, vector<1x1xf32>
    %394 = vector.shape_cast %393 : vector<1x1xf32> to vector<1x1x1xf32>
    %395 = vector.broadcast %394 : vector<1x1x1xf32> to vector<8x3x1xf32>
    %396 = arith.addf %392, %395 : vector<8x3x1xf32>
    %c0_152 = arith.constant 0 : index
    %c0_153 = arith.constant 0 : index
    %c0_154 = arith.constant 0 : index
    %397 = vector.load %arg4[%c0_152, %c0_153, %c0_154] : memref<8x3x1xf32, #tpu.memory_space<vmem>>, vector<8x3x1xf32>
    %cst_155 = arith.constant 5.000000e-01 : f32
    %398 = vector.broadcast %cst_155 : f32 to vector<8x3x1xf32>
    %399 = arith.cmpf ogt, %397, %398 : vector<8x3x1xf32>
    %cst_156 = arith.constant -1.000000e+09 : f32
    %400 = vector.broadcast %cst_156 : f32 to vector<8x3x1xf32>
    %401 = arith.select %399, %400, %396 : vector<8x3x1xi1>, vector<8x3x1xf32>
    %cst_157 = arith.constant dense<0xFF800000> : vector<3x1xf32>
    %402 = vector.multi_reduction <maximumf>, %401, %cst_157 [0] : vector<8x3x1xf32> to vector<3x1xf32>
    %403 = vector.shape_cast %402 : vector<3x1xf32> to vector<1x3x1xf32>
    %404 = vector.broadcast %403 : vector<1x3x1xf32> to vector<8x3x1xf32>
    %405 = arith.subf %401, %404 : vector<8x3x1xf32>
    %406 = math.exp %405 : vector<8x3x1xf32>
    %cst_158 = arith.constant dense<0.000000e+00> : vector<3x1xf32>
    %407 = vector.multi_reduction <add>, %406, %cst_158 [0] : vector<8x3x1xf32> to vector<3x1xf32>
    %408 = vector.shape_cast %407 : vector<3x1xf32> to vector<1x3x1xf32>
    %409 = tpu.reciprocal %408 {approx = true} : vector<1x3x1xf32> -> vector<1x3x1xf32>
    %410 = vector.broadcast %409 : vector<1x3x1xf32> to vector<8x3x1xf32>
    %411 = arith.mulf %406, %410 : vector<8x3x1xf32>
    %412 = vector.broadcast %411 : vector<8x3x1xf32> to vector<8x3x64xf32>
    %413 = arith.mulf %412, %357 : vector<8x3x64xf32>
    %cst_159 = arith.constant dense<0.000000e+00> : vector<3x64xf32>
    %414 = vector.multi_reduction <add>, %413, %cst_159 [0] : vector<8x3x64xf32> to vector<3x64xf32>
    %c0_160 = arith.constant 0 : index
    %c0_161 = arith.constant 0 : index
    %415 = vector.load %arg3[%c0_160, %c0_161] : memref<3x96xf32, #tpu.memory_space<vmem>>, vector<3x96xf32>
    %c0_162 = arith.constant 0 : index
    %c0_163 = arith.constant 0 : index
    %416 = vector.load %arg41[%c0_162, %c0_163] : memref<160x16xbf16, #tpu.memory_space<vmem>>, vector<160x16xbf16>
    %417 = arith.truncf %415 : vector<3x96xf32> to vector<3x96xbf16>
    %418 = vector.extract_strided_slice %416 {offsets = [0, 0], sizes = [96, 16], strides = [1, 1]} : vector<160x16xbf16> to vector<96x16xbf16>
    %cst_164 = arith.constant dense<0.000000e+00> : vector<3x16xf32>
    %419 = tpu.matmul %417, %418, %cst_164 {dimension_numbers = #tpu.dot_dimension_numbers<[1], [0], [0], [1], [0, 0, 1, 1], [], []>} : vector<3x96xbf16>, vector<96x16xbf16>, vector<3x16xf32> -> vector<3x16xf32>
    %420 = arith.truncf %414 : vector<3x64xf32> to vector<3x64xbf16>
    %421 = vector.extract_strided_slice %416 {offsets = [96, 0], sizes = [64, 16], strides = [1, 1]} : vector<160x16xbf16> to vector<64x16xbf16>
    %cst_165 = arith.constant dense<0.000000e+00> : vector<3x16xf32>
    %422 = tpu.matmul %420, %421, %cst_165 {dimension_numbers = #tpu.dot_dimension_numbers<[1], [0], [0], [1], [0, 0, 1, 1], [], []>} : vector<3x64xbf16>, vector<64x16xbf16>, vector<3x16xf32> -> vector<3x16xf32>
    %423 = arith.addf %419, %422 : vector<3x16xf32>
    %c0_166 = arith.constant 0 : index
    %c0_167 = arith.constant 0 : index
    %424 = vector.load %arg42[%c0_166, %c0_167] : memref<1x16xf32, #tpu.memory_space<vmem>>, vector<1x16xf32>
    %425 = vector.broadcast %424 : vector<1x16xf32> to vector<3x16xf32>
    %426 = arith.addf %423, %425 : vector<3x16xf32>
    %cst_168 = arith.constant 0.000000e+00 : f32
    %427 = vector.broadcast %cst_168 : f32 to vector<3x16xf32>
    %428 = arith.maximumf %426, %427 : vector<3x16xf32>
    %429 = arith.truncf %428 : vector<3x16xf32> to vector<3x16xbf16>
    %c0_169 = arith.constant 0 : index
    %c0_170 = arith.constant 0 : index
    %430 = vector.load %arg43[%c0_169, %c0_170] : memref<16x8xbf16, #tpu.memory_space<vmem>>, vector<16x8xbf16>
    %cst_171 = arith.constant dense<0.000000e+00> : vector<3x8xf32>
    %431 = tpu.matmul %429, %430, %cst_171 {dimension_numbers = #tpu.dot_dimension_numbers<[1], [0], [0], [1], [0, 0, 1, 1], [], []>} : vector<3x16xbf16>, vector<16x8xbf16>, vector<3x8xf32> -> vector<3x8xf32>
    %c0_172 = arith.constant 0 : index
    %c0_173 = arith.constant 0 : index
    %432 = vector.load %arg44[%c0_172, %c0_173] : memref<1x8xf32, #tpu.memory_space<vmem>>, vector<1x8xf32>
    %433 = vector.broadcast %432 : vector<1x8xf32> to vector<3x8xf32>
    %434 = arith.addf %431, %433 : vector<3x8xf32>
    %cst_174 = arith.constant 0.000000e+00 : f32
    %435 = vector.broadcast %cst_174 : f32 to vector<3x8xf32>
    %436 = arith.maximumf %434, %435 : vector<3x8xf32>
    %c0_175 = arith.constant 0 : index
    %c0_176 = arith.constant 0 : index
    %437 = vector.load %arg45[%c0_175, %c0_176] : memref<1x8xf32, #tpu.memory_space<vmem>>, vector<1x8xf32>
    %438 = vector.broadcast %437 : vector<1x8xf32> to vector<3x8xf32>
    %439 = arith.mulf %436, %438 : vector<3x8xf32>
    %cst_177 = arith.constant dense<0.000000e+00> : vector<3xf32>
    %440 = vector.multi_reduction <add>, %439, %cst_177 [1] : vector<3x8xf32> to vector<3xf32>
    %441 = vector.shape_cast %440 : vector<3xf32> to vector<3x1xf32>
    %c0_178 = arith.constant 0 : index
    %c0_179 = arith.constant 0 : index
    %442 = vector.load %arg46[%c0_178, %c0_179] : memref<1x1xf32, #tpu.memory_space<vmem>>, vector<1x1xf32>
    %443 = vector.broadcast %442 : vector<1x1xf32> to vector<3x1xf32>
    %444 = arith.addf %441, %443 : vector<3x1xf32>
    %445 = arith.negf %444 : vector<3x1xf32>
    %446 = math.exp %445 : vector<3x1xf32>
    %cst_180 = arith.constant 1.000000e+00 : f32
    %447 = vector.broadcast %cst_180 : f32 to vector<3x1xf32>
    %448 = arith.addf %447, %446 : vector<3x1xf32>
    %449 = arith.divf %447, %448 : vector<3x1xf32>
    %c0_181 = arith.constant 0 : index
    %c0_182 = arith.constant 0 : index
    %450 = vector.load %arg47[%c0_181, %c0_182] : memref<3x1xf32, #tpu.memory_space<vmem>>, vector<3x1xf32>
    tpu.vector_store %arg47[%c0_181, %c0_182], %449 {strides = array<i32>} : memref<3x1xf32, #tpu.memory_space<vmem>>, vector<3x1xf32>,
    return
  }
  func.func @transform_0(%arg0: i32) -> (i32, i32) {
    %c0_i32 = arith.constant 0 : i32
    %c0_i32_0 = arith.constant 0 : i32
    %c0_i32_1 = arith.constant 0 : i32
    return %c0_i32, %c0_i32_0 : i32, i32
  }
  func.func @transform_1(%arg0: i32) -> (i32, i32) {
    %c0_i32 = arith.constant 0 : i32
    %c0_i32_0 = arith.constant 0 : i32
    %c0_i32_1 = arith.constant 0 : i32
    return %c0_i32, %c0_i32_0 : i32, i32
  }
  func.func @transform_2(%arg0: i32) -> (i32, i32) {
    %c0_i32 = arith.constant 0 : i32
    %c0_i32_0 = arith.constant 0 : i32
    %c0_i32_1 = arith.constant 0 : i32
    return %c0_i32, %c0_i32_0 : i32, i32
  }
  func.func @transform_3(%arg0: i32) -> (i32, i32, i32) {
    %c0_i32 = arith.constant 0 : i32
    %c0_i32_0 = arith.constant 0 : i32
    %c0_i32_1 = arith.constant 0 : i32
    %c0_i32_2 = arith.constant 0 : i32
    return %c0_i32, %c0_i32_0, %c0_i32_1 : i32, i32, i32
  }
  func.func @transform_4(%arg0: i32) -> (i32, i32) {
    %c0_i32 = arith.constant 0 : i32
    %c0_i32_0 = arith.constant 0 : i32
    %c0_i32_1 = arith.constant 0 : i32
    return %c0_i32, %c0_i32_0 : i32, i32
  }
  func.func @transform_5(%arg0: i32) -> (i32, i32) {
    %c0_i32 = arith.constant 0 : i32
    %c0_i32_0 = arith.constant 0 : i32
    %c0_i32_1 = arith.constant 0 : i32
    return %c0_i32, %c0_i32_0 : i32, i32
  }
  func.func @transform_6(%arg0: i32) -> (i32, i32) {
    %c0_i32 = arith.constant 0 : i32
    %c0_i32_0 = arith.constant 0 : i32
    %c0_i32_1 = arith.constant 0 : i32
    return %c0_i32, %c0_i32_0 : i32, i32
  }
  func.func @transform_7(%arg0: i32) -> (i32, i32) {
    %c0_i32 = arith.constant 0 : i32
    %c0_i32_0 = arith.constant 0 : i32
    %c0_i32_1 = arith.constant 0 : i32
    return %c0_i32, %c0_i32_0 : i32, i32
  }
  func.func @transform_8(%arg0: i32) -> (i32, i32) {
    %c0_i32 = arith.constant 0 : i32
    %c0_i32_0 = arith.constant 0 : i32
    %c0_i32_1 = arith.constant 0 : i32
    return %c0_i32, %c0_i32_0 : i32, i32
  }
  func.func @transform_9(%arg0: i32) -> (i32, i32) {
    %c0_i32 = arith.constant 0 : i32
    %c0_i32_0 = arith.constant 0 : i32
    %c0_i32_1 = arith.constant 0 : i32
    return %c0_i32, %c0_i32_0 : i32, i32
  }
  func.func @transform_10(%arg0: i32) -> (i32, i32) {
    %c0_i32 = arith.constant 0 : i32
    %c0_i32_0 = arith.constant 0 : i32
    %c0_i32_1 = arith.constant 0 : i32
    return %c0_i32, %c0_i32_0 : i32, i32
  }
  func.func @transform_11(%arg0: i32) -> (i32, i32) {
    %c0_i32 = arith.constant 0 : i32
    %c0_i32_0 = arith.constant 0 : i32
    %c0_i32_1 = arith.constant 0 : i32
    return %c0_i32, %c0_i32_0 : i32, i32
  }
  func.func @transform_12(%arg0: i32) -> (i32, i32) {
    %c0_i32 = arith.constant 0 : i32
    %c0_i32_0 = arith.constant 0 : i32
    %c0_i32_1 = arith.constant 0 : i32
    return %c0_i32, %c0_i32_0 : i32, i32
  }
  func.func @transform_13(%arg0: i32) -> (i32, i32) {
    %c0_i32 = arith.constant 0 : i32
    %c0_i32_0 = arith.constant 0 : i32
    %c0_i32_1 = arith.constant 0 : i32
    return %c0_i32, %c0_i32_0 : i32, i32
  }
  func.func @transform_14(%arg0: i32) -> (i32, i32) {
    %c0_i32 = arith.constant 0 : i32
    %c0_i32_0 = arith.constant 0 : i32
    %c0_i32_1 = arith.constant 0 : i32
    return %c0_i32, %c0_i32_0 : i32, i32
  }
  func.func @transform_15(%arg0: i32) -> (i32, i32) {
    %c0_i32 = arith.constant 0 : i32
    %c0_i32_0 = arith.constant 0 : i32
    %c0_i32_1 = arith.constant 0 : i32
    return %c0_i32, %c0_i32_0 : i32, i32
  }
  func.func @transform_16(%arg0: i32) -> (i32, i32) {
    %c0_i32 = arith.constant 0 : i32
    %c0_i32_0 = arith.constant 0 : i32
    %c0_i32_1 = arith.constant 0 : i32
    return %c0_i32, %c0_i32_0 : i32, i32
  }
  func.func @transform_17(%arg0: i32) -> (i32, i32) {
    %c0_i32 = arith.constant 0 : i32
    %c0_i32_0 = arith.constant 0 : i32
    %c0_i32_1 = arith.constant 0 : i32
    return %c0_i32, %c0_i32_0 : i32, i32
  }
  func.func @transform_18(%arg0: i32) -> (i32, i32) {
    %c0_i32 = arith.constant 0 : i32
    %c0_i32_0 = arith.constant 0 : i32
    %c0_i32_1 = arith.constant 0 : i32
    return %c0_i32, %c0_i32_0 : i32, i32
  }
  func.func @transform_19(%arg0: i32) -> (i32, i32) {
    %c0_i32 = arith.constant 0 : i32
    %c0_i32_0 = arith.constant 0 : i32
    %c0_i32_1 = arith.constant 0 : i32
    return %c0_i32, %c0_i32_0 : i32, i32
  }
  func.func @transform_20(%arg0: i32) -> (i32, i32) {
    %c0_i32 = arith.constant 0 : i32
    %c0_i32_0 = arith.constant 0 : i32
    %c0_i32_1 = arith.constant 0 : i32
    return %c0_i32, %c0_i32_0 : i32, i32
  }
  func.func @transform_21(%arg0: i32) -> (i32, i32) {
    %c0_i32 = arith.constant 0 : i32
    %c0_i32_0 = arith.constant 0 : i32
    %c0_i32_1 = arith.constant 0 : i32
    return %c0_i32, %c0_i32_0 : i32, i32
  }
  func.func @transform_22(%arg0: i32) -> (i32, i32) {
    %c0_i32 = arith.constant 0 : i32
    %c0_i32_0 = arith.constant 0 : i32
    %c0_i32_1 = arith.constant 0 : i32
    return %c0_i32, %c0_i32_0 : i32, i32
  }
  func.func @transform_23(%arg0: i32) -> (i32, i32) {
    %c0_i32 = arith.constant 0 : i32
    %c0_i32_0 = arith.constant 0 : i32
    %c0_i32_1 = arith.constant 0 : i32
    return %c0_i32, %c0_i32_0 : i32, i32
  }
  func.func @transform_24(%arg0: i32) -> (i32, i32) {
    %c0_i32 = arith.constant 0 : i32
    %c0_i32_0 = arith.constant 0 : i32
    %c0_i32_1 = arith.constant 0 : i32
    return %c0_i32, %c0_i32_0 : i32, i32
  }
  func.func @transform_25(%arg0: i32) -> (i32, i32) {
    %c0_i32 = arith.constant 0 : i32
    %c0_i32_0 = arith.constant 0 : i32
    %c0_i32_1 = arith.constant 0 : i32
    return %c0_i32, %c0_i32_0 : i32, i32
  }
  func.func @transform_26(%arg0: i32) -> (i32, i32) {
    %c0_i32 = arith.constant 0 : i32
    %c0_i32_0 = arith.constant 0 : i32
    %c0_i32_1 = arith.constant 0 : i32
    return %c0_i32, %c0_i32_0 : i32, i32
  }
  func.func @transform_27(%arg0: i32) -> (i32, i32) {
    %c0_i32 = arith.constant 0 : i32
    %c0_i32_0 = arith.constant 0 : i32
    %c0_i32_1 = arith.constant 0 : i32
    return %c0_i32, %c0_i32_0 : i32, i32
  }
  func.func @transform_28(%arg0: i32) -> (i32, i32) {
    %c0_i32 = arith.constant 0 : i32
    %c0_i32_0 = arith.constant 0 : i32
    %c0_i32_1 = arith.constant 0 : i32
    return %c0_i32, %c0_i32_0 : i32, i32
  }
  func.func @transform_29(%arg0: i32) -> (i32, i32) {
    %c0_i32 = arith.constant 0 : i32
    %c0_i32_0 = arith.constant 0 : i32
    %c0_i32_1 = arith.constant 0 : i32
    return %c0_i32, %c0_i32_0 : i32, i32
  }
  func.func @transform_30(%arg0: i32) -> (i32, i32) {
    %c0_i32 = arith.constant 0 : i32
    %c0_i32_0 = arith.constant 0 : i32
    %c0_i32_1 = arith.constant 0 : i32
    return %c0_i32, %c0_i32_0 : i32, i32
  }
  func.func @transform_31(%arg0: i32) -> (i32, i32) {
    %c0_i32 = arith.constant 0 : i32
    %c0_i32_0 = arith.constant 0 : i32
    %c0_i32_1 = arith.constant 0 : i32
    return %c0_i32, %c0_i32_0 : i32, i32
  }
  func.func @transform_32(%arg0: i32) -> (i32, i32) {
    %c0_i32 = arith.constant 0 : i32
    %c0_i32_0 = arith.constant 0 : i32
    %c0_i32_1 = arith.constant 0 : i32
    return %c0_i32, %c0_i32_0 : i32, i32
  }
  func.func @transform_33(%arg0: i32) -> (i32, i32) {
    %c0_i32 = arith.constant 0 : i32
    %c0_i32_0 = arith.constant 0 : i32
    %c0_i32_1 = arith.constant 0 : i32
    return %c0_i32, %c0_i32_0 : i32, i32
  }
  func.func @transform_34(%arg0: i32) -> (i32, i32) {
    %c0_i32 = arith.constant 0 : i32
    %c0_i32_0 = arith.constant 0 : i32
    %c0_i32_1 = arith.constant 0 : i32
    return %c0_i32, %c0_i32_0 : i32, i32
  }
  func.func @transform_35(%arg0: i32) -> (i32, i32) {
    %c0_i32 = arith.constant 0 : i32
    %c0_i32_0 = arith.constant 0 : i32
    %c0_i32_1 = arith.constant 0 : i32
    return %c0_i32, %c0_i32_0 : i32, i32
  }
  func.func @transform_36(%arg0: i32) -> (i32, i32) {
    %c0_i32 = arith.constant 0 : i32
    %c0_i32_0 = arith.constant 0 : i32
    %c0_i32_1 = arith.constant 0 : i32
    return %c0_i32, %c0_i32_0 : i32, i32
  }
  func.func @transform_37(%arg0: i32) -> (i32, i32) {
    %c0_i32 = arith.constant 0 : i32
    %c0_i32_0 = arith.constant 0 : i32
    %c0_i32_1 = arith.constant 0 : i32
    return %c0_i32, %c0_i32_0 : i32, i32
  }
  func.func @transform_38(%arg0: i32) -> (i32, i32) {
    %c0_i32 = arith.constant 0 : i32
    %c0_i32_0 = arith.constant 0 : i32
    %c0_i32_1 = arith.constant 0 : i32
    return %c0_i32, %c0_i32_0 : i32, i32
  }
  func.func @transform_39(%arg0: i32) -> (i32, i32) {
    %c0_i32 = arith.constant 0 : i32
    %c0_i32_0 = arith.constant 0 : i32
    %c0_i32_1 = arith.constant 0 : i32
    return %c0_i32, %c0_i32_0 : i32, i32
  }
  func.func @transform_40(%arg0: i32) -> (i32, i32) {
    %c0_i32 = arith.constant 0 : i32
    %c0_i32_0 = arith.constant 0 : i32
    %c0_i32_1 = arith.constant 0 : i32
    return %c0_i32, %c0_i32_0 : i32, i32
  }
  func.func @transform_41(%arg0: i32) -> (i32, i32) {
    %c0_i32 = arith.constant 0 : i32
    %c0_i32_0 = arith.constant 0 : i32
    %c0_i32_1 = arith.constant 0 : i32
    return %c0_i32, %c0_i32_0 : i32, i32
  }
  func.func @transform_42(%arg0: i32) -> (i32, i32) {
    %c0_i32 = arith.constant 0 : i32
    %c0_i32_0 = arith.constant 0 : i32
    %c0_i32_1 = arith.constant 0 : i32
    return %c0_i32, %c0_i32_0 : i32, i32
  }
  func.func @transform_43(%arg0: i32) -> (i32, i32) {
    %c0_i32 = arith.constant 0 : i32
    %c0_i32_0 = arith.constant 0 : i32
    %c0_i32_1 = arith.constant 0 : i32
    return %c0_i32, %c0_i32_0 : i32, i32
  }
  func.func @transform_44(%arg0: i32) -> (i32, i32) {
    %c0_i32 = arith.constant 0 : i32
    %c0_i32_0 = arith.constant 0 : i32
    %c0_i32_1 = arith.constant 0 : i32
    return %c0_i32, %c0_i32_0 : i32, i32
  }
  func.func @transform_45(%arg0: i32) -> (i32, i32) {
    %c0_i32 = arith.constant 0 : i32
    %c0_i32_0 = arith.constant 0 : i32
    %c0_i32_1 = arith.constant 0 : i32
    return %c0_i32, %c0_i32_0 : i32, i32
  }
  func.func @transform_46(%arg0: i32) -> (i32, i32) {
    %c0_i32 = arith.constant 0 : i32
    %c0_i32_0 = arith.constant 0 : i32
    %c0_i32_1 = arith.constant 0 : i32
    return %c0_i32, %c0_i32_0 : i32, i32
  }
}

</mosaic_0001>

<bundles_post_ra>
// kernel: bst_forward.1
= control target key start
LH: loop header
LB: loop body
LE: loop exit
PB: predicated region body
PF: predicated region fallthrough
CT: control target
= control target key end

     0   :  { %s18083_s6 = smov 1   ;;  %s18084_s10 = smov 2   ;;  %s21569_s0 = inlined_call_operand.smem [shape: u32[47], index: -1, kind: input, shape index: {}] }
   0x1   :  { %s18146_s5 = sld [smem:[%s21569_s0]]   ;;  %s18085_s14 = smov 3  }
   0x2   :  { %s18151_s9 = sld [smem:[%s21569_s0 + %s18083_s6]]   ;;  %s18086_s18 = smov 4  }
   0x3   :  { %s18156_s13 = sld [smem:[%s21569_s0 + %s18084_s10]]   ;;  %s18087_s22 = smov 5  }
   0x4   :  { %s18161_s17 = sld [smem:[%s21569_s0 + %s18085_s14]]   ;;  %s18088_s26 = smov 6  }
   0x5   :  { %s18166_s21 = sld [smem:[%s21569_s0 + %s18086_s18]]   ;;  %s18089_s30 = smov 7  }
   0x6   :  { %s18171_s25 = sld [smem:[%s21569_s0 + %s18087_s22]]   ;;  %s18090_s4 = smov 8  }
   0x7   :  { %s18176_s29 = sld [smem:[%s21569_s0 + %s18088_s26]]   ;;  %s18091_s10 = smov 9  }
   0x8   :  { %21579 = sst [smem:[#allocation7_spill]] %s18151_s9  ;;  %s18092_s15 = smov 10  }
   0x9   :  { %21580 = sst [smem:[#allocation8_spill]] %s18156_s13  ;;  %s18093_s20 = smov 11  }
   0xa   :  { %21581 = sst [smem:[#allocation9_spill]] %s18161_s17  ;;  %s18094_s26 = smov 12  }
   0xb   :  { %s18181_s3 = sld [smem:[%s21569_s0 + %s18089_s30]]   ;;  %s18095_s1 = smov 13  }
   0xc   :  { %s18186_s8 = sld [smem:[%s21569_s0 + %s18090_s4]]   ;;  %s18096_s7 = smov 14  }
   0xd   :  { %s18191_s14 = sld [smem:[%s21569_s0 + %s18091_s10]]   ;;  %s18098_s22 = smov 16  }
   0xe   :  { %s18196_s19 = sld [smem:[%s21569_s0 + %s18092_s15]]   ;;  %s18097_s15 = smov 15  }
   0xf   :  { %s18201_s24 = sld [smem:[%s21569_s0 + %s18093_s20]]   ;;  %s18099_s28 = smov 17  }
  0x10   :  { %s18206_s30 = sld [smem:[%s21569_s0 + %s18094_s26]]   ;;  %s18122_s23 = smov 40  }
  0x11   :  { %s18211_s6 = sld [smem:[%s21569_s0 + %s18095_s1]]   ;;  %s18123_s1 = smov 41  }
  0x12   :  { %s18216_s12 = sld [smem:[%s21569_s0 + %s18096_s7]]   ;;  %s18100_s7 = smov 18  }
  0x13   :  { %s18221_s20 = sld [smem:[%s21569_s0 + %s18097_s15]]   ;;  %s18101_s15 = smov 19  }
  0x14   :  { %s18226_s27 = sld [smem:[%s21569_s0 + %s18098_s22]]   ;;  %s18102_s22 = smov 20  }
  0x15   :  { %s18231_s4 = sld [smem:[%s21569_s0 + %s18099_s28]]   ;;  %s18103_s28 = smov 21  }
  0x16   :  { %s18236_s13 = sld [smem:[%s21569_s0 + %s18100_s7]]   ;;  %s18104_s7 = smov 22  }
  0x17   :  { %s18241_s17 = sld [smem:[%s21569_s0 + %s18101_s15]]   ;;  %s18105_s15 = smov 23  }
  0x18   :  { %s18246_s9 = sld [smem:[%s21569_s0 + %s18102_s22]]   ;;  %s18106_s22 = smov 24  }
  0x19   :  { %21582 = sst [smem:[#allocation10_spill]] %s18221_s20  ;;  %s18124_s10 = smov 42  }
  0x1a   :  { %s18125_s16 = smov 43  }
  0x1b   :  { %21583 = sst [smem:[#allocation11_spill]] %s18231_s4 }
  0x1c   :  { %21584 = sst [smem:[#allocation12_spill]] %s18236_s13 }
  0x1d   :  { %21585 = sst [smem:[#allocation13_spill]] %s18241_s17 }
  0x1e   :  { %21586 = sst [smem:[#allocation14_spill]] %s18246_s9 }
  0x1f   :  { %s18251_s4 = sld [smem:[%s21569_s0 + %s18103_s28]]   ;;  %s18107_s28 = smov 25  }
  0x20   :  { %s18256_s13 = sld [smem:[%s21569_s0 + %s18104_s7]]   ;;  %s18108_s7 = smov 26  }
  0x21   :  { %s18261_s17 = sld [smem:[%s21569_s0 + %s18105_s15]]   ;;  %s18109_s15 = smov 27  }
  0x22   :  { %s18266_s9 = sld [smem:[%s21569_s0 + %s18106_s22]]   ;;  %s18110_s22 = smov 28  }
  0x23   :  { %s18359_s20 = sld [smem:[%s21569_s0 + %s18125_s16]]  }
  0x25   :  { %21587 = sst [smem:[#allocation15_spill]] %s18251_s4 }
  0x26   :  { %21588 = sst [smem:[#allocation16_spill]] %s18256_s13 }
  0x27   :  { %21589 = sst [smem:[#allocation17_spill]] %s18261_s17 }
  0x28   :  { %21590 = sst [smem:[#allocation18_spill]] %s18266_s9 }
  0x29   :  { %s18271_s4 = sld [smem:[%s21569_s0 + %s18107_s28]]   ;;  %s18111_s28 = smov 29  }
  0x2a   :  { %s18276_s13 = sld [smem:[%s21569_s0 + %s18108_s7]]   ;;  %s18112_s7 = smov 30  }
  0x2b   :  { %s18281_s17 = sld [smem:[%s21569_s0 + %s18109_s15]]   ;;  %s18113_s15 = smov 31  }
  0x2c   :  { %s18286_s9 = sld [smem:[%s21569_s0 + %s18110_s22]]   ;;  %s18114_s22 = smov 32  }
  0x2f   :  { %21591 = sst [smem:[#allocation19_spill]] %s18271_s4 }
  0x30   :  { %21592 = sst [smem:[#allocation20_spill]] %s18276_s13 }
  0x31   :  { %21593 = sst [smem:[#allocation21_spill]] %s18281_s17 }
  0x32   :  { %21594 = sst [smem:[#allocation22_spill]] %s18286_s9 }
  0x33   :  { %s18291_s4 = sld [smem:[%s21569_s0 + %s18111_s28]]   ;;  %s18115_s28 = smov 33  }
  0x34   :  { %s18296_s13 = sld [smem:[%s21569_s0 + %s18112_s7]]   ;;  %s18116_s7 = smov 34  }
  0x35   :  { %s18301_s17 = sld [smem:[%s21569_s0 + %s18113_s15]]   ;;  %s18117_s15 = smov 35  }
  0x36   :  { %s18306_s9 = sld [smem:[%s21569_s0 + %s18114_s22]]   ;;  %s18118_s22 = smov 36  }
  0x39   :  { %21595 = sst [smem:[#allocation23_spill]] %s18291_s4 }
  0x3a   :  { %21596 = sst [smem:[#allocation24_spill]] %s18296_s13 }
  0x3b   :  { %21597 = sst [smem:[#allocation25_spill]] %s18301_s17 }
  0x3c   :  { %21598 = sst [smem:[#allocation26_spill]] %s18306_s9 }
  0x3d   :  { %s18311_s4 = sld [smem:[%s21569_s0 + %s18115_s28]]   ;;  %s18119_s28 = smov 37  }
  0x3e   :  { %s18316_s13 = sld [smem:[%s21569_s0 + %s18116_s7]]   ;;  %s18120_s7 = smov 38  }
  0x3f   :  { %s18321_s17 = sld [smem:[%s21569_s0 + %s18117_s15]]   ;;  %s18121_s15 = smov 39  }
  0x40   :  { %s18326_s9 = sld [smem:[%s21569_s0 + %s18118_s22]]  }
  0x43   :  { %21599 = sst [smem:[#allocation27_spill]] %s18311_s4 }
  0x44   :  { %21600 = sst [smem:[#allocation28_spill]] %s18316_s13 }
  0x45   :  { %21601 = sst [smem:[#allocation29_spill]] %s18321_s17 }
  0x46   :  { %21602 = sst [smem:[#allocation30_spill]] %s18326_s9 }
  0x47   :  { %s18331_s4 = sld [smem:[%s21569_s0 + %s18119_s28]]   ;;  %s18127_s28 = smov 46  }
  0x48   :  { %s18336_s13 = sld [smem:[%s21569_s0 + %s18120_s7]]  }
  0x49   :  { %s15927_s17 = sld [smem:[%s21569_s0 + %s18121_s15]]  }
  0x4a   :  { %s18344_s9 = sld [smem:[%s21569_s0 + %s18122_s23]]   ;;  %s18126_s23 = smov 44  }
  0x4d   :  { %21603 = sst [smem:[#allocation31_spill]] %s18331_s4 }
  0x4e   :  { %21604 = sst [smem:[#allocation32_spill]] %s18336_s13 }
  0x4f   :  { %s18349_s4 = sld [smem:[%s21569_s0 + %s18123_s1]]   ;;  %v98_v0 = vstv %s15927_s17 }
  0x50   :  { %21605 = sst [smem:[#allocation33_spill]] %s18344_s9  ;;  %99 = vst [vmem:[#allocation2] sm:$0x1] %v98_v0 }
  0x51   :  { %s18354_s13 = sld [smem:[%s21569_s0 + %s18124_s10]]   ;;  %s18128_s10 = smov 45  }
  0x52   :  { %s15932_s9 = sld [smem:[%s21569_s0 + %s18126_s23]]  }
  0x53   :  { %s15933_s15 = sld [smem:[%s21569_s0 + %s18128_s10]]  }
  0x55   :  { %21606 = sst [smem:[#allocation34_spill]] %s18349_s4 }
  0x56   :  { %s18367_s4 = sld [smem:[%s21569_s0 + %s18127_s28]]  }
  0x59   :  { %v100_v1 = vstv %s15933_s15 }
  0x5a   :  { %101 = vst [vmem:[#allocation3] sm:$0x1] %v100_v1 }
  0x5b   :  { %102 = vsyncpa [#allocation5], 0  ;;  %s18129_s16 = smov [#allocation4]  }
  0x5c   :  { %s197_s18 = sshll.u32 %s18129_s16, 4  ;;  %s198_s18 = int_to_ptr.vmem [resolvable:$true] %s197_s18 }
  0x5d   :  { %s18069_s23 = scalar_lea.vmem %s198_s18, 16  ;;  %s18073_s22 = scalar_lea.vmem %s198_s18, 32 }
  0x5e   :  { %p18070_p0 = scmp.ne.s32.totalorder %s198_s18, %s18069_s23  ;;  %p18074_p1 = scmp.lt.s32.totalorder %s198_s18, %s198_s18 }
  0x5f   :  { %p18075_p2 = scmp.lt.s32.totalorder %s18073_s22, %s18069_s23 }
  0x61   :  { %p18076_p3 = por %p18075_p2, %p18074_p1 }
  0x63   :  { %p18077_p4 = pnand %p18076_p3, %p18070_p0 }
  0x65   :  { %18080 = shalt.err (!%p18077_p4)
}
  0x66   :  { %200 = dma.hbm_to_vmem [thread:$0]  %s15932_s9, 16, %s198_s18, [#allocation5]  }
  0x67   :  { %18081 = dma.done.wait [#allocation5], 16  }
  0x68   :  { %18082 = vsyncadd [#allocation5], 4294967280  ;;  %v17681_v2 = vld [vmem:[%s18166_s21 + $0x18] sm:$0xff]   ;;  %v17683_v4 = vld [vmem:[%s18166_s21 + $0x10] sm:$0xff]   ;;  %vm251_vm0 = vcmask 523264   ;;  %v18130_v19 = vmov 0.0   ;;  %v313_v22 = vlaneseq }
  0x69   :  { %v17682_v3 = vld [vmem:[%s18176_s29 + $0x18] sm:$0xff]   ;;  %16606 = vmatprep.subr.bf16.mxu0 %v17681_v2  ;;  %v17684_v5 = vld [vmem:[%s18176_s29 + $0x10] sm:$0xff]   ;;  %v17685_v6 = vld [vmem:[%s18166_s21 + $0x8] sm:$0xff]   ;;  %vm18131_vm1 = vmmov 0   ;;  %v18132_v20 = vmov 1966171168  }
  0x6a   :  { %16618 = vmatprep.subr.bf16.mxu1 %v17682_v3  ;;  %16607 = vmatpush3.bf16.msra.mxu0 %v17681_v2  ;;  %v17686_v7 = vld [vmem:[%s18176_s29 + $0x8] sm:$0xff]   ;;  %v17687_v8 = vld [vmem:[%s18166_s21] sm:$0xff]   ;;  %v209_v13 = vld [vmem:[%s18146_s5 + $0x10] sm:$0xff]  ;;  %v311_v21 = vunpack.c.l.s4 %v18132_v20  ;;  %v314_v26 = vshrl.u32 %v313_v22, 7  ;;  %vm1538_vm2 = vcmask 130048   ;;  %vm2008_vm3 = vcmask 1040384  }
  0x6b   :  { %16619 = vmatpush3.bf16.msra.mxu1 %v17682_v3  ;;  %16608 = vmatprep.subr.bf16.mxu0 %v17683_v4  ;;  %v17688_v9 = vld [vmem:[%s18176_s29] sm:$0xff]   ;;  %v208_v11 = vld [vmem:[%s18146_s5 + $0x8] sm:$0xff]  ;;  %v211_v14 = vpack.c.bf16 %v209_v13, %v209_v13  ;;  %v17689_v15 = vld [vmem:[%s18186_s8 + $0x18] sm:$0xff]   ;;  %vm2009_vm4 = vcmask 1041408   ;;  %vm1907_vm5 = vcmask 18432   ;;  %s18134_s0 = smov 112  }
  0x6c   :  { %16620 = vmatprep.subr.bf16.mxu1 %v17684_v5  ;;  %v207_v10 = vld [vmem:[%s18146_s5] sm:$0xff]  ;;  %v17690_v16 = vld [vmem:[%s18186_s8 + $0x10] sm:$0xff]   ;;  %v17691_v17 = vld [vmem:[%s18186_s8 + $0x8] sm:$0xff]   ;;  %v312_v25 = vunpack.c.0.s8 %v311_v21  ;;  %vm2004_vm6 = vcmask 23552   ;;  %s18135_s9 = smov 96   ;;  %s18136_s17 = smov 80  }
  0x6d   :  { %v210_v12 = vpack.c.bf16 %v208_v11, %v207_v10  ;;  %v17692_v18 = vld [vmem:[%s18186_s8] sm:$0xff]   ;;  %s21608_s21 = sld [smem:[#allocation11_spill]]  ;;  %vm15235_vm7 = vcmask 518144   ;;  %vm15299_vm8 = vcmask 2048  }
  0x6e   :  { %16609 = vmatpush3.bf16.msra.mxu0 %v17683_v4  ;;  %v15935_v24 = vld [vmem:[%s18171_s25] ss:$0 sm:$0xff]  ;;  %v18400_v32 = vsub.s32 %v312_v25, %v314_v26  ;;  %s21609_s25 = sld [smem:[#allocation14_spill]] }
  0x6f   :  { %16621 = vmatpush3.bf16.msra.mxu1 %v17684_v5  ;;  %16610 = vmatprep.subr.bf16.mxu0 %v17685_v6  ;;  %v15942_v35 = vld [vmem:[%s18181_s3] ss:$0 sm:$0xff]  ;;  %s21610_s29 = sld [smem:[#allocation16_spill]] }
  0x70   :  { %16622 = vmatprep.subr.bf16.mxu1 %v17686_v7  ;;  %16614 = vmatprep.mubr.msk.bf16.mxu0 %vm251_vm0, %v210_v12  ;;  %s21611_s3 = sld [smem:[#allocation18_spill]] }
  0x71   :  { %16626 = vmatprep.mubr.msk.bf16.mxu1 %vm251_vm0, %v210_v12  ;;  %s21612_s8 = sld [smem:[#allocation12_spill]] }
  0x72   :  { %16611 = vmatpush3.bf16.msra.mxu0 %v17685_v6  ;;  %s21620_s26 = sld [smem:[#allocation26_spill]] }
  0x73   :  { %16623 = vmatpush3.bf16.msra.mxu1 %v17686_v7  ;;  %16612 = vmatprep.subr.bf16.mxu0 %v17687_v8  ;;  %s21621_s28 = sld [smem:[#allocation22_spill]] }
  0x74   :  { %16624 = vmatprep.subr.bf16.mxu1 %v17688_v9  ;;  %s21622_s1 = sld [smem:[#allocation23_spill]] }
  0x75   :  { %s21623_s2 = sld [smem:[#allocation25_spill]] }
  0x76   :  { %16613 = vmatpush3.bf16.msra.mxu0 %v17687_v8  ;;  %s21624_s10 = sld [smem:[#allocation27_spill]] }
  0x77   :  { %16625 = vmatpush3.bf16.msra.mxu1 %v17688_v9  ;;  %16630 = vmatprep.subr.bf16.mxu0 %v17689_v15  ;;  %s21625_s7 = sld [smem:[#allocation30_spill]] }
  0x78   :  { %16642 = vmatprep.subr.bf16.mxu1 %v18130_v19  ;;  %s21626_s11 = sld [smem:[#allocation7_spill]] }
  0x79   :  { %16615 = vmatmul.mubr.msk.bf16.vlgmr.msra.gmra.mxu0 %vm251_vm0, %v211_v14  ;;  %s21627_s15 = sld [smem:[#allocation28_spill]] }
  0x7a   :  { %16627 = vmatmul.mubr.msk.bf16.vlgmr.msra.gmra.mxu1 %vm251_vm0, %v211_v14  ;;  %16638 = vmatprep.mubr.msk.bf16.mxu0 %vm251_vm0, %v210_v12  ;;  %s21628_s16 = sld [smem:[#allocation29_spill]] }
  0x7b   :  { %16631 = vmatpush3.bf16.msra.mxu0 %v17689_v15  ;;  %16644 = vmatprep.mubr.msk.bf16.mxu1 %vm18131_vm1, %v18130_v19  ;;  %s21629_s18 = sld [smem:[#allocation31_spill]] }
  0x7c   :  { %16632 = vmatprep.subr.bf16.mxu0 %v17690_v16  ;;  %s21630_s23 = sld [smem:[#allocation32_spill]] }
  0x7d   :  { %s21631_s22 = sld [smem:[#allocation9_spill]] }
  0x7f   :  { %16633 = vmatpush3.bf16.msra.mxu0 %v17690_v16 }
  0x80   :  { %16634 = vmatprep.subr.bf16.mxu0 %v17691_v17 }
  0x83   :  { %16635 = vmatpush3.bf16.msra.mxu0 %v17691_v17 }
  0x84   :  { %16636 = vmatprep.subr.bf16.mxu0 %v17692_v18 }
  0x87   :  { %16637 = vmatpush3.bf16.msra.mxu0 %v17692_v18 }
  0x88   :  { %16654 = vmatprep.subr.bf16.mxu0 %v18130_v19 }
  0x8a   :  { %16639 = vmatmul.mubr.msk.bf16.vlgmr.msra.gmra.mxu0 %vm251_vm0, %v211_v14 }
  0x8b   :  { %16656 = vmatprep.mubr.msk.bf16.mxu0 %vm18131_vm1, %v18130_v19 }
 0x139   :  { %v16616_v23 = vpop.f32.mrf.mxu0 }
 0x13a   :  { %v16628_v27 = vpop.f32.mrf.mxu1  ;;  %v301_v37 = vadd.f32 %v16616_v23, %v15935_v24 }
 0x13b   :  { %v292_v28 = vpop.f32.mrf.mxu0  ;;  %v538_v38 = vadd.f32 %v16628_v27, %v15942_v35 }
 0x13c   :  { %v529_v29 = vpop.f32.mrf.mxu1  ;;  %v293_v30 = vadd.f32 %v15935_v24, %v292_v28  ;;  %v407_v42 = vcombine.high %v301_v37, %v301_v37  ;;  %v414_v43 = vrot.slane %v301_v37, %v18400_v32 }
 0x13d   :  { %v16617_v31 = vpop.f32.mrf.mxu0  ;;  %v530_v40 = vadd.f32 %v15942_v35, %v529_v29  ;;  %v644_v45 = vcombine.high %v538_v38, %v538_v38  ;;  %v651_v46 = vrot.slane %v538_v38, %v18400_v32 }
 0x13e   :  { %v16629_v33 = vpop.f32.mrf.mxu1  ;;  %v316_v34 = vrot.slane %v293_v30, %v18400_v32  ;;  %v309_v36 = vcombine.high %v293_v30, %v293_v30  ;;  %v18410_v51 = vrot.slane %v407_v42, %v18400_v32  ;;  %v422_v58 = vcombine.high %v414_v43, %v414_v43 }
 0x13f   :  { %v295_v44 = vpop.f32.mrf.mxu0  ;;  %v546_v48 = vcombine.high %v530_v40, %v530_v40  ;;  %v553_v50 = vrot.slane %v530_v40, %v18400_v32  ;;  %v18416_v59 = vrot.slane %v414_v43, %v18400_v32  ;;  %v658_v60 = vrot.slane %v644_v45, %v18400_v32 }
 0x140   :  { %v324_v39 = vcombine.high %v316_v34, %v316_v34  ;;  %v323_v41 = vrot.slane %v309_v36, %v18400_v32  ;;  %v332_v52 = vrot.slane %v316_v34, %v18400_v32  ;;  %v296_v53 = vadd.f32 %v15935_v24, %v295_v44  ;;  %v532_v6 = vpop.f32.mrf.mxu1 }
 0x141   :  { %v560_v55 = vrot.slane %v546_v48, %v18400_v32  ;;  %v561_v56 = vcombine.high %v553_v50, %v553_v50  ;;  %v569_v57 = vrot.slane %v553_v50, %v18400_v32  ;;  %v659_v61 = vcombine.high %v651_v46, %v651_v46 }
 0x142   :  { %v346_v47 = vrot.slane %v324_v39, %v18400_v32  ;;  %v325_v49 = vcombine.high %v323_v41, %v323_v41  ;;  %v339_v62 = vrot.slane %v323_v41, %v18400_v32  ;;  %v354_v2 = vcombine.high %v332_v52, %v332_v52 }
 0x143   :  { %v562_v0 = vcombine.high %v560_v55, %v560_v55  ;;  %v583_v1 = vrot.slane %v561_v56, %v18400_v32  ;;  %v591_v4 = vcombine.high %v569_v57, %v569_v57  ;;  %v358_v5 = vcombine.high %v296_v53, %v296_v53 }
 0x144   :  { %v356_v54 = vcombine.high %v346_v47, %v346_v47  ;;  %v353_v63 = vrot.slane %v325_v49, %v18400_v32  ;;  %v938_v3 = vcombine.low %v332_v52, %v346_v47  ;;  %v576_v8 = vrot.slane %v560_v55, %v18400_v32 }
 0x145   :  { %v593_v9 = vcombine.high %v583_v1, %v583_v1  ;;  %v1138_v10 = vcombine.low %v569_v57, %v583_v1  ;;  %v660_v11 = vcombine.high %v658_v60, %v658_v60  ;;  %v18424_v12 = vrot.slane %v651_v46, %v18400_v32 }
 0x146   :  { %v961_v7 = vcombine.low %v356_v54, %v339_v62  ;;  %v18427_v13 = vrot.slane %v658_v60, %v18400_v32  ;;  %v18430_v14 = vrot.slane %v659_v61, %v18400_v32  ;;  %v590_v15 = vrot.slane %v562_v0, %v18400_v32 }
 0x147   :  { %v1145_v16 = vrot.slane %v1138_v10, %v18400_v32  ;;  %v1161_v17 = vcombine.low %v593_v9, %v576_v8  ;;  %v533_v18 = vadd.f32 %v15942_v35, %v532_v6  ;;  %v18435_v20 = vrot.slane %v422_v58, %v18400_v32 }
 0x148   :  { %v15956_v21 = vcombine.high %v339_v62, %v353_v63  ;;  %v1152_v22 = vrot.slane %v591_v4, %v18400_v32  ;;  %v372_v23 = vrot.slane %v358_v5, %v18400_v32  ;;  %v945_v24 = vrot.slane %v938_v3, %v18400_v32 }
 0x149   :  { %v952_v25 = vrot.slane %v354_v2, %v18400_v32  ;;  %v968_v26 = vrot.slane %v961_v7, %v18400_v32  ;;  %v975_v27 = vrot.slane %v353_v63, %v18400_v32  ;;  %v18444_v28 = vrot.slane %v660_v11, %v18400_v32 }
 0x14a   :  { %v1153_v29 = vcombine.low %v1145_v16, %v1152_v22  ;;  %v1168_v30 = vrot.slane %v1161_v17, %v18400_v32  ;;  %v365_v31 = vrot.slane %v296_v53, %v18400_v32  ;;  %v690_v33 = vcombine.high %v18427_v13, %v18427_v13 }
 0x14b   :  { %v1267_v34 = vrot.slane %v18430_v14, %v18400_v32  ;;  %v15958_v35 = vcombine.high %v576_v8, %v590_v15  ;;  %v595_v36 = vcombine.high %v533_v18, %v533_v18  ;;  %v15959_v37 = vcombine.high %v18424_v12, %v18430_v14 }
 0x14c   :  { %v991_v38 = vrot.slane %v15956_v21, %v18400_v32  ;;  %v1175_v39 = vrot.slane %v590_v15, %v18400_v32  ;;  %v374_v40 = vcombine.high %v372_v23, %v372_v23  ;;  %v953_v41 = vcombine.low %v945_v24, %v952_v25 }
 0x14d   :  { %v18456_v42 = vcombine.low %v968_v26, %v975_v27  ;;  %v602_v43 = vrot.slane %v533_v18, %v18400_v32  ;;  %v609_v44 = vrot.slane %v595_v36, %v18400_v32  ;;  %v373_v46 = vcombine.high %v365_v31, %v365_v31 }
 0x14e   :  { %v1176_v45 = vcombine.low %v1168_v30, %v1175_v39  ;;  %v381_v47 = vrot.slane %v365_v31, %v18400_v32  ;;  %v1160_v48 = vrot.slane %v1153_v29, %v18400_v32  ;;  %v1191_v49 = vrot.slane %v15958_v35, %v18400_v32 }
 0x14f   :  { %v610_v50 = vcombine.high %v602_v43, %v602_v43  ;;  %v611_v52 = vcombine.high %v609_v44, %v609_v44  ;;  %v618_v53 = vrot.slane %v602_v43, %v18400_v32  ;;  %v388_v54 = vrot.slane %v372_v23, %v18400_v32 }
 0x150   :  { %v18466_v55 = vrot.slane %v374_v40, %v18400_v32  ;;  %v625_v56 = vrot.slane %v609_v44, %v18400_v32  ;;  %v18469_v57 = vpack.c.bf16 %v1160_v48, %v1160_v48  ;;  %v998_v63 = vrot.slane %v381_v47, %v18400_v32 }
 0x151   :  { %v632_v58 = vrot.slane %v610_v50, %v18400_v32  ;;  %v639_v60 = vrot.slane %v611_v52, %v18400_v32  ;;  %v640_v61 = vcombine.high %v618_v53, %v618_v53  ;;  %v1198_v62 = vrot.slane %v618_v53, %v18400_v32 }
 0x152   :  { %v641_v0 = vcombine.high %v625_v56, %v625_v56  ;;  %v1543_v1 = vsel %vm1538_vm2, %v18469_v57, 0  ;;  %v1183_v2 = vrot.slane %v1176_v45, %v18400_v32  ;;  %v395_v7 = vrot.slane %v373_v46, %v18400_v32 }
 0x153   :  { %v642_v3 = vcombine.high %v632_v58, %v632_v58  ;;  %v643_v4 = vcombine.high %v639_v60, %v639_v60  ;;  %v1199_v5 = vcombine.low %v1191_v49, %v1198_v62  ;;  %v1207_v6 = vcombine.low %v632_v58, %v640_v61  ;;  %16643 = vmatpush3.bf16.xpose.msra.mxu1 %v1543_v1 }
 0x154   :  { %v403_v8 = vcombine.high %v381_v47, %v381_v47  ;;  %v1230_v9 = vcombine.low %v625_v56, %v639_v60  ;;  %v960_v10 = vrot.slane %v953_v41, %v18400_v32  ;;  %16648 = vmatprep.subr.bf16.mxu1 %v18130_v19  ;;  %v404_v11 = vcombine.high %v388_v54, %v388_v54 }
 0x155   :  { %v1206_v15 = vrot.slane %v1199_v5, %v18400_v32  ;;  %v1214_v16 = vrot.slane %v1207_v6, %v18400_v32  ;;  %v1221_v17 = vrot.slane %v642_v3, %v18400_v32  ;;  %v1244_v21 = vrot.slane %v641_v0, %v18400_v32 }
 0x156   :  { %v1237_v18 = vrot.slane %v1230_v9, %v18400_v32  ;;  %v1253_v22 = vcombine.low %v643_v4, %v18424_v12  ;;  %v18487_v23 = vpack.c.bf16 %v1183_v2, %v1183_v2  ;;  %v999_v24 = vcombine.low %v991_v38, %v998_v63 }
 0x157   :  { %v1030_v25 = vcombine.low %v388_v54, %v18466_v55  ;;  %v1222_v26 = vcombine.low %v1214_v16, %v1221_v17  ;;  %v18490_v27 = vpack.c.bf16 %v1206_v15, %v1206_v15  ;;  %v405_v29 = vcombine.high %v395_v7, %v395_v7 }
 0x158   :  { %v1007_v30 = vcombine.low %v395_v7, %v403_v8  ;;  %v1245_v31 = vcombine.low %v1237_v18, %v1244_v21  ;;  %v18492_v35 = vpack.c.bf16 %v960_v10, %v960_v10  ;;  %v1283_v36 = vrot.slane %v15959_v37, %v18400_v32 }
 0x159   :  { %v1290_v39 = vrot.slane %v18427_v13, %v18400_v32  ;;  %v406_v12 = vcombine.high %v18466_v55, %v18466_v55  ;;  %v1635_v38 = vsel %vm1538_vm2, %v18490_v27, 0  ;;  %v1260_v40 = vrot.slane %v1253_v22, %v18400_v32 }
 0x15a   :  { %16655 = vmatpush3.bf16.xpose.msra.mxu0 %v1635_v38  ;;  %16645 = vmatmul.mubr.msk.bf16.vlgmr.msra.gmra.mxu1 %vm1538_vm2, %v18492_v35  ;;  %v1589_v41 = vsel %vm1538_vm2, %v18487_v23, 0  ;;  %v1252_v37 = vrot.slane %v1245_v31, %v18400_v32  ;;  %v1229_v43 = vrot.slane %v1222_v26, %v18400_v32  ;;  %v1006_v44 = vrot.slane %v999_v24, %v18400_v32 }
 0x15b   :  { %v1037_v45 = vrot.slane %v1030_v25, %v18400_v32  ;;  %v1044_v46 = vrot.slane %v404_v11, %v18400_v32  ;;  %16649 = vmatpush3.bf16.xpose.msra.mxu1 %v1589_v41  ;;  %16666 = vmatprep.subr.bf16.mxu0 %v18130_v19  ;;  %v1014_v47 = vrot.slane %v1007_v30, %v18400_v32 }
 0x15c   :  { %v1021_v48 = vrot.slane %v405_v29, %v18400_v32  ;;  %16650 = vmatprep.mubr.msk.bf16.mxu1 %vm18131_vm1, %v18130_v19  ;;  %v983_v49 = vrot.slane %v18456_v42, %v18400_v32  ;;  %16660 = vmatprep.subr.bf16.mxu1 %v18130_v19  ;;  %v423_v50 = vcombine.high %v18410_v51, %v18410_v51 }
 0x15d   :  { %v1291_v52 = vcombine.low %v1283_v36, %v1290_v39  ;;  %v18521_v53 = vpack.c.bf16 %v1252_v37, %v1252_v37  ;;  %v692_v54 = vcombine.high %v18444_v28, %v18444_v28  ;;  %v1299_v55 = vcombine.low %v18444_v28, %v690_v33 }
 0x15e   :  { %v18529_v56 = vpack.c.bf16 %v1229_v43, %v1229_v43  ;;  %v1268_v42 = vcombine.low %v1260_v40, %v1267_v34  ;;  %v437_v58 = vrot.slane %v18410_v51, %v18400_v32  ;;  %v15957_v60 = vcombine.high %v18416_v59, %v18435_v20  ;;  %v16640_v43 = vpop.f32.mrf.mxu0 }
 0x15f   :  { %v1045_v61 = vcombine.low %v1037_v45, %v1044_v46  ;;  %v18538_v62 = vpack.c.bf16 %v1006_v44, %v1006_v44  ;;  %v1022_v63 = vcombine.low %v1014_v47, %v1021_v48  ;;  %v1053_v13 = vcombine.low %v406_v12, %v18416_v59  ;;  %v15949_v44 = vld [vmem:[%s18191_s14] ss:$0 sm:$0xff]  ;;  %s21613_s14 = sld [smem:[#allocation13_spill]] }
 0x160   :  { %v18541_v0 = vpack.c.bf16 %v983_v49, %v983_v49  ;;  %v451_v28 = vrot.slane %v423_v50, %v18400_v32  ;;  %v1727_v14 = vsel %vm1538_vm2, %v18521_v53, 0  ;;  %v1298_v51 = vrot.slane %v1291_v52, %v18400_v32  ;;  %v766_v46 = vpop.f32.mrf.mxu0 }
 0x161   :  { %16657 = vmatmul.mubr.msk.bf16.vlgmr.msra.gmra.mxu0 %vm1538_vm2, %v18538_v62  ;;  %v1306_v33 = vrot.slane %v1299_v55, %v18400_v32  ;;  %v1313_v34 = vrot.slane %v692_v54, %v18400_v32  ;;  %v1681_v59 = vsel %vm1538_vm2, %v18529_v56, 0  ;;  %v1275_v1 = vrot.slane %v1268_v42, %v18400_v32 }
 0x162   :  { %16667 = vmatpush3.bf16.xpose.msra.mxu0 %v1727_v14  ;;  %16651 = vmatmul.mubr.msk.bf16.vlgmr.msra.gmra.mxu1 %vm1538_vm2, %v18541_v0  ;;  %v1083_v2 = vrot.slane %v15957_v60, %v18400_v32  ;;  %v1090_v3 = vrot.slane %v437_v58, %v18400_v32  ;;  %v1052_v4 = vrot.slane %v1045_v61, %v18400_v32  ;;  %v16641_v48 = vpop.f32.mrf.mxu0 }
 0x163   :  { %16661 = vmatpush3.bf16.xpose.msra.mxu1 %v1681_v59  ;;  %16668 = vmatprep.mubr.msk.bf16.mxu0 %vm18131_vm1, %v18130_v19  ;;  %v453_v5 = vcombine.high %v437_v58, %v437_v58  ;;  %v1060_v6 = vrot.slane %v1053_v13, %v18400_v32  ;;  %v1029_v7 = vrot.slane %v1022_v63, %v18400_v32  ;;  %v18133_v48 = vmov 65535  }
 0x164   :  { %16678 = vmatprep.subr.bf16.mxu0 %v18130_v19  ;;  %16662 = vmatprep.mubr.msk.bf16.mxu1 %vm18131_vm1, %v18130_v19  ;;  %v18566_v8 = vpack.c.bf16 %v1298_v51, %v1298_v51  ;;  %v1067_v9 = vrot.slane %v18435_v20, %v18400_v32  ;;  %v18571_v10 = vpack.c.bf16 %v1275_v1, %v1275_v1  ;;  %v769_v52 = vpop.f32.mrf.mxu0 }
 0x165   :  { %16672 = vmatprep.subr.bf16.mxu1 %v18130_v19  ;;  %v1314_v11 = vcombine.low %v1306_v33, %v1313_v34  ;;  %v1091_v15 = vcombine.low %v1083_v2, %v1090_v3  ;;  %v18573_v16 = vpack.c.bf16 %v1052_v4, %v1052_v4  ;;  %v455_v17 = vcombine.high %v451_v28, %v451_v28 }
 0x166   :  { %v1099_v18 = vcombine.low %v451_v28, %v453_v5  ;;  %v18575_v21 = vpack.c.bf16 %v1029_v7, %v1029_v7  ;;  %v1068_v22 = vcombine.low %v1060_v6, %v1067_v9  ;;  %v1819_v24 = vsel %vm1538_vm2, %v18566_v8, 0 }
 0x167   :  { %v1773_v20 = vsel %vm1538_vm2, %v18571_v10, 0  ;;  %v1321_v25 = vrot.slane %v1314_v11, %v18400_v32  ;;  %v1098_v26 = vrot.slane %v1091_v15, %v18400_v32  ;;  %v1113_v30 = vrot.slane %v455_v17, %v18400_v32 }
 0x168   :  { %v1106_v29 = vrot.slane %v1099_v18, %v18400_v32  ;;  %v1075_v31 = vrot.slane %v1068_v22, %v18400_v32  ;;  %v18621_v45 = vadd.f32 %v16640_v43, %v15949_v44  ;;  %v767_v47 = vadd.f32 %v15949_v44, %v766_v46 }
 0x169   :  { %16669 = vmatmul.mubr.msk.bf16.vlgmr.msra.gmra.mxu0 %vm1538_vm2, %v18573_v16  ;;  %v18596_v36 = vpack.c.bf16 %v1321_v25, %v1321_v25  ;;  %v18598_v39 = vpack.c.bf16 %v1098_v26, %v1098_v26  ;;  %v770_v58 = vadd.f32 %v15949_v44, %v769_v52 }
 0x16a   :  { %16679 = vmatpush3.bf16.xpose.msra.mxu0 %v1819_v24  ;;  %16663 = vmatmul.mubr.msk.bf16.vlgmr.msra.gmra.mxu1 %vm1538_vm2, %v18575_v21  ;;  %v18600_v12 = vpack.c.bf16 %v1075_v31, %v1075_v31  ;;  %v1114_v38 = vcombine.low %v1106_v29, %v1113_v30  ;;  %v783_v49 = vcombine.high %v767_v47, %v767_v47 }
 0x16b   :  { %16673 = vmatpush3.bf16.xpose.msra.mxu1 %v1773_v20  ;;  %16680 = vmatprep.mubr.msk.bf16.mxu0 %vm18131_vm1, %v18130_v19  ;;  %v1865_v40 = vsel %vm1538_vm2, %v18596_v36, 0  ;;  %v790_v50 = vrot.slane %v767_v47, %v18400_v32  ;;  %v832_v33 = vcombine.high %v770_v58, %v770_v58  ;;  %v888_v34 = vrot.slane %v18621_v45, %v18400_v32 }
 0x16c   :  { %16674 = vmatprep.mubr.msk.bf16.mxu1 %vm18131_vm1, %v18130_v19  ;;  %16684 = vmatprep.subr.bf16.mxu1 %v18130_v19  ;;  %v1121_v41 = vrot.slane %v1114_v38, %v18400_v32  ;;  %v797_v54 = vrot.slane %v783_v49, %v18400_v32  ;;  %v18635_v5 = vrot.slane %v770_v58, %v18400_v32  ;;  %v2010_v49 = vsel %vm2008_vm3, 4294967295, %v18133_v48 }
 0x16d   :  { %16690 = vmatprep.subr.bf16.mxu0 %v18130_v19  ;;  %v798_v55 = vcombine.high %v790_v50, %v790_v50  ;;  %v806_v42 = vrot.slane %v790_v50, %v18400_v32  ;;  %v18638_v6 = vrot.slane %v832_v33, %v18400_v32  ;;  %v896_v9 = vcombine.high %v888_v34, %v888_v34 }
 0x16e   :  { %v18614_v37 = vpack.c.bf16 %v1121_v41, %v1121_v41  ;;  %v799_v60 = vcombine.high %v797_v54, %v797_v54  ;;  %v813_v61 = vrot.slane %v797_v54, %v18400_v32  ;;  %v18646_v17 = vrot.slane %v18635_v5, %v18400_v32 }
 0x16f   :  { %v820_v63 = vrot.slane %v798_v55, %v18400_v32  ;;  %v828_v13 = vcombine.high %v806_v42, %v806_v42  ;;  %v848_v15 = vcombine.high %v18638_v6, %v18638_v6  ;;  %v18649_v18 = vrot.slane %v888_v34, %v18400_v32 }
 0x170   :  { %v827_v28 = vrot.slane %v799_v60, %v18400_v32  ;;  %v1398_v25 = vrot.slane %v18646_v17, %v18400_v32  ;;  %v18657_v26 = vrot.slane %v896_v9, %v18400_v32  ;;  %v18675_v50 = vsel %vm2009_vm4, %v2010_v49, 0 }
 0x171   :  { %16681 = vmatmul.mubr.msk.bf16.vlgmr.msra.gmra.mxu0 %vm1538_vm2, %v18598_v39  ;;  %v830_v14 = vcombine.high %v820_v63, %v820_v63  ;;  %v1338_v51 = vcombine.low %v806_v42, %v820_v63  ;;  %v1352_v59 = vrot.slane %v828_v13, %v18400_v32  ;;  %v18652_v20 = vrot.slane %v848_v15, %v18400_v32 }
 0x172   :  { %16675 = vmatmul.mubr.msk.bf16.vlgmr.msra.gmra.mxu1 %vm1538_vm2, %v18600_v12  ;;  %16692 = vmatprep.mubr.msk.bf16.mxu0 %vm18131_vm1, %v18130_v19  ;;  %v15960_v2 = vcombine.high %v813_v61, %v827_v28  ;;  %v1375_v4 = vrot.slane %v827_v28, %v18400_v32  ;;  %v1467_v31 = vrot.slane %v18657_v26, %v18400_v32  ;;  %vm15744_vm4 = vcmask 785408  }
 0x173   :  { %16685 = vmatpush3.bf16.xpose.msra.mxu1 %v1865_v40  ;;  %16686 = vmatprep.mubr.msk.bf16.mxu1 %vm18131_vm1, %v18130_v19  ;;  %v1361_v1 = vcombine.low %v830_v14, %v813_v61  ;;  %v1345_v3 = vrot.slane %v1338_v51, %v18400_v32  ;;  %v880_v29 = vcombine.high %v18652_v20, %v18652_v20 }
 0x174   :  { %16696 = vmatprep.subr.bf16.mxu1 %v18130_v19  ;;  %v1391_v11 = vrot.slane %v15960_v2, %v18400_v32 }
 0x175   :  { %v1368_v7 = vrot.slane %v1361_v1, %v18400_v32  ;;  %v1353_v22 = vcombine.low %v1345_v3, %v1352_v59  ;;  %v1453_v41 = vcombine.low %v880_v29, %v18649_v18 }
 0x176   :  { %v18661_v30 = vcombine.low %v1391_v11, %v1398_v25 }
 0x177   :  { %v1376_v24 = vcombine.low %v1368_v7, %v1375_v4  ;;  %v1360_v38 = vrot.slane %v1353_v22, %v18400_v32  ;;  %v1460_v43 = vrot.slane %v1453_v41, %v18400_v32 }
 0x179   :  { %v1383_v40 = vrot.slane %v1376_v24, %v18400_v32  ;;  %v18669_v44 = vpack.c.bf16 %v1360_v38, %v1360_v38  ;;  %v18673_v47 = vcombine.low %v1460_v43, %v1467_v31 }
 0x17a   :  { %16687 = vmatmul.mubr.msk.bf16.vlgmr.msra.gmra.mxu1 %vm1538_vm2, %v18614_v37 }
 0x17b   :  { %16698 = vmatprep.mubr.msk.bf16.mxu1 %vm18131_vm1, %v18130_v19  ;;  %v18671_v46 = vpack.c.bf16 %v1383_v40, %v1383_v40  ;;  %v2013_v52 = vand.u32 %v18675_v50, %v18669_v44 }
 0x17d   :  { %v2059_v54 = vand.u32 %v18675_v50, %v18671_v46  ;;  %16691 = vmatpush3.bf16.msra.mxu0 %v2013_v52 }
 0x17e   :  { %16702 = vmatprep.subr.bf16.mxu0 %v18130_v19 }
 0x17f   :  { %16697 = vmatpush3.bf16.msra.mxu1 %v2059_v54 }
 0x180   :  { %16708 = vmatprep.subr.bf16.mxu1 %v18130_v19 }
 0x21a   :  { %v1579_v55 = vpop.f32.mrf.mxu1 }
 0x21b   :  { %v1908_v42 = vsel %vm1907_vm5, %v1579_v55, -inf }
 0x21c   :  { %1909 = vmax.xlane.f32.xlu0 %v1908_v42  ;;  %v16646_v58 = vpop.f32.mrf.mxu1 }
 0x21e   :  { %v1582_v60 = vpop.f32.mrf.mxu1 }
 0x220   :  { %v16647_v61 = vpop.f32.mrf.mxu1 }
 0x221   :  { %v1671_v63 = vpop.f32.mrf.mxu0 }
 0x222   :  { %v1914_v13 = vsel %vm1907_vm5, %v1671_v63, -inf  ;;  %v1625_v28 = vpop.f32.mrf.mxu1 }
 0x223   :  { %1915 = vmax.xlane.f32.xlu1 %v1914_v13  ;;  %v16658_v14 = vpop.f32.mrf.mxu0  ;;  %v1911_v51 = vsel %vm1907_vm5, %v1625_v28, -inf }
 0x224   :  { %1912 = vmax.xlane.f32.xlu0 %v1911_v51  ;;  %v16652_v33 = vpop.f32.mrf.mxu1 }
 0x225   :  { %v1674_v34 = vpop.f32.mrf.mxu0 }
 0x226   :  { %v1628_v59 = vpop.f32.mrf.mxu1 }
 0x227   :  { %v16659_v1 = vpop.f32.mrf.mxu0 }
 0x228   :  { %v16653_v2 = vpop.f32.mrf.mxu1 }
 0x229   :  { %v1763_v3 = vpop.f32.mrf.mxu0 }
 0x22a   :  { %v1920_v4 = vsel %vm1907_vm5, %v1763_v3, -inf  ;;  %v1717_v7 = vpop.f32.mrf.mxu1 }
 0x22b   :  { %v16670_v9 = vpop.f32.mrf.mxu0  ;;  %1921 = vmax.xlane.f32.xlu0 %v1920_v4  ;;  %v1917_v11 = vsel %vm1907_vm5, %v1717_v7, -inf }
 0x22c   :  { %1918 = vmax.xlane.f32.xlu1 %v1917_v11  ;;  %v16664_v15 = vpop.f32.mrf.mxu1 }
 0x22d   :  { %v1766_v22 = vpop.f32.mrf.mxu0 }
 0x22e   :  { %v1720_v24 = vpop.f32.mrf.mxu1 }
 0x22f   :  { %v16671_v25 = vpop.f32.mrf.mxu0 }
 0x230   :  { %v16665_v29 = vpop.f32.mrf.mxu1 }
 0x231   :  { %v1855_v31 = vpop.f32.mrf.mxu0 }
 0x232   :  { %v1926_v38 = vsel %vm1907_vm5, %v1855_v31, -inf  ;;  %v18689_v40 = vpop.f32.mrf.mxu1 }
 0x233   :  { %v16682_v41 = vpop.f32.mrf.mxu0  ;;  %1927 = vmax.xlane.f32.xlu0 %v1926_v38  ;;  %v1923_v43 = vsel %vm1907_vm5, %v18689_v40, -inf }
 0x234   :  { %1924 = vmax.xlane.f32.xlu1 %v1923_v43  ;;  %v16676_v48 = vpop.f32.mrf.mxu1 }
 0x235   :  { %v1858_v49 = vpop.f32.mrf.mxu0 }
 0x236   :  { %v1812_v52 = vpop.f32.mrf.mxu1 }
 0x237   :  { %v16683_v54 = vpop.f32.mrf.mxu0 }
 0x238   :  { %v16677_v42 = vpop.f32.mrf.mxu1 }
 0x23a   :  { %v18693_v58 = vpop.f32.mrf.mxu1 }
 0x23b   :  { %v1929_v60 = vsel %vm1907_vm5, %v18693_v58, -inf }
 0x23c   :  { %1930 = vmax.xlane.f32.xlu1 %v1929_v60  ;;  %v16688_v61 = vpop.f32.mrf.mxu1 }
 0x23e   :  { %v1904_v13 = vpop.f32.mrf.mxu1 }
 0x240   :  { %v16689_v14 = vpop.f32.mrf.mxu1 }
 0x2a5   :  { %v1910_v51 = vpop.xlane.xlu0 %1909 }
 0x2a6   :  { %v1932_v33 = vsub.f32 %v1579_v55, %v1910_v51 }
 0x2a8   :  { %v1940_v34 = vmul.f32 1.442695, %v1932_v33 }
 0x2aa   :  { %17756 = vpow2.f32 %v1940_v34 }
 0x2ac   :  { %v1916_v59 = vpop.xlane.xlu1 %1915 }
 0x2ad   :  { %v1934_v1 = vsub.f32 %v1671_v63, %v1916_v59  ;;  %v1913_v2 = vpop.xlane.xlu0 %1912 }
 0x2ae   :  { %v1933_v4 = vsub.f32 %v1625_v28, %v1913_v2 }
 0x2af   :  { %v1944_v9 = vmul.f32 1.442695, %v1934_v1 }
 0x2b0   :  { %v1942_v11 = vmul.f32 1.442695, %v1933_v4 }
 0x2b1   :  { %17758 = vpow2.f32 %v1944_v9  ;;  %v847_v9 = vcombine.high %v18635_v5, %v18635_v5 }
 0x2b2   :  { %17760 = vpow2.f32 %v1942_v11 }
 0x2b4   :  { %v1922_v15 = vpop.xlane.xlu0 %1921 }
 0x2b5   :  { %v1936_v22 = vsub.f32 %v1763_v3, %v1922_v15  ;;  %v1919_v24 = vpop.xlane.xlu1 %1918  ;;  %v862_v15 = vrot.slane %v18638_v6, %v18400_v32 }
 0x2b6   :  { %v1935_v25 = vsub.f32 %v1717_v7, %v1919_v24  ;;  %v881_v24 = vcombine.high %v18621_v45, %v18621_v45  ;;  %v1406_v45 = vrot.slane %v18661_v30, %v18400_v32 }
 0x2b7   :  { %v18697_v29 = vpop.eup %17756  ;;  %v1948_v38 = vmul.f32 1.442695, %v1936_v22  ;;  %v869_v22 = vrot.slane %v847_v9, %v18400_v32  ;;  %v1430_v5 = vcombine.low %v862_v15, %v18652_v20 }
 0x2b8   :  { %v1946_v41 = vmul.f32 1.442695, %v1935_v25  ;;  %v1956_v55 = vsel %vm1907_vm5, %v18697_v29, 0.0  ;;  %v878_v25 = vcombine.high %v862_v15, %v862_v15  ;;  %v18780_v30 = vpack.c.bf16 %v1406_v45, %v1406_v45 }
 0x2b9   :  { %17762 = vpow2.f32 %v1948_v38  ;;  %1957 = vadd.xlane.f32.xlu0 %v1956_v55  ;;  %v879_v38 = vcombine.high %v869_v22, %v869_v22  ;;  %v1437_v20 = vrot.slane %v1430_v5, %v18400_v32 }
 0x2ba   :  { %17764 = vpow2.f32 %v1946_v41 }
 0x2bc   :  { %v1928_v63 = vpop.xlane.xlu0 %1927 }
 0x2bd   :  { %v1938_v28 = vsub.f32 %v1855_v31, %v1928_v63  ;;  %v1925_v13 = vpop.xlane.xlu1 %1924  ;;  %v18764_v63 = vrot.slane %v881_v24, %v18400_v32 }
 0x2be   :  { %v18701_v43 = vpop.eup %17758  ;;  %v1937_v14 = vsub.f32 %v18689_v40, %v1925_v13 }
 0x2bf   :  { %v18703_v48 = vpop.eup %17760  ;;  %v1952_v49 = vmul.f32 1.442695, %v1938_v28  ;;  %v1962_v3 = vsel %vm1907_vm5, %v18701_v43, 0.0 }
 0x2c0   :  { %1963 = vadd.xlane.f32.xlu0 %v1962_v3  ;;  %v1959_v7 = vsel %vm1907_vm5, %v18703_v48, 0.0  ;;  %v1950_v51 = vmul.f32 1.442695, %v1937_v14  ;;  %v18776_v3 = vrot.slane %v18764_v63, %v18400_v32 }
 0x2c1   :  { %17766 = vpow2.f32 %v1952_v49  ;;  %1960 = vadd.xlane.f32.xlu1 %v1959_v7  ;;  %v1421_v49 = vrot.slane %v879_v38, %v18400_v32 }
 0x2c2   :  { %17768 = vpow2.f32 %v1950_v51 }
 0x2c5   :  { %v1931_v34 = vpop.xlane.xlu1 %1930 }
 0x2c6   :  { %v18709_v52 = vpop.eup %17762  ;;  %v1939_v59 = vsub.f32 %v18693_v58, %v1931_v34  ;;  %v877_v58 = vcombine.high %v18646_v17, %v18646_v17  ;;  %v1444_v17 = vrot.slane %v878_v25, %v18400_v32 }
 0x2c7   :  { %v18711_v54 = vpop.eup %17764  ;;  %v1968_v31 = vsel %vm1907_vm5, %v18709_v52, 0.0 }
 0x2c8   :  { %1969 = vadd.xlane.f32.xlu0 %v1968_v31  ;;  %v1965_v42 = vsel %vm1907_vm5, %v18711_v54, 0.0  ;;  %v1954_v1 = vmul.f32 1.442695, %v1939_v59  ;;  %v1407_v41 = vcombine.low %v869_v22, %v877_v58  ;;  %v15961_v31 = vcombine.high %v18649_v18, %v18657_v26 }
 0x2c9   :  { %1966 = vadd.xlane.f32.xlu1 %v1965_v42 }
 0x2ca   :  { %17770 = vpow2.f32 %v1954_v1  ;;  %v1414_v28 = vrot.slane %v1407_v41, %v18400_v32  ;;  %v1483_v18 = vrot.slane %v15961_v31, %v18400_v32 }
 0x2cc   :  { %v1422_v42 = vcombine.low %v1414_v28, %v1421_v49 }
 0x2ce   :  { %v18717_v60 = vpop.eup %17766  ;;  %v1429_v26 = vrot.slane %v1422_v42, %v18400_v32 }
 0x2cf   :  { %v1974_v61 = vsel %vm1907_vm5, %v18717_v60, 0.0  ;;  %v18734_v33 = vpop.eup %17768 }
 0x2d0   :  { %1975 = vadd.xlane.f32.xlu0 %v1974_v61  ;;  %v1971_v40 = vsel %vm1907_vm5, %v18734_v33, 0.0  ;;  %v1445_v61 = vcombine.low %v1437_v20, %v1444_v17  ;;  %v18801_v15 = vpack.c.bf16 %v1429_v26, %v1429_v26 }
 0x2d2   :  { %v1452_v59 = vrot.slane %v1445_v61, %v18400_v32  ;;  %v2151_v5 = vand.u32 %v18675_v50, %v18801_v15 }
 0x2d4   :  { %v18803_v22 = vpack.c.bf16 %v1452_v59, %v1452_v59 }
 0x2d7   :  { %v18745_v2 = vpop.eup %17770 }
 0x2d8   :  { %v1977_v4 = vsel %vm1907_vm5, %v18745_v2, 0.0 }
 0x2da   :  { %2777 = vrot.lane.b32.xlu1 %v18487_v23, %s18134_s0 }
 0x2e6   :  { %2725 = vrot.lane.b32.xlu0 %v18469_v57, %s18134_s0 }
 0x2ea   :  { %2829 = vrot.lane.b32.xlu0 %v18490_v27, %s18134_s0 }
 0x2ee   :  { %2826 = vrot.lane.b32.xlu0 %v18538_v62, %s18134_s0 }
 0x2f2   :  { %2933 = vrot.lane.b32.xlu0 %v18521_v53, %s18134_s0 }
 0x2f6   :  { %2930 = vrot.lane.b32.xlu0 %v18573_v16, %s18134_s0 }
 0x2fa   :  { %3037 = vrot.lane.b32.xlu0 %v18566_v8, %s18134_s0 }
 0x2fe   :  { %3034 = vrot.lane.b32.xlu0 %v18598_v39, %s18134_s0  ;;  %1972 = vadd.xlane.f32.xlu1 %v1971_v40  ;;  %v1490_v40 = vrot.slane %v18776_v3, %v18400_v32 }
 0x300   :  { %v1491_v9 = vcombine.low %v1483_v18, %v1490_v40 }
 0x302   :  { %v1498_v41 = vrot.slane %v1491_v9, %v18400_v32 }
 0x304   :  { %v18820_v17 = vpack.c.bf16 %v1498_v41, %v1498_v41 }
 0x306   :  { %v2289_v31 = vand.u32 %v18675_v50, %v18820_v17 }
 0x30f   :  { %2722 = vrot.lane.b32.xlu1 %v18492_v35, %s18134_s0 }
 0x333   :  { %1978 = vadd.xlane.f32.xlu1 %v1977_v4 }
 0x342   :  { %v1958_v11 = vpop.xlane.xlu0 %1957 }
 0x343   :  { %17772 = vrcp.f32 %v1958_v11 }
 0x344   :  { %2774 = vrot.lane.b32.xlu1 %v18541_v0, %s18134_s0 }
 0x348   :  { %2881 = vrot.lane.b32.xlu1 %v18529_v56, %s18134_s0 }
 0x349   :  { %v1964_v6 = vpop.xlane.xlu0 %1963 }
 0x34a   :  { %17774 = vrcp.f32 %v1964_v6  ;;  %v1961_v55 = vpop.xlane.xlu1 %1960  ;;  %v1475_v6 = vrot.slane %v18673_v47, %v18400_v32 }
 0x34b   :  { %17776 = vrcp.f32 %v1961_v55 }
 0x34c   :  { %2878 = vrot.lane.b32.xlu1 %v18575_v21, %s18134_s0  ;;  %v18826_v45 = vpack.c.bf16 %v1475_v6, %v1475_v6 }
 0x350   :  { %v17773_v7 = vpop.eup %17772  ;;  %2985 = vrot.lane.b32.xlu1 %v18571_v10, %s18134_s0 }
 0x351   :  { %v1970_v13 = vpop.xlane.xlu0 %1969  ;;  %v1988_v14 = vmul.f32 %v17773_v7, %v18697_v29  ;;  %v2105_v29 = vand.u32 %v18675_v50, %v18780_v30  ;;  %v2243_v7 = vand.u32 %v18675_v50, %v18826_v45 }
 0x352   :  { %17778 = vrcp.f32 %v1970_v13  ;;  %v1967_v51 = vpop.xlane.xlu1 %1966 }
 0x353   :  { %17780 = vrcp.f32 %v1967_v51  ;;  %v1996_v34 = vpack.c.bf16 %v1988_v14, %v1988_v14  ;;  %v927_v51 = vcombine.high %v18776_v3, %v18776_v3 }
 0x354   :  { %2982 = vrot.lane.b32.xlu1 %v18600_v12, %s18134_s0 }
 0x355   :  { %16693 = vmatmul.mubr.msk.bf16.vlgmr.msra.gmra.mxu0 %vm2004_vm6, %v1996_v34 }
 0x356   :  { %16703 = vmatpush3.bf16.msra.mxu0 %v2105_v29  ;;  %16704 = vmatprep.mubr.msk.bf16.mxu0 %vm18131_vm1, %v18130_v19  ;;  %v2778_v34 = vpop.permute.xlu1 %2777 }
 0x357   :  { %v17775_v1 = vpop.eup %17774  ;;  %16714 = vmatprep.subr.bf16.mxu0 %v18130_v19 }
 0x358   :  { %v17777_v4 = vpop.eup %17776  ;;  %3089 = vrot.lane.b32.xlu1 %v18596_v36, %s18134_s0  ;;  %v1990_v11 = vmul.f32 %v17775_v1, %v18701_v43  ;;  %v2197_v43 = vand.u32 %v18675_v50, %v18803_v22 }
 0x359   :  { %v1976_v58 = vpop.xlane.xlu0 %1975  ;;  %v1989_v24 = vmul.f32 %v17777_v4, %v18703_v48 }
 0x35a   :  { %17782 = vrcp.f32 %v1976_v58  ;;  %v1998_v38 = vpack.c.bf16 %v1990_v11, %v1990_v11 }
 0x35b   :  { %v1997_v25 = vpack.c.bf16 %v1989_v24, %v1989_v24 }
 0x35c   :  { %3086 = vrot.lane.b32.xlu1 %v18614_v37, %s18134_s0 }
 0x35d   :  { %16699 = vmatmul.mubr.msk.bf16.vlgmr.msra.gmra.mxu1 %vm2004_vm6, %v1997_v25  ;;  %16705 = vmatmul.mubr.msk.bf16.vlgmr.msra.gmra.mxu0 %vm2004_vm6, %v1998_v38 }
 0x35e   :  { %16709 = vmatpush3.bf16.msra.mxu1 %v2151_v5  ;;  %16715 = vmatpush3.bf16.msra.mxu0 %v2197_v43 }
 0x35f   :  { %v17779_v48 = vpop.eup %17778  ;;  %16716 = vmatprep.mubr.msk.bf16.mxu0 %vm18131_vm1, %v18130_v19  ;;  %16726 = vmatprep.subr.bf16.mxu0 %v18130_v19 }
 0x360   :  { %v17781_v55 = vpop.eup %17780  ;;  %16710 = vmatprep.mubr.msk.bf16.mxu1 %vm18131_vm1, %v18130_v19  ;;  %16720 = vmatprep.subr.bf16.mxu1 %v18130_v19  ;;  %v1992_v47 = vmul.f32 %v17779_v48, %v18709_v52 }
 0x361   :  { %v1991_v28 = vmul.f32 %v17781_v55, %v18711_v54  ;;  %v2726_v54 = vpop.permute.xlu0 %2725 }
 0x362   :  { %v2000_v20 = vpack.c.bf16 %v1992_v47, %v1992_v47  ;;  %v2731_v13 = vsel %vm1538_vm2, %v2726_v54, 0 }
 0x363   :  { %v1999_v49 = vpack.c.bf16 %v1991_v28, %v1991_v28 }
 0x365   :  { %16711 = vmatmul.mubr.msk.bf16.vlgmr.msra.gmra.mxu1 %vm2004_vm6, %v1999_v49  ;;  %16717 = vmatmul.mubr.msk.bf16.vlgmr.msra.gmra.mxu0 %vm2004_vm6, %v2000_v20  ;;  %v2830_v40 = vpop.permute.xlu0 %2829 }
 0x366   :  { %16721 = vmatpush3.bf16.msra.mxu1 %v2243_v7  ;;  %16727 = vmatpush3.bf16.msra.mxu0 %v2289_v31  ;;  %v2835_v11 = vsel %vm1538_vm2, %v2830_v40, 0 }
 0x367   :  { %v17783_v42 = vpop.eup %17782  ;;  %16728 = vmatprep.mubr.msk.bf16.mxu0 %vm18131_vm1, %v18130_v19  ;;  %16738 = vmatprep.subr.bf16.mxu0 %v18130_v19 }
 0x368   :  { %v1994_v52 = vmul.f32 %v17783_v42, %v18717_v60  ;;  %16722 = vmatprep.mubr.msk.bf16.mxu1 %vm18131_vm1, %v18130_v19  ;;  %16732 = vmatprep.subr.bf16.mxu1 %v18130_v19  ;;  %v897_v60 = vcombine.high %v18764_v63, %v18764_v63  ;;  %v2783_v42 = vsel %vm1538_vm2, %v2778_v34, 0 }
 0x369   :  { %v2827_v59 = vpop.permute.xlu0 %2826 }
 0x36a   :  { %v2002_v61 = vpack.c.bf16 %v1994_v52, %v1994_v52  ;;  %v925_v14 = vrot.slane %v897_v60, %v18400_v32 }
 0x36c   :  { %v929_v18 = vcombine.high %v925_v14, %v925_v14  ;;  %v1499_v26 = vcombine.low %v925_v14, %v927_v51 }
 0x36d   :  { %16729 = vmatmul.mubr.msk.bf16.vlgmr.msra.gmra.mxu0 %vm2004_vm6, %v2002_v61  ;;  %v2934_v58 = vpop.permute.xlu0 %2933 }
 0x36e   :  { %16739 = vmatpush3.bf16.xpose.msra.mxu0 %v2731_v13  ;;  %16740 = vmatprep.mubr.msk.bf16.mxu0 %vm18131_vm1, %v18130_v19  ;;  %v1506_v1 = vrot.slane %v1499_v26, %v18400_v32  ;;  %v1513_v4 = vrot.slane %v929_v18, %v18400_v32  ;;  %v2939_v25 = vsel %vm1538_vm2, %v2934_v58, 0 }
 0x36f   :  { %16750 = vmatprep.subr.bf16.mxu0 %v18130_v19 }
 0x370   :  { %v1514_v63 = vcombine.low %v1506_v1, %v1513_v4 }
 0x371   :  { %v2931_v24 = vpop.permute.xlu0 %2930 }
 0x372   :  { %v1521_v3 = vrot.slane %v1514_v63, %v18400_v32 }
 0x374   :  { %v18862_v41 = vpack.c.bf16 %v1521_v3, %v1521_v3 }
 0x375   :  { %v3038_v6 = vpop.permute.xlu0 %3037 }
 0x376   :  { %v2335_v48 = vand.u32 %v18675_v50, %v18862_v41  ;;  %v3043_v55 = vsel %vm1538_vm2, %v3038_v6, 0 }
 0x387   :  { %v1973_v29 = vpop.xlane.xlu1 %1972 }
 0x388   :  { %17784 = vrcp.f32 %v1973_v29 }
 0x38b   :  { %v2723_v9 = vpop.permute.xlu1 %2722 }
 0x38c   :  { %16741 = vmatmul.mubr.msk.bf16.vlgmr.msra.gmra.mxu0 %vm1538_vm2, %v2723_v9 }
 0x38d   :  { %16751 = vmatpush3.bf16.xpose.msra.mxu0 %v2835_v11  ;;  %16752 = vmatprep.mubr.msk.bf16.mxu0 %vm18131_vm1, %v18130_v19 }
 0x38e   :  { %16762 = vmatprep.subr.bf16.mxu0 %v18130_v19 }
 0x394   :  { %16753 = vmatmul.mubr.msk.bf16.vlgmr.msra.gmra.mxu0 %vm1538_vm2, %v2827_v59 }
 0x395   :  { %v17785_v38 = vpop.eup %17784  ;;  %16763 = vmatpush3.bf16.xpose.msra.mxu0 %v2939_v25  ;;  %16764 = vmatprep.mubr.msk.bf16.mxu0 %vm18131_vm1, %v18130_v19 }
 0x396   :  { %v1993_v5 = vmul.f32 %v17785_v38, %v18734_v33  ;;  %16774 = vmatprep.subr.bf16.mxu0 %v18130_v19  ;;  %v3035_v33 = vpop.permute.xlu0 %3034 }
 0x398   :  { %v2001_v43 = vpack.c.bf16 %v1993_v5, %v1993_v5 }
 0x39a   :  { %16723 = vmatmul.mubr.msk.bf16.vlgmr.msra.gmra.mxu1 %vm2004_vm6, %v2001_v43 }
 0x39b   :  { %16733 = vmatpush3.bf16.msra.mxu1 %v2335_v48  ;;  %16734 = vmatprep.mubr.msk.bf16.mxu1 %vm18131_vm1, %v18130_v19 }
 0x39c   :  { %16765 = vmatmul.mubr.msk.bf16.vlgmr.msra.gmra.mxu0 %vm1538_vm2, %v2931_v24  ;;  %16744 = vmatprep.subr.bf16.mxu1 %v18130_v19 }
 0x39d   :  { %16775 = vmatpush3.bf16.xpose.msra.mxu0 %v3043_v55  ;;  %16776 = vmatprep.mubr.msk.bf16.mxu0 %vm18131_vm1, %v18130_v19 }
 0x39e   :  { %16786 = vmatprep.subr.bf16.mxu0 %v18130_v19 }
 0x3a4   :  { %16777 = vmatmul.mubr.msk.bf16.vlgmr.msra.gmra.mxu0 %vm1538_vm2, %v3035_v33 }
 0x3a5   :  { %16788 = vmatprep.mubr.msk.bf16.mxu0 %vm18131_vm1, %v18130_v19 }
 0x3bc   :  { %v1979_v47 = vpop.xlane.xlu1 %1978 }
 0x3bd   :  { %17786 = vrcp.f32 %v1979_v47 }
 0x3c0   :  { %v2775_v28 = vpop.permute.xlu1 %2774 }
 0x3c4   :  { %v2882_v7 = vpop.permute.xlu1 %2881 }
 0x3c5   :  { %v2887_v54 = vsel %vm1538_vm2, %v2882_v7, 0 }
 0x3c8   :  { %v2879_v52 = vpop.permute.xlu1 %2878 }
 0x3ca   :  { %v17787_v49 = vpop.eup %17786 }
 0x3cb   :  { %v1995_v20 = vmul.f32 %v17787_v49, %v18745_v2 }
 0x3cc   :  { %v2986_v61 = vpop.permute.xlu1 %2985 }
 0x3cd   :  { %v2003_v31 = vpack.c.bf16 %v1995_v20, %v1995_v20  ;;  %v2991_v13 = vsel %vm1538_vm2, %v2986_v61, 0 }
 0x3cf   :  { %16735 = vmatmul.mubr.msk.bf16.vlgmr.msra.gmra.mxu1 %vm2004_vm6, %v2003_v31 }
 0x3d0   :  { %16745 = vmatpush3.bf16.xpose.msra.mxu1 %v2783_v42  ;;  %16746 = vmatprep.mubr.msk.bf16.mxu1 %vm18131_vm1, %v18130_v19  ;;  %v2983_v2 = vpop.permute.xlu1 %2982 }
 0x3d1   :  { %16756 = vmatprep.subr.bf16.mxu1 %v18130_v19 }
 0x3d4   :  { %v3090_v60 = vpop.permute.xlu1 %3089 }
 0x3d5   :  { %v3095_v14 = vsel %vm1538_vm2, %v3090_v60, 0 }
 0x3d7   :  { %16747 = vmatmul.mubr.msk.bf16.vlgmr.msra.gmra.mxu1 %vm1538_vm2, %v2775_v28 }
 0x3d8   :  { %16757 = vmatpush3.bf16.xpose.msra.mxu1 %v2887_v54  ;;  %16758 = vmatprep.mubr.msk.bf16.mxu1 %vm18131_vm1, %v18130_v19  ;;  %v3087_v51 = vpop.permute.xlu1 %3086 }
 0x3d9   :  { %16768 = vmatprep.subr.bf16.mxu1 %v18130_v19 }
 0x3df   :  { %16759 = vmatmul.mubr.msk.bf16.vlgmr.msra.gmra.mxu1 %vm1538_vm2, %v2879_v52 }
 0x3e0   :  { %16769 = vmatpush3.bf16.xpose.msra.mxu1 %v2991_v13  ;;  %16770 = vmatprep.mubr.msk.bf16.mxu1 %vm18131_vm1, %v18130_v19 }
 0x3e1   :  { %16780 = vmatprep.subr.bf16.mxu1 %v18130_v19 }
 0x3e7   :  { %16771 = vmatmul.mubr.msk.bf16.vlgmr.msra.gmra.mxu1 %vm1538_vm2, %v2983_v2 }
 0x3e8   :  { %16781 = vmatpush3.bf16.xpose.msra.mxu1 %v3095_v14  ;;  %16782 = vmatprep.mubr.msk.bf16.mxu1 %vm18131_vm1, %v18130_v19 }
 0x3e9   :  { %16792 = vmatprep.subr.bf16.mxu1 %v18130_v19 }
 0x3ef   :  { %16783 = vmatmul.mubr.msk.bf16.vlgmr.msra.gmra.mxu1 %vm1538_vm2, %v3087_v51 }
 0x3f0   :  { %16794 = vmatprep.mubr.msk.bf16.mxu1 %vm18131_vm1, %v18130_v19 }
 0x415   :  { %v2049_v40 = vpop.f32.mrf.mxu0 }
 0x416   :  { %v2391_v34 = vrot.slane %v2049_v40, %v18400_v32 }
 0x417   :  { %v16694_v18 = vpop.f32.mrf.mxu0 }
 0x418   :  { %v2392_v26 = vcombine.high %v2391_v34, %v2391_v34  ;;  %v2399_v29 = vrot.slane %v2391_v34, %v18400_v32 }
 0x419   :  { %v2052_v59 = vpop.f32.mrf.mxu0 }
 0x41a   :  { %v2406_v4 = vrot.slane %v2392_v26, %v18400_v32  ;;  %v2407_v3 = vcombine.high %v2399_v29, %v2399_v29 }
 0x41b   :  { %v16695_v1 = vpop.f32.mrf.mxu0 }
 0x41c   :  { %v2569_v38 = vcombine.low %v2399_v29, %v2406_v4 }
 0x41d   :  { %v2095_v9 = vpop.f32.mrf.mxu1  ;;  %v2141_v11 = vpop.f32.mrf.mxu0 }
 0x41e   :  { %v2414_v63 = vrot.slane %v2095_v9, %v18400_v32  ;;  %v2437_v58 = vrot.slane %v2141_v11, %v18400_v32  ;;  %v2579_v42 = vrot.slane %v2569_v38, %v18400_v32 }
 0x41f   :  { %v16700_v24 = vpop.f32.mrf.mxu1  ;;  %v16706_v25 = vpop.f32.mrf.mxu0 }
 0x420   :  { %v2415_v5 = vcombine.high %v2414_v63, %v2414_v63  ;;  %v2422_v43 = vrot.slane %v2414_v63, %v18400_v32  ;;  %v2438_v6 = vcombine.high %v2437_v58, %v2437_v58  ;;  %v2445_v48 = vrot.slane %v2437_v58, %v18400_v32 }
 0x421   :  { %v2098_v55 = vpop.f32.mrf.mxu1  ;;  %v2144_v33 = vpop.f32.mrf.mxu0 }
 0x422   :  { %v2429_v47 = vrot.slane %v2415_v5, %v18400_v32  ;;  %v2430_v28 = vcombine.high %v2422_v43, %v2422_v43  ;;  %v2570_v49 = vcombine.low %v2407_v3, %v2422_v43  ;;  %v2452_v20 = vrot.slane %v2438_v6, %v18400_v32 }
 0x423   :  { %v16701_v7 = vpop.f32.mrf.mxu1  ;;  %v16707_v31 = vpop.f32.mrf.mxu0  ;;  %v2453_v26 = vcombine.high %v2445_v48, %v2445_v48 }
 0x424   :  { %v2571_v52 = vcombine.low %v2429_v47, %v2430_v28  ;;  %v2586_v54 = vrot.slane %v2570_v49, %v18400_v32  ;;  %v2572_v61 = vcombine.low %v2445_v48, %v2452_v20 }
 0x425   :  { %v2187_v2 = vpop.f32.mrf.mxu1  ;;  %v2233_v13 = vpop.f32.mrf.mxu0 }
 0x426   :  { %v2593_v60 = vrot.slane %v2571_v52, %v18400_v32  ;;  %v2601_v14 = vcombine.low %v2579_v42, %v2586_v54  ;;  %v2600_v51 = vrot.slane %v2572_v61, %v18400_v32  ;;  %v2460_v40 = vrot.slane %v2187_v2, %v18400_v32 }
 0x427   :  { %v16712_v34 = vpop.f32.mrf.mxu1  ;;  %v16718_v18 = vpop.f32.mrf.mxu0  ;;  %v2483_v52 = vrot.slane %v2233_v13, %v18400_v32 }
 0x428   :  { %v2602_v59 = vcombine.low %v2593_v60, %v2600_v51  ;;  %v2461_v29 = vcombine.high %v2460_v40, %v2460_v40  ;;  %v2468_v1 = vrot.slane %v2460_v40, %v18400_v32  ;;  %v2609_v4 = vrot.slane %v2601_v14, %v18400_v32 }
 0x429   :  { %v2190_v9 = vpop.f32.mrf.mxu1  ;;  %v2236_v11 = vpop.f32.mrf.mxu0  ;;  %v2484_v60 = vcombine.high %v2483_v52, %v2483_v52  ;;  %v2491_v34 = vrot.slane %v2483_v52, %v18400_v32 }
 0x42a   :  { %v2616_v63 = vrot.slane %v2602_v59, %v18400_v32  ;;  %v2475_v58 = vrot.slane %v2461_v29, %v18400_v32  ;;  %v2476_v3 = vcombine.high %v2468_v1, %v2468_v1  ;;  %v2618_v24 = vcombine.low %v2453_v26, %v2468_v1 }
 0x42b   :  { %v16713_v25 = vpop.f32.mrf.mxu1  ;;  %v16719_v38 = vpop.f32.mrf.mxu0  ;;  %v2498_v26 = vrot.slane %v2484_v60, %v18400_v32 }
 0x42c   :  { %v2619_v5 = vcombine.low %v2475_v58, %v2476_v3  ;;  %v18924_v43 = vcombine.low %v2609_v4, %v2616_v63  ;;  %v2628_v48 = vrot.slane %v2618_v24, %v18400_v32  ;;  %v2499_v4 = vcombine.high %v2491_v34, %v2491_v34 }
 0x42d   :  { %v2325_v6 = vpop.f32.mrf.mxu0  ;;  %v2620_v63 = vcombine.low %v2491_v34, %v2498_v26 }
 0x42e   :  { %v2635_v55 = vrot.slane %v2619_v5, %v18400_v32  ;;  %v2529_v61 = vrot.slane %v2325_v6, %v18400_v32 }
 0x42f   :  { %v16730_v33 = vpop.f32.mrf.mxu0 }
 0x430   :  { %v2650_v47 = vcombine.low %v2628_v48, %v2635_v55  ;;  %v2530_v40 = vcombine.high %v2529_v61, %v2529_v61  ;;  %v2537_v58 = vrot.slane %v2529_v61, %v18400_v32 }
 0x431   :  { %v2328_v28 = vpop.f32.mrf.mxu0 }
 0x432   :  { %v2544_v13 = vrot.slane %v2530_v40, %v18400_v32 }
 0x433   :  { %v16731_v49 = vpop.f32.mrf.mxu0 }
 0x434   :  { %v2668_v5 = vcombine.low %v2537_v58, %v2544_v13  ;;  %v2642_v49 = vrot.slane %v2620_v63, %v18400_v32 }
 0x436   :  { %v2684_v52 = vrot.slane %v2668_v5, %v18400_v32 }
 0x44c   :  { %v18928_v20 = vpop.f32.mrf.mxu0 }
 0x44d   :  { %v3137_v7 = vsel %vm1907_vm5, %v18928_v20, -inf }
 0x44e   :  { %3138 = vmax.xlane.f32.xlu0 %v3137_v7  ;;  %v16742_v31 = vpop.f32.mrf.mxu0 }
 0x450   :  { %v2770_v42 = vpop.f32.mrf.mxu0 }
 0x452   :  { %v16743_v54 = vpop.f32.mrf.mxu0 }
 0x454   :  { %v18934_v2 = vpop.f32.mrf.mxu0 }
 0x455   :  { %v3143_v14 = vsel %vm1907_vm5, %v18934_v2, -inf }
 0x456   :  { %3144 = vmax.xlane.f32.xlu0 %v3143_v14  ;;  %v16754_v51 = vpop.f32.mrf.mxu0  ;;  %v2658_v14 = vrot.slane %v2650_v47, %v18400_v32 }
 0x458   :  { %v2874_v18 = vpop.f32.mrf.mxu0 }
 0x45a   :  { %v2279_v59 = vpop.f32.mrf.mxu1  ;;  %v16755_v29 = vpop.f32.mrf.mxu0 }
 0x45b   :  { %v2506_v1 = vrot.slane %v2279_v59, %v18400_v32 }
 0x45c   :  { %v16724_v9 = vpop.f32.mrf.mxu1  ;;  %v18942_v11 = vpop.f32.mrf.mxu0 }
 0x45d   :  { %v2507_v3 = vcombine.high %v2506_v1, %v2506_v1  ;;  %v2514_v24 = vrot.slane %v2506_v1, %v18400_v32  ;;  %v2545_v9 = vcombine.high %v2537_v58, %v2537_v58 }
 0x45e   :  { %v2282_v25 = vpop.f32.mrf.mxu1  ;;  %v16766_v38 = vpop.f32.mrf.mxu0 }
 0x45f   :  { %v2521_v6 = vrot.slane %v2507_v3, %v18400_v32  ;;  %v2522_v48 = vcombine.high %v2514_v24, %v2514_v24  ;;  %v2621_v55 = vcombine.low %v2499_v4, %v2514_v24 }
 0x460   :  { %v16725_v33 = vpop.f32.mrf.mxu1  ;;  %v2978_v28 = vpop.f32.mrf.mxu0 }
 0x461   :  { %v2649_v7 = vrot.slane %v2621_v55, %v18400_v32  ;;  %v2667_v31 = vcombine.low %v2521_v6, %v2522_v48 }
 0x462   :  { %v16767_v42 = vpop.f32.mrf.mxu0 }
 0x463   :  { %v2651_v54 = vcombine.low %v2642_v49, %v2649_v7  ;;  %v2677_v61 = vrot.slane %v2667_v31, %v18400_v32 }
 0x464   :  { %v18951_v60 = vpop.f32.mrf.mxu0 }
 0x465   :  { %v2665_v51 = vrot.slane %v2651_v54, %v18400_v32  ;;  %v2699_v40 = vcombine.low %v2677_v61, %v2684_v52 }
 0x466   :  { %v16778_v34 = vpop.f32.mrf.mxu0 }
 0x467   :  { %v18955_v18 = vcombine.low %v2658_v14, %v2665_v51  ;;  %v2707_v31 = vrot.slane %v2699_v40, %v18400_v32  ;;  %v3155_v40 = vsel %vm1907_vm5, %v18951_v60, -inf }
 0x468   :  { %v3082_v26 = vpop.f32.mrf.mxu0 }
 0x469   :  { %v2719_v59 = vpack.c.bf16 %v18955_v18, %v18924_v43  ;;  %v3149_v26 = vsel %vm1907_vm5, %v18942_v11, -inf }
 0x46a   :  { %v16779_v29 = vpop.f32.mrf.mxu0 }
 0x48f   :  { %v2371_v13 = vpop.f32.mrf.mxu1 }
 0x490   :  { %v2552_v1 = vrot.slane %v2371_v13, %v18400_v32 }
 0x491   :  { %v16736_v4 = vpop.f32.mrf.mxu1 }
 0x492   :  { %v2553_v63 = vcombine.high %v2552_v1, %v2552_v1  ;;  %v2560_v3 = vrot.slane %v2552_v1, %v18400_v32 }
 0x493   :  { %v2374_v47 = vpop.f32.mrf.mxu1 }
 0x494   :  { %v2567_v24 = vrot.slane %v2553_v63, %v18400_v32  ;;  %v2568_v25 = vcombine.high %v2560_v3, %v2560_v3  ;;  %v2669_v38 = vcombine.low %v2545_v9, %v2560_v3 }
 0x495   :  { %v16737_v5 = vpop.f32.mrf.mxu1 }
 0x496   :  { %v2670_v6 = vcombine.low %v2567_v24, %v2568_v25  ;;  %v2691_v55 = vrot.slane %v2669_v38, %v18400_v32 }
 0x497   :  { %v2819_v48 = vpop.f32.mrf.mxu1 }
 0x498   :  { %v2698_v33 = vrot.slane %v2670_v6, %v18400_v32  ;;  %v3140_v28 = vsel %vm1907_vm5, %v2819_v48, -inf }
 0x499   :  { %3141 = vmax.xlane.f32.xlu1 %v3140_v28  ;;  %v16748_v49 = vpop.f32.mrf.mxu1 }
 0x49a   :  { %v2700_v58 = vcombine.low %v2691_v55, %v2698_v33 }
 0x49b   :  { %v2822_v7 = vpop.f32.mrf.mxu1 }
 0x49c   :  { %v2714_v42 = vrot.slane %v2700_v58, %v18400_v32 }
 0x49d   :  { %v16749_v52 = vpop.f32.mrf.mxu1 }
 0x49e   :  { %v18967_v54 = vcombine.low %v2707_v31, %v2714_v42 }
 0x49f   :  { %v18969_v61 = vpop.f32.mrf.mxu1 }
 0x4a0   :  { %v3146_v14 = vsel %vm1907_vm5, %v18969_v61, -inf }
 0x4a1   :  { %3147 = vmax.xlane.f32.xlu0 %v3146_v14  ;;  %v16760_v51 = vpop.f32.mrf.mxu1 }
 0x4a3   :  { %v2926_v34 = vpop.f32.mrf.mxu1 }
 0x4a5   :  { %3150 = vmax.xlane.f32.xlu0 %v3149_v26  ;;  %v16761_v29 = vpop.f32.mrf.mxu1 }
 0x4a7   :  { %v18975_v13 = vpop.f32.mrf.mxu1 }
 0x4a8   :  { %v3152_v1 = vsel %vm1907_vm5, %v18975_v13, -inf }
 0x4a9   :  { %3156 = vmax.xlane.f32.xlu0 %v3155_v40  ;;  %3153 = vmax.xlane.f32.xlu1 %v3152_v1  ;;  %v16772_v4 = vpop.f32.mrf.mxu1 }
 0x4ab   :  { %v3030_v9 = vpop.f32.mrf.mxu1 }
 0x4ad   :  { %v16773_v63 = vpop.f32.mrf.mxu1 }
 0x4af   :  { %v18981_v3 = vpop.f32.mrf.mxu1 }
 0x4b0   :  { %v3158_v28 = vsel %vm1907_vm5, %v18981_v3, -inf }
 0x4b1   :  { %v16784_v47 = vpop.f32.mrf.mxu1 }
 0x4b3   :  { %v3134_v24 = vpop.f32.mrf.mxu1 }
 0x4b5   :  { %v16785_v25 = vpop.f32.mrf.mxu1 }
 0x4ba   :  { %3283 = vrot.lane.b32.xlu1 %v18671_v46, %s18134_s0 }
 0x4be   :  { %3332 = vrot.lane.b32.xlu1 %v18780_v30, %s18134_s0 }
 0x4bf   :  { %3234 = vrot.lane.b32.xlu0 %v18669_v44, %s18134_s0 }
 0x4d7   :  { %v3139_v38 = vpop.xlane.xlu0 %3138 }
 0x4d8   :  { %v3161_v5 = vsub.f32 %v18928_v20, %v3139_v38 }
 0x4da   :  { %v3169_v6 = vmul.f32 1.442695, %v3161_v5 }
 0x4dc   :  { %17788 = vpow2.f32 %v3169_v6 }
 0x4df   :  { %v3145_v55 = vpop.xlane.xlu0 %3144 }
 0x4e0   :  { %v3163_v33 = vsub.f32 %v18934_v2, %v3145_v55 }
 0x4e2   :  { %v3173_v49 = vmul.f32 1.442695, %v3163_v33  ;;  %3159 = vmax.xlane.f32.xlu1 %v3158_v28 }
 0x4e4   :  { %17790 = vpow2.f32 %v3173_v49 }
 0x4e9   :  { %v18993_v58 = vpop.eup %17788 }
 0x4ea   :  { %v3185_v7 = vsel %vm1907_vm5, %v18993_v58, 0.0 }
 0x4eb   :  { %3186 = vadd.xlane.f32.xlu0 %v3185_v7 }
 0x4f1   :  { %v18997_v31 = vpop.eup %17790 }
 0x4f2   :  { %v3191_v20 = vsel %vm1907_vm5, %v18997_v31, 0.0 }
 0x4f3   :  { %3192 = vadd.xlane.f32.xlu0 %v3191_v20  ;;  %3381 = vrot.lane.b32.xlu1 %v18801_v15, %s18134_s0 }
 0x509   :  { %3430 = vrot.lane.b32.xlu0 %v18803_v22, %s18134_s0 }
 0x522   :  { %v3142_v2 = vpop.xlane.xlu1 %3141 }
 0x523   :  { %v3162_v42 = vsub.f32 %v2819_v48, %v3142_v2 }
 0x525   :  { %v3171_v52 = vmul.f32 1.442695, %v3162_v42 }
 0x527   :  { %17792 = vpow2.f32 %v3171_v52 }
 0x52a   :  { %v3148_v14 = vpop.xlane.xlu0 %3147 }
 0x52b   :  { %v3164_v6 = vsub.f32 %v18969_v61, %v3148_v14 }
 0x52d   :  { %v3175_v55 = vmul.f32 1.442695, %v3164_v6 }
 0x52e   :  { %v3151_v51 = vpop.xlane.xlu0 %3150 }
 0x52f   :  { %v3165_v34 = vsub.f32 %v18942_v11, %v3151_v51 }
 0x531   :  { %v3177_v26 = vmul.f32 1.442695, %v3165_v34 }
 0x532   :  { %v3157_v29 = vpop.xlane.xlu0 %3156  ;;  %v3154_v40 = vpop.xlane.xlu1 %3153 }
 0x533   :  { %17794 = vpow2.f32 %v3177_v26  ;;  %v3167_v1 = vsub.f32 %v18951_v60, %v3157_v29  ;;  %v3166_v33 = vsub.f32 %v18975_v13, %v3154_v40 }
 0x534   :  { %v19007_v4 = vpop.eup %17792 }
 0x535   :  { %v3181_v9 = vmul.f32 1.442695, %v3167_v1  ;;  %v3188_v63 = vsel %vm1907_vm5, %v19007_v4, 0.0  ;;  %v3179_v28 = vmul.f32 1.442695, %v3166_v33 }
 0x536   :  { %v3235_v47 = vpop.permute.xlu0 %3234  ;;  %v3284_v48 = vpop.permute.xlu1 %3283  ;;  %3189 = vadd.xlane.f32.xlu1 %v3188_v63 }
 0x537   :  { %17796 = vpow2.f32 %v3181_v9  ;;  %v3240_v24 = vand.u32 %v3235_v47, %v18675_v50  ;;  %v3289_v11 = vand.u32 %v3284_v48, %v18675_v50 }
 0x538   :  { %17798 = vpow2.f32 %v3175_v55 }
 0x539   :  { %16787 = vmatpush3.bf16.msra.mxu0 %v3240_v24  ;;  %16793 = vmatpush3.bf16.msra.mxu1 %v3289_v11  ;;  %17800 = vpow2.f32 %v3179_v28 }
 0x53a   :  { %16798 = vmatprep.subr.bf16.mxu0 %v18130_v19  ;;  %16804 = vmatprep.subr.bf16.mxu1 %v18130_v19  ;;  %v3333_v7 = vpop.permute.xlu1 %3332 }
 0x53b   :  { %v3338_v1 = vand.u32 %v3333_v7, %v18675_v50 }
 0x540   :  { %v19015_v60 = vpop.eup %17794 }
 0x541   :  { %v3197_v25 = vsel %vm1907_vm5, %v19015_v60, 0.0 }
 0x542   :  { %3198 = vadd.xlane.f32.xlu0 %v3197_v25 }
 0x544   :  { %v19019_v38 = vpop.eup %17796 }
 0x545   :  { %v3203_v5 = vsel %vm1907_vm5, %v19019_v38, 0.0  ;;  %v19033_v49 = vpop.eup %17798 }
 0x546   :  { %3204 = vadd.xlane.f32.xlu0 %v3203_v5  ;;  %v3194_v61 = vsel %vm1907_vm5, %v19033_v49, 0.0  ;;  %v19039_v13 = vpop.eup %17800 }
 0x547   :  { %3479 = vrot.lane.b32.xlu1 %v18826_v45, %s18134_s0  ;;  %v3200_v52 = vsel %vm1907_vm5, %v19039_v13, 0.0 }
 0x55c   :  { %3528 = vrot.lane.b32.xlu0 %v18820_v17, %s18134_s0 }
 0x560   :  { %4091 = vrot.lane.b32.xlu0 %v18469_v57, %s18135_s9 }
 0x564   :  { %4089 = vrot.lane.b32.xlu0 %v18492_v35, %s18135_s9 }
 0x568   :  { %4191 = vrot.lane.b32.xlu0 %v18490_v27, %s18135_s9 }
 0x56b   :  { %3195 = vadd.xlane.f32.xlu1 %v3194_v61  ;;  %v3160_v20 = vpop.xlane.xlu1 %3159 }
 0x56c   :  { %v3168_v2 = vsub.f32 %v18981_v3, %v3160_v20  ;;  %4189 = vrot.lane.b32.xlu0 %v18538_v62, %s18135_s9 }
 0x56e   :  { %v3183_v42 = vmul.f32 1.442695, %v3168_v2 }
 0x56f   :  { %3201 = vadd.xlane.f32.xlu1 %v3200_v52 }
 0x570   :  { %17802 = vpow2.f32 %v3183_v42  ;;  %4291 = vrot.lane.b32.xlu0 %v18521_v53, %s18135_s9 }
 0x574   :  { %4289 = vrot.lane.b32.xlu0 %v18573_v16, %s18135_s9  ;;  %v3187_v14 = vpop.xlane.xlu0 %3186 }
 0x575   :  { %17804 = vrcp.f32 %v3187_v14 }
 0x578   :  { %4391 = vrot.lane.b32.xlu0 %v18566_v8, %s18135_s9 }
 0x57c   :  { %4389 = vrot.lane.b32.xlu0 %v18598_v39, %s18135_s9  ;;  %v3193_v3 = vpop.xlane.xlu0 %3192 }
 0x57d   :  { %v19054_v51 = vpop.eup %17802  ;;  %17806 = vrcp.f32 %v3193_v3 }
 0x57e   :  { %v3206_v34 = vsel %vm1907_vm5, %v19054_v51, 0.0 }
 0x57f   :  { %3207 = vadd.xlane.f32.xlu1 %v3206_v34 }
 0x580   :  { %v3431_v63 = vpop.permute.xlu0 %3430 }
 0x581   :  { %v3436_v24 = vand.u32 %v3431_v63, %v18675_v50 }
 0x582   :  { %v17805_v26 = vpop.eup %17804 }
 0x583   :  { %v3217_v29 = vmul.f32 %v17805_v26, %v18993_v58  ;;  %v3382_v58 = vpop.permute.xlu1 %3381 }
 0x584   :  { %v3387_v33 = vand.u32 %v3382_v58, %v18675_v50 }
 0x585   :  { %v3225_v40 = vpack.c.bf16 %v3217_v29, %v3217_v29 }
 0x587   :  { %16789 = vmatmul.mubr.msk.bf16.vlgmr.msra.gmra.mxu0 %vm2004_vm6, %v3225_v40 }
 0x588   :  { %16799 = vmatpush3.bf16.msra.mxu0 %v3338_v1  ;;  %16800 = vmatprep.mubr.msk.bf16.mxu0 %vm18131_vm1, %v18130_v19 }
 0x589   :  { %16810 = vmatprep.subr.bf16.mxu0 %v18130_v19 }
 0x58a   :  { %v17807_v9 = vpop.eup %17806 }
 0x58b   :  { %v3219_v47 = vmul.f32 %v17807_v9, %v18997_v31 }
 0x58d   :  { %v3227_v48 = vpack.c.bf16 %v3219_v47, %v3219_v47 }
 0x58f   :  { %16801 = vmatmul.mubr.msk.bf16.vlgmr.msra.gmra.mxu0 %vm2004_vm6, %v3227_v48  ;;  %v17693_v48 = vld [vmem:[%s18196_s19] sm:$0xff]  }
 0x590   :  { %16811 = vmatpush3.bf16.msra.mxu0 %v3436_v24  ;;  %3577 = vrot.lane.b32.xlu1 %v18862_v41, %s18134_s0 }
 0x591   :  { %16812 = vmatprep.mubr.msk.bf16.mxu0 %vm18131_vm1, %v18130_v19  ;;  %16822 = vmatprep.subr.bf16.mxu0 %v18130_v19 }
 0x594   :  { %4141 = vrot.lane.b32.xlu1 %v18487_v23, %s18135_s9 }
 0x598   :  { %4139 = vrot.lane.b32.xlu1 %v18541_v0, %s18135_s9 }
 0x59c   :  { %4241 = vrot.lane.b32.xlu1 %v18529_v56, %s18135_s9 }
 0x5a0   :  { %4239 = vrot.lane.b32.xlu1 %v18575_v21, %s18135_s9 }
 0x5a4   :  { %4341 = vrot.lane.b32.xlu1 %v18571_v10, %s18135_s9 }
 0x5a8   :  { %4339 = vrot.lane.b32.xlu1 %v18600_v12, %s18135_s9 }
 0x5ac   :  { %4441 = vrot.lane.b32.xlu1 %v18596_v36, %s18135_s9 }
 0x5b0   :  { %4439 = vrot.lane.b32.xlu1 %v18614_v37, %s18135_s9 }
 0x5bf   :  { %v3190_v31 = vpop.xlane.xlu1 %3189 }
 0x5c0   :  { %17808 = vrcp.f32 %v3190_v31 }
 0x5c3   :  { %v3480_v14 = vpop.permute.xlu1 %3479 }
 0x5c4   :  { %v3485_v1 = vand.u32 %v3480_v14, %v18675_v50 }
 0x5cb   :  { %v3199_v11 = vpop.xlane.xlu0 %3198 }
 0x5cc   :  { %17810 = vrcp.f32 %v3199_v11 }
 0x5cd   :  { %v17809_v25 = vpop.eup %17808 }
 0x5ce   :  { %v3218_v5 = vmul.f32 %v17809_v25, %v19007_v4 }
 0x5cf   :  { %v3205_v6 = vpop.xlane.xlu0 %3204 }
 0x5d0   :  { %17812 = vrcp.f32 %v3205_v6  ;;  %v3226_v55 = vpack.c.bf16 %v3218_v5, %v3218_v5  ;;  %v2720_v5 = vpack.c.bf16 %v18967_v54, %v18967_v54 }
 0x5d2   :  { %16795 = vmatmul.mubr.msk.bf16.vlgmr.msra.gmra.mxu1 %vm2004_vm6, %v3226_v55 }
 0x5d3   :  { %16805 = vmatpush3.bf16.msra.mxu1 %v3387_v33  ;;  %16806 = vmatprep.mubr.msk.bf16.mxu1 %vm18131_vm1, %v18130_v19  ;;  %v3529_v7 = vpop.permute.xlu0 %3528 }
 0x5d4   :  { %16816 = vmatprep.subr.bf16.mxu1 %v18130_v19  ;;  %v3534_v4 = vand.u32 %v3529_v7, %v18675_v50 }
 0x5d9   :  { %v17811_v28 = vpop.eup %17810 }
 0x5da   :  { %v3221_v61 = vmul.f32 %v17811_v28, %v19015_v60 }
 0x5dc   :  { %v3229_v20 = vpack.c.bf16 %v3221_v61, %v3221_v61 }
 0x5dd   :  { %v17813_v2 = vpop.eup %17812 }
 0x5de   :  { %16813 = vmatmul.mubr.msk.bf16.vlgmr.msra.gmra.mxu0 %vm2004_vm6, %v3229_v20  ;;  %v3223_v42 = vmul.f32 %v17813_v2, %v19019_v38 }
 0x5df   :  { %16823 = vmatpush3.bf16.msra.mxu0 %v3534_v4  ;;  %16824 = vmatprep.mubr.msk.bf16.mxu0 %vm18131_vm1, %v18130_v19 }
 0x5e0   :  { %v3231_v52 = vpack.c.bf16 %v3223_v42, %v3223_v42 }
 0x5e6   :  { %16825 = vmatmul.mubr.msk.bf16.vlgmr.msra.gmra.mxu0 %vm2004_vm6, %v3231_v52 }
 0x5f4   :  { %v3196_v3 = vpop.xlane.xlu1 %3195 }
 0x5f5   :  { %17814 = vrcp.f32 %v3196_v3  ;;  %v17694_v3 = vld [vmem:[%s18196_s19 + $0x8] sm:$0xff]  }
 0x5f6   :  { %16834 = vmatprep.subr.bf16.mxu0 %v17694_v3 }
 0x5f7   :  { %16835 = vmatpush3.bf16.msra.mxu0 %v17694_v3 }
 0x5f8   :  { %v3202_v34 = vpop.xlane.xlu1 %3201  ;;  %16846 = vmatprep.subr.bf16.mxu0 %v18130_v19 }
 0x5f9   :  { %17816 = vrcp.f32 %v3202_v34 }
 0x602   :  { %v17815_v60 = vpop.eup %17814 }
 0x603   :  { %v3220_v26 = vmul.f32 %v17815_v60, %v19033_v49 }
 0x605   :  { %v3228_v29 = vpack.c.bf16 %v3220_v26, %v3220_v26 }
 0x606   :  { %v17817_v40 = vpop.eup %17816 }
 0x607   :  { %16807 = vmatmul.mubr.msk.bf16.vlgmr.msra.gmra.mxu1 %vm2004_vm6, %v3228_v29  ;;  %v3222_v9 = vmul.f32 %v17817_v40, %v19039_v13 }
 0x608   :  { %16817 = vmatpush3.bf16.msra.mxu1 %v3485_v1  ;;  %v3208_v38 = vpop.xlane.xlu1 %3207  ;;  %16818 = vmatprep.mubr.msk.bf16.mxu1 %vm18131_vm1, %v18130_v19 }
 0x609   :  { %17818 = vrcp.f32 %v3208_v38  ;;  %16828 = vmatprep.subr.bf16.mxu1 %v18130_v19  ;;  %v3230_v49 = vpack.c.bf16 %v3222_v9, %v3222_v9 }
 0x60c   :  { %v3578_v63 = vpop.permute.xlu1 %3577 }
 0x60d   :  { %v3583_v47 = vand.u32 %v3578_v63, %v18675_v50 }
 0x60f   :  { %16819 = vmatmul.mubr.msk.bf16.vlgmr.msra.gmra.mxu1 %vm2004_vm6, %v3230_v49 }
 0x610   :  { %16829 = vmatpush3.bf16.msra.mxu1 %v3583_v47  ;;  %16830 = vmatprep.mubr.msk.bf16.mxu1 %vm18131_vm1, %v18130_v19  ;;  %v4142_v24 = vpop.permute.xlu1 %4141 }
 0x611   :  { %16840 = vmatprep.subr.bf16.mxu1 %v17693_v48  ;;  %v4147_v6 = vsel %vm1538_vm2, %v4142_v24, 0 }
 0x614   :  { %v4140_v25 = vpop.permute.xlu1 %4139 }
 0x616   :  { %v17819_v58 = vpop.eup %17818 }
 0x617   :  { %v3224_v31 = vmul.f32 %v17819_v58, %v19054_v51 }
 0x618   :  { %v4242_v13 = vpop.permute.xlu1 %4241 }
 0x619   :  { %v3232_v11 = vpack.c.bf16 %v3224_v31, %v3224_v31  ;;  %v4247_v18 = vsel %vm1538_vm2, %v4242_v13, 0 }
 0x61b   :  { %16831 = vmatmul.mubr.msk.bf16.vlgmr.msra.gmra.mxu1 %vm2004_vm6, %v3232_v11 }
 0x61c   :  { %16842 = vmatprep.mubr.msk.bf16.mxu1 %vm1538_vm2, %v2719_v59  ;;  %16841 = vmatpush3.bf16.msra.mxu1 %v17693_v48  ;;  %v4240_v43 = vpop.permute.xlu1 %4239 }
 0x61d   :  { %16852 = vmatprep.subr.bf16.mxu1 %v18130_v19 }
 0x620   :  { %v4342_v59 = vpop.permute.xlu1 %4341 }
 0x621   :  { %v4347_v51 = vsel %vm1538_vm2, %v4342_v59, 0 }
 0x623   :  { %16843 = vmatmul.mubr.msk.bf16.vlgmr.msra.gmra.mxu1 %vm1538_vm2, %v2720_v5 }
 0x624   :  { %16853 = vmatpush3.bf16.xpose.msra.mxu1 %v4147_v6  ;;  %16854 = vmatprep.mubr.msk.bf16.mxu1 %vm18131_vm1, %v18130_v19  ;;  %v4340_v54 = vpop.permute.xlu1 %4339 }
 0x625   :  { %16864 = vmatprep.subr.bf16.mxu1 %v18130_v19 }
 0x628   :  { %v4442_v55 = vpop.permute.xlu1 %4441 }
 0x629   :  { %v4447_v33 = vsel %vm1538_vm2, %v4442_v55, 0 }
 0x62b   :  { %16855 = vmatmul.mubr.msk.bf16.vlgmr.msra.gmra.mxu1 %vm1538_vm2, %v4140_v25 }
 0x62c   :  { %16865 = vmatpush3.bf16.xpose.msra.mxu1 %v4247_v18  ;;  %16866 = vmatprep.mubr.msk.bf16.mxu1 %vm18131_vm1, %v18130_v19  ;;  %v4440_v28 = vpop.permute.xlu1 %4439 }
 0x62d   :  { %16876 = vmatprep.subr.bf16.mxu1 %v18130_v19 }
 0x633   :  { %16867 = vmatmul.mubr.msk.bf16.vlgmr.msra.gmra.mxu1 %vm1538_vm2, %v4240_v43 }
 0x634   :  { %16877 = vmatpush3.bf16.xpose.msra.mxu1 %v4347_v51  ;;  %16878 = vmatprep.mubr.msk.bf16.mxu1 %vm18131_vm1, %v18130_v19 }
 0x635   :  { %16888 = vmatprep.subr.bf16.mxu1 %v18130_v19 }
 0x63b   :  { %16879 = vmatmul.mubr.msk.bf16.vlgmr.msra.gmra.mxu1 %vm1538_vm2, %v4340_v54 }
 0x63c   :  { %16889 = vmatpush3.bf16.xpose.msra.mxu1 %v4447_v33  ;;  %16890 = vmatprep.mubr.msk.bf16.mxu1 %vm18131_vm1, %v18130_v19 }
 0x63d   :  { %16900 = vmatprep.subr.bf16.mxu1 %v18130_v19 }
 0x643   :  { %16891 = vmatmul.mubr.msk.bf16.vlgmr.msra.gmra.mxu1 %vm1538_vm2, %v4440_v28 }
 0x644   :  { %16902 = vmatprep.mubr.msk.bf16.mxu1 %vm18131_vm1, %v18130_v19 }
 0x647   :  { %v3276_v7 = vpop.f32.mrf.mxu0 }
 0x648   :  { %v3639_v34 = vrot.slane %v3276_v7, %v18400_v32 }
 0x649   :  { %v16790_v61 = vpop.f32.mrf.mxu0 }
 0x64a   :  { %v3640_v26 = vcombine.high %v3639_v34, %v3639_v34  ;;  %v3647_v40 = vrot.slane %v3639_v34, %v18400_v32 }
 0x64b   :  { %v3279_v20 = vpop.f32.mrf.mxu0 }
 0x64c   :  { %v3654_v1 = vrot.slane %v3640_v26, %v18400_v32  ;;  %v3655_v47 = vcombine.high %v3647_v40, %v3647_v40 }
 0x64d   :  { %v16791_v2 = vpop.f32.mrf.mxu0 }
 0x64e   :  { %v3817_v48 = vcombine.low %v3647_v40, %v3654_v1 }
 0x64f   :  { %v3374_v4 = vpop.f32.mrf.mxu0 }
 0x650   :  { %v3685_v60 = vrot.slane %v3374_v4, %v18400_v32  ;;  %v3827_v18 = vrot.slane %v3817_v48, %v18400_v32 }
 0x651   :  { %v16802_v42 = vpop.f32.mrf.mxu0 }
 0x652   :  { %v3686_v29 = vcombine.high %v3685_v60, %v3685_v60  ;;  %v3693_v24 = vrot.slane %v3685_v60, %v18400_v32 }
 0x653   :  { %v3377_v52 = vpop.f32.mrf.mxu0 }
 0x654   :  { %v3700_v9 = vrot.slane %v3686_v29, %v18400_v32 }
 0x655   :  { %v16803_v14 = vpop.f32.mrf.mxu0 }
 0x656   :  { %v3820_v25 = vcombine.low %v3693_v24, %v3700_v9 }
 0x658   :  { %v3848_v51 = vrot.slane %v3820_v25, %v18400_v32 }
 0x692   :  { %v3325_v38 = vpop.f32.mrf.mxu1 }
 0x693   :  { %v3662_v63 = vrot.slane %v3325_v38, %v18400_v32 }
 0x694   :  { %v16796_v49 = vpop.f32.mrf.mxu1 }
 0x695   :  { %v3663_v58 = vcombine.high %v3662_v63, %v3662_v63  ;;  %v3670_v31 = vrot.slane %v3662_v63, %v18400_v32 }
 0x696   :  { %v3328_v11 = vpop.f32.mrf.mxu1 }
 0x697   :  { %v3677_v13 = vrot.slane %v3663_v58, %v18400_v32  ;;  %v3678_v5 = vcombine.high %v3670_v31, %v3670_v31  ;;  %v3818_v6 = vcombine.low %v3655_v47, %v3670_v31  ;;  %v3701_v11 = vcombine.high %v3693_v24, %v3693_v24 }
 0x698   :  { %v16797_v43 = vpop.f32.mrf.mxu1 }
 0x699   :  { %v3819_v59 = vcombine.low %v3677_v13, %v3678_v5  ;;  %v3834_v54 = vrot.slane %v3818_v6, %v18400_v32 }
 0x69b   :  { %v3841_v55 = vrot.slane %v3819_v59, %v18400_v32  ;;  %v3849_v33 = vcombine.low %v3827_v18, %v3834_v54 }
 0x69d   :  { %v3850_v28 = vcombine.low %v3841_v55, %v3848_v51  ;;  %v3857_v61 = vrot.slane %v3849_v33, %v18400_v32 }
 0x69e   :  { %v3472_v7 = vpop.f32.mrf.mxu0 }
 0x69f   :  { %v3864_v20 = vrot.slane %v3850_v28, %v18400_v32  ;;  %v3731_v26 = vrot.slane %v3472_v7, %v18400_v32 }
 0x6a0   :  { %v16814_v2 = vpop.f32.mrf.mxu0 }
 0x6a1   :  { %v19162_v4 = vcombine.low %v3857_v61, %v3864_v20  ;;  %v3732_v38 = vcombine.high %v3731_v26, %v3731_v26  ;;  %v3739_v58 = vrot.slane %v3731_v26, %v18400_v32 }
 0x6a2   :  { %v3475_v42 = vpop.f32.mrf.mxu0 }
 0x6a3   :  { %v3746_v25 = vrot.slane %v3732_v38, %v18400_v32  ;;  %v3747_v18 = vcombine.high %v3739_v58, %v3739_v58 }
 0x6a4   :  { %v16815_v52 = vpop.f32.mrf.mxu0 }
 0x6a5   :  { %v3868_v54 = vcombine.low %v3739_v58, %v3746_v25 }
 0x6a6   :  { %v3570_v14 = vpop.f32.mrf.mxu0 }
 0x6a7   :  { %v3777_v51 = vrot.slane %v3570_v14, %v18400_v32  ;;  %v3890_v2 = vrot.slane %v3868_v54, %v18400_v32 }
 0x6a8   :  { %v16826_v3 = vpop.f32.mrf.mxu0 }
 0x6a9   :  { %v3778_v42 = vcombine.high %v3777_v51, %v3777_v51  ;;  %v3785_v26 = vrot.slane %v3777_v51, %v18400_v32 }
 0x6aa   :  { %v3573_v34 = vpop.f32.mrf.mxu0 }
 0x6ac   :  { %v16827_v60 = vpop.f32.mrf.mxu0 }
 0x6c7   :  { %v3423_v29 = vpop.f32.mrf.mxu1 }
 0x6c8   :  { %v3708_v40 = vrot.slane %v3423_v29, %v18400_v32  ;;  %v3792_v29 = vrot.slane %v3778_v42, %v18400_v32 }
 0x6c9   :  { %v16808_v1 = vpop.f32.mrf.mxu1 }
 0x6ca   :  { %v3709_v9 = vcombine.high %v3708_v40, %v3708_v40  ;;  %v3716_v63 = vrot.slane %v3708_v40, %v18400_v32  ;;  %v3916_v58 = vcombine.low %v3785_v26, %v3792_v29 }
 0x6cb   :  { %v3426_v47 = vpop.f32.mrf.mxu1 }
 0x6cc   :  { %v3723_v49 = vrot.slane %v3709_v9, %v18400_v32  ;;  %v3724_v48 = vcombine.high %v3716_v63, %v3716_v63  ;;  %v3866_v6 = vcombine.low %v3701_v11, %v3716_v63  ;;  %v3932_v51 = vrot.slane %v3916_v58, %v18400_v32 }
 0x6cd   :  { %v16809_v31 = vpop.f32.mrf.mxu1 }
 0x6ce   :  { %v3867_v13 = vcombine.low %v3723_v49, %v3724_v48  ;;  %v3876_v7 = vrot.slane %v3866_v6, %v18400_v32  ;;  %v3793_v49 = vcombine.high %v3785_v26, %v3785_v26 }
 0x6cf   :  { %v3521_v5 = vpop.f32.mrf.mxu1 }
 0x6d0   :  { %v3754_v43 = vrot.slane %v3521_v5, %v18400_v32  ;;  %v3883_v55 = vrot.slane %v3867_v13, %v18400_v32  ;;  %v4092_v13 = vpop.permute.xlu0 %4091 }
 0x6d1   :  { %v16820_v59 = vpop.f32.mrf.mxu1 }
 0x6d2   :  { %v3762_v33 = vrot.slane %v3754_v43, %v18400_v32  ;;  %v3755_v24 = vcombine.high %v3754_v43, %v3754_v43  ;;  %v3898_v52 = vcombine.low %v3876_v7, %v3883_v55 }
 0x6d3   :  { %v3524_v28 = vpop.f32.mrf.mxu1 }
 0x6d4   :  { %v3869_v61 = vcombine.low %v3747_v18, %v3762_v33  ;;  %v3769_v34 = vrot.slane %v3755_v24, %v18400_v32  ;;  %v3770_v60 = vcombine.high %v3762_v33, %v3762_v33  ;;  %v3906_v40 = vrot.slane %v3898_v52, %v18400_v32  ;;  %v4090_v24 = vpop.permute.xlu0 %4089 }
 0x6d5   :  { %v16821_v20 = vpop.f32.mrf.mxu1 }
 0x6d6   :  { %v3897_v3 = vrot.slane %v3869_v61, %v18400_v32  ;;  %v3915_v9 = vcombine.low %v3769_v34, %v3770_v60 }
 0x6d8   :  { %v3899_v14 = vcombine.low %v3890_v2, %v3897_v3  ;;  %v3925_v6 = vrot.slane %v3915_v9, %v18400_v32  ;;  %v4192_v60 = vpop.permute.xlu0 %4191 }
 0x6d9   :  { %v4197_v58 = vsel %vm1538_vm2, %v4192_v60, 0 }
 0x6da   :  { %v3913_v1 = vrot.slane %v3899_v14, %v18400_v32  ;;  %v3947_v28 = vcombine.low %v3925_v6, %v3932_v51 }
 0x6db   :  { %v3619_v38 = vpop.f32.mrf.mxu1 }
 0x6dc   :  { %v3800_v63 = vrot.slane %v3619_v38, %v18400_v32  ;;  %v3914_v47 = vcombine.low %v3906_v40, %v3913_v1  ;;  %v3955_v42 = vrot.slane %v3947_v28, %v18400_v32  ;;  %v4097_v1 = vsel %vm1538_vm2, %v4092_v13, 0  ;;  %v4190_v9 = vpop.permute.xlu0 %4189 }
 0x6dd   :  { %v16832_v48 = vpop.f32.mrf.mxu1 }
 0x6de   :  { %v3801_v31 = vcombine.high %v3800_v63, %v3800_v63  ;;  %v3808_v11 = vrot.slane %v3800_v63, %v18400_v32  ;;  %v3967_v25 = vpack.c.bf16 %v3914_v47, %v19162_v4 }
 0x6df   :  { %v3622_v5 = vpop.f32.mrf.mxu1 }
 0x6e0   :  { %v3815_v43 = vrot.slane %v3801_v31, %v18400_v32  ;;  %v3816_v18 = vcombine.high %v3808_v11, %v3808_v11  ;;  %v3917_v59 = vcombine.low %v3793_v49, %v3808_v11  ;;  %16836 = vmatprep.mubr.msk.bf16.mxu0 %vm1538_vm2, %v3967_v25  ;;  %v4292_v31 = vpop.permute.xlu0 %4291 }
 0x6e1   :  { %v16833_v54 = vpop.f32.mrf.mxu1 }
 0x6e2   :  { %v3918_v55 = vcombine.low %v3815_v43, %v3816_v18  ;;  %v3939_v7 = vrot.slane %v3917_v59, %v18400_v32  ;;  %v4297_v18 = vsel %vm1538_vm2, %v4292_v31, 0 }
 0x6e3   :  { %v19189_v33 = vpop.f32.mrf.mxu1 }
 0x6e4   :  { %v3946_v4 = vrot.slane %v3918_v55, %v18400_v32  ;;  %v4290_v6 = vpop.permute.xlu0 %4289 }
 0x6e5   :  { %v19193_v61 = vpop.f32.mrf.mxu1 }
 0x6e6   :  { %v3948_v20 = vcombine.low %v3939_v7, %v3946_v4 }
 0x6e7   :  { %v16845_v2 = vpop.f32.mrf.mxu1 }
 0x6e8   :  { %v3962_v52 = vrot.slane %v3948_v20, %v18400_v32  ;;  %v4392_v51 = vpop.permute.xlu0 %4391 }
 0x6e9   :  { %v19197_v3 = vpop.f32.mrf.mxu1  ;;  %v4397_v4 = vsel %vm1538_vm2, %v4392_v51, 0 }
 0x6ea   :  { %v3963_v34 = vcombine.low %v3955_v42, %v3962_v52 }
 0x6eb   :  { %v4183_v14 = vpop.f32.mrf.mxu1 }
 0x6ec   :  { %v4492_v26 = vsel %vm1907_vm5, %v4183_v14, -inf  ;;  %v3968_v29 = vpack.c.bf16 %v3963_v34, %v3963_v34  ;;  %v4390_v2 = vpop.permute.xlu0 %4389 }
 0x6ed   :  { %4493 = vmax.xlane.f32.xlu1 %v4492_v26  ;;  %v16856_v40 = vpop.f32.mrf.mxu1 }
 0x6ee   :  { %16837 = vmatmul.mubr.msk.bf16.vlgmr.msra.gmra.mxu0 %vm1538_vm2, %v3968_v29 }
 0x6ef   :  { %16847 = vmatpush3.bf16.xpose.msra.mxu0 %v4097_v1  ;;  %v4186_v38 = vpop.f32.mrf.mxu1  ;;  %16848 = vmatprep.mubr.msk.bf16.mxu0 %vm18131_vm1, %v18130_v19 }
 0x6f0   :  { %16858 = vmatprep.subr.bf16.mxu0 %v18130_v19 }
 0x6f1   :  { %v16857_v63 = vpop.f32.mrf.mxu1 }
 0x6f3   :  { %v4283_v47 = vpop.f32.mrf.mxu1 }
 0x6f4   :  { %v4498_v49 = vsel %vm1907_vm5, %v4283_v47, -inf }
 0x6f5   :  { %4499 = vmax.xlane.f32.xlu0 %v4498_v49  ;;  %v16868_v48 = vpop.f32.mrf.mxu1 }
 0x6f6   :  { %16849 = vmatmul.mubr.msk.bf16.vlgmr.msra.gmra.mxu0 %vm1538_vm2, %v4090_v24 }
 0x6f7   :  { %16859 = vmatpush3.bf16.xpose.msra.mxu0 %v4197_v58  ;;  %v4286_v11 = vpop.f32.mrf.mxu1  ;;  %16860 = vmatprep.mubr.msk.bf16.mxu0 %vm18131_vm1, %v18130_v19 }
 0x6f8   :  { %16870 = vmatprep.subr.bf16.mxu0 %v18130_v19 }
 0x6f9   :  { %v16869_v25 = vpop.f32.mrf.mxu1 }
 0x6fb   :  { %v4383_v13 = vpop.f32.mrf.mxu1 }
 0x6fc   :  { %v4504_v5 = vsel %vm1907_vm5, %v4383_v13, -inf }
 0x6fd   :  { %4505 = vmax.xlane.f32.xlu1 %v4504_v5  ;;  %v16880_v43 = vpop.f32.mrf.mxu1 }
 0x6fe   :  { %16861 = vmatmul.mubr.msk.bf16.vlgmr.msra.gmra.mxu0 %vm1538_vm2, %v4190_v9 }
 0x6ff   :  { %16871 = vmatpush3.bf16.xpose.msra.mxu0 %v4297_v18  ;;  %v4386_v59 = vpop.f32.mrf.mxu1  ;;  %16872 = vmatprep.mubr.msk.bf16.mxu0 %vm18131_vm1, %v18130_v19 }
 0x700   :  { %16882 = vmatprep.subr.bf16.mxu0 %v18130_v19 }
 0x701   :  { %v16881_v54 = vpop.f32.mrf.mxu1 }
 0x703   :  { %v4483_v55 = vpop.f32.mrf.mxu1 }
 0x704   :  { %v4510_v28 = vsel %vm1907_vm5, %v4483_v55, -inf }
 0x705   :  { %4511 = vmax.xlane.f32.xlu1 %v4510_v28  ;;  %v16892_v7 = vpop.f32.mrf.mxu1 }
 0x706   :  { %16873 = vmatmul.mubr.msk.bf16.vlgmr.msra.gmra.mxu0 %vm1538_vm2, %v4290_v6 }
 0x707   :  { %16883 = vmatpush3.bf16.xpose.msra.mxu0 %v4397_v4  ;;  %v4486_v24 = vpop.f32.mrf.mxu1  ;;  %16884 = vmatprep.mubr.msk.bf16.mxu0 %vm18131_vm1, %v18130_v19 }
 0x708   :  { %16894 = vmatprep.subr.bf16.mxu0 %v18130_v19 }
 0x709   :  { %v16893_v20 = vpop.f32.mrf.mxu1 }
 0x70e   :  { %16885 = vmatmul.mubr.msk.bf16.vlgmr.msra.gmra.mxu0 %vm1538_vm2, %v4390_v2 }
 0x70f   :  { %16896 = vmatprep.mubr.msk.bf16.mxu0 %vm18131_vm1, %v18130_v19 }
 0x776   :  { %v4494_v42 = vpop.xlane.xlu1 %4493 }
 0x777   :  { %v4514_v52 = vsub.f32 %v4183_v14, %v4494_v42 }
 0x779   :  { %v4523_v34 = vmul.f32 1.442695, %v4514_v52 }
 0x77b   :  { %17820 = vpow2.f32 %v4523_v34 }
 0x77e   :  { %v4500_v60 = vpop.xlane.xlu0 %4499 }
 0x77f   :  { %v4516_v26 = vsub.f32 %v4283_v47, %v4500_v60 }
 0x781   :  { %v4527_v29 = vmul.f32 1.442695, %v4516_v26 }
 0x783   :  { %17822 = vpow2.f32 %v4527_v29 }
 0x786   :  { %v4506_v40 = vpop.xlane.xlu1 %4505 }
 0x787   :  { %v4518_v1 = vsub.f32 %v4383_v13, %v4506_v40 }
 0x788   :  { %v19226_v38 = vpop.eup %17820 }
 0x789   :  { %v4531_v9 = vmul.f32 1.442695, %v4518_v1  ;;  %v4540_v63 = vsel %vm1907_vm5, %v19226_v38, 0.0 }
 0x78a   :  { %4541 = vadd.xlane.f32.xlu1 %v4540_v63 }
 0x78b   :  { %17824 = vpow2.f32 %v4531_v9 }
 0x78e   :  { %v4512_v49 = vpop.xlane.xlu1 %4511 }
 0x78f   :  { %v4520_v48 = vsub.f32 %v4483_v55, %v4512_v49 }
 0x790   :  { %v19230_v58 = vpop.eup %17822 }
 0x791   :  { %v4535_v14 = vmul.f32 1.442695, %v4520_v48  ;;  %v4546_v47 = vsel %vm1907_vm5, %v19230_v58, 0.0 }
 0x792   :  { %4547 = vadd.xlane.f32.xlu1 %v4546_v47 }
 0x793   :  { %17826 = vpow2.f32 %v4535_v14 }
 0x798   :  { %v19234_v31 = vpop.eup %17824 }
 0x799   :  { %v4552_v11 = vsel %vm1907_vm5, %v19234_v31, 0.0 }
 0x79a   :  { %4553 = vadd.xlane.f32.xlu1 %v4552_v11 }
 0x7a0   :  { %v19238_v25 = vpop.eup %17826 }
 0x7a1   :  { %v4558_v13 = vsel %vm1907_vm5, %v19238_v25, 0.0 }
 0x7a2   :  { %4559 = vadd.xlane.f32.xlu1 %v4558_v13 }
 0x7ae   :  { %v19242_v5 = vpop.f32.mrf.mxu0 }
 0x7b0   :  { %v19244_v6 = vpop.f32.mrf.mxu0 }
 0x7b2   :  { %v16839_v43 = vpop.f32.mrf.mxu0 }
 0x7b3   :  { %4633 = vrot.lane.b32.xlu1 %v18671_v46, %s18135_s9 }
 0x7b4   :  { %v19248_v18 = vpop.f32.mrf.mxu0 }
 0x7b6   :  { %v19250_v59 = vpop.f32.mrf.mxu0 }
 0x7b7   :  { %4681 = vrot.lane.b32.xlu1 %v18780_v30, %s18135_s9  ;;  %v4489_v54 = vsel %vm1907_vm5, %v19250_v59, -inf }
 0x7b8   :  { %v16850_v51 = vpop.f32.mrf.mxu0  ;;  %4490 = vmax.xlane.f32.xlu0 %v4489_v54 }
 0x7ba   :  { %v4136_v55 = vpop.f32.mrf.mxu0 }
 0x7bb   :  { %4729 = vrot.lane.b32.xlu1 %v18801_v15, %s18135_s9 }
 0x7bc   :  { %v16851_v28 = vpop.f32.mrf.mxu0 }
 0x7be   :  { %v19258_v7 = vpop.f32.mrf.mxu0 }
 0x7bf   :  { %4825 = vrot.lane.b32.xlu1 %v18826_v45, %s18135_s9  ;;  %v4495_v4 = vsel %vm1907_vm5, %v19258_v7, -inf }
 0x7c0   :  { %v16862_v24 = vpop.f32.mrf.mxu0  ;;  %4496 = vmax.xlane.f32.xlu0 %v4495_v4 }
 0x7c2   :  { %v4236_v20 = vpop.f32.mrf.mxu0 }
 0x7c3   :  { %4921 = vrot.lane.b32.xlu1 %v18862_v41, %s18135_s9 }
 0x7c4   :  { %v16863_v2 = vpop.f32.mrf.mxu0 }
 0x7c6   :  { %v19266_v42 = vpop.f32.mrf.mxu0 }
 0x7c7   :  { %5428 = vrot.lane.b32.xlu1 %v18487_v23, %s18136_s17  ;;  %v4501_v52 = vsel %vm1907_vm5, %v19266_v42, -inf }
 0x7c8   :  { %v16874_v34 = vpop.f32.mrf.mxu0  ;;  %4502 = vmax.xlane.f32.xlu0 %v4501_v52 }
 0x7ca   :  { %v4336_v60 = vpop.f32.mrf.mxu0 }
 0x7cb   :  { %5426 = vrot.lane.b32.xlu1 %v18541_v0, %s18136_s17 }
 0x7cc   :  { %v16875_v26 = vpop.f32.mrf.mxu0 }
 0x7ce   :  { %v19274_v29 = vpop.f32.mrf.mxu0 }
 0x7cf   :  { %5528 = vrot.lane.b32.xlu1 %v18529_v56, %s18136_s17  ;;  %v4507_v40 = vsel %vm1907_vm5, %v19274_v29, -inf }
 0x7d0   :  { %v16886_v1 = vpop.f32.mrf.mxu0  ;;  %4508 = vmax.xlane.f32.xlu0 %v4507_v40 }
 0x7d2   :  { %v4436_v23 = vpop.f32.mrf.mxu0 }
 0x7d3   :  { %5526 = vrot.lane.b32.xlu1 %v18575_v21, %s18136_s17 }
 0x7d4   :  { %v16887_v9 = vpop.f32.mrf.mxu0 }
 0x7d7   :  { %5628 = vrot.lane.b32.xlu1 %v18571_v10, %s18136_s17 }
 0x7db   :  { %5626 = vrot.lane.b32.xlu1 %v18600_v12, %s18136_s17 }
 0x7df   :  { %5728 = vrot.lane.b32.xlu1 %v18596_v36, %s18136_s17 }
 0x7e3   :  { %5726 = vrot.lane.b32.xlu1 %v18614_v37, %s18136_s17 }
 0x7e6   :  { %4585 = vrot.lane.b32.xlu0 %v18669_v44, %s18135_s9 }
 0x813   :  { %v4542_v56 = vpop.xlane.xlu1 %4541 }
 0x814   :  { %17828 = vrcp.f32 %v4542_v56 }
 0x81b   :  { %v4548_v0 = vpop.xlane.xlu1 %4547 }
 0x81c   :  { %17830 = vrcp.f32 %v4548_v0 }
 0x821   :  { %v17829_v49 = vpop.eup %17828 }
 0x822   :  { %v4570_v12 = vmul.f32 %v17829_v49, %v19226_v38 }
 0x823   :  { %v4554_v21 = vpop.xlane.xlu1 %4553 }
 0x824   :  { %17832 = vrcp.f32 %v4554_v21  ;;  %v4578_v37 = vpack.c.bf16 %v4570_v12, %v4570_v12 }
 0x829   :  { %v17831_v14 = vpop.eup %17830 }
 0x82a   :  { %v4572_v11 = vmul.f32 %v17831_v14, %v19230_v58 }
 0x82b   :  { %v4560_v63 = vpop.xlane.xlu1 %4559 }
 0x82c   :  { %17834 = vrcp.f32 %v4560_v63  ;;  %v4580_v43 = vpack.c.bf16 %v4572_v11, %v4572_v11 }
 0x82f   :  { %v4634_v10 = vpop.permute.xlu1 %4633 }
 0x830   :  { %v4639_v48 = vand.u32 %v4634_v10, %v18675_v50 }
 0x831   :  { %v17833_v54 = vpop.eup %17832 }
 0x832   :  { %16901 = vmatpush3.bf16.msra.mxu1 %v4639_v48  ;;  %v4574_v58 = vmul.f32 %v17833_v54, %v19234_v31 }
 0x833   :  { %v19294_v36 = vpop.permute.xlu1 %4681  ;;  %16912 = vmatprep.subr.bf16.mxu1 %v18130_v19 }
 0x834   :  { %v4582_v24 = vpack.c.bf16 %v4574_v58, %v4574_v58 }
 0x835   :  { %16903 = vmatmul.mubr.msk.bf16.vlgmr.msra.gmra.mxu1 %vm2004_vm6, %v4578_v37 }
 0x836   :  { %16914 = vmatprep.mubr.msk.bf16.mxu1 %vm18131_vm1, %v18130_v19 }
 0x837   :  { %v4730_v47 = vpop.permute.xlu1 %4729 }
 0x838   :  { %v4735_v38 = vand.u32 %v4730_v47, %v18675_v50 }
 0x839   :  { %v17835_v20 = vpop.eup %17834 }
 0x83a   :  { %16913 = vmatpush3.bf16.msra.mxu1 %v4735_v38  ;;  %v4576_v34 = vmul.f32 %v17835_v20, %v19238_v25 }
 0x83b   :  { %v4826_v13 = vpop.permute.xlu1 %4825  ;;  %16924 = vmatprep.subr.bf16.mxu1 %v18130_v19 }
 0x83c   :  { %v4831_v51 = vand.u32 %v4826_v13, %v18675_v50 }
 0x83d   :  { %16915 = vmatmul.mubr.msk.bf16.vlgmr.msra.gmra.mxu1 %vm2004_vm6, %v4580_v43 }
 0x83e   :  { %16925 = vmatpush3.bf16.msra.mxu1 %v4831_v51  ;;  %16926 = vmatprep.mubr.msk.bf16.mxu1 %vm18131_vm1, %v18130_v19 }
 0x83f   :  { %16936 = vmatprep.subr.bf16.mxu1 %v18130_v19  ;;  %v4922_v55 = vpop.permute.xlu1 %4921 }
 0x840   :  { %v4927_v2 = vand.u32 %v4922_v55, %v18675_v50 }
 0x841   :  { %v4491_v28 = vpop.xlane.xlu0 %4490 }
 0x842   :  { %v4513_v4 = vsub.f32 %v19250_v59, %v4491_v28  ;;  %v4584_v59 = vpack.c.bf16 %v4576_v34, %v4576_v34 }
 0x844   :  { %v4521_v52 = vmul.f32 1.442695, %v4513_v4 }
 0x845   :  { %16927 = vmatmul.mubr.msk.bf16.vlgmr.msra.gmra.mxu1 %vm2004_vm6, %v4582_v24 }
 0x846   :  { %17836 = vpow2.f32 %v4521_v52  ;;  %16937 = vmatpush3.bf16.msra.mxu1 %v4927_v2  ;;  %16938 = vmatprep.mubr.msk.bf16.mxu1 %vm18131_vm1, %v18130_v19 }
 0x847   :  { %16948 = vmatprep.subr.bf16.mxu1 %v18130_v19 }
 0x849   :  { %v4497_v31 = vpop.xlane.xlu0 %4496 }
 0x84a   :  { %v4515_v60 = vsub.f32 %v19258_v7, %v4497_v31 }
 0x84c   :  { %v4525_v26 = vmul.f32 1.442695, %v4515_v60 }
 0x84d   :  { %16939 = vmatmul.mubr.msk.bf16.vlgmr.msra.gmra.mxu1 %vm2004_vm6, %v4584_v59 }
 0x84e   :  { %17838 = vpow2.f32 %v4525_v26  ;;  %16950 = vmatprep.mubr.msk.bf16.mxu1 %vm18131_vm1, %v18130_v19 }
 0x851   :  { %v4503_v23 = vpop.xlane.xlu0 %4502 }
 0x852   :  { %v4517_v21 = vsub.f32 %v19266_v42, %v4503_v23 }
 0x853   :  { %v17837_v40 = vpop.eup %17836 }
 0x854   :  { %v4537_v1 = vsel %vm1907_vm5, %v17837_v40, 0.0  ;;  %v4529_v63 = vmul.f32 1.442695, %v4517_v21 }
 0x855   :  { %4538 = vadd.xlane.f32.xlu0 %v4537_v1 }
 0x856   :  { %17840 = vpow2.f32 %v4529_v63 }
 0x859   :  { %v4509_v9 = vpop.xlane.xlu0 %4508 }
 0x85a   :  { %v4519_v49 = vsub.f32 %v19274_v29, %v4509_v9 }
 0x85b   :  { %v17839_v25 = vpop.eup %17838 }
 0x85c   :  { %v4543_v56 = vsel %vm1907_vm5, %v17839_v25, 0.0  ;;  %v4533_v10 = vmul.f32 1.442695, %v4519_v49 }
 0x85d   :  { %4544 = vadd.xlane.f32.xlu0 %v4543_v56  ;;  %v4586_v0 = vpop.permute.xlu0 %4585 }
 0x85e   :  { %v4591_v7 = vand.u32 %v4586_v0, %v18675_v50  ;;  %17842 = vpow2.f32 %v4533_v10 }
 0x860   :  { %16895 = vmatpush3.bf16.msra.mxu0 %v4591_v7 }
 0x861   :  { %16906 = vmatprep.subr.bf16.mxu0 %v18130_v19 }
 0x863   :  { %v17841_v12 = vpop.eup %17840 }
 0x864   :  { %v4549_v48 = vsel %vm1907_vm5, %v17841_v12, 0.0 }
 0x86b   :  { %v19329_v37 = vpop.eup %17842 }
 0x86c   :  { %v4555_v14 = vsel %vm1907_vm5, %v19329_v37, 0.0 }
 0x873   :  { %4777 = vrot.lane.b32.xlu0 %v18803_v22, %s18135_s9 }
 0x892   :  { %4550 = vadd.xlane.f32.xlu0 %v4549_v48 }
 0x896   :  { %4556 = vadd.xlane.f32.xlu0 %v4555_v14 }
 0x8ac   :  { %4873 = vrot.lane.b32.xlu0 %v18820_v17, %s18135_s9 }
 0x8b0   :  { %5378 = vrot.lane.b32.xlu0 %v18469_v57, %s18136_s17 }
 0x8b4   :  { %5376 = vrot.lane.b32.xlu0 %v18492_v35, %s18136_s17 }
 0x8b8   :  { %5478 = vrot.lane.b32.xlu0 %v18490_v27, %s18136_s17 }
 0x8bc   :  { %5476 = vrot.lane.b32.xlu0 %v18538_v62, %s18136_s17  ;;  %v4687_v62 = vand.u32 %v19294_v36, %v18675_v50 }
 0x8c0   :  { %5578 = vrot.lane.b32.xlu0 %v18521_v53, %s18136_s17 }
 0x8c4   :  { %5576 = vrot.lane.b32.xlu0 %v18573_v16, %s18136_s17 }
 0x8c8   :  { %5678 = vrot.lane.b32.xlu0 %v18566_v8, %s18136_s17 }
 0x8cc   :  { %5676 = vrot.lane.b32.xlu0 %v18598_v39, %s18136_s17 }
 0x8de   :  { %v4539_v57 = vpop.xlane.xlu0 %4538 }
 0x8df   :  { %17844 = vrcp.f32 %v4539_v57 }
 0x8e6   :  { %v4545_v35 = vpop.xlane.xlu0 %4544 }
 0x8e7   :  { %17846 = vrcp.f32 %v4545_v35 }
 0x8ea   :  { %v4778_v8 = vpop.permute.xlu0 %4777 }
 0x8eb   :  { %v4783_v38 = vand.u32 %v4778_v8, %v18675_v50 }
 0x8ec   :  { %v17845_v27 = vpop.eup %17844 }
 0x8ed   :  { %v4569_v42 = vmul.f32 %v17845_v27, %v17837_v40  ;;  %v17695_v27 = vld [vmem:[%s18196_s19 + $0x10] sm:$0xff]  }
 0x8ef   :  { %v4577_v29 = vpack.c.bf16 %v4569_v42, %v4569_v42 }
 0x8f1   :  { %16897 = vmatmul.mubr.msk.bf16.vlgmr.msra.gmra.mxu0 %vm2004_vm6, %v4577_v29 }
 0x8f2   :  { %16907 = vmatpush3.bf16.msra.mxu0 %v4687_v62  ;;  %16908 = vmatprep.mubr.msk.bf16.mxu0 %vm18131_vm1, %v18130_v19 }
 0x8f3   :  { %16918 = vmatprep.subr.bf16.mxu0 %v18130_v19 }
 0x8f4   :  { %v17847_v53 = vpop.eup %17846 }
 0x8f5   :  { %v19357_v16 = vpop.f32.mrf.mxu1  ;;  %v4571_v39 = vmul.f32 %v17847_v53, %v17839_v25 }
 0x8f7   :  { %v16904_v47 = vpop.f32.mrf.mxu1  ;;  %v4579_v11 = vpack.c.bf16 %v4571_v39, %v4571_v39 }
 0x8f9   :  { %v4678_v13 = vpop.f32.mrf.mxu1  ;;  %16909 = vmatmul.mubr.msk.bf16.vlgmr.msra.gmra.mxu0 %vm2004_vm6, %v4579_v11 }
 0x8fa   :  { %16919 = vmatpush3.bf16.msra.mxu0 %v4783_v38  ;;  %16920 = vmatprep.mubr.msk.bf16.mxu0 %vm18131_vm1, %v18130_v19  ;;  %v5006_v38 = vrot.slane %v19357_v16, %v18400_v32 }
 0x8fb   :  { %v16905_v36 = vpop.f32.mrf.mxu1  ;;  %16930 = vmatprep.subr.bf16.mxu0 %v18130_v19 }
 0x8fd   :  { %v19364_v43 = vpop.f32.mrf.mxu1 }
 0x8ff   :  { %v16916_v54 = vpop.f32.mrf.mxu1 }
 0x900   :  { %v5007_v54 = vcombine.high %v5006_v38, %v5006_v38 }
 0x901   :  { %v4774_v51 = vpop.f32.mrf.mxu1 }
 0x902   :  { %v5014_v51 = vrot.slane %v5006_v38, %v18400_v32 }
 0x903   :  { %v16917_v58 = vpop.f32.mrf.mxu1 }
 0x904   :  { %v5052_v58 = vrot.slane %v19364_v43, %v18400_v32 }
 0x905   :  { %v19366_v55 = vpop.f32.mrf.mxu1 }
 0x906   :  { %v5053_v16 = vcombine.high %v5052_v58, %v5052_v58 }
 0x907   :  { %v16928_v28 = vpop.f32.mrf.mxu1 }
 0x908   :  { %v5067_v43 = vrot.slane %v5053_v16, %v18400_v32 }
 0x909   :  { %v4870_v4 = vpop.f32.mrf.mxu1 }
 0x90b   :  { %v16929_v24 = vpop.f32.mrf.mxu1 }
 0x90d   :  { %v19368_v20 = vpop.f32.mrf.mxu1 }
 0x90f   :  { %v16940_v2 = vpop.f32.mrf.mxu1 }
 0x910   :  { %v5021_v2 = vrot.slane %v5007_v54, %v18400_v32 }
 0x911   :  { %v4966_v52 = vpop.f32.mrf.mxu1 }
 0x912   :  { %v5022_v52 = vcombine.high %v5014_v51, %v5014_v51 }
 0x913   :  { %v16941_v34 = vpop.f32.mrf.mxu1 }
 0x91b   :  { %v4551_v31 = vpop.xlane.xlu0 %4550 }
 0x91c   :  { %17848 = vrcp.f32 %v4551_v31  ;;  %v5060_v31 = vrot.slane %v5052_v58, %v18400_v32 }
 0x91f   :  { %v4557_v60 = vpop.xlane.xlu0 %4556 }
 0x920   :  { %17850 = vrcp.f32 %v4557_v60 }
 0x923   :  { %v4874_v59 = vpop.permute.xlu0 %4873 }
 0x924   :  { %v4879_v0 = vand.u32 %v4874_v59, %v18675_v50 }
 0x927   :  { %v5379_v26 = vpop.permute.xlu0 %5378 }
 0x928   :  { %v5384_v40 = vsel %vm1538_vm2, %v5379_v26, 0 }
 0x929   :  { %v17849_v1 = vpop.eup %17848  ;;  %16949 = vmatpush3.bf16.xpose.msra.mxu1 %v5384_v40  ;;  %v5163_v40 = vcombine.low %v5021_v2, %v5022_v52 }
 0x92a   :  { %v4573_v23 = vmul.f32 %v17849_v1, %v17841_v12  ;;  %16960 = vmatprep.subr.bf16.mxu1 %v18130_v19 }
 0x92b   :  { %v5377_v9 = vpop.permute.xlu0 %5376 }
 0x92c   :  { %v4581_v25 = vpack.c.bf16 %v4573_v23, %v4573_v23  ;;  %v5068_v23 = vcombine.high %v5060_v31, %v5060_v31 }
 0x92d   :  { %v17851_v56 = vpop.eup %17850 }
 0x92e   :  { %16921 = vmatmul.mubr.msk.bf16.vlgmr.msra.gmra.mxu0 %vm2004_vm6, %v4581_v25  ;;  %v4575_v63 = vmul.f32 %v17851_v56, %v19329_v37  ;;  %v5144_v56 = vrot.slane %v19368_v20, %v18400_v32 }
 0x92f   :  { %16931 = vmatpush3.bf16.msra.mxu0 %v4879_v0  ;;  %v5479_v7 = vpop.permute.xlu0 %5478  ;;  %16932 = vmatprep.mubr.msk.bf16.mxu0 %vm18131_vm1, %v18130_v19 }
 0x930   :  { %v5484_v21 = vsel %vm1538_vm2, %v5479_v7, 0  ;;  %16951 = vmatmul.mubr.msk.bf16.vlgmr.msra.gmra.mxu1 %vm1538_vm2, %v5377_v9  ;;  %v4583_v10 = vpack.c.bf16 %v4575_v63, %v4575_v63  ;;  %16942 = vmatprep.subr.bf16.mxu0 %v17695_v27  ;;  %v5098_v9 = vrot.slane %v19366_v55, %v18400_v32 }
 0x931   :  { %16961 = vmatpush3.bf16.xpose.msra.mxu1 %v5484_v21  ;;  %16962 = vmatprep.mubr.msk.bf16.mxu1 %vm18131_vm1, %v18130_v19 }
 0x932   :  { %16972 = vmatprep.subr.bf16.mxu1 %v18130_v19  ;;  %v5106_v55 = vrot.slane %v5098_v9, %v18400_v32 }
 0x933   :  { %v5477_v49 = vpop.permute.xlu0 %5476 }
 0x936   :  { %16933 = vmatmul.mubr.msk.bf16.vlgmr.msra.gmra.mxu0 %vm2004_vm6, %v4583_v10  ;;  %v5185_v10 = vrot.slane %v5163_v40, %v18400_v32 }
 0x937   :  { %v5579_v12 = vpop.permute.xlu0 %5578  ;;  %16943 = vmatpush3.bf16.msra.mxu0 %v17695_v27 }
 0x938   :  { %v5584_v48 = vsel %vm1538_vm2, %v5579_v12, 0  ;;  %16963 = vmatmul.mubr.msk.bf16.vlgmr.msra.gmra.mxu1 %vm1538_vm2, %v5477_v49  ;;  %16954 = vmatprep.subr.bf16.mxu0 %v18130_v19  ;;  %v5211_v12 = vcombine.low %v5067_v43, %v5068_v23 }
 0x939   :  { %16973 = vmatpush3.bf16.xpose.msra.mxu1 %v5584_v48  ;;  %16974 = vmatprep.mubr.msk.bf16.mxu1 %vm18131_vm1, %v18130_v19  ;;  %v5099_v48 = vcombine.high %v5098_v9, %v5098_v9  ;;  %v5429_v9 = vpop.permute.xlu1 %5428 }
 0x93a   :  { %16984 = vmatprep.subr.bf16.mxu1 %v18130_v19 }
 0x93b   :  { %v5577_v37 = vpop.permute.xlu0 %5576  ;;  %v5113_v58 = vrot.slane %v5099_v48, %v18400_v32 }
 0x93f   :  { %v5679_v14 = vpop.permute.xlu0 %5678 }
 0x940   :  { %v5684_v57 = vsel %vm1538_vm2, %v5679_v14, 0  ;;  %16975 = vmatmul.mubr.msk.bf16.vlgmr.msra.gmra.mxu1 %vm1538_vm2, %v5577_v37 }
 0x941   :  { %16985 = vmatpush3.bf16.xpose.msra.mxu1 %v5684_v57  ;;  %16986 = vmatprep.mubr.msk.bf16.mxu1 %vm18131_vm1, %v18130_v19 }
 0x942   :  { %16996 = vmatprep.subr.bf16.mxu1 %v18130_v19 }
 0x943   :  { %v5677_v35 = vpop.permute.xlu0 %5676 }
 0x948   :  { %16987 = vmatmul.mubr.msk.bf16.vlgmr.msra.gmra.mxu1 %vm1538_vm2, %v5677_v35 }
 0x949   :  { %16998 = vmatprep.mubr.msk.bf16.mxu1 %vm18131_vm1, %v18130_v19 }
 0x9b1   :  { %v4627_v42 = vpop.f32.mrf.mxu0 }
 0x9b2   :  { %v4983_v36 = vrot.slane %v4627_v42, %v18400_v32  ;;  %v5145_v42 = vcombine.high %v5144_v56, %v5144_v56 }
 0x9b3   :  { %v16898_v29 = vpop.f32.mrf.mxu0 }
 0x9b4   :  { %v4984_v4 = vcombine.high %v4983_v36, %v4983_v36  ;;  %v4991_v24 = vrot.slane %v4983_v36, %v18400_v32  ;;  %v5152_v29 = vrot.slane %v5144_v56, %v18400_v32  ;;  %v5159_v2 = vrot.slane %v5145_v42, %v18400_v32 }
 0x9b5   :  { %v4630_v62 = vpop.f32.mrf.mxu0 }
 0x9b6   :  { %v4998_v59 = vrot.slane %v4984_v4, %v18400_v32  ;;  %v4999_v26 = vcombine.high %v4991_v24, %v4991_v24  ;;  %v5160_v52 = vcombine.high %v5152_v29, %v5152_v29 }
 0x9b7   :  { %v16899_v53 = vpop.f32.mrf.mxu0 }
 0x9b8   :  { %v5161_v0 = vcombine.low %v4991_v24, %v4998_v59  ;;  %v5162_v7 = vcombine.low %v4999_v26, %v5014_v51  ;;  %v5227_v51 = vrot.slane %v5211_v12, %v18400_v32  ;;  %v5114_v24 = vcombine.high %v5106_v55, %v5106_v55 }
 0x9b9   :  { %v4723_v8 = vpop.f32.mrf.mxu0 }
 0x9ba   :  { %v5029_v13 = vrot.slane %v4723_v8, %v18400_v32  ;;  %v5171_v62 = vrot.slane %v5161_v0, %v18400_v32  ;;  %v5178_v53 = vrot.slane %v5162_v7, %v18400_v32 }
 0x9bb   :  { %v16910_v39 = vpop.f32.mrf.mxu0 }
 0x9bc   :  { %v5030_v28 = vcombine.high %v5029_v13, %v5029_v13  ;;  %v5037_v34 = vrot.slane %v5029_v13, %v18400_v32 }
 0x9bd   :  { %v4726_v47 = vpop.f32.mrf.mxu0 }
 0x9be   :  { %v5044_v60 = vrot.slane %v5030_v28, %v18400_v32  ;;  %v5045_v1 = vcombine.high %v5037_v34, %v5037_v34 }
 0x9bf   :  { %v16911_v11 = vpop.f32.mrf.mxu0 }
 0x9c0   :  { %v5164_v25 = vcombine.low %v5037_v34, %v5044_v60  ;;  %v5210_v63 = vcombine.low %v5045_v1, %v5060_v31  ;;  %v5193_v34 = vcombine.low %v5171_v62, %v5178_v53 }
 0x9c2   :  { %v5192_v37 = vrot.slane %v5164_v25, %v18400_v32  ;;  %v5220_v47 = vrot.slane %v5210_v63, %v18400_v32  ;;  %v5262_v63 = vcombine.low %v5159_v2, %v5160_v52 }
 0x9c4   :  { %v5194_v13 = vcombine.low %v5185_v10, %v5192_v37  ;;  %v5242_v60 = vcombine.low %v5220_v47, %v5227_v51  ;;  %v5290_v47 = vrot.slane %v5262_v63, %v18400_v32  ;;  %v4084_v63 = vadd.f32 %v19189_v33, %v19242_v5 }
 0x9c6   :  { %v5208_v1 = vrot.slane %v5194_v13, %v18400_v32 }
 0x9ee   :  { %v4819_v21 = vpop.f32.mrf.mxu0 }
 0x9ef   :  { %v5075_v49 = vrot.slane %v4819_v21, %v18400_v32  ;;  %v5259_v21 = vcombine.low %v5113_v58, %v5114_v24 }
 0x9f0   :  { %v16922_v14 = vpop.f32.mrf.mxu0  ;;  %v19419_v57 = vpop.f32.mrf.mxu1 }
 0x9f1   :  { %v5076_v35 = vcombine.high %v5075_v49, %v5075_v49  ;;  %v5083_v20 = vrot.slane %v5075_v49, %v18400_v32  ;;  %v5776_v27 = vsel %vm1907_vm5, %v19419_v57, -inf  ;;  %v5201_v49 = vrot.slane %v5193_v34, %v18400_v32 }
 0x9f2   :  { %v4822_v8 = vpop.f32.mrf.mxu0  ;;  %5777 = vmax.xlane.f32.xlu0 %v5776_v27  ;;  %v16952_v39 = vpop.f32.mrf.mxu1 }
 0x9f3   :  { %v5090_v11 = vrot.slane %v5076_v35, %v18400_v32  ;;  %v5091_v38 = vcombine.high %v5083_v20, %v5083_v20  ;;  %v5209_v62 = vcombine.low %v5201_v49, %v5208_v1  ;;  %v5269_v8 = vrot.slane %v5259_v21, %v18400_v32 }
 0x9f4   :  { %v16923_v36 = vpop.f32.mrf.mxu0  ;;  %v5423_v54 = vpop.f32.mrf.mxu1 }
 0x9f5   :  { %v5212_v28 = vcombine.low %v5083_v20, %v5090_v11  ;;  %v5213_v4 = vcombine.low %v5091_v38, %v5106_v55  ;;  %v5250_v55 = vrot.slane %v5242_v60, %v18400_v32  ;;  %v5427_v36 = vpop.permute.xlu1 %5426  ;;  %v5434_v60 = vsel %vm1538_vm2, %v5429_v9, 0 }
 0x9f6   :  { %v4915_v16 = vpop.f32.mrf.mxu0  ;;  %v16953_v31 = vpop.f32.mrf.mxu1 }
 0x9f7   :  { %v5234_v59 = vrot.slane %v5212_v28, %v18400_v32  ;;  %v5241_v26 = vrot.slane %v5213_v4, %v18400_v32  ;;  %v5121_v40 = vrot.slane %v4915_v16, %v18400_v32 }
 0x9f8   :  { %v16934_v43 = vpop.f32.mrf.mxu0  ;;  %v19437_v23 = vpop.f32.mrf.mxu1 }
 0x9f9   :  { %v5243_v25 = vcombine.low %v5234_v59, %v5241_v26  ;;  %v5122_v56 = vcombine.high %v5121_v40, %v5121_v40  ;;  %v5129_v0 = vrot.slane %v5121_v40, %v18400_v32  ;;  %v5782_v7 = vsel %vm1907_vm5, %v19437_v23, -inf  ;;  %v5529_v52 = vpop.permute.xlu1 %5528 }
 0x9fa   :  { %v4918_v10 = vpop.f32.mrf.mxu0  ;;  %5783 = vmax.xlane.f32.xlu0 %v5782_v7  ;;  %v16964_v12 = vpop.f32.mrf.mxu1  ;;  %v5534_v43 = vsel %vm1538_vm2, %v5529_v52, 0 }
 0x9fb   :  { %v5257_v48 = vrot.slane %v5243_v25, %v18400_v32  ;;  %v5136_v37 = vrot.slane %v5122_v56, %v18400_v32  ;;  %v5137_v14 = vcombine.high %v5129_v0, %v5129_v0  ;;  %v4076_v10 = vadd.f32 %v19193_v61, %v19244_v6 }
 0x9fc   :  { %v16935_v35 = vpop.f32.mrf.mxu0  ;;  %v5523_v20 = vpop.f32.mrf.mxu1 }
 0x9fd   :  { %v5260_v27 = vcombine.low %v5129_v0, %v5136_v37  ;;  %v5261_v42 = vcombine.low %v5137_v14, %v5152_v29  ;;  %v5258_v53 = vcombine.low %v5250_v55, %v5257_v48  ;;  %v5527_v26 = vpop.permute.xlu1 %5526 }
 0x9fe   :  { %v16965_v39 = vpop.f32.mrf.mxu1 }
 0x9ff   :  { %v5276_v11 = vrot.slane %v5260_v27, %v18400_v32  ;;  %v5283_v38 = vrot.slane %v5261_v42, %v18400_v32  ;;  %v5311_v13 = vpack.c.bf16 %v5258_v53, %v5209_v62 }
 0xa00   :  { %v19450_v54 = vpop.f32.mrf.mxu1 }
 0xa01   :  { %v5291_v51 = vcombine.low %v5269_v8, %v5276_v11  ;;  %v5292_v58 = vcombine.low %v5283_v38, %v5290_v47  ;;  %16944 = vmatprep.mubr.msk.bf16.mxu0 %vm1538_vm2, %v5311_v13  ;;  %v5629_v25 = vpop.permute.xlu1 %5628  ;;  %v5788_v38 = vsel %vm1907_vm5, %v19450_v54, -inf }
 0xa02   :  { %v16976_v29 = vpop.f32.mrf.mxu1  ;;  %v5634_v56 = vsel %vm1538_vm2, %v5629_v25, 0 }
 0xa03   :  { %v5299_v28 = vrot.slane %v5291_v51, %v18400_v32  ;;  %v5306_v4 = vrot.slane %v5292_v58, %v18400_v32 }
 0xa04   :  { %v5623_v24 = vpop.f32.mrf.mxu1 }
 0xa05   :  { %v5307_v2 = vcombine.low %v5299_v28, %v5306_v4  ;;  %v5627_v9 = vpop.permute.xlu1 %5626 }
 0xa06   :  { %v16977_v34 = vpop.f32.mrf.mxu1 }
 0xa07   :  { %v5312_v16 = vpack.c.bf16 %v5307_v2, %v5307_v2 }
 0xa08   :  { %v19455_v31 = vpop.f32.mrf.mxu1 }
 0xa09   :  { %16945 = vmatmul.mubr.msk.bf16.vlgmr.msra.gmra.mxu0 %vm1538_vm2, %v5312_v16  ;;  %v5729_v0 = vpop.permute.xlu1 %5728 }
 0xa0a   :  { %16955 = vmatpush3.bf16.xpose.msra.mxu0 %v5434_v60  ;;  %v16988_v59 = vpop.f32.mrf.mxu1  ;;  %16956 = vmatprep.mubr.msk.bf16.mxu0 %vm18131_vm1, %v18130_v19  ;;  %v5734_v7 = vsel %vm1538_vm2, %v5729_v0, 0 }
 0xa0b   :  { %16966 = vmatprep.subr.bf16.mxu0 %v18130_v19 }
 0xa0c   :  { %v5723_v40 = vpop.f32.mrf.mxu1 }
 0xa0d   :  { %v5727_v21 = vpop.permute.xlu1 %5726 }
 0xa0e   :  { %v16989_v1 = vpop.f32.mrf.mxu1 }
 0xa11   :  { %16957 = vmatmul.mubr.msk.bf16.vlgmr.msra.gmra.mxu0 %vm1538_vm2, %v5427_v36  ;;  %v5794_v36 = vsel %vm1907_vm5, %v19455_v31, -inf }
 0xa12   :  { %16967 = vmatpush3.bf16.xpose.msra.mxu0 %v5534_v43  ;;  %16968 = vmatprep.mubr.msk.bf16.mxu0 %vm18131_vm1, %v18130_v19 }
 0xa13   :  { %16978 = vmatprep.subr.bf16.mxu0 %v18130_v19 }
 0xa19   :  { %16969 = vmatmul.mubr.msk.bf16.vlgmr.msra.gmra.mxu0 %vm1538_vm2, %v5527_v26 }
 0xa1a   :  { %16979 = vmatpush3.bf16.xpose.msra.mxu0 %v5634_v56  ;;  %16980 = vmatprep.mubr.msk.bf16.mxu0 %vm18131_vm1, %v18130_v19 }
 0xa1b   :  { %16990 = vmatprep.subr.bf16.mxu0 %v18130_v19 }
 0xa21   :  { %16981 = vmatmul.mubr.msk.bf16.vlgmr.msra.gmra.mxu0 %vm1538_vm2, %v5627_v9 }
 0xa22   :  { %16991 = vmatpush3.bf16.xpose.msra.mxu0 %v5734_v7  ;;  %16992 = vmatprep.mubr.msk.bf16.mxu0 %vm18131_vm1, %v18130_v19 }
 0xa23   :  { %17002 = vmatprep.subr.bf16.mxu0 %v18130_v19 }
 0xa29   :  { %16993 = vmatmul.mubr.msk.bf16.vlgmr.msra.gmra.mxu0 %vm1538_vm2, %v5727_v21 }
 0xa2a   :  { %17004 = vmatprep.mubr.msk.bf16.mxu0 %vm18131_vm1, %v18130_v19 }
 0xa7b   :  { %v5778_v48 = vpop.xlane.xlu0 %5777 }
 0xa7c   :  { %v5800_v35 = vsub.f32 %v19419_v57, %v5778_v48 }
 0xa7e   :  { %v5808_v62 = vmul.f32 1.442695, %v5800_v35 }
 0xa80   :  { %17852 = vpow2.f32 %v5808_v62 }
 0xa83   :  { %v5784_v20 = vpop.xlane.xlu0 %5783 }
 0xa84   :  { %v5802_v33 = vsub.f32 %v19437_v23, %v5784_v20 }
 0xa86   :  { %v5812_v53 = vmul.f32 1.442695, %v5802_v33 }
 0xa88   :  { %17854 = vpow2.f32 %v5812_v53 }
 0xa8d   :  { %v19498_v51 = vpop.eup %17852 }
 0xa8e   :  { %v5824_v28 = vsel %vm1907_vm5, %v19498_v51, 0.0 }
 0xa95   :  { %v19504_v4 = vpop.eup %17854 }
 0xa96   :  { %v5830_v52 = vsel %vm1907_vm5, %v19504_v4, 0.0 }
 0xac9   :  { %v16946_v49 = vpop.f32.mrf.mxu0 }
 0xaca   :  { %v19484_v12 = vadd.f32 %v16946_v49, %v4084_v63 }
 0xacb   :  { %v5359_v37 = vpop.f32.mrf.mxu0 }
 0xacc   :  { %v19486_v14 = vadd.f32 %v5359_v37, %v4076_v10 }
 0xacd   :  { %v16947_v55 = vpop.f32.mrf.mxu0 }
 0xacf   :  { %v19489_v27 = vpop.f32.mrf.mxu0 }
 0xad1   :  { %v5470_v42 = vpop.f32.mrf.mxu0 }
 0xad2   :  { %v5779_v5 = vsel %vm1907_vm5, %v5470_v42, -inf }
 0xad3   :  { %5780 = vmax.xlane.f32.xlu1 %v5779_v5  ;;  %v16958_v61 = vpop.f32.mrf.mxu0 }
 0xad5   :  { %v5473_v6 = vpop.f32.mrf.mxu0 }
 0xad7   :  { %v16959_v8 = vpop.f32.mrf.mxu0 }
 0xad9   :  { %v5570_v39 = vpop.f32.mrf.mxu0 }
 0xada   :  { %v5785_v47 = vsel %vm1907_vm5, %v5570_v39, -inf }
 0xadb   :  { %v16970_v57 = vpop.f32.mrf.mxu0  ;;  %5786 = vmax.xlane.f32.xlu0 %v5785_v47 }
 0xadd   :  { %v5573_v11 = vpop.f32.mrf.mxu0 }
 0xadf   :  { %v16971_v13 = vpop.f32.mrf.mxu0  ;;  %5789 = vmax.xlane.f32.xlu0 %v5788_v38 }
 0xae1   :  { %v5670_v23 = vpop.f32.mrf.mxu0 }
 0xae3   :  { %v16982_v58 = vpop.f32.mrf.mxu0  ;;  %5795 = vmax.xlane.f32.xlu0 %v5794_v36 }
 0xae4   :  { %5920 = vrot.lane.b32.xlu1 %v18671_v46, %s18136_s17  ;;  %v5791_v46 = vsel %vm1907_vm5, %v5670_v23, -inf }
 0xae5   :  { %v5673_v29 = vpop.f32.mrf.mxu0 }
 0xae7   :  { %v16983_v24 = vpop.f32.mrf.mxu0  ;;  %5825 = vadd.xlane.f32.xlu0 %v5824_v28 }
 0xae8   :  { %5968 = vrot.lane.b32.xlu1 %v18780_v30, %s18136_s17 }
 0xae9   :  { %v5770_v2 = vpop.f32.mrf.mxu0 }
 0xaea   :  { %v5797_v59 = vsel %vm1907_vm5, %v5770_v2, -inf }
 0xaeb   :  { %v16994_v34 = vpop.f32.mrf.mxu0  ;;  %5831 = vadd.xlane.f32.xlu0 %v5830_v52 }
 0xaed   :  { %v5773_v16 = vpop.f32.mrf.mxu0 }
 0xaef   :  { %v16995_v60 = vpop.f32.mrf.mxu0 }
 0xb0c   :  { %5792 = vmax.xlane.f32.xlu1 %v5791_v46 }
 0xb10   :  { %5798 = vmax.xlane.f32.xlu1 %v5797_v59 }
 0xb21   :  { %6016 = vrot.lane.b32.xlu1 %v18801_v15, %s18136_s17 }
 0xb5c   :  { %v5781_v26 = vpop.xlane.xlu1 %5780 }
 0xb5d   :  { %v5801_v40 = vsub.f32 %v5470_v42, %v5781_v26 }
 0xb5f   :  { %v5810_v30 = vmul.f32 1.442695, %v5801_v40 }
 0xb60   :  { %v5921_v1 = vpop.permute.xlu1 %5920 }
 0xb61   :  { %17856 = vpow2.f32 %v5810_v30  ;;  %v5926_v43 = vand.u32 %v5921_v1, %v18675_v50 }
 0xb63   :  { %17003 = vmatpush3.bf16.msra.mxu0 %v5926_v43 }
 0xb64   :  { %v5787_v25 = vpop.xlane.xlu0 %5786  ;;  %17014 = vmatprep.subr.bf16.mxu0 %v18130_v19  ;;  %v5969_v35 = vpop.permute.xlu1 %5968 }
 0xb65   :  { %v5974_v34 = vand.u32 %v5969_v35, %v18675_v50 }
 0xb68   :  { %v5790_v9 = vpop.xlane.xlu0 %5789 }
 0xb69   :  { %v5804_v56 = vsub.f32 %v19450_v54, %v5790_v9 }
 0xb6b   :  { %v5816_v0 = vmul.f32 1.442695, %v5804_v56 }
 0xb6c   :  { %v5796_v7 = vpop.xlane.xlu0 %5795 }
 0xb6d   :  { %17858 = vpow2.f32 %v5816_v0  ;;  %v5806_v21 = vsub.f32 %v19455_v31, %v5796_v7  ;;  %v5803_v31 = vsub.f32 %v5570_v39, %v5787_v25 }
 0xb6e   :  { %v17857_v15 = vpop.eup %17856 }
 0xb6f   :  { %v5820_v63 = vmul.f32 1.442695, %v5806_v21  ;;  %v5827_v49 = vsel %vm1907_vm5, %v17857_v15, 0.0  ;;  %v5814_v55 = vmul.f32 1.442695, %v5803_v31 }
 0xb70   :  { %5828 = vadd.xlane.f32.xlu1 %v5827_v49  ;;  %v5826_v47 = vpop.xlane.xlu0 %5825 }
 0xb71   :  { %17860 = vpow2.f32 %v5820_v63 }
 0xb72   :  { %17862 = vpow2.f32 %v5814_v55 }
 0xb74   :  { %v5832_v57 = vpop.xlane.xlu0 %5831 }
 0xb7a   :  { %v19519_v10 = vpop.eup %17858 }
 0xb7b   :  { %v5836_v48 = vsel %vm1907_vm5, %v19519_v10, 0.0 }
 0xb7c   :  { %5837 = vadd.xlane.f32.xlu0 %v5836_v48 }
 0xb7e   :  { %v19523_v37 = vpop.eup %17860 }
 0xb7f   :  { %v5842_v54 = vsel %vm1907_vm5, %v19523_v37, 0.0 }
 0xb80   :  { %5843 = vadd.xlane.f32.xlu0 %v5842_v54 }
 0xb81   :  { %6112 = vrot.lane.b32.xlu1 %v18826_v45, %s18136_s17  ;;  %v19535_v45 = vpop.eup %17862 }
 0xb82   :  { %v5833_v6 = vsel %vm1907_vm5, %v19535_v45, 0.0 }
 0xb95   :  { %v5793_v20 = vpop.xlane.xlu1 %5792 }
 0xb96   :  { %v5805_v42 = vsub.f32 %v5670_v23, %v5793_v20  ;;  %5872 = vrot.lane.b32.xlu0 %v18669_v44, %s18136_s17 }
 0xb98   :  { %v5818_v62 = vmul.f32 1.442695, %v5805_v42  ;;  %v17696_v42 = vld [vmem:[%s18196_s19 + $0x18] sm:$0xff]   ;;  %s21614_s19 = sld [smem:[#allocation15_spill]] }
 0xb99   :  { %v5799_v33 = vpop.xlane.xlu1 %5798 }
 0xb9a   :  { %17864 = vpow2.f32 %v5818_v62  ;;  %v5807_v5 = vsub.f32 %v5770_v2, %v5799_v33  ;;  %6064 = vrot.lane.b32.xlu0 %v18803_v22, %s18136_s17 }
 0xb9c   :  { %v5822_v61 = vmul.f32 1.442695, %v5807_v5 }
 0xb9e   :  { %17866 = vpow2.f32 %v5822_v61  ;;  %6160 = vrot.lane.b32.xlu0 %v18820_v17, %s18136_s17  ;;  %v6017_v17 = vpop.permute.xlu1 %6016 }
 0xb9f   :  { %v6022_v29 = vand.u32 %v6017_v17, %v18675_v50 }
 0xba5   :  { %5834 = vadd.xlane.f32.xlu1 %v5833_v6 }
 0xba7   :  { %v19539_v53 = vpop.eup %17864 }
 0xba8   :  { %v5839_v44 = vsel %vm1907_vm5, %v19539_v53, 0.0 }
 0xba9   :  { %5840 = vadd.xlane.f32.xlu1 %v5839_v44 }
 0xbab   :  { %v19543_v8 = vpop.eup %17866 }
 0xbac   :  { %v5845_v22 = vsel %vm1907_vm5, %v19543_v8, 0.0 }
 0xbad   :  { %5846 = vadd.xlane.f32.xlu1 %v5845_v22 }
 0xbbe   :  { %6208 = vrot.lane.b32.xlu1 %v18862_v41, %s18136_s17 }
 0xbf9   :  { %v5829_v39 = vpop.xlane.xlu1 %5828 }
 0xbfa   :  { %17868 = vrcp.f32 %v5829_v39 }
 0xbfb   :  { %17870 = vrcp.f32 %v5826_v47 }
 0xbfc   :  { %17872 = vrcp.f32 %v5832_v57 }
 0xbfd   :  { %v6113_v9 = vpop.permute.xlu1 %6112 }
 0xc05   :  { %v5838_v11 = vpop.xlane.xlu0 %5837 }
 0xc06   :  { %17874 = vrcp.f32 %v5838_v11 }
 0xc07   :  { %v17869_v38 = vpop.eup %17868 }
 0xc08   :  { %v5857_v13 = vmul.f32 %v17869_v38, %v17857_v15  ;;  %v17871_v36 = vpop.eup %17870 }
 0xc09   :  { %v5844_v23 = vpop.xlane.xlu0 %5843  ;;  %v5856_v28 = vmul.f32 %v17871_v36, %v19498_v51  ;;  %v17873_v52 = vpop.eup %17872 }
 0xc0a   :  { %v5865_v58 = vpack.c.bf16 %v5857_v13, %v5857_v13  ;;  %v5858_v51 = vmul.f32 %v17873_v52, %v19504_v4  ;;  %17876 = vrcp.f32 %v5844_v23 }
 0xc0b   :  { %v5864_v2 = vpack.c.bf16 %v5856_v28, %v5856_v28 }
 0xc0c   :  { %17005 = vmatmul.mubr.msk.bf16.vlgmr.msra.gmra.mxu0 %vm2004_vm6, %v5865_v58  ;;  %v5866_v60 = vpack.c.bf16 %v5858_v51, %v5858_v51 }
 0xc0d   :  { %17015 = vmatpush3.bf16.msra.mxu0 %v6022_v29  ;;  %v5873_v41 = vpop.permute.xlu0 %5872  ;;  %17016 = vmatprep.mubr.msk.bf16.mxu0 %vm18131_vm1, %v18130_v19 }
 0xc0e   :  { %v5878_v24 = vand.u32 %v5873_v41, %v18675_v50  ;;  %17026 = vmatprep.subr.bf16.mxu0 %v18130_v19 }
 0xc10   :  { %16997 = vmatpush3.bf16.msra.mxu1 %v5878_v24 }
 0xc11   :  { %17008 = vmatprep.subr.bf16.mxu1 %v18130_v19  ;;  %v6065_v16 = vpop.permute.xlu0 %6064 }
 0xc12   :  { %v6070_v59 = vand.u32 %v6065_v16, %v18675_v50 }
 0xc13   :  { %16999 = vmatmul.mubr.msk.bf16.vlgmr.msra.gmra.mxu1 %vm2004_vm6, %v5864_v2  ;;  %v17875_v46 = vpop.eup %17874 }
 0xc14   :  { %17009 = vmatpush3.bf16.msra.mxu1 %v5974_v34  ;;  %17010 = vmatprep.mubr.msk.bf16.mxu1 %vm18131_vm1, %v18130_v19  ;;  %v5860_v26 = vmul.f32 %v17875_v46, %v19519_v10  ;;  %v6118_v10 = vand.u32 %v6113_v9, %v18675_v50 }
 0xc15   :  { %17020 = vmatprep.subr.bf16.mxu1 %v18130_v19  ;;  %v6161_v40 = vpop.permute.xlu0 %6160 }
 0xc16   :  { %v5868_v4 = vpack.c.bf16 %v5860_v26, %v5860_v26  ;;  %v6166_v1 = vand.u32 %v6161_v40, %v18675_v50 }
 0xc17   :  { %v17877_v30 = vpop.eup %17876 }
 0xc18   :  { %v5862_v43 = vmul.f32 %v17877_v30, %v19523_v37 }
 0xc1a   :  { %v5870_v25 = vpack.c.bf16 %v5862_v43, %v5862_v43 }
 0xc1b   :  { %17011 = vmatmul.mubr.msk.bf16.vlgmr.msra.gmra.mxu1 %vm2004_vm6, %v5866_v60 }
 0xc1c   :  { %17021 = vmatpush3.bf16.msra.mxu1 %v6070_v59  ;;  %17022 = vmatprep.mubr.msk.bf16.mxu1 %vm18131_vm1, %v18130_v19 }
 0xc1d   :  { %17032 = vmatprep.subr.bf16.mxu1 %v18130_v19 }
 0xc23   :  { %17023 = vmatmul.mubr.msk.bf16.vlgmr.msra.gmra.mxu1 %vm2004_vm6, %v5868_v4 }
 0xc24   :  { %17033 = vmatpush3.bf16.msra.mxu1 %v6166_v1  ;;  %17034 = vmatprep.mubr.msk.bf16.mxu1 %vm18131_vm1, %v18130_v19 }
 0xc25   :  { %17044 = vmatprep.subr.bf16.mxu1 %v17696_v42 }
 0xc2b   :  { %17035 = vmatmul.mubr.msk.bf16.vlgmr.msra.gmra.mxu1 %vm2004_vm6, %v5870_v25 }
 0xc2c   :  { %17045 = vmatpush3.bf16.msra.mxu1 %v17696_v42 }
 0xc2e   :  { %v5835_v56 = vpop.xlane.xlu1 %5834 }
 0xc2f   :  { %17878 = vrcp.f32 %v5835_v56 }
 0xc32   :  { %v5841_v0 = vpop.xlane.xlu1 %5840 }
 0xc33   :  { %17880 = vrcp.f32 %v5841_v0 }
 0xc36   :  { %v5847_v7 = vpop.xlane.xlu1 %5846 }
 0xc37   :  { %17882 = vrcp.f32 %v5847_v7 }
 0xc3a   :  { %v6209_v37 = vpop.permute.xlu1 %6208 }
 0xc3b   :  { %v6214_v55 = vand.u32 %v6209_v37, %v18675_v50 }
 0xc3c   :  { %v17879_v21 = vpop.eup %17878 }
 0xc3d   :  { %v5859_v15 = vmul.f32 %v17879_v21, %v19535_v45 }
 0xc3f   :  { %v5867_v63 = vpack.c.bf16 %v5859_v15, %v5859_v15 }
 0xc40   :  { %v17881_v49 = vpop.eup %17880 }
 0xc41   :  { %17017 = vmatmul.mubr.msk.bf16.vlgmr.msra.gmra.mxu0 %vm2004_vm6, %v5867_v63  ;;  %v5861_v48 = vmul.f32 %v17881_v49, %v19539_v53 }
 0xc42   :  { %17027 = vmatpush3.bf16.msra.mxu0 %v6118_v10  ;;  %17028 = vmatprep.mubr.msk.bf16.mxu0 %vm18131_vm1, %v18130_v19 }
 0xc43   :  { %17038 = vmatprep.subr.bf16.mxu0 %v18130_v19  ;;  %v5869_v54 = vpack.c.bf16 %v5861_v48, %v5861_v48 }
 0xc44   :  { %v17883_v31 = vpop.eup %17882 }
 0xc45   :  { %v5863_v35 = vmul.f32 %v17883_v31, %v19543_v8 }
 0xc47   :  { %v5871_v20 = vpack.c.bf16 %v5863_v35, %v5863_v35 }
 0xc49   :  { %17029 = vmatmul.mubr.msk.bf16.vlgmr.msra.gmra.mxu0 %vm2004_vm6, %v5869_v54 }
 0xc4a   :  { %17039 = vmatpush3.bf16.msra.mxu0 %v6214_v55  ;;  %17040 = vmatprep.mubr.msk.bf16.mxu0 %vm18131_vm1, %v18130_v19 }
 0xc51   :  { %17041 = vmatmul.mubr.msk.bf16.vlgmr.msra.gmra.mxu0 %vm2004_vm6, %v5871_v20 }
 0xccc   :  { %v5962_v62 = vpop.f32.mrf.mxu0 }
 0xccd   :  { %v6293_v29 = vrot.slane %v5962_v62, %v18400_v32 }
 0xcce   :  { %v17006_v33 = vpop.f32.mrf.mxu0 }
 0xccf   :  { %v6294_v24 = vcombine.high %v6293_v29, %v6293_v29  ;;  %v6301_v52 = vrot.slane %v6293_v29, %v18400_v32 }
 0xcd0   :  { %v5965_v5 = vpop.f32.mrf.mxu0 }
 0xcd1   :  { %v6308_v59 = vrot.slane %v6294_v24, %v18400_v32  ;;  %v6309_v4 = vcombine.high %v6301_v52, %v6301_v52 }
 0xcd2   :  { %v17007_v61 = vpop.f32.mrf.mxu0 }
 0xcd3   :  { %v5914_v45 = vpop.f32.mrf.mxu1  ;;  %v6450_v10 = vcombine.low %v6308_v59, %v6309_v4 }
 0xcd4   :  { %v6270_v41 = vrot.slane %v5914_v45, %v18400_v32 }
 0xcd5   :  { %v17000_v6 = vpop.f32.mrf.mxu1 }
 0xcd6   :  { %v6271_v51 = vcombine.high %v6270_v41, %v6270_v41  ;;  %v6278_v16 = vrot.slane %v6270_v41, %v18400_v32 }
 0xcd7   :  { %v5917_v53 = vpop.f32.mrf.mxu1 }
 0xcd8   :  { %v6285_v25 = vrot.slane %v6271_v51, %v18400_v32  ;;  %v6286_v9 = vcombine.high %v6278_v16, %v6278_v16 }
 0xcd9   :  { %v17001_v44 = vpop.f32.mrf.mxu1 }
 0xcda   :  { %v6448_v54 = vcombine.low %v6278_v16, %v6285_v25  ;;  %v6449_v31 = vcombine.low %v6286_v9, %v6301_v52 }
 0xcdb   :  { %v6010_v22 = vpop.f32.mrf.mxu1 }
 0xcdc   :  { %v6316_v28 = vrot.slane %v6010_v22, %v18400_v32  ;;  %v6472_v22 = vrot.slane %v6450_v10, %v18400_v32 }
 0xcdd   :  { %v17012_v17 = vpop.f32.mrf.mxu1 }
 0xcde   :  { %v6317_v2 = vcombine.high %v6316_v28, %v6316_v28  ;;  %v6324_v56 = vrot.slane %v6316_v28, %v18400_v32  ;;  %v6458_v17 = vrot.slane %v6448_v54, %v18400_v32 }
 0xcdf   :  { %v6013_v39 = vpop.f32.mrf.mxu1 }
 0xce0   :  { %v6331_v26 = vrot.slane %v6317_v2, %v18400_v32  ;;  %v6332_v55 = vcombine.high %v6324_v56, %v6324_v56  ;;  %v6465_v39 = vrot.slane %v6449_v31, %v18400_v32 }
 0xce1   :  { %v17013_v47 = vpop.f32.mrf.mxu1 }
 0xce2   :  { %v6451_v15 = vcombine.low %v6324_v56, %v6331_v26  ;;  %v6480_v24 = vcombine.low %v6458_v17, %v6465_v39 }
 0xce3   :  { %v6106_v57 = vpop.f32.mrf.mxu1 }
 0xce4   :  { %v6362_v34 = vrot.slane %v6106_v57, %v18400_v32  ;;  %v6479_v62 = vrot.slane %v6451_v15, %v18400_v32 }
 0xce5   :  { %v17024_v8 = vpop.f32.mrf.mxu1 }
 0xce6   :  { %v6363_v30 = vcombine.high %v6362_v34, %v6362_v34  ;;  %v6370_v63 = vrot.slane %v6362_v34, %v18400_v32 }
 0xce7   :  { %v6109_v11 = vpop.f32.mrf.mxu1 }
 0xce8   :  { %v6377_v48 = vrot.slane %v6363_v30, %v18400_v32  ;;  %v6378_v33 = vcombine.high %v6370_v63, %v6370_v63 }
 0xce9   :  { %v17025_v38 = vpop.f32.mrf.mxu1 }
 0xcea   :  { %v6499_v45 = vcombine.low %v6370_v63, %v6377_v48 }
 0xceb   :  { %v6202_v13 = vpop.f32.mrf.mxu1 }
 0xcec   :  { %v6408_v37 = vrot.slane %v6202_v13, %v18400_v32  ;;  %v6481_v13 = vcombine.low %v6472_v22, %v6479_v62  ;;  %v6521_v29 = vrot.slane %v6499_v45, %v18400_v32 }
 0xced   :  { %v17036_v23 = vpop.f32.mrf.mxu1 }
 0xcee   :  { %v6409_v6 = vcombine.high %v6408_v37, %v6408_v37  ;;  %v6416_v23 = vrot.slane %v6408_v37, %v18400_v32 }
 0xcef   :  { %v6205_v36 = vpop.f32.mrf.mxu1 }
 0xcf0   :  { %v6423_v28 = vrot.slane %v6409_v6, %v18400_v32  ;;  %v4079_v6 = vadd.f32 %v19197_v3, %v19248_v18 }
 0xcf1   :  { %v17037_v58 = vpop.f32.mrf.mxu1 }
 0xcf2   :  { %v6547_v26 = vcombine.low %v6416_v23, %v6423_v28  ;;  %v5374_v22 = vadd.f32 %v19489_v27, %v4079_v6 }
 0xd01   :  { %v6058_v60 = vpop.f32.mrf.mxu0 }
 0xd02   :  { %v6339_v46 = vrot.slane %v6058_v60, %v18400_v32  ;;  %v6495_v60 = vrot.slane %v6481_v13, %v18400_v32  ;;  %v18059_v13 = vld [vmem:[%s18146_s5 + $0x10] sm:$0xff] }
 0xd03   :  { %v17018_v40 = vpop.f32.mrf.mxu0 }
 0xd04   :  { %v6340_v1 = vcombine.high %v6339_v46, %v6339_v46  ;;  %v6347_v43 = vrot.slane %v6339_v46, %v18400_v32  ;;  %v6424_v46 = vcombine.high %v6416_v23, %v6416_v23 }
 0xd05   :  { %v6061_v0 = vpop.f32.mrf.mxu0 }
 0xd06   :  { %v6354_v7 = vrot.slane %v6340_v1, %v18400_v32  ;;  %v6355_v21 = vcombine.high %v6347_v43, %v6347_v43  ;;  %v6497_v5 = vcombine.low %v6332_v55, %v6347_v43  ;;  %v6488_v1 = vrot.slane %v6480_v24, %v18400_v32 }
 0xd07   :  { %v17019_v49 = vpop.f32.mrf.mxu0 }
 0xd08   :  { %v6498_v35 = vcombine.low %v6354_v7, %v6355_v21  ;;  %v6507_v36 = vrot.slane %v6497_v5, %v18400_v32  ;;  %v6496_v15 = vcombine.low %v6488_v1, %v6495_v60  ;;  %v6563_v49 = vrot.slane %v6547_v26, %v18400_v32  ;;  %v17700_v1 = vld [vmem:[%s18216_s12] sm:$0xff]  }
 0xd09   :  { %v6154_v20 = vpop.f32.mrf.mxu0 }
 0xd0a   :  { %v6385_v42 = vrot.slane %v6154_v20, %v18400_v32  ;;  %v6514_v47 = vrot.slane %v6498_v35, %v18400_v32 }
 0xd0b   :  { %v17030_v61 = vpop.f32.mrf.mxu0 }
 0xd0c   :  { %v6386_v53 = vcombine.high %v6385_v42, %v6385_v42  ;;  %v6393_v44 = vrot.slane %v6385_v42, %v18400_v32  ;;  %v6529_v2 = vcombine.low %v6507_v36, %v6514_v47  ;;  %v16038_v61 = vld [vmem:[%s18201_s24] ss:$0 sm:$0xff]  ;;  %v18060_v36 = vld [vmem:[%s18146_s5 + $0x8] sm:$0xff]  ;;  %s21615_s24 = sld [smem:[#allocation17_spill]] }
 0xd0d   :  { %v6157_v57 = vpop.f32.mrf.mxu0 }
 0xd0e   :  { %v6400_v8 = vrot.slane %v6386_v53, %v18400_v32  ;;  %v6401_v11 = vcombine.high %v6393_v44, %v6393_v44  ;;  %v6500_v38 = vcombine.low %v6378_v33, %v6393_v44  ;;  %v6537_v43 = vrot.slane %v6529_v2, %v18400_v32 }
 0xd0f   :  { %v17031_v58 = vpop.f32.mrf.mxu0 }
 0xd10   :  { %v6528_v41 = vrot.slane %v6500_v38, %v18400_v32  ;;  %v6546_v51 = vcombine.low %v6400_v8, %v6401_v11  ;;  %v18058_v8 = vld [vmem:[%s18146_s5] sm:$0xff]  ;;  %s21607_s5 = sld [smem:[#allocation10_spill]] }
 0xd11   :  { %v6250_v52 = vpop.f32.mrf.mxu0 }
 0xd12   :  { %v6530_v34 = vcombine.low %v6521_v29, %v6528_v41  ;;  %v6431_v16 = vrot.slane %v6250_v52, %v18400_v32  ;;  %v6556_v9 = vrot.slane %v6546_v51, %v18400_v32 }
 0xd13   :  { %v17042_v59 = vpop.f32.mrf.mxu0 }
 0xd14   :  { %v6544_v40 = vrot.slane %v6530_v34, %v18400_v32  ;;  %v6432_v4 = vcombine.high %v6431_v16, %v6431_v16  ;;  %v6439_v30 = vrot.slane %v6431_v16, %v18400_v32  ;;  %v6578_v37 = vcombine.low %v6556_v9, %v6563_v49 }
 0xd15   :  { %v6253_v25 = vpop.f32.mrf.mxu0 }
 0xd16   :  { %v6446_v56 = vrot.slane %v6432_v4, %v18400_v32  ;;  %v6447_v0 = vcombine.high %v6439_v30, %v6439_v30  ;;  %v6548_v7 = vcombine.low %v6424_v46, %v6439_v30  ;;  %v6545_v63 = vcombine.low %v6537_v43, %v6544_v40  ;;  %v17697_v40 = vld [vmem:[%s18216_s12 + $0x18] sm:$0xff]   ;;  %v17698_v4 = vld [vmem:[%s18216_s12 + $0x10] sm:$0xff]   ;;  %v17699_v30 = vld [vmem:[%s18216_s12 + $0x8] sm:$0xff]   ;;  %s21618_s12 = sld [smem:[#allocation21_spill]] }
 0xd17   :  { %v17043_v21 = vpop.f32.mrf.mxu0  ;;  %v6586_v35 = vrot.slane %v6578_v37, %v18400_v32  ;;  %17050 = vmatprep.subr.bf16.mxu0 %v17697_v40  ;;  %v17701_v43 = vld [vmem:[%s18226_s27 + $0x18] sm:$0xff]   ;;  %v16039_v37 = vld [vmem:[%s18206_s30] ss:$0 sm:$0xff]  ;;  %s21616_s30 = sld [smem:[#allocation19_spill]] }
 0xd18   :  { %v6549_v10 = vcombine.low %v6446_v56, %v6447_v0  ;;  %v6598_v48 = vpack.c.bf16 %v6545_v63, %v6496_v15  ;;  %v6570_v54 = vrot.slane %v6548_v7, %v18400_v32  ;;  %17051 = vmatpush3.bf16.msra.mxu0 %v17697_v40  ;;  %17062 = vmatprep.subr.bf16.mxu1 %v17701_v43 }
 0xd19   :  { %17052 = vmatprep.subr.bf16.mxu0 %v17698_v4 }
 0xd1a   :  { %v6577_v31 = vrot.slane %v6549_v10, %v18400_v32  ;;  %17046 = vmatprep.mubr.msk.bf16.mxu1 %vm1538_vm2, %v6598_v48 }
 0xd1c   :  { %v6579_v55 = vcombine.low %v6570_v54, %v6577_v31  ;;  %17053 = vmatpush3.bf16.msra.mxu0 %v17698_v4 }
 0xd1d   :  { %17054 = vmatprep.subr.bf16.mxu0 %v17699_v30 }
 0xd1e   :  { %v6593_v20 = vrot.slane %v6579_v55, %v18400_v32 }
 0xd20   :  { %v6594_v42 = vcombine.low %v6586_v35, %v6593_v20  ;;  %17055 = vmatpush3.bf16.msra.mxu0 %v17699_v30 }
 0xd21   :  { %17056 = vmatprep.subr.bf16.mxu0 %v17700_v1 }
 0xd22   :  { %v6599_v62 = vpack.c.bf16 %v6594_v42, %v6594_v42 }
 0xd24   :  { %17047 = vmatmul.mubr.msk.bf16.vlgmr.msra.gmra.mxu1 %vm1538_vm2, %v6599_v62  ;;  %17057 = vmatpush3.bf16.msra.mxu0 %v17700_v1  ;;  %v16040_v62 = vld [vmem:[%s18211_s6] ss:$0 sm:$0xff]  ;;  %s21617_s6 = sld [smem:[#allocation20_spill]] }
 0xd25   :  { %17063 = vmatpush3.bf16.msra.mxu1 %v17701_v43 }
 0xde4   :  { %v17048_v33 = vpop.f32.mrf.mxu1 }
 0xde5   :  { %v6662_v5 = vadd.f32 %v17048_v33, %v19484_v12 }
 0xde6   :  { %v6646_v45 = vpop.f32.mrf.mxu1 }
 0xde7   :  { %v6660_v53 = vadd.f32 %v6646_v45, %v19486_v14  ;;  %v6672_v17 = vadd.f32 %v16038_v61, %v6662_v5 }
 0xde8   :  { %v17049_v44 = vpop.f32.mrf.mxu1 }
 0xde9   :  { %v6670_v39 = vadd.f32 %v16038_v61, %v6660_v53  ;;  %v6675_v23 = vadd.f32 %v18059_v13, %v6672_v17  ;;  %v17702_v44 = vld [vmem:[%s18226_s27 + $0x10] sm:$0xff]   ;;  %v17704_v17 = vld [vmem:[%s18226_s27] sm:$0xff]  }
 0xdea   :  { %v6649_v47 = vpop.f32.mrf.mxu1  ;;  %17064 = vmatprep.subr.bf16.mxu1 %v17702_v44 }
 0xdeb   :  { %v6661_v57 = vadd.f32 %v6649_v47, %v5374_v22  ;;  %v6673_v11 = vadd.f32 %v18058_v8, %v6670_v39  ;;  %v6682_v18 = vsel %vm251_vm0, %v6675_v23, 0.0  ;;  %17065 = vmatpush3.bf16.msra.mxu1 %v17702_v44  ;;  %v17703_v22 = vld [vmem:[%s18226_s27 + $0x8] sm:$0xff]   ;;  %v16041_v47 = vld [vmem:[%s21607_s5] ss:$0 sm:$0xff]  ;;  %s21619_s27 = sld [smem:[#allocation24_spill]] }
 0xdec   :  { %17066 = vmatprep.subr.bf16.mxu1 %v17703_v22 }
 0xded   :  { %v6671_v38 = vadd.f32 %v16038_v61, %v6661_v57  ;;  %v6676_v12 = vsel %vm251_vm0, %v6673_v11, 0.0 }
 0xdee   :  { %6677 = vadd.xlane.f32.xlu0 %v6676_v12 }
 0xdef   :  { %v6674_v58 = vadd.f32 %v18060_v36, %v6671_v38  ;;  %17067 = vmatpush3.bf16.msra.mxu1 %v17703_v22 }
 0xdf0   :  { %17068 = vmatprep.subr.bf16.mxu1 %v17704_v17 }
 0xdf1   :  { %v6679_v3 = vsel %vm251_vm0, %v6674_v58, 0.0 }
 0xdf2   :  { %6680 = vadd.xlane.f32.xlu1 %v6679_v3  ;;  %6683 = vadd.xlane.f32.xlu0 %v6682_v18 }
 0xdf3   :  { %17069 = vmatpush3.bf16.msra.mxu1 %v17704_v17 }
 0xe77   :  { %v6678_v14 = vpop.xlane.xlu0 %6677 }
 0xe78   :  { %v6686_v27 = vmul.f32 0.015625, %v6678_v14 }
 0xe7a   :  { %v6689_v29 = vsub.f32 %v6673_v11, %v6686_v27  ;;  %v16048_v27 = vld [vmem:[%s21608_s21] ss:$0 sm:$0xff] }
 0xe7b   :  { %v6681_v28 = vpop.xlane.xlu1 %6680  ;;  %v6684_v41 = vpop.xlane.xlu0 %6683 }
 0xe7c   :  { %v6687_v24 = vmul.f32 0.015625, %v6681_v28  ;;  %v6688_v2 = vmul.f32 0.015625, %v6684_v41  ;;  %v6692_v52 = vmul.f32 %v6689_v29, %v6689_v29 }
 0xe7e   :  { %v6690_v34 = vsub.f32 %v6674_v58, %v6687_v24  ;;  %v6691_v51 = vsub.f32 %v6675_v23, %v6688_v2  ;;  %v6695_v16 = vsel %vm251_vm0, %v6692_v52, 0.0 }
 0xe7f   :  { %6696 = vadd.xlane.f32.xlu0 %v6695_v16 }
 0xe80   :  { %v6693_v60 = vmul.f32 %v6690_v34, %v6690_v34  ;;  %v6694_v46 = vmul.f32 %v6691_v51, %v6691_v51 }
 0xe82   :  { %v6698_v59 = vsel %vm251_vm0, %v6693_v60, 0.0  ;;  %v6701_v26 = vsel %vm251_vm0, %v6694_v46, 0.0 }
 0xe83   :  { %6699 = vadd.xlane.f32.xlu0 %v6698_v59  ;;  %6702 = vadd.xlane.f32.xlu1 %v6701_v26 }
 0xf08   :  { %v6697_v25 = vpop.xlane.xlu0 %6696 }
 0xf09   :  { %v6704_v9 = vmul.f32 0.015625, %v6697_v25 }
 0xf0b   :  { %v6707_v56 = vadd.f32 1e-05, %v6704_v9 }
 0xf0c   :  { %v6703_v0 = vpop.xlane.xlu1 %6702  ;;  %v6700_v7 = vpop.xlane.xlu0 %6699 }
 0xf0d   :  { %17884 = vrsqrt.f32 %v6707_v56  ;;  %v6706_v21 = vmul.f32 0.015625, %v6703_v0  ;;  %v6705_v15 = vmul.f32 0.015625, %v6700_v7 }
 0xf0f   :  { %v6709_v63 = vadd.f32 1e-05, %v6706_v21  ;;  %v6708_v49 = vadd.f32 1e-05, %v6705_v15 }
 0xf11   :  { %17886 = vrsqrt.f32 %v6709_v63 }
 0xf12   :  { %17888 = vrsqrt.f32 %v6708_v49 }
 0xf1a   :  { %v17885_v10 = vpop.eup %17884 }
 0xf1b   :  { %v6713_v48 = vmul.f32 %v17885_v10, %v6689_v29  ;;  %v17705_v10 = vld [vmem:[%s21609_s25 + $0x18] sm:$0xff]  }
 0xf1c   :  { %17074 = vmatprep.subr.bf16.mxu0 %v17705_v10 }
 0xf1d   :  { %v6723_v20 = vmul.f32 %v16039_v37, %v6713_v48  ;;  %v17706_v48 = vld [vmem:[%s21610_s29 + $0x18] sm:$0xff]  }
 0xf1e   :  { %v17887_v54 = vpop.eup %17886  ;;  %17086 = vmatprep.subr.bf16.mxu1 %v17706_v48 }
 0xf1f   :  { %v17889_v31 = vpop.eup %17888  ;;  %v6715_v55 = vmul.f32 %v17887_v54, %v6691_v51  ;;  %v6733_v61 = vadd.f32 %v16040_v62, %v6723_v20  ;;  %v17708_v54 = vld [vmem:[%s21610_s29 + $0x10] sm:$0xff]   ;;  %v17712_v20 = vld [vmem:[%s21610_s29] sm:$0xff]  }
 0xf20   :  { %v6714_v35 = vmul.f32 %v17889_v31, %v6690_v34  ;;  %v17709_v31 = vld [vmem:[%s21609_s25 + $0x8] sm:$0xff]  }
 0xf21   :  { %v6725_v42 = vmul.f32 %v16039_v37, %v6715_v55  ;;  %v17710_v55 = vld [vmem:[%s21610_s29 + $0x8] sm:$0xff]  }
 0xf22   :  { %v6724_v33 = vmul.f32 %v16039_v37, %v6714_v35  ;;  %v17707_v37 = vld [vmem:[%s21609_s25 + $0x10] sm:$0xff]   ;;  %v17711_v35 = vld [vmem:[%s21609_s25] sm:$0xff]  }
 0xf23   :  { %v6735_v5 = vadd.f32 %v16040_v62, %v6725_v42  ;;  %v17713_v42 = vld [vmem:[%s21611_s3 + $0x18] sm:$0xff]  }
 0xf24   :  { %v6734_v45 = vadd.f32 %v16040_v62, %v6724_v33 }
 0xf25   :  { %v6737_v6 = vpack.c.bf16 %v6735_v5, %v6735_v5 }
 0xf26   :  { %v6736_v53 = vpack.c.bf16 %v6734_v45, %v6733_v61 }
 0xf28   :  { %17058 = vmatprep.mubr.msk.bf16.mxu0 %vm251_vm0, %v6736_v53 }
 0xf29   :  { %17059 = vmatmul.mubr.msk.bf16.vlgmr.msra.gmra.mxu0 %vm251_vm0, %v6737_v6 }
 0xf2a   :  { %17075 = vmatpush3.bf16.msra.mxu0 %v17705_v10 }
 0xf2b   :  { %17076 = vmatprep.subr.bf16.mxu0 %v17707_v37 }
 0xf2e   :  { %17077 = vmatpush3.bf16.msra.mxu0 %v17707_v37 }
 0xf2f   :  { %17078 = vmatprep.subr.bf16.mxu0 %v17709_v31 }
 0xf32   :  { %17079 = vmatpush3.bf16.msra.mxu0 %v17709_v31 }
 0xf33   :  { %17080 = vmatprep.subr.bf16.mxu0 %v17711_v35 }
 0xf36   :  { %17081 = vmatpush3.bf16.msra.mxu0 %v17711_v35 }
 0xf37   :  { %17098 = vmatprep.subr.bf16.mxu0 %v17713_v42 }
 0xfe9   :  { %v17060_v39 = vpop.f32.mrf.mxu0 }
 0xfea   :  { %v6826_v8 = vadd.f32 %v17060_v39, %v16041_v47 }
 0xfeb   :  { %v6817_v57 = vpop.f32.mrf.mxu0 }
 0xfec   :  { %v6818_v38 = vadd.f32 %v16041_v47, %v6817_v57  ;;  %v6833_v23 = vmax.f32 %v6826_v8, 0.0 }
 0xfed   :  { %v17061_v11 = vpop.f32.mrf.mxu0 }
 0xfee   :  { %v6831_v36 = vmax.f32 %v6818_v38, 0.0  ;;  %v6835_v18 = vpack.c.bf16 %v6833_v23, %v6833_v23  ;;  %v16056_v23 = vld [vmem:[%s21613_s14] ss:$0 sm:$0xff] }
 0xfef   :  { %v6820_v12 = vpop.f32.mrf.mxu0 }
 0xff0   :  { %v6821_v13 = vadd.f32 %v16041_v47, %v6820_v12  ;;  %v16055_v47 = vld [vmem:[%s21612_s8] ss:$0 sm:$0xff] }
 0xff2   :  { %v6832_v58 = vmax.f32 %v6821_v13, 0.0 }
 0xff4   :  { %v6834_v3 = vpack.c.bf16 %v6832_v58, %v6831_v36 }
 0xff6   :  { %17070 = vmatprep.mubr.msk.bf16.mxu1 %vm251_vm0, %v6834_v3 }
 0xff7   :  { %17071 = vmatmul.mubr.msk.bf16.vlgmr.msra.gmra.mxu1 %vm251_vm0, %v6835_v18 }
 0xff8   :  { %17087 = vmatpush3.bf16.msra.mxu1 %v17706_v48 }
 0xff9   :  { %17088 = vmatprep.subr.bf16.mxu1 %v17708_v54 }
 0xffc   :  { %17089 = vmatpush3.bf16.msra.mxu1 %v17708_v54 }
 0xffd   :  { %17090 = vmatprep.subr.bf16.mxu1 %v17710_v55 }
0x1000   :  { %17091 = vmatpush3.bf16.msra.mxu1 %v17710_v55 }
0x1001   :  { %17092 = vmatprep.subr.bf16.mxu1 %v17712_v20 }
0x1004   :  { %17093 = vmatpush3.bf16.msra.mxu1 %v17712_v20 }
0x1005   :  { %17110 = vmatprep.subr.bf16.mxu1 %v18130_v19 }
0x10b7   :  { %v17072_v14 = vpop.f32.mrf.mxu1 }
0x10b8   :  { %v6924_v28 = vadd.f32 %v17072_v14, %v16048_v27 }
0x10b9   :  { %v6915_v29 = vpop.f32.mrf.mxu1 }
0x10ba   :  { %v6916_v41 = vadd.f32 %v16048_v27, %v6915_v29  ;;  %v6931_v34 = vadd.f32 %v6924_v28, %v6735_v5  ;;  %v17714_v29 = vld [vmem:[%s21611_s3 + $0x10] sm:$0xff]   ;;  %v17715_v28 = vld [vmem:[%s21611_s3 + $0x8] sm:$0xff]  }
0x10bb   :  { %v17073_v24 = vpop.f32.mrf.mxu1 }
0x10bc   :  { %v6929_v2 = vadd.f32 %v6916_v41, %v6733_v61  ;;  %v6938_v59 = vsel %vm251_vm0, %v6931_v34, 0.0  ;;  %v17716_v41 = vld [vmem:[%s21611_s3] sm:$0xff]  }
0x10bd   :  { %v6918_v52 = vpop.f32.mrf.mxu1 }
0x10be   :  { %v6919_v51 = vadd.f32 %v16048_v27, %v6918_v52  ;;  %v6932_v16 = vsel %vm251_vm0, %v6929_v2, 0.0 }
0x10bf   :  { %6933 = vadd.xlane.f32.xlu0 %v6932_v16 }
0x10c0   :  { %v6930_v60 = vadd.f32 %v6919_v51, %v6734_v45 }
0x10c2   :  { %v6935_v46 = vsel %vm251_vm0, %v6930_v60, 0.0 }
0x10c3   :  { %6936 = vadd.xlane.f32.xlu1 %v6935_v46  ;;  %6939 = vadd.xlane.f32.xlu0 %v6938_v59  ;;  %v16057_v46 = vld [vmem:[%s21614_s19] ss:$0 sm:$0xff] }
0x1148   :  { %v6934_v26 = vpop.xlane.xlu0 %6933 }
0x1149   :  { %v6941_v40 = vmul.f32 0.015625, %v6934_v26 }
0x114b   :  { %v6944_v4 = vsub.f32 %v6929_v2, %v6941_v40  ;;  %v16064_v40 = vld [vmem:[%s21615_s24] ss:$0 sm:$0xff] }
0x114c   :  { %v6937_v30 = vpop.xlane.xlu1 %6936  ;;  %v6940_v1 = vpop.xlane.xlu0 %6939 }
0x114d   :  { %v6942_v43 = vmul.f32 0.015625, %v6937_v30  ;;  %v6943_v25 = vmul.f32 0.015625, %v6940_v1  ;;  %v6947_v9 = vmul.f32 %v6944_v4, %v6944_v4  ;;  %v19711_v1 = vld [vmem:[%s21616_s30] ss:$0 sm:$0xff] }
0x114f   :  { %v6945_v56 = vsub.f32 %v6930_v60, %v6942_v43  ;;  %v6946_v0 = vsub.f32 %v6931_v34, %v6943_v25  ;;  %v6950_v7 = vsel %vm251_vm0, %v6947_v9, 0.0 }
0x1150   :  { %6951 = vadd.xlane.f32.xlu1 %v6950_v7 }
0x1151   :  { %v6948_v21 = vmul.f32 %v6945_v56, %v6945_v56  ;;  %v6949_v15 = vmul.f32 %v6946_v0, %v6946_v0 }
0x1153   :  { %v6953_v63 = vsel %vm251_vm0, %v6948_v21, 0.0  ;;  %v6956_v49 = vsel %vm251_vm0, %v6949_v15, 0.0 }
0x1154   :  { %6954 = vadd.xlane.f32.xlu0 %v6953_v63  ;;  %6957 = vadd.xlane.f32.xlu1 %v6956_v49 }
0x11d9   :  { %v6952_v62 = vpop.xlane.xlu1 %6951 }
0x11da   :  { %v6959_v33 = vmul.f32 0.015625, %v6952_v62 }
0x11dc   :  { %v6962_v5 = vadd.f32 1e-05, %v6959_v33 }
0x11dd   :  { %v6958_v61 = vpop.xlane.xlu1 %6957  ;;  %v6955_v45 = vpop.xlane.xlu0 %6954 }
0x11de   :  { %17890 = vrsqrt.f32 %v6962_v5  ;;  %v6961_v6 = vmul.f32 0.015625, %v6958_v61  ;;  %v6960_v53 = vmul.f32 0.015625, %v6955_v45 }
0x11e0   :  { %v6964_v44 = vadd.f32 1e-05, %v6961_v6  ;;  %v6963_v22 = vadd.f32 1e-05, %v6960_v53 }
0x11e2   :  { %17892 = vrsqrt.f32 %v6964_v44 }
0x11e3   :  { %17894 = vrsqrt.f32 %v6963_v22 }
0x11eb   :  { %v17891_v17 = vpop.eup %17890 }
0x11ec   :  { %v6968_v39 = vmul.f32 %v17891_v17, %v6944_v4 }
0x11ee   :  { %v6978_v12 = vmul.f32 %v16055_v47, %v6968_v39 }
0x11ef   :  { %v17893_v57 = vpop.eup %17892 }
0x11f0   :  { %v17895_v8 = vpop.eup %17894  ;;  %v6970_v11 = vmul.f32 %v17893_v57, %v6946_v0  ;;  %v19684_v3 = vadd.f32 %v16056_v23, %v6978_v12 }
0x11f1   :  { %v6969_v38 = vmul.f32 %v17895_v8, %v6945_v56 }
0x11f2   :  { %v6980_v13 = vmul.f32 %v16055_v47, %v6970_v11 }
0x11f3   :  { %v6979_v36 = vmul.f32 %v16055_v47, %v6969_v38 }
0x11f4   :  { %v19682_v58 = vadd.f32 %v16056_v23, %v6980_v13 }
0x11f5   :  { %v19686_v18 = vadd.f32 %v16056_v23, %v6979_v36 }
0x11f6   :  { %v6992_v14 = vpack.c.bf16 %v19682_v58, %v19682_v58 }
0x11f7   :  { %v6991_v27 = vpack.c.bf16 %v19686_v18, %v19684_v3 }
0x11f9   :  { %17082 = vmatprep.mubr.msk.bf16.mxu0 %vm251_vm0, %v6991_v27  ;;  %17094 = vmatprep.mubr.msk.bf16.mxu1 %vm251_vm0, %v6991_v27 }
0x11fa   :  { %17083 = vmatmul.mubr.msk.bf16.vlgmr.msra.gmra.mxu0 %vm251_vm0, %v6992_v14  ;;  %17095 = vmatmul.mubr.msk.bf16.vlgmr.msra.gmra.mxu1 %vm251_vm0, %v6992_v14 }
0x11fb   :  { %17099 = vmatpush3.bf16.msra.mxu0 %v17713_v42  ;;  %17106 = vmatprep.mubr.msk.bf16.mxu0 %vm251_vm0, %v6991_v27 }
0x11fc   :  { %17100 = vmatprep.subr.bf16.mxu0 %v17714_v29  ;;  %17112 = vmatprep.mubr.msk.bf16.mxu1 %vm18131_vm1, %v18130_v19 }
0x11ff   :  { %17101 = vmatpush3.bf16.msra.mxu0 %v17714_v29 }
0x1200   :  { %17102 = vmatprep.subr.bf16.mxu0 %v17715_v28 }
0x1203   :  { %17103 = vmatpush3.bf16.msra.mxu0 %v17715_v28 }
0x1204   :  { %17104 = vmatprep.subr.bf16.mxu0 %v17716_v41 }
0x1207   :  { %17105 = vmatpush3.bf16.msra.mxu0 %v17716_v41 }
0x1208   :  { %17122 = vmatprep.subr.bf16.mxu0 %v18130_v19 }
0x120a   :  { %17107 = vmatmul.mubr.msk.bf16.vlgmr.msra.gmra.mxu0 %vm251_vm0, %v6992_v14 }
0x120b   :  { %17124 = vmatprep.mubr.msk.bf16.mxu0 %vm18131_vm1, %v18130_v19 }
0x12ba   :  { %v17084_v24 = vpop.f32.mrf.mxu0  ;;  %v17096_v2 = vpop.f32.mrf.mxu1 }
0x12bb   :  { %v7081_v43 = vadd.f32 %v17084_v24, %v16057_v46  ;;  %v7318_v56 = vadd.f32 %v17096_v2, %v16064_v40 }
0x12bc   :  { %v7072_v52 = vpop.f32.mrf.mxu0  ;;  %v7309_v34 = vpop.f32.mrf.mxu1 }
0x12bd   :  { %v7073_v26 = vadd.f32 %v16057_v46, %v7072_v52  ;;  %v7310_v30 = vadd.f32 %v16064_v40, %v7309_v34  ;;  %v7194_v21 = vrot.slane %v7081_v43, %v18400_v32  ;;  %v7187_v49 = vcombine.high %v7081_v43, %v7081_v43 }
0x12be   :  { %v17085_v51 = vpop.f32.mrf.mxu0  ;;  %v17097_v16 = vpop.f32.mrf.mxu1  ;;  %v7424_v10 = vcombine.high %v7318_v56, %v7318_v56  ;;  %v7431_v48 = vrot.slane %v7318_v56, %v18400_v32 }
0x12bf   :  { %v7096_v9 = vrot.slane %v7073_v26, %v18400_v32  ;;  %v7326_v7 = vcombine.high %v7310_v30, %v7310_v30  ;;  %v7089_v15 = vcombine.high %v7073_v26, %v7073_v26  ;;  %v7333_v37 = vrot.slane %v7310_v30, %v18400_v32 }
0x12c0   :  { %v7075_v60 = vpop.f32.mrf.mxu0  ;;  %v7202_v31 = vcombine.high %v7194_v21, %v7194_v21  ;;  %v7312_v35 = vpop.f32.mrf.mxu1  ;;  %v19724_v42 = vrot.slane %v7187_v49, %v18400_v32  ;;  %v7438_v62 = vrot.slane %v7424_v10, %v18400_v32  ;;  %v7439_v33 = vcombine.high %v7431_v48, %v7431_v48 }
0x12c1   :  { %v7104_v63 = vcombine.high %v7096_v9, %v7096_v9  ;;  %v7340_v54 = vrot.slane %v7326_v7, %v18400_v32  ;;  %v7103_v55 = vrot.slane %v7089_v15, %v18400_v32  ;;  %v7341_v5 = vcombine.high %v7333_v37, %v7333_v37 }
0x12c2   :  { %v7112_v61 = vrot.slane %v7096_v9, %v18400_v32  ;;  %v7313_v6 = vadd.f32 %v16064_v40, %v7312_v35  ;;  %v19729_v53 = vrot.slane %v7202_v31, %v18400_v32  ;;  %v19732_v22 = vrot.slane %v7194_v21, %v18400_v32 }
0x12c3   :  { %v7126_v20 = vrot.slane %v7104_v63, %v18400_v32  ;;  %v7342_v45 = vcombine.high %v7340_v54, %v7340_v54  ;;  %v7105_v44 = vcombine.high %v7103_v55, %v7103_v55  ;;  %v19735_v17 = vrot.slane %v7431_v48, %v18400_v32 }
0x12c4   :  { %v19739_v47 = vrot.slane %v19724_v42, %v18400_v32  ;;  %v7440_v57 = vcombine.high %v7438_v62, %v7438_v62  ;;  %v19742_v8 = vrot.slane %v7439_v33, %v18400_v32  ;;  %v7363_v11 = vrot.slane %v7341_v5, %v18400_v32 }
0x12c5   :  { %v7718_v39 = vcombine.low %v7112_v61, %v7126_v20  ;;  %v19746_v38 = vrot.slane %v7438_v62, %v18400_v32  ;;  %v7134_v12 = vcombine.high %v7112_v61, %v7112_v61  ;;  %v19749_v13 = vrot.slane %v7342_v45, %v18400_v32 }
0x12c6   :  { %v7375_v23 = vcombine.high %v7313_v6, %v7313_v6  ;;  %v16079_v36 = vcombine.high %v19732_v22, %v19729_v53  ;;  %v19754_v14 = vrot.slane %v7105_v44, %v18400_v32  ;;  %v7349_v27 = vrot.slane %v7333_v37, %v18400_v32 }
0x12c7   :  { %v7076_v29 = vadd.f32 %v16057_v46, %v7075_v60  ;;  %v7136_v28 = vcombine.high %v7126_v20, %v7126_v20  ;;  %v7725_v41 = vrot.slane %v7718_v39, %v18400_v32  ;;  %v7356_v24 = vrot.slane %v7340_v54, %v18400_v32 }
0x12c8   :  { %v7382_v2 = vrot.slane %v7313_v6, %v18400_v32  ;;  %v19761_v52 = vrot.slane %v7440_v57, %v18400_v32  ;;  %v16081_v34 = vcombine.high %v19735_v17, %v19742_v8  ;;  %v7119_v51 = vrot.slane %v7103_v55, %v18400_v32 }
0x12c9   :  { %v7918_v16 = vcombine.low %v7349_v27, %v7363_v11  ;;  %v7373_v26 = vcombine.high %v7363_v11, %v7363_v11  ;;  %v16080_v60 = vcombine.high %v7356_v24, %v19749_v13  ;;  %v7389_v46 = vrot.slane %v7375_v23, %v18400_v32 }
0x12ca   :  { %v17108_v59 = vpop.f32.mrf.mxu0  ;;  %v7470_v30 = vcombine.high %v19746_v38, %v19746_v38  ;;  %v16078_v43 = vcombine.high %v7119_v51, %v19754_v14  ;;  %v7138_v9 = vcombine.high %v7076_v29, %v7076_v29  ;;  %v8070_v56 = vrot.slane %v19746_v38, %v18400_v32 }
0x12cb   :  { %v19715_v0 = vadd.f32 %v17108_v59, %v19711_v1  ;;  %v7732_v59 = vrot.slane %v7134_v12, %v18400_v32  ;;  %v19774_v21 = vcombine.low %v7136_v28, %v7119_v51  ;;  %v7398_v15 = vrot.slane %v7382_v2, %v18400_v32 }
0x12cc   :  { %v19708_v4 = vpop.f32.mrf.mxu0  ;;  %v19778_v63 = vrot.slane %v16081_v34, %v18400_v32  ;;  %v7925_v49 = vrot.slane %v7918_v16, %v18400_v32  ;;  %v7941_v37 = vcombine.low %v7373_v26, %v7356_v24  ;;  %v7971_v54 = vrot.slane %v16080_v60, %v18400_v32 }
0x12cd   :  { %v7733_v7 = vcombine.low %v7725_v41, %v7732_v59  ;;  %v7547_v10 = vadd.f32 %v19711_v1, %v19708_v4  ;;  %v19786_v31 = vrot.slane %v7076_v29, %v18400_v32  ;;  %v7391_v55 = vcombine.high %v7389_v46, %v7389_v46 }
0x12ce   :  { %v17109_v25 = vpop.f32.mrf.mxu0  ;;  %v7771_v35 = vrot.slane %v16078_v43, %v18400_v32  ;;  %v7152_v62 = vrot.slane %v7138_v9, %v18400_v32  ;;  %v7748_v4 = vrot.slane %v19774_v21, %v18400_v32  ;;  %v7955_v6 = vrot.slane %v19749_v13, %v18400_v32 }
0x12cf   :  { %v7371_v25 = vcombine.high %v7349_v27, %v7349_v27  ;;  %v7563_v33 = vcombine.high %v7547_v10, %v7547_v10  ;;  %v19792_v5 = vrot.slane %v7733_v7, %v18400_v32  ;;  %v7390_v44 = vcombine.high %v7382_v2, %v7382_v2 }
0x12d0   :  { %v7549_v40 = vpop.f32.mrf.mxu0  ;;  %v7948_v57 = vrot.slane %v7941_v37, %v18400_v32  ;;  %v7153_v11 = vcombine.high %v19786_v31, %v19786_v31  ;;  %v19804_v12 = vrot.slane %v7391_v55, %v18400_v32  ;;  %v7154_v27 = vcombine.high %v7152_v62, %v7152_v62 }
0x12d1   :  { %v7550_v48 = vadd.f32 %v19711_v1, %v7549_v40  ;;  %v7932_v20 = vrot.slane %v7371_v25, %v18400_v32  ;;  %v7978_v1 = vrot.slane %v7398_v15, %v18400_v32  ;;  %v7577_v39 = vrot.slane %v7563_v33, %v18400_v32 }
0x12d2   :  { %v19808_v29 = vrot.slane %v19786_v31, %v18400_v32  ;;  %v7668_v13 = vrot.slane %v19715_v0, %v18400_v32  ;;  %v19813_v41 = vrot.slane %v7152_v62, %v18400_v32  ;;  %v7405_v24 = vrot.slane %v7389_v46, %v18400_v32 }
0x12d3   :  { %v7612_v61 = vcombine.high %v7550_v48, %v7550_v48  ;;  %v7933_v45 = vcombine.low %v7925_v49, %v7932_v20  ;;  %v7979_v23 = vcombine.low %v7971_v54, %v7978_v1  ;;  %v7579_v28 = vcombine.high %v7577_v39, %v7577_v39 }
0x12d4   :  { %v19817_v2 = vrot.slane %v7550_v48, %v18400_v32  ;;  %v7412_v51 = vrot.slane %v7390_v44, %v18400_v32  ;;  %v7420_v16 = vcombine.high %v7398_v15, %v7398_v15  ;;  %v19824_v59 = vrot.slane %v7577_v39, %v18400_v32 }
0x12d5   :  { %v19820_v34 = vrot.slane %v7612_v61, %v18400_v32  ;;  %v19827_v26 = vrot.slane %v7579_v28, %v18400_v32  ;;  %v7956_v60 = vcombine.low %v7948_v57, %v7955_v6  ;;  %v7986_v40 = vrot.slane %v7979_v23, %v18400_v32 }
0x12d6   :  { %v8010_v46 = vcombine.low %v7405_v24, %v19804_v12  ;;  %v7570_v43 = vrot.slane %v7547_v10, %v18400_v32  ;;  %v7676_v25 = vcombine.high %v7668_v13, %v7668_v13  ;;  %v7940_v15 = vrot.slane %v7933_v45, %v18400_v32 }
0x12d7   :  { %v16082_v9 = vcombine.high %v19824_v59, %v19827_v26  ;;  %v7628_v7 = vcombine.high %v19820_v34, %v19820_v34  ;;  %v19838_v49 = vrot.slane %v7154_v27, %v18400_v32  ;;  %v7778_v48 = vrot.slane %v19808_v29, %v18400_v32 }
0x12d8   :  { %v7421_v37 = vcombine.high %v7405_v24, %v7405_v24  ;;  %v19844_v54 = vrot.slane %v19817_v2, %v18400_v32  ;;  %v7422_v10 = vcombine.high %v7412_v51, %v7412_v51  ;;  %v7987_v31 = vcombine.low %v7412_v51, %v7420_v16 }
0x12d9   :  { %v8171_v55 = vrot.slane %v16082_v9, %v18400_v32  ;;  %v19848_v20 = vrot.slane %v7628_v7, %v18400_v32  ;;  %v8017_v62 = vrot.slane %v8010_v46, %v18400_v32  ;;  %v19852_v33 = vrot.slane %v7668_v13, %v18400_v32 }
0x12da   :  { %v7578_v1 = vcombine.high %v7570_v43, %v7570_v43  ;;  %v19854_v61 = vpack.c.bf16 %v7986_v40, %v7986_v40  ;;  %v19857_v45 = vrot.slane %v7676_v25, %v18400_v32  ;;  %v8178_v44 = vrot.slane %v19844_v54, %v18400_v32 }
0x12db   :  { %v7660_v6 = vcombine.high %v19848_v20, %v19848_v20  ;;  %v19863_v39 = vpack.c.bf16 %v7940_v15, %v7940_v15  ;;  %v7184_v57 = vcombine.high %v19813_v41, %v19813_v41  ;;  %v7779_v23 = vcombine.low %v7771_v35, %v7778_v48 }
0x12dc   :  { %v7810_v27 = vcombine.low %v19813_v41, %v19838_v49  ;;  %v8024_v13 = vrot.slane %v7421_v37, %v18400_v32  ;;  %v7423_v28 = vcombine.high %v19804_v12, %v19804_v12  ;;  %v8001_v24 = vrot.slane %v7422_v10, %v18400_v32 }
0x12dd   :  { %v19873_v51 = vcombine.low %v8171_v55, %v8178_v44  ;;  %v8233_v16 = vcombine.low %v7660_v6, %v19852_v33  ;;  %v7994_v40 = vrot.slane %v7987_v31, %v18400_v32  ;;  %v19878_v25 = vrot.slane %v7578_v1, %v18400_v32 }
0x12de   :  { %v8025_v46 = vcombine.low %v8017_v62, %v8024_v13  ;;  %v7963_v35 = vrot.slane %v7956_v60, %v18400_v32  ;;  %v8247_v41 = vrot.slane %v19857_v45, %v18400_v32  ;;  %v8322_v12 = vsel %vm1538_vm2, %v19863_v39, 0 }
0x12df   :  { %v8240_v9 = vrot.slane %v8233_v16, %v18400_v32  ;;  %v8414_v7 = vsel %vm1538_vm2, %v19854_v61, 0  ;;  %v7175_v15 = vrot.slane %v7153_v11, %v18400_v32  ;;  %v7183_v48 = vcombine.high %v19808_v29, %v19808_v29  ;;  %17111 = vmatpush3.bf16.xpose.msra.mxu1 %v8322_v12 }
0x12e0   :  { %v7586_v37 = vrot.slane %v7570_v43, %v18400_v32  ;;  %17123 = vmatpush3.bf16.xpose.msra.mxu0 %v8414_v7  ;;  %v7786_v60 = vrot.slane %v7779_v23, %v18400_v32  ;;  %v7817_v10 = vrot.slane %v7810_v27, %v18400_v32  ;;  %17116 = vmatprep.subr.bf16.mxu1 %v18130_v19 }
0x12e1   :  { %v19894_v31 = vcombine.low %v8240_v9, %v8247_v41  ;;  %17134 = vmatprep.subr.bf16.mxu0 %v18130_v19  ;;  %v7755_v11 = vrot.slane %v19754_v14, %v18400_v32  ;;  %v8033_v55 = vcombine.low %v7423_v28, %v19735_v17  ;;  %v8032_v43 = vrot.slane %v8025_v46, %v18400_v32 }
0x12e2   :  { %v8118_v29 = vcombine.low %v7586_v37, %v19878_v25  ;;  %v8071_v62 = vcombine.low %v19778_v63, %v8070_v56  ;;  %v7824_v1 = vrot.slane %v7184_v57, %v18400_v32  ;;  %v8002_v6 = vcombine.low %v7994_v40, %v8001_v24 }
0x12e3   :  { %v19908_v44 = vpack.c.bf16 %v7963_v35, %v7963_v35  ;;  %v7756_v14 = vcombine.low %v7748_v4, %v7755_v11  ;;  %v19915_v17 = vpack.c.bf16 %v19792_v5, %v19792_v5  ;;  %v7608_v23 = vcombine.high %v7586_v37, %v7586_v37 }
0x12e4   :  { %v19917_v27 = vpack.c.bf16 %v8032_v43, %v8032_v43  ;;  %v7185_v13 = vcombine.high %v7175_v15, %v7175_v15  ;;  %v7787_v28 = vcombine.low %v7175_v15, %v7183_v48  ;;  %v7825_v16 = vcombine.low %v7817_v10, %v7824_v1 }
0x12e5   :  { %v19919_v56 = vpack.c.bf16 %v7786_v60, %v7786_v60  ;;  %v7863_v63 = vrot.slane %v16079_v36, %v18400_v32  ;;  %v8047_v21 = vrot.slane %v19742_v8, %v18400_v32  ;;  %v8040_v4 = vrot.slane %v8033_v55, %v18400_v32 }
0x12e6   :  { %v8125_v5 = vrot.slane %v8118_v29, %v18400_v32  ;;  %17113 = vmatmul.mubr.msk.bf16.vlgmr.msra.gmra.mxu1 %vm1538_vm2, %v19915_v17  ;;  %v8368_v57 = vsel %vm1538_vm2, %v19908_v44, 0  ;;  %v8506_v24 = vsel %vm1538_vm2, %v19917_v27, 0  ;;  %v8009_v36 = vrot.slane %v8002_v6, %v18400_v32 }
0x12e7   :  { %17125 = vmatmul.mubr.msk.bf16.vlgmr.msra.gmra.mxu0 %vm1538_vm2, %v19919_v56  ;;  %v8078_v8 = vrot.slane %v8071_v62, %v18400_v32  ;;  %v7763_v40 = vrot.slane %v7756_v14, %v18400_v32  ;;  %v7186_v46 = vcombine.high %v19838_v49, %v19838_v49  ;;  %v8132_v35 = vrot.slane %v7608_v23, %v18400_v32 }
0x12e8   :  { %17117 = vmatpush3.bf16.xpose.msra.mxu1 %v8368_v57  ;;  %17135 = vmatpush3.bf16.xpose.msra.mxu0 %v8506_v24  ;;  %v7794_v41 = vrot.slane %v7787_v28, %v18400_v32  ;;  %v7801_v9 = vrot.slane %v7185_v13, %v18400_v32  ;;  %v7832_v12 = vrot.slane %v7825_v16, %v18400_v32 }
0x12e9   :  { %17118 = vmatprep.mubr.msk.bf16.mxu1 %vm18131_vm1, %v18130_v19  ;;  %17128 = vmatprep.subr.bf16.mxu1 %v18130_v19  ;;  %v7870_v7 = vrot.slane %v19739_v47, %v18400_v32  ;;  %v8079_v49 = vcombine.low %v19761_v52, %v7470_v30  ;;  %v8133_v15 = vcombine.low %v8125_v5, %v8132_v35 }
0x12ea   :  { %17136 = vmatprep.mubr.msk.bf16.mxu0 %vm18131_vm1, %v18130_v19  ;;  %17146 = vmatprep.subr.bf16.mxu0 %v18130_v19  ;;  %v7472_v48 = vcombine.high %v19761_v52, %v19761_v52  ;;  %v19960_v37 = vpack.c.bf16 %v8009_v36, %v8009_v36  ;;  %v19962_v60 = vpack.c.bf16 %v8078_v8, %v8078_v8 }
0x12eb   :  { %v8048_v10 = vcombine.low %v8040_v4, %v8047_v21  ;;  %v7203_v11 = vcombine.high %v19724_v42, %v19724_v42  ;;  %v7871_v38 = vcombine.low %v7863_v63, %v7870_v7  ;;  %v19966_v55 = vpack.c.bf16 %v7763_v40, %v7763_v40 }
0x12ec   :  { %v7802_v30 = vcombine.low %v7794_v41, %v7801_v9  ;;  %v7833_v29 = vcombine.low %v7186_v46, %v19732_v22  ;;  %v19969_v43 = vpack.c.bf16 %v7832_v12, %v7832_v12  ;;  %v8086_v62 = vrot.slane %v8079_v49, %v18400_v32 }
0x12ed   :  { %v7610_v52 = vcombine.high %v19878_v25, %v19878_v25  ;;  %v8140_v1 = vrot.slane %v8133_v15, %v18400_v32  ;;  %v8093_v6 = vrot.slane %v7472_v48, %v18400_v32  ;;  %v8460_v42 = vsel %vm1538_vm2, %v19960_v37, 0 }
0x12ee   :  { %v8598_v22 = vsel %vm1538_vm2, %v19962_v60, 0  ;;  %v8055_v14 = vrot.slane %v8048_v10, %v18400_v32  ;;  %v7231_v25 = vrot.slane %v7203_v11, %v18400_v32  ;;  %v7233_v23 = vcombine.high %v19739_v47, %v19739_v47 }
0x12ef   :  { %17119 = vmatmul.mubr.msk.bf16.vlgmr.msra.gmra.mxu1 %vm1538_vm2, %v19966_v55  ;;  %17137 = vmatmul.mubr.msk.bf16.vlgmr.msra.gmra.mxu0 %vm1538_vm2, %v19969_v43  ;;  %v7878_v13 = vrot.slane %v7871_v38, %v18400_v32  ;;  %v7809_v28 = vrot.slane %v7802_v30, %v18400_v32  ;;  %v7840_v16 = vrot.slane %v7833_v29, %v18400_v32 }
0x12f0   :  { %17129 = vmatpush3.bf16.xpose.msra.mxu1 %v8460_v42  ;;  %17147 = vmatpush3.bf16.xpose.msra.mxu0 %v8598_v22  ;;  %v8141_v63 = vcombine.low %v7610_v52, %v19824_v59  ;;  %v19995_v21 = vpack.c.bf16 %v8140_v1, %v8140_v1  ;;  %v7847_v47 = vrot.slane %v19729_v53, %v18400_v32 }
0x12f1   :  { %17130 = vmatprep.mubr.msk.bf16.mxu1 %vm18131_vm1, %v18130_v19  ;;  %17140 = vmatprep.subr.bf16.mxu1 %v18130_v19  ;;  %v20002_v4 = vpack.c.bf16 %v8055_v14, %v8055_v14  ;;  %v8094_v5 = vcombine.low %v8086_v62, %v8093_v6  ;;  %v7235_v57 = vcombine.high %v7231_v25, %v7231_v25 }
0x12f2   :  { %17148 = vmatprep.mubr.msk.bf16.mxu0 %vm18131_vm1, %v18130_v19  ;;  %17158 = vmatprep.subr.bf16.mxu0 %v18130_v19  ;;  %v7879_v24 = vcombine.low %v7231_v25, %v7233_v23  ;;  %v20004_v36 = vpack.c.bf16 %v7878_v13, %v7878_v13  ;;  %v7848_v8 = vcombine.low %v7840_v16, %v7847_v47 }
0x12f3   :  { %v20006_v40 = vpack.c.bf16 %v7809_v28, %v7809_v28  ;;  %v8148_v59 = vrot.slane %v8141_v63, %v18400_v32  ;;  %v8786_v46 = vand.u32 %v19995_v21, %v18675_v50  ;;  %v8552_v53 = vsel %vm1538_vm2, %v20002_v4, 0 }
0x12f4   :  { %v8101_v35 = vrot.slane %v8094_v5, %v18400_v32  ;;  %v8155_v41 = vrot.slane %v19827_v26, %v18400_v32  ;;  %v7886_v9 = vrot.slane %v7879_v24, %v18400_v32  ;;  %v7893_v12 = vrot.slane %v7235_v57, %v18400_v32 }
0x12f5   :  { %v7855_v7 = vrot.slane %v7848_v8, %v18400_v32 }
0x12f6   :  { %v8156_v49 = vcombine.low %v8148_v59, %v8155_v41  ;;  %v20029_v26 = vpack.c.bf16 %v8101_v35, %v8101_v35  ;;  %v7894_v15 = vcombine.low %v7886_v9, %v7893_v12 }
0x12f7   :  { %17131 = vmatmul.mubr.msk.bf16.vlgmr.msra.gmra.mxu1 %vm1538_vm2, %v20006_v40  ;;  %17149 = vmatmul.mubr.msk.bf16.vlgmr.msra.gmra.mxu0 %vm1538_vm2, %v20004_v36  ;;  %v20031_v48 = vpack.c.bf16 %v7855_v7, %v7855_v7 }
0x12f8   :  { %17141 = vmatpush3.bf16.xpose.msra.mxu1 %v8552_v53  ;;  %17159 = vmatpush3.bf16.msra.mxu0 %v8786_v46  ;;  %v8163_v10 = vrot.slane %v8156_v49, %v18400_v32  ;;  %v8644_v11 = vsel %vm1538_vm2, %v20029_v26, 0  ;;  %v7901_v38 = vrot.slane %v7894_v15, %v18400_v32 }
0x12f9   :  { %17142 = vmatprep.mubr.msk.bf16.mxu1 %vm18131_vm1, %v18130_v19  ;;  %17152 = vmatprep.subr.bf16.mxu1 %v18130_v19 }
0x12fa   :  { %17160 = vmatprep.mubr.msk.bf16.mxu0 %vm18131_vm1, %v18130_v19  ;;  %17170 = vmatprep.subr.bf16.mxu0 %v18130_v19  ;;  %v20042_v30 = vpack.c.bf16 %v8163_v10, %v8163_v10  ;;  %v20044_v29 = vpack.c.bf16 %v7901_v38, %v7901_v38 }
0x12fc   :  { %v8832_v62 = vand.u32 %v20042_v30, %v18675_v50 }
0x12ff   :  { %17143 = vmatmul.mubr.msk.bf16.vlgmr.msra.gmra.mxu1 %vm1538_vm2, %v20031_v48 }
0x1300   :  { %17153 = vmatpush3.bf16.xpose.msra.mxu1 %v8644_v11  ;;  %17154 = vmatprep.mubr.msk.bf16.mxu1 %vm18131_vm1, %v18130_v19 }
0x1301   :  { %17164 = vmatprep.subr.bf16.mxu1 %v18130_v19 }
0x1307   :  { %17155 = vmatmul.mubr.msk.bf16.vlgmr.msra.gmra.mxu1 %vm1538_vm2, %v20044_v29 }
0x1308   :  { %17165 = vmatpush3.bf16.msra.mxu1 %v8832_v62  ;;  %17166 = vmatprep.mubr.msk.bf16.mxu1 %vm18131_vm1, %v18130_v19 }
0x1309   :  { %17176 = vmatprep.subr.bf16.mxu1 %v18130_v19 }
0x13a6   :  { %v8358_v52 = vpop.f32.mrf.mxu1 }
0x13a7   :  { %v8450_v1 = vpop.f32.mrf.mxu0  ;;  %v8686_v6 = vsel %vm1907_vm5, %v8358_v52, -inf }
0x13a8   :  { %8687 = vmax.xlane.f32.xlu0 %v8686_v6  ;;  %v17114_v42 = vpop.f32.mrf.mxu1  ;;  %v8692_v23 = vsel %vm1907_vm5, %v8450_v1, -inf }
0x13a9   :  { %v17126_v22 = vpop.f32.mrf.mxu0 }
0x13aa   :  { %v8361_v14 = vpop.f32.mrf.mxu1 }
0x13ab   :  { %v8453_v25 = vpop.f32.mrf.mxu0 }
0x13ac   :  { %v17115_v13 = vpop.f32.mrf.mxu1  ;;  %8693 = vmax.xlane.f32.xlu0 %v8692_v23 }
0x13ad   :  { %v17127_v28 = vpop.f32.mrf.mxu0 }
0x13af   :  { %v8404_v16 = vpop.f32.mrf.mxu1  ;;  %v8542_v63 = vpop.f32.mrf.mxu0 }
0x13b0   :  { %v8689_v47 = vsel %vm1907_vm5, %v8404_v16, -inf  ;;  %v8698_v5 = vsel %vm1907_vm5, %v8542_v63, -inf }
0x13b1   :  { %8690 = vmax.xlane.f32.xlu1 %v8689_v47  ;;  %v17120_v57 = vpop.f32.mrf.mxu1  ;;  %8699 = vmax.xlane.f32.xlu0 %v8698_v5  ;;  %v17138_v24 = vpop.f32.mrf.mxu0 }
0x13b3   :  { %v8407_v8 = vpop.f32.mrf.mxu1  ;;  %v8545_v59 = vpop.f32.mrf.mxu0 }
0x13b5   :  { %v17121_v46 = vpop.f32.mrf.mxu1  ;;  %v17139_v53 = vpop.f32.mrf.mxu0 }
0x13b7   :  { %v8496_v35 = vpop.f32.mrf.mxu1  ;;  %v8634_v41 = vpop.f32.mrf.mxu0 }
0x13b8   :  { %v8695_v9 = vsel %vm1907_vm5, %v8496_v35, -inf  ;;  %v8704_v12 = vsel %vm1907_vm5, %v8634_v41, -inf }
0x13b9   :  { %8696 = vmax.xlane.f32.xlu1 %v8695_v9  ;;  %v17132_v7 = vpop.f32.mrf.mxu1  ;;  %8705 = vmax.xlane.f32.xlu0 %v8704_v12  ;;  %v17150_v49 = vpop.f32.mrf.mxu0 }
0x13bb   :  { %v8499_v15 = vpop.f32.mrf.mxu1  ;;  %v8637_v10 = vpop.f32.mrf.mxu0 }
0x13bd   :  { %v17133_v11 = vpop.f32.mrf.mxu1  ;;  %v17151_v38 = vpop.f32.mrf.mxu0 }
0x13bf   :  { %v8588_v62 = vpop.f32.mrf.mxu1 }
0x13c0   :  { %v8701_v6 = vsel %vm1907_vm5, %v8588_v62, -inf }
0x13c1   :  { %8702 = vmax.xlane.f32.xlu1 %v8701_v6  ;;  %v17144_v42 = vpop.f32.mrf.mxu1 }
0x13c3   :  { %v8591_v22 = vpop.f32.mrf.mxu1 }
0x13c5   :  { %v17145_v14 = vpop.f32.mrf.mxu1 }
0x13c7   :  { %v20060_v25 = vpop.f32.mrf.mxu1 }
0x13c8   :  { %v8707_v23 = vsel %vm1907_vm5, %v20060_v25, -inf }
0x13c9   :  { %8708 = vmax.xlane.f32.xlu1 %v8707_v23  ;;  %v17156_v13 = vpop.f32.mrf.mxu1 }
0x13cb   :  { %v8683_v28 = vpop.f32.mrf.mxu1 }
0x13cd   :  { %v17157_v47 = vpop.f32.mrf.mxu1 }
0x1431   :  { %v8688_v5 = vpop.xlane.xlu0 %8687 }
0x1432   :  { %v8710_v57 = vsub.f32 %v8358_v52, %v8688_v5 }
0x1434   :  { %v8718_v24 = vmul.f32 1.442695, %v8710_v57 }
0x1435   :  { %v8694_v8 = vpop.xlane.xlu0 %8693 }
0x1436   :  { %17896 = vpow2.f32 %v8718_v24  ;;  %v8712_v59 = vsub.f32 %v8450_v1, %v8694_v8 }
0x1438   :  { %v8722_v46 = vmul.f32 1.442695, %v8712_v59 }
0x143a   :  { %v8691_v53 = vpop.xlane.xlu1 %8690  ;;  %v8700_v9 = vpop.xlane.xlu0 %8699  ;;  %17898 = vpow2.f32 %v8722_v46 }
0x143b   :  { %v8711_v12 = vsub.f32 %v8404_v16, %v8691_v53  ;;  %v8714_v7 = vsub.f32 %v8542_v63, %v8700_v9 }
0x143d   :  { %v8720_v49 = vmul.f32 1.442695, %v8711_v12  ;;  %v8726_v15 = vmul.f32 1.442695, %v8714_v7 }
0x143f   :  { %17900 = vpow2.f32 %v8720_v49  ;;  %v7627_v49 = vcombine.high %v19817_v2, %v19817_v2  ;;  %v7661_v2 = vcombine.high %v19715_v0, %v19715_v0 }
0x1440   :  { %17902 = vpow2.f32 %v8726_v15 }
0x1442   :  { %v8697_v10 = vpop.xlane.xlu1 %8696  ;;  %v8706_v11 = vpop.xlane.xlu0 %8705 }
0x1443   :  { %v8713_v38 = vsub.f32 %v8496_v35, %v8697_v10  ;;  %v8716_v6 = vsub.f32 %v8634_v41, %v8706_v11  ;;  %v20064_v42 = vpop.eup %17896  ;;  %v7649_v10 = vrot.slane %v7627_v49, %v18400_v32  ;;  %v7657_v11 = vcombine.high %v19844_v54, %v19844_v54 }
0x1444   :  { %v8734_v1 = vsel %vm1907_vm5, %v20064_v42, 0.0 }
0x1445   :  { %v8724_v52 = vmul.f32 1.442695, %v8713_v38  ;;  %v8730_v22 = vmul.f32 1.442695, %v8716_v6  ;;  %8735 = vadd.xlane.f32.xlu0 %v8734_v1  ;;  %v7659_v6 = vcombine.high %v7649_v10, %v7649_v10 }
0x1447   :  { %17904 = vpow2.f32 %v8724_v52  ;;  %v20068_v14 = vpop.eup %17898  ;;  %v8187_v52 = vcombine.low %v7649_v10, %v7657_v11 }
0x1448   :  { %17906 = vpow2.f32 %v8730_v22  ;;  %v8740_v16 = vsel %vm1907_vm5, %v20068_v14, 0.0 }
0x1449   :  { %8741 = vadd.xlane.f32.xlu0 %v8740_v16  ;;  %v8186_v16 = vrot.slane %v19873_v51, %v18400_v32  ;;  %v16083_v51 = vcombine.high %v19852_v33, %v19857_v45 }
0x144a   :  { %v8703_v57 = vpop.xlane.xlu1 %8702 }
0x144b   :  { %v8715_v24 = vsub.f32 %v8588_v62, %v8703_v57  ;;  %v8263_v49 = vrot.slane %v16083_v51, %v18400_v32 }
0x144c   :  { %v20072_v63 = vpop.eup %17900 }
0x144d   :  { %v20074_v35 = vpop.eup %17902  ;;  %v8737_v41 = vsel %vm1907_vm5, %v20072_v63, 0.0  ;;  %v8728_v8 = vmul.f32 1.442695, %v8715_v24 }
0x144e   :  { %8738 = vadd.xlane.f32.xlu1 %v8737_v41  ;;  %v8746_v23 = vsel %vm1907_vm5, %v20074_v35, 0.0  ;;  %v8201_v41 = vrot.slane %v7659_v6, %v18400_v32 }
0x144f   :  { %8747 = vadd.xlane.f32.xlu0 %v8746_v23  ;;  %17908 = vpow2.f32 %v8728_v8  ;;  %v20142_v8 = vpack.c.bf16 %v8186_v16, %v8186_v16 }
0x1452   :  { %v8709_v46 = vpop.xlane.xlu1 %8708 }
0x1453   :  { %v8717_v53 = vsub.f32 %v20060_v25, %v8709_v46  ;;  %v7642_v25 = vrot.slane %v19820_v34, %v18400_v32  ;;  %v8194_v34 = vrot.slane %v8187_v52, %v18400_v32 }
0x1454   :  { %v20080_v13 = vpop.eup %17904 }
0x1455   :  { %v20082_v28 = vpop.eup %17906  ;;  %v8743_v47 = vsel %vm1907_vm5, %v20080_v13, 0.0  ;;  %v8732_v9 = vmul.f32 1.442695, %v8717_v53  ;;  %v8210_v22 = vcombine.low %v7642_v25, %v19848_v20  ;;  %v7658_v1 = vcombine.high %v7642_v25, %v7642_v25 }
0x1456   :  { %8744 = vadd.xlane.f32.xlu1 %v8743_v47  ;;  %v8752_v5 = vsel %vm1907_vm5, %v20082_v28, 0.0  ;;  %v20137_v20 = vrot.slane %v7661_v2, %v18400_v32  ;;  %v8202_v57 = vcombine.low %v8194_v34, %v8201_v41  ;;  %v8255_v41 = vrot.slane %v19894_v31, %v18400_v32 }
0x1457   :  { %8753 = vadd.xlane.f32.xlu0 %v8752_v5  ;;  %17910 = vpow2.f32 %v8732_v9  ;;  %v8217_v23 = vrot.slane %v8210_v22, %v18400_v32  ;;  %v8224_v0 = vrot.slane %v7658_v1, %v18400_v32 }
0x1458   :  { %v20149_v46 = vrot.slane %v20137_v20, %v18400_v32  ;;  %v8209_v33 = vrot.slane %v8202_v57, %v18400_v32  ;;  %v20192_v31 = vpack.c.bf16 %v8255_v41, %v8255_v41 }
0x1459   :  { %v8225_v24 = vcombine.low %v8217_v23, %v8224_v0 }
0x145a   :  { %v8270_v10 = vrot.slane %v20149_v46, %v18400_v32  ;;  %v20167_v6 = vpack.c.bf16 %v8209_v33, %v8209_v33  ;;  %v9016_v57 = vand.u32 %v20192_v31, %v18675_v50 }
0x145b   :  { %v8232_v45 = vrot.slane %v8225_v24, %v18400_v32 }
0x145c   :  { %v20104_v59 = vpop.eup %17908 }
0x145d   :  { %v8749_v62 = vsel %vm1907_vm5, %v20104_v59, 0.0  ;;  %v20169_v52 = vpack.c.bf16 %v8232_v45, %v8232_v45 }
0x145f   :  { %v8970_v34 = vand.u32 %v20169_v52, %v18675_v50 }
0x1464   :  { %v20111_v12 = vpop.eup %17910 }
0x1465   :  { %v8755_v7 = vsel %vm1907_vm5, %v20111_v12, 0.0 }
0x1467   :  { %9550 = vrot.lane.b32.xlu1 %v19908_v44, %s18134_s0 }
0x146d   :  { %9498 = vrot.lane.b32.xlu0 %v19863_v39, %s18134_s0 }
0x1471   :  { %9602 = vrot.lane.b32.xlu0 %v19854_v61, %s18134_s0 }
0x1475   :  { %9599 = vrot.lane.b32.xlu0 %v19919_v56, %s18134_s0 }
0x1479   :  { %9706 = vrot.lane.b32.xlu0 %v19917_v27, %s18134_s0 }
0x147d   :  { %9703 = vrot.lane.b32.xlu0 %v19969_v43, %s18134_s0 }
0x1481   :  { %9810 = vrot.lane.b32.xlu0 %v19962_v60, %s18134_s0 }
0x1485   :  { %9807 = vrot.lane.b32.xlu0 %v20004_v36, %s18134_s0 }
0x148b   :  { %8750 = vadd.xlane.f32.xlu1 %v8749_v62 }
0x149c   :  { %9495 = vrot.lane.b32.xlu1 %v19915_v17, %s18134_s0 }
0x14c0   :  { %8756 = vadd.xlane.f32.xlu1 %v8755_v7 }
0x14ce   :  { %v8736_v15 = vpop.xlane.xlu0 %8735 }
0x14cf   :  { %17912 = vrcp.f32 %v8736_v15 }
0x14d1   :  { %9547 = vrot.lane.b32.xlu1 %v19966_v55, %s18134_s0 }
0x14d2   :  { %v8742_v38 = vpop.xlane.xlu0 %8741 }
0x14d3   :  { %17914 = vrcp.f32 %v8742_v38  ;;  %v8271_v38 = vcombine.low %v8263_v49, %v8270_v10  ;;  %v7707_v49 = vcombine.high %v20149_v46, %v20149_v46 }
0x14d5   :  { %9654 = vrot.lane.b32.xlu1 %v19960_v37, %s18134_s0  ;;  %v8278_v16 = vrot.slane %v8271_v38, %v18400_v32 }
0x14d7   :  { %v8739_v54 = vpop.xlane.xlu1 %8738 }
0x14d8   :  { %17916 = vrcp.f32 %v8739_v54  ;;  %v8748_v47 = vpop.xlane.xlu0 %8747 }
0x14d9   :  { %9651 = vrot.lane.b32.xlu1 %v20006_v40, %s18134_s0  ;;  %17918 = vrcp.f32 %v8748_v47  ;;  %v20187_v47 = vpack.c.bf16 %v8278_v16, %v8278_v16 }
0x14db   :  { %v9062_v24 = vand.u32 %v20187_v47, %v18675_v50 }
0x14dc   :  { %v17913_v5 = vpop.eup %17912 }
0x14dd   :  { %9758 = vrot.lane.b32.xlu1 %v20002_v4, %s18134_s0  ;;  %v8766_v62 = vmul.f32 %v17913_v5, %v20064_v42  ;;  %v8878_v42 = vand.u32 %v20142_v8, %v18675_v50 }
0x14df   :  { %v8745_v53 = vpop.xlane.xlu1 %8744  ;;  %v8774_v9 = vpack.c.bf16 %v8766_v62, %v8766_v62 }
0x14e0   :  { %17920 = vrcp.f32 %v8745_v53  ;;  %v17915_v7 = vpop.eup %17914  ;;  %v8754_v15 = vpop.xlane.xlu0 %8753 }
0x14e1   :  { %9755 = vrot.lane.b32.xlu1 %v20031_v48, %s18134_s0  ;;  %17161 = vmatmul.mubr.msk.bf16.vlgmr.msra.gmra.mxu0 %vm2004_vm6, %v8774_v9  ;;  %v8768_v11 = vmul.f32 %v17915_v7, %v20068_v14  ;;  %17922 = vrcp.f32 %v8754_v15  ;;  %v8924_v14 = vand.u32 %v20167_v6, %v18675_v50 }
0x14e2   :  { %17171 = vmatpush3.bf16.msra.mxu0 %v8878_v42  ;;  %17172 = vmatprep.mubr.msk.bf16.mxu0 %vm18131_vm1, %v18130_v19 }
0x14e3   :  { %17182 = vmatprep.subr.bf16.mxu0 %v18130_v19  ;;  %v8776_v2 = vpack.c.bf16 %v8768_v11, %v8768_v11  ;;  %v9551_v45 = vpop.permute.xlu1 %9550 }
0x14e5   :  { %v17917_v25 = vpop.eup %17916  ;;  %9862 = vrot.lane.b32.xlu1 %v20029_v26, %s18134_s0 }
0x14e6   :  { %v8767_v22 = vmul.f32 %v17917_v25, %v20072_v63  ;;  %v17919_v54 = vpop.eup %17918 }
0x14e7   :  { %v8770_v63 = vmul.f32 %v17919_v54, %v20074_v35 }
0x14e8   :  { %v8775_v1 = vpack.c.bf16 %v8767_v22, %v8767_v22 }
0x14e9   :  { %9859 = vrot.lane.b32.xlu1 %v20044_v29, %s18134_s0  ;;  %17173 = vmatmul.mubr.msk.bf16.vlgmr.msra.gmra.mxu0 %vm2004_vm6, %v8776_v2  ;;  %v8778_v5 = vpack.c.bf16 %v8770_v63, %v8770_v63 }
0x14ea   :  { %17167 = vmatmul.mubr.msk.bf16.vlgmr.msra.gmra.mxu1 %vm2004_vm6, %v8775_v1  ;;  %17183 = vmatpush3.bf16.msra.mxu0 %v8970_v34 }
0x14eb   :  { %17177 = vmatpush3.bf16.msra.mxu1 %v8924_v14  ;;  %17184 = vmatprep.mubr.msk.bf16.mxu0 %vm18131_vm1, %v18130_v19 }
0x14ec   :  { %17194 = vmatprep.subr.bf16.mxu0 %v18130_v19  ;;  %17178 = vmatprep.mubr.msk.bf16.mxu1 %vm18131_vm1, %v18130_v19 }
0x14ed   :  { %v17921_v23 = vpop.eup %17920  ;;  %17188 = vmatprep.subr.bf16.mxu1 %v18130_v19 }
0x14ee   :  { %v8769_v0 = vmul.f32 %v17921_v23, %v20080_v13  ;;  %v17923_v35 = vpop.eup %17922  ;;  %v9499_v13 = vpop.permute.xlu0 %9498 }
0x14ef   :  { %v8772_v62 = vmul.f32 %v17923_v35, %v20082_v28  ;;  %v9504_v9 = vsel %vm1538_vm2, %v9499_v13, 0  ;;  %v7677_v28 = vcombine.high %v20137_v20, %v20137_v20 }
0x14f0   :  { %v8777_v51 = vpack.c.bf16 %v8769_v0, %v8769_v0 }
0x14f1   :  { %17185 = vmatmul.mubr.msk.bf16.vlgmr.msra.gmra.mxu0 %vm2004_vm6, %v8778_v5  ;;  %v8780_v53 = vpack.c.bf16 %v8772_v62, %v8772_v62  ;;  %v7705_v7 = vrot.slane %v7677_v28, %v18400_v32 }
0x14f2   :  { %17179 = vmatmul.mubr.msk.bf16.vlgmr.msra.gmra.mxu1 %vm2004_vm6, %v8777_v51  ;;  %17195 = vmatpush3.bf16.msra.mxu0 %v9062_v24  ;;  %v9603_v33 = vpop.permute.xlu0 %9602 }
0x14f3   :  { %17189 = vmatpush3.bf16.msra.mxu1 %v9016_v57  ;;  %17196 = vmatprep.mubr.msk.bf16.mxu0 %vm18131_vm1, %v18130_v19  ;;  %v7709_v15 = vcombine.high %v7705_v7, %v7705_v7  ;;  %v8279_v42 = vcombine.low %v7705_v7, %v7707_v49  ;;  %v9608_v2 = vsel %vm1538_vm2, %v9603_v33, 0 }
0x14f4   :  { %17206 = vmatprep.subr.bf16.mxu0 %v18130_v19  ;;  %17190 = vmatprep.mubr.msk.bf16.mxu1 %vm18131_vm1, %v18130_v19 }
0x14f5   :  { %17200 = vmatprep.subr.bf16.mxu1 %v18130_v19  ;;  %v8286_v25 = vrot.slane %v8279_v42, %v18400_v32  ;;  %v8293_v38 = vrot.slane %v7709_v15, %v18400_v32 }
0x14f6   :  { %v9600_v10 = vpop.permute.xlu0 %9599 }
0x14f7   :  { %v8294_v20 = vcombine.low %v8286_v25, %v8293_v38 }
0x14f9   :  { %17197 = vmatmul.mubr.msk.bf16.vlgmr.msra.gmra.mxu0 %vm2004_vm6, %v8780_v53  ;;  %v8301_v46 = vrot.slane %v8294_v20, %v18400_v32  ;;  %v9556_v53 = vsel %vm1538_vm2, %v9551_v45, 0 }
0x14fa   :  { %17207 = vmatpush3.bf16.xpose.msra.mxu0 %v9504_v9  ;;  %17208 = vmatprep.mubr.msk.bf16.mxu0 %vm18131_vm1, %v18130_v19  ;;  %v9707_v1 = vpop.permute.xlu0 %9706 }
0x14fb   :  { %17218 = vmatprep.subr.bf16.mxu0 %v18130_v19  ;;  %v9712_v16 = vsel %vm1538_vm2, %v9707_v1, 0  ;;  %v20228_v34 = vpack.c.bf16 %v8301_v46, %v8301_v46 }
0x14fd   :  { %v9108_v0 = vand.u32 %v20228_v34, %v18675_v50 }
0x14fe   :  { %v9704_v54 = vpop.permute.xlu0 %9703 }
0x1502   :  { %v9811_v23 = vpop.permute.xlu0 %9810 }
0x1503   :  { %v9816_v5 = vsel %vm1538_vm2, %v9811_v23, 0 }
0x1514   :  { %v8751_v11 = vpop.xlane.xlu1 %8750 }
0x1515   :  { %17924 = vrcp.f32 %v8751_v11 }
0x1518   :  { %v9496_v22 = vpop.permute.xlu1 %9495 }
0x1519   :  { %17209 = vmatmul.mubr.msk.bf16.vlgmr.msra.gmra.mxu0 %vm1538_vm2, %v9496_v22 }
0x151a   :  { %17219 = vmatpush3.bf16.xpose.msra.mxu0 %v9608_v2  ;;  %17220 = vmatprep.mubr.msk.bf16.mxu0 %vm18131_vm1, %v18130_v19 }
0x151b   :  { %17230 = vmatprep.subr.bf16.mxu0 %v18130_v19 }
0x1521   :  { %17221 = vmatmul.mubr.msk.bf16.vlgmr.msra.gmra.mxu0 %vm1538_vm2, %v9600_v10 }
0x1522   :  { %v17925_v14 = vpop.eup %17924  ;;  %17231 = vmatpush3.bf16.xpose.msra.mxu0 %v9712_v16  ;;  %17232 = vmatprep.mubr.msk.bf16.mxu0 %vm18131_vm1, %v18130_v19 }
0x1523   :  { %v8771_v41 = vmul.f32 %v17925_v14, %v20104_v59  ;;  %17242 = vmatprep.subr.bf16.mxu0 %v18130_v19  ;;  %v9808_v59 = vpop.permute.xlu0 %9807 }
0x1525   :  { %v8779_v63 = vpack.c.bf16 %v8771_v41, %v8771_v41 }
0x1527   :  { %17191 = vmatmul.mubr.msk.bf16.vlgmr.msra.gmra.mxu1 %vm2004_vm6, %v8779_v63 }
0x1528   :  { %17201 = vmatpush3.bf16.msra.mxu1 %v9108_v0  ;;  %17202 = vmatprep.mubr.msk.bf16.mxu1 %vm18131_vm1, %v18130_v19 }
0x1529   :  { %17233 = vmatmul.mubr.msk.bf16.vlgmr.msra.gmra.mxu0 %vm1538_vm2, %v9704_v54  ;;  %17212 = vmatprep.subr.bf16.mxu1 %v18130_v19 }
0x152a   :  { %17243 = vmatpush3.bf16.xpose.msra.mxu0 %v9816_v5  ;;  %17244 = vmatprep.mubr.msk.bf16.mxu0 %vm18131_vm1, %v18130_v19 }
0x152b   :  { %17254 = vmatprep.subr.bf16.mxu0 %v18130_v19 }
0x1531   :  { %17245 = vmatmul.mubr.msk.bf16.vlgmr.msra.gmra.mxu0 %vm1538_vm2, %v9808_v59 }
0x1532   :  { %17256 = vmatprep.mubr.msk.bf16.mxu0 %vm18131_vm1, %v18130_v19 }
0x1549   :  { %v8757_v51 = vpop.xlane.xlu1 %8756 }
0x154a   :  { %17926 = vrcp.f32 %v8757_v51 }
0x154d   :  { %v9548_v35 = vpop.permute.xlu1 %9547 }
0x1551   :  { %v9655_v62 = vpop.permute.xlu1 %9654 }
0x1552   :  { %v9660_v28 = vsel %vm1538_vm2, %v9655_v62, 0 }
0x1555   :  { %v9652_v9 = vpop.permute.xlu1 %9651 }
0x1557   :  { %v17927_v57 = vpop.eup %17926 }
0x1558   :  { %v8773_v24 = vmul.f32 %v17927_v57, %v20111_v12 }
0x1559   :  { %v9759_v7 = vpop.permute.xlu1 %9758 }
0x155a   :  { %v8781_v13 = vpack.c.bf16 %v8773_v24, %v8773_v24  ;;  %v9764_v49 = vsel %vm1538_vm2, %v9759_v7, 0 }
0x155c   :  { %17203 = vmatmul.mubr.msk.bf16.vlgmr.msra.gmra.mxu1 %vm2004_vm6, %v8781_v13 }
0x155d   :  { %17213 = vmatpush3.bf16.xpose.msra.mxu1 %v9556_v53  ;;  %17214 = vmatprep.mubr.msk.bf16.mxu1 %vm18131_vm1, %v18130_v19  ;;  %v9756_v12 = vpop.permute.xlu1 %9755 }
0x155e   :  { %17224 = vmatprep.subr.bf16.mxu1 %v18130_v19 }
0x1561   :  { %v9863_v33 = vpop.permute.xlu1 %9862 }
0x1562   :  { %v9868_v45 = vsel %vm1538_vm2, %v9863_v33, 0 }
0x1564   :  { %17215 = vmatmul.mubr.msk.bf16.vlgmr.msra.gmra.mxu1 %vm1538_vm2, %v9548_v35 }
0x1565   :  { %17225 = vmatpush3.bf16.xpose.msra.mxu1 %v9660_v28  ;;  %17226 = vmatprep.mubr.msk.bf16.mxu1 %vm18131_vm1, %v18130_v19  ;;  %v9860_v15 = vpop.permute.xlu1 %9859 }
0x1566   :  { %17236 = vmatprep.subr.bf16.mxu1 %v18130_v19 }
0x156c   :  { %17227 = vmatmul.mubr.msk.bf16.vlgmr.msra.gmra.mxu1 %vm1538_vm2, %v9652_v9 }
0x156d   :  { %17237 = vmatpush3.bf16.xpose.msra.mxu1 %v9764_v49  ;;  %17238 = vmatprep.mubr.msk.bf16.mxu1 %vm18131_vm1, %v18130_v19 }
0x156e   :  { %17248 = vmatprep.subr.bf16.mxu1 %v18130_v19 }
0x1574   :  { %17239 = vmatmul.mubr.msk.bf16.vlgmr.msra.gmra.mxu1 %vm1538_vm2, %v9756_v12 }
0x1575   :  { %17249 = vmatpush3.bf16.xpose.msra.mxu1 %v9868_v45  ;;  %17250 = vmatprep.mubr.msk.bf16.mxu1 %vm18131_vm1, %v18130_v19 }
0x1576   :  { %17260 = vmatprep.subr.bf16.mxu1 %v18130_v19 }
0x157c   :  { %17251 = vmatmul.mubr.msk.bf16.vlgmr.msra.gmra.mxu1 %vm1538_vm2, %v9860_v15 }
0x157d   :  { %17262 = vmatprep.mubr.msk.bf16.mxu1 %vm18131_vm1, %v18130_v19 }
0x15a1   :  { %v8822_v42 = vpop.f32.mrf.mxu0 }
0x15a2   :  { %v9164_v10 = vrot.slane %v8822_v42, %v18400_v32 }
0x15a3   :  { %v17162_v11 = vpop.f32.mrf.mxu0 }
0x15a4   :  { %v9165_v25 = vcombine.high %v9164_v10, %v9164_v10  ;;  %v9172_v22 = vrot.slane %v9164_v10, %v18400_v32 }
0x15a5   :  { %v8825_v38 = vpop.f32.mrf.mxu0 }
0x15a6   :  { %v9179_v20 = vrot.slane %v9165_v25, %v18400_v32  ;;  %v9180_v14 = vcombine.high %v9172_v22, %v9172_v22 }
0x15a7   :  { %v17163_v2 = vpop.f32.mrf.mxu0 }
0x15a8   :  { %v9342_v23 = vcombine.low %v9172_v22, %v9179_v20 }
0x15a9   :  { %v8914_v46 = vpop.f32.mrf.mxu0 }
0x15aa   :  { %v8868_v1 = vpop.f32.mrf.mxu1  ;;  %v9210_v16 = vrot.slane %v8914_v46, %v18400_v32  ;;  %v9352_v7 = vrot.slane %v9342_v23, %v18400_v32 }
0x15ab   :  { %v9187_v54 = vrot.slane %v8868_v1, %v18400_v32  ;;  %v17174_v63 = vpop.f32.mrf.mxu0 }
0x15ac   :  { %v17168_v41 = vpop.f32.mrf.mxu1  ;;  %v9211_v59 = vcombine.high %v9210_v16, %v9210_v16  ;;  %v9218_v51 = vrot.slane %v9210_v16, %v18400_v32 }
0x15ad   :  { %v9188_v0 = vcombine.high %v9187_v54, %v9187_v54  ;;  %v9195_v5 = vrot.slane %v9187_v54, %v18400_v32  ;;  %v8917_v57 = vpop.f32.mrf.mxu0 }
0x15ae   :  { %v8871_v35 = vpop.f32.mrf.mxu1  ;;  %v9225_v53 = vrot.slane %v9211_v59, %v18400_v32  ;;  %v9226_v2 = vcombine.high %v9218_v51, %v9218_v51 }
0x15af   :  { %v9202_v24 = vrot.slane %v9188_v0, %v18400_v32  ;;  %v9203_v62 = vcombine.high %v9195_v5, %v9195_v5  ;;  %v9343_v13 = vcombine.low %v9180_v14, %v9195_v5  ;;  %v17175_v28 = vpop.f32.mrf.mxu0 }
0x15b0   :  { %v17169_v9 = vpop.f32.mrf.mxu1  ;;  %v9345_v33 = vcombine.low %v9218_v51, %v9225_v53 }
0x15b1   :  { %v9344_v12 = vcombine.low %v9202_v24, %v9203_v62  ;;  %v9359_v49 = vrot.slane %v9343_v13, %v18400_v32  ;;  %v9006_v15 = vpop.f32.mrf.mxu0 }
0x15b2   :  { %v8960_v45 = vpop.f32.mrf.mxu1  ;;  %v9373_v11 = vrot.slane %v9345_v33, %v18400_v32 }
0x15b3   :  { %v9366_v42 = vrot.slane %v9344_v12, %v18400_v32  ;;  %v9374_v10 = vcombine.low %v9352_v7, %v9359_v49  ;;  %v9233_v25 = vrot.slane %v8960_v45, %v18400_v32  ;;  %v17186_v22 = vpop.f32.mrf.mxu0  ;;  %v9256_v45 = vrot.slane %v9006_v15, %v18400_v32 }
0x15b4   :  { %v17180_v38 = vpop.f32.mrf.mxu1 }
0x15b5   :  { %v9375_v20 = vcombine.low %v9366_v42, %v9373_v11  ;;  %v9234_v1 = vcombine.high %v9233_v25, %v9233_v25  ;;  %v9241_v46 = vrot.slane %v9233_v25, %v18400_v32  ;;  %v9382_v54 = vrot.slane %v9374_v10, %v18400_v32  ;;  %v9009_v14 = vpop.f32.mrf.mxu0 }
0x15b6   :  { %v8963_v16 = vpop.f32.mrf.mxu1  ;;  %v9257_v25 = vcombine.high %v9256_v45, %v9256_v45 }
0x15b7   :  { %v9389_v41 = vrot.slane %v9375_v20, %v18400_v32  ;;  %v9248_v63 = vrot.slane %v9234_v1, %v18400_v32  ;;  %v9249_v23 = vcombine.high %v9241_v46, %v9241_v46  ;;  %v9391_v0 = vcombine.low %v9226_v2, %v9241_v46  ;;  %v17187_v59 = vpop.f32.mrf.mxu0 }
0x15b8   :  { %v17181_v5 = vpop.f32.mrf.mxu1  ;;  %v9264_v20 = vrot.slane %v9256_v45, %v18400_v32  ;;  %v9271_v46 = vrot.slane %v9257_v25, %v18400_v32 }
0x15b9   :  { %v9392_v35 = vcombine.low %v9248_v63, %v9249_v23  ;;  %v20290_v57 = vcombine.low %v9382_v54, %v9389_v41  ;;  %v9098_v51 = vpop.f32.mrf.mxu0  ;;  %v9401_v24 = vrot.slane %v9391_v0, %v18400_v32 }
0x15ba   :  { %v9302_v10 = vrot.slane %v9098_v51, %v18400_v32  ;;  %v9272_v41 = vcombine.high %v9264_v20, %v9264_v20  ;;  %v9393_v0 = vcombine.low %v9264_v20, %v9271_v46 }
0x15bb   :  { %v9408_v62 = vrot.slane %v9392_v35, %v18400_v32  ;;  %v17198_v13 = vpop.f32.mrf.mxu0 }
0x15bc   :  { %v9303_v2 = vcombine.high %v9302_v10, %v9302_v10  ;;  %v9310_v5 = vrot.slane %v9302_v10, %v18400_v32 }
0x15bd   :  { %v9423_v53 = vcombine.low %v9401_v24, %v9408_v62  ;;  %v9101_v9 = vpop.f32.mrf.mxu0 }
0x15be   :  { %v9317_v15 = vrot.slane %v9303_v2, %v18400_v32 }
0x15bf   :  { %v17199_v28 = vpop.f32.mrf.mxu0  ;;  %v9431_v20 = vrot.slane %v9423_v53, %v18400_v32 }
0x15c0   :  { %v9441_v62 = vcombine.low %v9310_v5, %v9317_v15 }
0x15c2   :  { %v9457_v10 = vrot.slane %v9441_v62, %v18400_v32 }
0x15d9   :  { %v20294_v7 = vpop.f32.mrf.mxu0 }
0x15da   :  { %v9910_v12 = vsel %vm1907_vm5, %v20294_v7, -inf }
0x15db   :  { %9911 = vmax.xlane.f32.xlu0 %v9910_v12  ;;  %v17210_v49 = vpop.f32.mrf.mxu0 }
0x15dd   :  { %v9543_v33 = vpop.f32.mrf.mxu0 }
0x15de   :  { %v9415_v33 = vrot.slane %v9393_v0, %v18400_v32 }
0x15df   :  { %v17211_v42 = vpop.f32.mrf.mxu0 }
0x15e1   :  { %v20300_v11 = vpop.f32.mrf.mxu0 }
0x15e2   :  { %v9916_v38 = vsel %vm1907_vm5, %v20300_v11, -inf }
0x15e3   :  { %9917 = vmax.xlane.f32.xlu0 %v9916_v38  ;;  %v17222_v22 = vpop.f32.mrf.mxu0 }
0x15e5   :  { %v9647_v1 = vpop.f32.mrf.mxu0 }
0x15e7   :  { %v9052_v54 = vpop.f32.mrf.mxu1  ;;  %v17223_v16 = vpop.f32.mrf.mxu0 }
0x15e8   :  { %v9279_v14 = vrot.slane %v9052_v54, %v18400_v32 }
0x15e9   :  { %v17192_v63 = vpop.f32.mrf.mxu1  ;;  %v20308_v23 = vpop.f32.mrf.mxu0 }
0x15ea   :  { %v9280_v59 = vcombine.high %v9279_v14, %v9279_v14  ;;  %v9287_v35 = vrot.slane %v9279_v14, %v18400_v32 }
0x15eb   :  { %v9055_v51 = vpop.f32.mrf.mxu1  ;;  %v17234_v24 = vpop.f32.mrf.mxu0 }
0x15ec   :  { %v9294_v13 = vrot.slane %v9280_v59, %v18400_v32  ;;  %v9295_v9 = vcombine.high %v9287_v35, %v9287_v35  ;;  %v9394_v28 = vcombine.low %v9272_v41, %v9287_v35  ;;  %v9318_v35 = vcombine.high %v9310_v5, %v9310_v5 }
0x15ed   :  { %v17193_v12 = vpop.f32.mrf.mxu1  ;;  %v9751_v49 = vpop.f32.mrf.mxu0 }
0x15ee   :  { %v9422_v45 = vrot.slane %v9394_v28, %v18400_v32  ;;  %v9440_v42 = vcombine.low %v9294_v13, %v9295_v9 }
0x15ef   :  { %v17235_v25 = vpop.f32.mrf.mxu0 }
0x15f0   :  { %v9424_v38 = vcombine.low %v9415_v33, %v9422_v45  ;;  %v9450_v22 = vrot.slane %v9440_v42, %v18400_v32 }
0x15f1   :  { %v20317_v2 = vpop.f32.mrf.mxu0 }
0x15f2   :  { %v9438_v1 = vrot.slane %v9424_v38, %v18400_v32  ;;  %v9472_v46 = vcombine.low %v9450_v22, %v9457_v10 }
0x15f3   :  { %v17246_v54 = vpop.f32.mrf.mxu0 }
0x15f4   :  { %v20321_v16 = vcombine.low %v9431_v20, %v9438_v1  ;;  %v9480_v38 = vrot.slane %v9472_v46, %v18400_v32  ;;  %v9928_v46 = vsel %vm1907_vm5, %v20317_v2, -inf }
0x15f5   :  { %v9855_v15 = vpop.f32.mrf.mxu0 }
0x15f6   :  { %v9492_v14 = vpack.c.bf16 %v20321_v16, %v20290_v57 }
0x15f7   :  { %v17247_v41 = vpop.f32.mrf.mxu0 }
0x161c   :  { %v9144_v63 = vpop.f32.mrf.mxu1 }
0x161d   :  { %v9325_v0 = vrot.slane %v9144_v63, %v18400_v32 }
0x161e   :  { %v17204_v59 = vpop.f32.mrf.mxu1 }
0x161f   :  { %v9326_v51 = vcombine.high %v9325_v0, %v9325_v0  ;;  %v9333_v24 = vrot.slane %v9325_v0, %v18400_v32  ;;  %v9922_v0 = vsel %vm1907_vm5, %v20308_v23, -inf }
0x1620   :  { %v9147_v53 = vpop.f32.mrf.mxu1 }
0x1621   :  { %v9340_v62 = vrot.slane %v9326_v51, %v18400_v32  ;;  %v9341_v13 = vcombine.high %v9333_v24, %v9333_v24  ;;  %v9442_v9 = vcombine.low %v9318_v35, %v9333_v24 }
0x1622   :  { %v17205_v28 = vpop.f32.mrf.mxu1 }
0x1623   :  { %v9443_v12 = vcombine.low %v9340_v62, %v9341_v13  ;;  %v9464_v33 = vrot.slane %v9442_v9, %v18400_v32 }
0x1624   :  { %v9592_v49 = vpop.f32.mrf.mxu1 }
0x1625   :  { %v9471_v45 = vrot.slane %v9443_v12, %v18400_v32  ;;  %v9913_v42 = vsel %vm1907_vm5, %v9592_v49, -inf }
0x1626   :  { %9914 = vmax.xlane.f32.xlu1 %v9913_v42  ;;  %v17216_v25 = vpop.f32.mrf.mxu1 }
0x1627   :  { %v9473_v5 = vcombine.low %v9464_v33, %v9471_v45 }
0x1628   :  { %v9595_v10 = vpop.f32.mrf.mxu1 }
0x1629   :  { %v9487_v22 = vrot.slane %v9473_v5, %v18400_v32 }
0x162a   :  { %v17217_v20 = vpop.f32.mrf.mxu1 }
0x162b   :  { %v20333_v1 = vcombine.low %v9480_v38, %v9487_v22 }
0x162c   :  { %v20335_v54 = vpop.f32.mrf.mxu1 }
0x162d   :  { %v9919_v15 = vsel %vm1907_vm5, %v20335_v54, -inf }
0x162e   :  { %9920 = vmax.xlane.f32.xlu0 %v9919_v15  ;;  %v17228_v41 = vpop.f32.mrf.mxu1 }
0x1630   :  { %v9699_v63 = vpop.f32.mrf.mxu1 }
0x1632   :  { %9923 = vmax.xlane.f32.xlu0 %v9922_v0  ;;  %v17229_v59 = vpop.f32.mrf.mxu1 }
0x1634   :  { %v20341_v35 = vpop.f32.mrf.mxu1 }
0x1635   :  { %v9925_v51 = vsel %vm1907_vm5, %v20341_v35, -inf }
0x1636   :  { %9929 = vmax.xlane.f32.xlu0 %v9928_v46  ;;  %9926 = vmax.xlane.f32.xlu1 %v9925_v51  ;;  %v17240_v24 = vpop.f32.mrf.mxu1 }
0x1638   :  { %v9803_v53 = vpop.f32.mrf.mxu1 }
0x163a   :  { %v17241_v62 = vpop.f32.mrf.mxu1 }
0x163c   :  { %v20347_v13 = vpop.f32.mrf.mxu1 }
0x163d   :  { %v9931_v10 = vsel %vm1907_vm5, %v20347_v13, -inf }
0x163e   :  { %v17252_v9 = vpop.f32.mrf.mxu1 }
0x1640   :  { %v9907_v28 = vpop.f32.mrf.mxu1 }
0x1642   :  { %v17253_v12 = vpop.f32.mrf.mxu1 }
0x1647   :  { %10056 = vrot.lane.b32.xlu1 %v20042_v30, %s18134_s0 }
0x164b   :  { %10105 = vrot.lane.b32.xlu1 %v20142_v8, %s18134_s0 }
0x164c   :  { %10007 = vrot.lane.b32.xlu0 %v19995_v21, %s18134_s0 }
0x1664   :  { %v9912_v33 = vpop.xlane.xlu0 %9911 }
0x1665   :  { %v9934_v45 = vsub.f32 %v20294_v7, %v9912_v33 }
0x1667   :  { %v9942_v42 = vmul.f32 1.442695, %v9934_v45 }
0x1669   :  { %17928 = vpow2.f32 %v9942_v42 }
0x166c   :  { %v9918_v25 = vpop.xlane.xlu0 %9917 }
0x166d   :  { %v9936_v5 = vsub.f32 %v20300_v11, %v9918_v25 }
0x166f   :  { %v9946_v38 = vmul.f32 1.442695, %v9936_v5  ;;  %9932 = vmax.xlane.f32.xlu1 %v9931_v10 }
0x1671   :  { %17930 = vpow2.f32 %v9946_v38 }
0x1676   :  { %v20359_v22 = vpop.eup %17928 }
0x1677   :  { %v9958_v20 = vsel %vm1907_vm5, %v20359_v22, 0.0 }
0x1678   :  { %9959 = vadd.xlane.f32.xlu0 %v9958_v20 }
0x167e   :  { %v20363_v15 = vpop.eup %17930 }
0x167f   :  { %v9964_v7 = vsel %vm1907_vm5, %v20363_v15, 0.0 }
0x1680   :  { %9965 = vadd.xlane.f32.xlu0 %v9964_v7  ;;  %10154 = vrot.lane.b32.xlu1 %v20167_v6, %s18134_s0 }
0x1696   :  { %10203 = vrot.lane.b32.xlu0 %v20169_v52, %s18134_s0 }
0x16af   :  { %v9915_v11 = vpop.xlane.xlu1 %9914 }
0x16b0   :  { %v9935_v41 = vsub.f32 %v9592_v49, %v9915_v11 }
0x16b2   :  { %v9944_v63 = vmul.f32 1.442695, %v9935_v41 }
0x16b4   :  { %17932 = vpow2.f32 %v9944_v63 }
0x16b7   :  { %v9921_v0 = vpop.xlane.xlu0 %9920 }
0x16b8   :  { %v9937_v10 = vsub.f32 %v20335_v54, %v9921_v0 }
0x16ba   :  { %v9948_v38 = vmul.f32 1.442695, %v9937_v10 }
0x16bb   :  { %v9924_v59 = vpop.xlane.xlu0 %9923 }
0x16bc   :  { %v9938_v46 = vsub.f32 %v20308_v23, %v9924_v59 }
0x16be   :  { %v9950_v51 = vmul.f32 1.442695, %v9938_v46 }
0x16bf   :  { %v9930_v24 = vpop.xlane.xlu0 %9929  ;;  %v9927_v53 = vpop.xlane.xlu1 %9926 }
0x16c0   :  { %17934 = vpow2.f32 %v9950_v51  ;;  %v9940_v62 = vsub.f32 %v20317_v2, %v9930_v24  ;;  %v9939_v20 = vsub.f32 %v20341_v35, %v9927_v53 }
0x16c1   :  { %v20373_v9 = vpop.eup %17932 }
0x16c2   :  { %v9954_v28 = vmul.f32 1.442695, %v9940_v62  ;;  %v9961_v12 = vsel %vm1907_vm5, %v20373_v9, 0.0  ;;  %v9952_v7 = vmul.f32 1.442695, %v9939_v20 }
0x16c3   :  { %v10008_v33 = vpop.permute.xlu0 %10007  ;;  %v10057_v49 = vpop.permute.xlu1 %10056  ;;  %9962 = vadd.xlane.f32.xlu1 %v9961_v12 }
0x16c4   :  { %17936 = vpow2.f32 %v9954_v28  ;;  %v10013_v45 = vand.u32 %v10008_v33, %v18675_v50  ;;  %v10062_v23 = vand.u32 %v10057_v49, %v18675_v50 }
0x16c5   :  { %17938 = vpow2.f32 %v9948_v38 }
0x16c6   :  { %17255 = vmatpush3.bf16.msra.mxu0 %v10013_v45  ;;  %17261 = vmatpush3.bf16.msra.mxu1 %v10062_v23  ;;  %17940 = vpow2.f32 %v9952_v7 }
0x16c7   :  { %17266 = vmatprep.subr.bf16.mxu0 %v18130_v19  ;;  %17272 = vmatprep.subr.bf16.mxu1 %v18130_v19  ;;  %v10106_v41 = vpop.permute.xlu1 %10105 }
0x16c8   :  { %v10111_v33 = vand.u32 %v10106_v41, %v18675_v50 }
0x16cd   :  { %v20381_v2 = vpop.eup %17934 }
0x16ce   :  { %v9970_v42 = vsel %vm1907_vm5, %v20381_v2, 0.0 }
0x16cf   :  { %9971 = vadd.xlane.f32.xlu0 %v9970_v42 }
0x16d1   :  { %v20385_v25 = vpop.eup %17936 }
0x16d2   :  { %v9976_v5 = vsel %vm1907_vm5, %v20385_v25, 0.0  ;;  %v20399_v11 = vpop.eup %17938 }
0x16d3   :  { %9977 = vadd.xlane.f32.xlu0 %v9976_v5  ;;  %v9967_v54 = vsel %vm1907_vm5, %v20399_v11, 0.0  ;;  %v20405_v35 = vpop.eup %17940 }
0x16d4   :  { %10252 = vrot.lane.b32.xlu1 %v20192_v31, %s18134_s0  ;;  %v9973_v46 = vsel %vm1907_vm5, %v20405_v35, 0.0 }
0x16e9   :  { %10301 = vrot.lane.b32.xlu0 %v20187_v47, %s18134_s0 }
0x16ed   :  { %10864 = vrot.lane.b32.xlu0 %v19863_v39, %s18135_s9 }
0x16f1   :  { %10862 = vrot.lane.b32.xlu0 %v19915_v17, %s18135_s9 }
0x16f5   :  { %10964 = vrot.lane.b32.xlu0 %v19854_v61, %s18135_s9 }
0x16f8   :  { %9968 = vadd.xlane.f32.xlu1 %v9967_v54  ;;  %v9933_v63 = vpop.xlane.xlu1 %9932 }
0x16f9   :  { %v9941_v0 = vsub.f32 %v20347_v13, %v9933_v63  ;;  %10962 = vrot.lane.b32.xlu0 %v19919_v56, %s18135_s9 }
0x16fb   :  { %v9956_v59 = vmul.f32 1.442695, %v9941_v0 }
0x16fc   :  { %9974 = vadd.xlane.f32.xlu1 %v9973_v46 }
0x16fd   :  { %17942 = vpow2.f32 %v9956_v59  ;;  %11064 = vrot.lane.b32.xlu0 %v19917_v27, %s18135_s9 }
0x1701   :  { %11062 = vrot.lane.b32.xlu0 %v19969_v43, %s18135_s9  ;;  %v9960_v51 = vpop.xlane.xlu0 %9959 }
0x1702   :  { %17944 = vrcp.f32 %v9960_v51 }
0x1705   :  { %11164 = vrot.lane.b32.xlu0 %v19962_v60, %s18135_s9 }
0x1709   :  { %11162 = vrot.lane.b32.xlu0 %v20004_v36, %s18135_s9  ;;  %v9966_v13 = vpop.xlane.xlu0 %9965 }
0x170a   :  { %v20420_v24 = vpop.eup %17942  ;;  %17946 = vrcp.f32 %v9966_v13 }
0x170b   :  { %v9979_v53 = vsel %vm1907_vm5, %v20420_v24, 0.0 }
0x170c   :  { %9980 = vadd.xlane.f32.xlu1 %v9979_v53 }
0x170d   :  { %v10204_v23 = vpop.permute.xlu0 %10203 }
0x170e   :  { %v10209_v5 = vand.u32 %v10204_v23, %v18675_v50 }
0x170f   :  { %v17945_v62 = vpop.eup %17944 }
0x1710   :  { %v9990_v28 = vmul.f32 %v17945_v62, %v20359_v22  ;;  %v10155_v22 = vpop.permute.xlu1 %10154 }
0x1711   :  { %v10160_v54 = vand.u32 %v10155_v22, %v18675_v50 }
0x1712   :  { %v9998_v12 = vpack.c.bf16 %v9990_v28, %v9990_v28 }
0x1714   :  { %17257 = vmatmul.mubr.msk.bf16.vlgmr.msra.gmra.mxu0 %vm2004_vm6, %v9998_v12 }
0x1715   :  { %17267 = vmatpush3.bf16.msra.mxu0 %v10111_v33  ;;  %17268 = vmatprep.mubr.msk.bf16.mxu0 %vm18131_vm1, %v18130_v19 }
0x1716   :  { %17278 = vmatprep.subr.bf16.mxu0 %v18130_v19 }
0x1717   :  { %v17947_v49 = vpop.eup %17946 }
0x1718   :  { %v9992_v45 = vmul.f32 %v17947_v49, %v20363_v15 }
0x171a   :  { %v10000_v42 = vpack.c.bf16 %v9992_v45, %v9992_v45 }
0x171c   :  { %17269 = vmatmul.mubr.msk.bf16.vlgmr.msra.gmra.mxu0 %vm2004_vm6, %v10000_v42 }
0x171d   :  { %17279 = vmatpush3.bf16.msra.mxu0 %v10209_v5  ;;  %10350 = vrot.lane.b32.xlu1 %v20228_v34, %s18134_s0  ;;  %s21632_s0 = sld [smem:[#allocation33_spill]] }
0x171e   :  { %17280 = vmatprep.mubr.msk.bf16.mxu0 %vm18131_vm1, %v18130_v19  ;;  %17290 = vmatprep.subr.bf16.mxu0 %v18130_v19 }
0x1721   :  { %10914 = vrot.lane.b32.xlu1 %v19908_v44, %s18135_s9 }
0x1725   :  { %10912 = vrot.lane.b32.xlu1 %v19966_v55, %s18135_s9 }
0x1729   :  { %11014 = vrot.lane.b32.xlu1 %v19960_v37, %s18135_s9 }
0x172d   :  { %11012 = vrot.lane.b32.xlu1 %v20006_v40, %s18135_s9 }
0x1731   :  { %11114 = vrot.lane.b32.xlu1 %v20002_v4, %s18135_s9 }
0x1735   :  { %11112 = vrot.lane.b32.xlu1 %v20031_v48, %s18135_s9 }
0x1739   :  { %11214 = vrot.lane.b32.xlu1 %v20029_v26, %s18135_s9 }
0x173d   :  { %11212 = vrot.lane.b32.xlu1 %v20044_v29, %s18135_s9 }
0x174c   :  { %v9963_v15 = vpop.xlane.xlu1 %9962 }
0x174d   :  { %17948 = vrcp.f32 %v9963_v15  ;;  %v17717_v15 = vld [vmem:[%s21617_s6] sm:$0xff]  }
0x1750   :  { %v10253_v62 = vpop.permute.xlu1 %10252 }
0x1751   :  { %v10258_v23 = vand.u32 %v10253_v62, %v18675_v50 }
0x1758   :  { %v9972_v10 = vpop.xlane.xlu0 %9971 }
0x1759   :  { %17950 = vrcp.f32 %v9972_v10 }
0x175a   :  { %v17949_v38 = vpop.eup %17948 }
0x175b   :  { %v9991_v20 = vmul.f32 %v17949_v38, %v20373_v9 }
0x175c   :  { %v9978_v7 = vpop.xlane.xlu0 %9977 }
0x175d   :  { %v9999_v41 = vpack.c.bf16 %v9991_v20, %v9991_v20  ;;  %17952 = vrcp.f32 %v9978_v7 }
0x175f   :  { %17263 = vmatmul.mubr.msk.bf16.vlgmr.msra.gmra.mxu1 %vm2004_vm6, %v9999_v41 }
0x1760   :  { %17273 = vmatpush3.bf16.msra.mxu1 %v10160_v54  ;;  %17274 = vmatprep.mubr.msk.bf16.mxu1 %vm18131_vm1, %v18130_v19  ;;  %v10302_v59 = vpop.permute.xlu0 %10301  ;;  %v9493_v54 = vpack.c.bf16 %v20333_v1, %v20333_v1 }
0x1761   :  { %17284 = vmatprep.subr.bf16.mxu1 %v18130_v19  ;;  %v10307_v9 = vand.u32 %v10302_v59, %v18675_v50 }
0x1766   :  { %v17951_v63 = vpop.eup %17950 }
0x1767   :  { %v9994_v0 = vmul.f32 %v17951_v63, %v20381_v2 }
0x1769   :  { %v10002_v46 = vpack.c.bf16 %v9994_v0, %v9994_v0 }
0x176a   :  { %v17953_v51 = vpop.eup %17952 }
0x176b   :  { %17281 = vmatmul.mubr.msk.bf16.vlgmr.msra.gmra.mxu0 %vm2004_vm6, %v10002_v46  ;;  %v9996_v13 = vmul.f32 %v17953_v51, %v20385_v25 }
0x176c   :  { %17291 = vmatpush3.bf16.msra.mxu0 %v10307_v9  ;;  %17292 = vmatprep.mubr.msk.bf16.mxu0 %vm18131_vm1, %v18130_v19 }
0x176d   :  { %v10004_v53 = vpack.c.bf16 %v9996_v13, %v9996_v13 }
0x1773   :  { %17293 = vmatmul.mubr.msk.bf16.vlgmr.msra.gmra.mxu0 %vm2004_vm6, %v10004_v53 }
0x1781   :  { %v9969_v28 = vpop.xlane.xlu1 %9968 }
0x1782   :  { %17954 = vrcp.f32 %v9969_v28 }
0x1785   :  { %v9975_v2 = vpop.xlane.xlu1 %9974 }
0x1786   :  { %17956 = vrcp.f32 %v9975_v2 }
0x178f   :  { %v17955_v12 = vpop.eup %17954 }
0x1790   :  { %v9993_v33 = vmul.f32 %v17955_v12, %v20399_v11 }
0x1792   :  { %v10001_v49 = vpack.c.bf16 %v9993_v33, %v9993_v33  ;;  %v17718_v33 = vld [vmem:[%s21617_s6 + $0x8] sm:$0xff]  }
0x1793   :  { %v17957_v45 = vpop.eup %17956  ;;  %17302 = vmatprep.subr.bf16.mxu0 %v17718_v33 }
0x1794   :  { %17275 = vmatmul.mubr.msk.bf16.vlgmr.msra.gmra.mxu1 %vm2004_vm6, %v10001_v49  ;;  %v9995_v42 = vmul.f32 %v17957_v45, %v20405_v35  ;;  %17303 = vmatpush3.bf16.msra.mxu0 %v17718_v33 }
0x1795   :  { %17285 = vmatpush3.bf16.msra.mxu1 %v10258_v23  ;;  %v9981_v25 = vpop.xlane.xlu1 %9980  ;;  %17286 = vmatprep.mubr.msk.bf16.mxu1 %vm18131_vm1, %v18130_v19 }
0x1796   :  { %17958 = vrcp.f32 %v9981_v25  ;;  %17296 = vmatprep.subr.bf16.mxu1 %v18130_v19  ;;  %v10003_v22 = vpack.c.bf16 %v9995_v42, %v9995_v42  ;;  %17314 = vmatprep.subr.bf16.mxu0 %v18130_v19 }
0x1799   :  { %v10351_v5 = vpop.permute.xlu1 %10350 }
0x179a   :  { %v10356_v11 = vand.u32 %v10351_v5, %v18675_v50 }
0x179c   :  { %17287 = vmatmul.mubr.msk.bf16.vlgmr.msra.gmra.mxu1 %vm2004_vm6, %v10003_v22 }
0x179d   :  { %17297 = vmatpush3.bf16.msra.mxu1 %v10356_v11  ;;  %17298 = vmatprep.mubr.msk.bf16.mxu1 %vm18131_vm1, %v18130_v19  ;;  %v10915_v10 = vpop.permute.xlu1 %10914 }
0x179e   :  { %17308 = vmatprep.subr.bf16.mxu1 %v17717_v15  ;;  %v10920_v63 = vsel %vm1538_vm2, %v10915_v10, 0 }
0x17a1   :  { %v10913_v7 = vpop.permute.xlu1 %10912 }
0x17a3   :  { %v17959_v38 = vpop.eup %17958 }
0x17a4   :  { %v9997_v20 = vmul.f32 %v17959_v38, %v20420_v24 }
0x17a5   :  { %v11015_v41 = vpop.permute.xlu1 %11014 }
0x17a6   :  { %v10005_v35 = vpack.c.bf16 %v9997_v20, %v9997_v20  ;;  %v11020_v16 = vsel %vm1538_vm2, %v11015_v41, 0 }
0x17a8   :  { %17299 = vmatmul.mubr.msk.bf16.vlgmr.msra.gmra.mxu1 %vm2004_vm6, %v10005_v35 }
0x17a9   :  { %17310 = vmatprep.mubr.msk.bf16.mxu1 %vm1538_vm2, %v9492_v14  ;;  %17309 = vmatpush3.bf16.msra.mxu1 %v17717_v15  ;;  %v11013_v57 = vpop.permute.xlu1 %11012 }
0x17aa   :  { %17320 = vmatprep.subr.bf16.mxu1 %v18130_v19 }
0x17ad   :  { %v11115_v14 = vpop.permute.xlu1 %11114 }
0x17ae   :  { %v11120_v24 = vsel %vm1538_vm2, %v11115_v14, 0 }
0x17b0   :  { %17311 = vmatmul.mubr.msk.bf16.vlgmr.msra.gmra.mxu1 %vm1538_vm2, %v9493_v54 }
0x17b1   :  { %17321 = vmatpush3.bf16.xpose.msra.mxu1 %v10920_v63  ;;  %17322 = vmatprep.mubr.msk.bf16.mxu1 %vm18131_vm1, %v18130_v19  ;;  %v11113_v1 = vpop.permute.xlu1 %11112 }
0x17b2   :  { %17332 = vmatprep.subr.bf16.mxu1 %v18130_v19 }
0x17b5   :  { %v11215_v0 = vpop.permute.xlu1 %11214 }
0x17b6   :  { %v11220_v59 = vsel %vm1538_vm2, %v11215_v0, 0 }
0x17b8   :  { %17323 = vmatmul.mubr.msk.bf16.vlgmr.msra.gmra.mxu1 %vm1538_vm2, %v10913_v7 }
0x17b9   :  { %17333 = vmatpush3.bf16.xpose.msra.mxu1 %v11020_v16  ;;  %17334 = vmatprep.mubr.msk.bf16.mxu1 %vm18131_vm1, %v18130_v19  ;;  %v11213_v46 = vpop.permute.xlu1 %11212 }
0x17ba   :  { %17344 = vmatprep.subr.bf16.mxu1 %v18130_v19 }
0x17c0   :  { %17335 = vmatmul.mubr.msk.bf16.vlgmr.msra.gmra.mxu1 %vm1538_vm2, %v11013_v57 }
0x17c1   :  { %17345 = vmatpush3.bf16.xpose.msra.mxu1 %v11120_v24  ;;  %17346 = vmatprep.mubr.msk.bf16.mxu1 %vm18131_vm1, %v18130_v19 }
0x17c2   :  { %17356 = vmatprep.subr.bf16.mxu1 %v18130_v19 }
0x17c8   :  { %17347 = vmatmul.mubr.msk.bf16.vlgmr.msra.gmra.mxu1 %vm1538_vm2, %v11113_v1 }
0x17c9   :  { %17357 = vmatpush3.bf16.xpose.msra.mxu1 %v11220_v59  ;;  %17358 = vmatprep.mubr.msk.bf16.mxu1 %vm18131_vm1, %v18130_v19 }
0x17ca   :  { %17368 = vmatprep.subr.bf16.mxu1 %v18130_v19 }
0x17d0   :  { %17359 = vmatmul.mubr.msk.bf16.vlgmr.msra.gmra.mxu1 %vm1538_vm2, %v11213_v46 }
0x17d1   :  { %17370 = vmatprep.mubr.msk.bf16.mxu1 %vm18131_vm1, %v18130_v19 }
0x17d4   :  { %v10049_v51 = vpop.f32.mrf.mxu0 }
0x17d5   :  { %v10412_v49 = vrot.slane %v10049_v51, %v18400_v32 }
0x17d6   :  { %v17258_v9 = vpop.f32.mrf.mxu0 }
0x17d7   :  { %v10413_v23 = vcombine.high %v10412_v49, %v10412_v49  ;;  %v10420_v42 = vrot.slane %v10412_v49, %v18400_v32 }
0x17d8   :  { %v10052_v13 = vpop.f32.mrf.mxu0 }
0x17d9   :  { %v10427_v5 = vrot.slane %v10413_v23, %v18400_v32  ;;  %v10428_v10 = vcombine.high %v10420_v42, %v10420_v42 }
0x17da   :  { %v17259_v53 = vpop.f32.mrf.mxu0 }
0x17db   :  { %v10590_v20 = vcombine.low %v10420_v42, %v10427_v5 }
0x17dc   :  { %v10147_v62 = vpop.f32.mrf.mxu0 }
0x17dd   :  { %v10458_v45 = vrot.slane %v10147_v62, %v18400_v32  ;;  %v10600_v24 = vrot.slane %v10590_v20, %v18400_v32 }
0x17de   :  { %v17270_v28 = vpop.f32.mrf.mxu0 }
0x17df   :  { %v10459_v25 = vcombine.high %v10458_v45, %v10458_v45  ;;  %v10466_v35 = vrot.slane %v10458_v45, %v18400_v32 }
0x17e0   :  { %v10150_v2 = vpop.f32.mrf.mxu0 }
0x17e1   :  { %v10473_v11 = vrot.slane %v10459_v25, %v18400_v32 }
0x17e2   :  { %v17271_v12 = vpop.f32.mrf.mxu0 }
0x17e3   :  { %v10593_v63 = vcombine.low %v10466_v35, %v10473_v11 }
0x17e5   :  { %v10621_v46 = vrot.slane %v10593_v63, %v18400_v32 }
0x181f   :  { %v10098_v22 = vpop.f32.mrf.mxu1 }
0x1820   :  { %v10435_v15 = vrot.slane %v10098_v22, %v18400_v32 }
0x1821   :  { %v17264_v38 = vpop.f32.mrf.mxu1 }
0x1822   :  { %v10436_v7 = vcombine.high %v10435_v15, %v10435_v15  ;;  %v10443_v41 = vrot.slane %v10435_v15, %v18400_v32 }
0x1823   :  { %v10101_v54 = vpop.f32.mrf.mxu1 }
0x1824   :  { %v10450_v57 = vrot.slane %v10436_v7, %v18400_v32  ;;  %v10451_v16 = vcombine.high %v10443_v41, %v10443_v41  ;;  %v10591_v14 = vcombine.low %v10428_v10, %v10443_v41 }
0x1825   :  { %v17265_v1 = vpop.f32.mrf.mxu1 }
0x1826   :  { %v10592_v0 = vcombine.low %v10450_v57, %v10451_v16  ;;  %v10607_v59 = vrot.slane %v10591_v14, %v18400_v32  ;;  %v10474_v16 = vcombine.high %v10466_v35, %v10466_v35 }
0x1828   :  { %v10614_v51 = vrot.slane %v10592_v0, %v18400_v32  ;;  %v10622_v9 = vcombine.low %v10600_v24, %v10607_v59 }
0x182a   :  { %v10623_v13 = vcombine.low %v10614_v51, %v10621_v46  ;;  %v10630_v62 = vrot.slane %v10622_v9, %v18400_v32 }
0x182b   :  { %v10245_v53 = vpop.f32.mrf.mxu0 }
0x182c   :  { %v10637_v28 = vrot.slane %v10623_v13, %v18400_v32  ;;  %v10504_v5 = vrot.slane %v10245_v53, %v18400_v32 }
0x182d   :  { %v17282_v2 = vpop.f32.mrf.mxu0 }
0x182e   :  { %v20528_v12 = vcombine.low %v10630_v62, %v10637_v28  ;;  %v10505_v10 = vcombine.high %v10504_v5, %v10504_v5  ;;  %v10512_v63 = vrot.slane %v10504_v5, %v18400_v32 }
0x182f   :  { %v10248_v33 = vpop.f32.mrf.mxu0 }
0x1830   :  { %v10519_v14 = vrot.slane %v10505_v10, %v18400_v32  ;;  %v10520_v46 = vcombine.high %v10512_v63, %v10512_v63 }
0x1831   :  { %v17283_v49 = vpop.f32.mrf.mxu0 }
0x1832   :  { %v10641_v9 = vcombine.low %v10512_v63, %v10519_v14 }
0x1833   :  { %v10343_v45 = vpop.f32.mrf.mxu0 }
0x1834   :  { %v10550_v13 = vrot.slane %v10343_v45, %v18400_v32 }
0x1835   :  { %v17294_v23 = vpop.f32.mrf.mxu0 }
0x1836   :  { %v10663_v23 = vrot.slane %v10641_v9, %v18400_v32 }
0x1837   :  { %v10346_v25 = vpop.f32.mrf.mxu0 }
0x1838   :  { %v10551_v25 = vcombine.high %v10550_v13, %v10550_v13 }
0x1839   :  { %v17295_v42 = vpop.f32.mrf.mxu0 }
0x183a   :  { %v10565_v10 = vrot.slane %v10551_v25, %v18400_v32 }
0x1854   :  { %v10196_v22 = vpop.f32.mrf.mxu1 }
0x1855   :  { %v10481_v11 = vrot.slane %v10196_v22, %v18400_v32 }
0x1856   :  { %v17276_v15 = vpop.f32.mrf.mxu1 }
0x1857   :  { %v10482_v38 = vcombine.high %v10481_v11, %v10481_v11  ;;  %v10489_v20 = vrot.slane %v10481_v11, %v18400_v32  ;;  %v10558_v15 = vrot.slane %v10550_v13, %v18400_v32 }
0x1858   :  { %v10199_v7 = vpop.f32.mrf.mxu1 }
0x1859   :  { %v10496_v41 = vrot.slane %v10482_v38, %v18400_v32  ;;  %v10497_v54 = vcombine.high %v10489_v20, %v10489_v20  ;;  %v10639_v0 = vcombine.low %v10474_v16, %v10489_v20  ;;  %v10689_v14 = vcombine.low %v10558_v15, %v10565_v10 }
0x185a   :  { %v17277_v57 = vpop.f32.mrf.mxu1 }
0x185b   :  { %v10640_v1 = vcombine.low %v10496_v41, %v10497_v54  ;;  %v10649_v2 = vrot.slane %v10639_v0, %v18400_v32  ;;  %v10566_v57 = vcombine.high %v10558_v15, %v10558_v15 }
0x185c   :  { %v10294_v24 = vpop.f32.mrf.mxu1 }
0x185d   :  { %v10527_v59 = vrot.slane %v10294_v24, %v18400_v32  ;;  %v10656_v53 = vrot.slane %v10640_v1, %v18400_v32 }
0x185e   :  { %v17288_v51 = vpop.f32.mrf.mxu1 }
0x185f   :  { %v10535_v62 = vrot.slane %v10527_v59, %v18400_v32  ;;  %v10528_v35 = vcombine.high %v10527_v59, %v10527_v59  ;;  %v10671_v42 = vcombine.low %v10649_v2, %v10656_v53  ;;  %v10865_v59 = vpop.permute.xlu0 %10864 }
0x1860   :  { %v10297_v28 = vpop.f32.mrf.mxu1 }
0x1861   :  { %v10642_v33 = vcombine.low %v10520_v46, %v10535_v62  ;;  %v10542_v22 = vrot.slane %v10528_v35, %v18400_v32  ;;  %v10543_v11 = vcombine.high %v10535_v62, %v10535_v62  ;;  %v10679_v38 = vrot.slane %v10671_v42, %v18400_v32 }
0x1862   :  { %v17289_v49 = vpop.f32.mrf.mxu1  ;;  %v10705_v28 = vrot.slane %v10689_v14, %v18400_v32 }
0x1863   :  { %v10670_v5 = vrot.slane %v10642_v33, %v18400_v32  ;;  %v10688_v41 = vcombine.low %v10542_v22, %v10543_v11 }
0x1865   :  { %v10672_v45 = vcombine.low %v10663_v23, %v10670_v5  ;;  %v10698_v51 = vrot.slane %v10688_v41, %v18400_v32  ;;  %v10863_v23 = vpop.permute.xlu0 %10862 }
0x1867   :  { %v10686_v20 = vrot.slane %v10672_v45, %v18400_v32  ;;  %v10720_v33 = vcombine.low %v10698_v51, %v10705_v28 }
0x1868   :  { %v10392_v7 = vpop.f32.mrf.mxu1 }
0x1869   :  { %v10573_v54 = vrot.slane %v10392_v7, %v18400_v32  ;;  %v10687_v63 = vcombine.low %v10679_v38, %v10686_v20  ;;  %v10728_v22 = vrot.slane %v10720_v33, %v18400_v32  ;;  %v10965_v10 = vpop.permute.xlu0 %10964 }
0x186a   :  { %v17300_v16 = vpop.f32.mrf.mxu1 }
0x186b   :  { %v10574_v1 = vcombine.high %v10573_v54, %v10573_v54  ;;  %v10581_v24 = vrot.slane %v10573_v54, %v18400_v32  ;;  %v10740_v0 = vpack.c.bf16 %v10687_v63, %v20528_v12  ;;  %v10870_v54 = vsel %vm1538_vm2, %v10865_v59, 0 }
0x186c   :  { %v10395_v46 = vpop.f32.mrf.mxu1 }
0x186d   :  { %v10588_v9 = vrot.slane %v10574_v1, %v18400_v32  ;;  %v10589_v13 = vcombine.high %v10581_v24, %v10581_v24  ;;  %v10690_v53 = vcombine.low %v10566_v57, %v10581_v24  ;;  %17304 = vmatprep.mubr.msk.bf16.mxu0 %vm1538_vm2, %v10740_v0  ;;  %v10963_v57 = vpop.permute.xlu0 %10962  ;;  %v10970_v0 = vsel %vm1538_vm2, %v10965_v10, 0 }
0x186e   :  { %v17301_v62 = vpop.f32.mrf.mxu1 }
0x186f   :  { %v10691_v2 = vcombine.low %v10588_v9, %v10589_v13  ;;  %v10712_v49 = vrot.slane %v10690_v53, %v18400_v32 }
0x1870   :  { %v20555_v35 = vpop.f32.mrf.mxu1 }
0x1871   :  { %v10719_v12 = vrot.slane %v10691_v2, %v18400_v32  ;;  %v11065_v59 = vpop.permute.xlu0 %11064 }
0x1872   :  { %v20559_v25 = vpop.f32.mrf.mxu1  ;;  %v11070_v28 = vsel %vm1538_vm2, %v11065_v59, 0 }
0x1873   :  { %v10721_v42 = vcombine.low %v10712_v49, %v10719_v12 }
0x1874   :  { %v17313_v5 = vpop.f32.mrf.mxu1 }
0x1875   :  { %v10735_v11 = vrot.slane %v10721_v42, %v18400_v32  ;;  %v11063_v53 = vpop.permute.xlu0 %11062 }
0x1876   :  { %v20563_v45 = vpop.f32.mrf.mxu1 }
0x1877   :  { %v10736_v15 = vcombine.low %v10728_v22, %v10735_v11 }
0x1878   :  { %v10956_v38 = vpop.f32.mrf.mxu1 }
0x1879   :  { %v10741_v20 = vpack.c.bf16 %v10736_v15, %v10736_v15  ;;  %v11265_v7 = vsel %vm1907_vm5, %v10956_v38, -inf  ;;  %v11165_v49 = vpop.permute.xlu0 %11164 }
0x187a   :  { %11266 = vmax.xlane.f32.xlu1 %v11265_v7  ;;  %v17324_v41 = vpop.f32.mrf.mxu1  ;;  %v11170_v5 = vsel %vm1538_vm2, %v11165_v49, 0 }
0x187b   :  { %17305 = vmatmul.mubr.msk.bf16.vlgmr.msra.gmra.mxu0 %vm1538_vm2, %v10741_v20 }
0x187c   :  { %17315 = vmatpush3.bf16.xpose.msra.mxu0 %v10870_v54  ;;  %v10959_v63 = vpop.f32.mrf.mxu1  ;;  %17316 = vmatprep.mubr.msk.bf16.mxu0 %vm18131_vm1, %v18130_v19 }
0x187d   :  { %17326 = vmatprep.subr.bf16.mxu0 %v18130_v19  ;;  %v11163_v15 = vpop.permute.xlu0 %11162 }
0x187e   :  { %v17325_v16 = vpop.f32.mrf.mxu1 }
0x1880   :  { %v11056_v14 = vpop.f32.mrf.mxu1 }
0x1881   :  { %v11271_v1 = vsel %vm1907_vm5, %v11056_v14, -inf }
0x1882   :  { %11272 = vmax.xlane.f32.xlu0 %v11271_v1  ;;  %v17336_v24 = vpop.f32.mrf.mxu1 }
0x1883   :  { %17317 = vmatmul.mubr.msk.bf16.vlgmr.msra.gmra.mxu0 %vm1538_vm2, %v10863_v23 }
0x1884   :  { %17327 = vmatpush3.bf16.xpose.msra.mxu0 %v10970_v0  ;;  %v11059_v46 = vpop.f32.mrf.mxu1  ;;  %17328 = vmatprep.mubr.msk.bf16.mxu0 %vm18131_vm1, %v18130_v19 }
0x1885   :  { %17338 = vmatprep.subr.bf16.mxu0 %v18130_v19 }
0x1886   :  { %v17337_v51 = vpop.f32.mrf.mxu1 }
0x1888   :  { %v11156_v9 = vpop.f32.mrf.mxu1 }
0x1889   :  { %v11277_v13 = vsel %vm1907_vm5, %v11156_v9, -inf }
0x188a   :  { %11278 = vmax.xlane.f32.xlu1 %v11277_v13  ;;  %v17348_v62 = vpop.f32.mrf.mxu1 }
0x188b   :  { %17329 = vmatmul.mubr.msk.bf16.vlgmr.msra.gmra.mxu0 %vm1538_vm2, %v10963_v57 }
0x188c   :  { %17339 = vmatpush3.bf16.xpose.msra.mxu0 %v11070_v28  ;;  %v11159_v2 = vpop.f32.mrf.mxu1  ;;  %17340 = vmatprep.mubr.msk.bf16.mxu0 %vm18131_vm1, %v18130_v19 }
0x188d   :  { %17350 = vmatprep.subr.bf16.mxu0 %v18130_v19 }
0x188e   :  { %v17349_v33 = vpop.f32.mrf.mxu1 }
0x1890   :  { %v11256_v12 = vpop.f32.mrf.mxu1 }
0x1891   :  { %v11283_v23 = vsel %vm1907_vm5, %v11256_v12, -inf }
0x1892   :  { %11284 = vmax.xlane.f32.xlu1 %v11283_v23  ;;  %v17360_v42 = vpop.f32.mrf.mxu1 }
0x1893   :  { %17341 = vmatmul.mubr.msk.bf16.vlgmr.msra.gmra.mxu0 %vm1538_vm2, %v11063_v53 }
0x1894   :  { %17351 = vmatpush3.bf16.xpose.msra.mxu0 %v11170_v5  ;;  %v11259_v22 = vpop.f32.mrf.mxu1  ;;  %17352 = vmatprep.mubr.msk.bf16.mxu0 %vm18131_vm1, %v18130_v19 }
0x1895   :  { %17362 = vmatprep.subr.bf16.mxu0 %v18130_v19 }
0x1896   :  { %v17361_v11 = vpop.f32.mrf.mxu1 }
0x189b   :  { %17353 = vmatmul.mubr.msk.bf16.vlgmr.msra.gmra.mxu0 %vm1538_vm2, %v11163_v15 }
0x189c   :  { %17364 = vmatprep.mubr.msk.bf16.mxu0 %vm18131_vm1, %v18130_v19 }
0x1903   :  { %v11267_v10 = vpop.xlane.xlu1 %11266 }
0x1904   :  { %v11287_v20 = vsub.f32 %v10956_v38, %v11267_v10 }
0x1906   :  { %v11296_v7 = vmul.f32 1.442695, %v11287_v20 }
0x1908   :  { %17960 = vpow2.f32 %v11296_v7 }
0x190b   :  { %v11273_v41 = vpop.xlane.xlu0 %11272 }
0x190c   :  { %v11289_v54 = vsub.f32 %v11056_v14, %v11273_v41 }
0x190e   :  { %v11300_v63 = vmul.f32 1.442695, %v11289_v54 }
0x1910   :  { %17962 = vpow2.f32 %v11300_v63 }
0x1913   :  { %v11279_v57 = vpop.xlane.xlu1 %11278 }
0x1914   :  { %v11291_v16 = vsub.f32 %v11156_v9, %v11279_v57 }
0x1915   :  { %v20592_v1 = vpop.eup %17960 }
0x1916   :  { %v11304_v24 = vmul.f32 1.442695, %v11291_v16  ;;  %v11313_v0 = vsel %vm1907_vm5, %v20592_v1, 0.0 }
0x1917   :  { %11314 = vadd.xlane.f32.xlu1 %v11313_v0 }
0x1918   :  { %17964 = vpow2.f32 %v11304_v24 }
0x191b   :  { %v11285_v59 = vpop.xlane.xlu1 %11284 }
0x191c   :  { %v11293_v46 = vsub.f32 %v11256_v12, %v11285_v59 }
0x191d   :  { %v20596_v51 = vpop.eup %17962 }
0x191e   :  { %v11308_v38 = vmul.f32 1.442695, %v11293_v46  ;;  %v11319_v14 = vsel %vm1907_vm5, %v20596_v51, 0.0 }
0x191f   :  { %11320 = vadd.xlane.f32.xlu1 %v11319_v14 }
0x1920   :  { %17966 = vpow2.f32 %v11308_v38 }
0x1925   :  { %v20600_v13 = vpop.eup %17964 }
0x1926   :  { %v11325_v9 = vsel %vm1907_vm5, %v20600_v13, 0.0 }
0x1927   :  { %11326 = vadd.xlane.f32.xlu1 %v11325_v9 }
0x192d   :  { %v20604_v53 = vpop.eup %17966 }
0x192e   :  { %v11331_v62 = vsel %vm1907_vm5, %v20604_v53, 0.0 }
0x192f   :  { %11332 = vadd.xlane.f32.xlu1 %v11331_v62 }
0x193b   :  { %v20608_v28 = vpop.f32.mrf.mxu0 }
0x193d   :  { %v20610_v2 = vpop.f32.mrf.mxu0 }
0x193f   :  { %v17307_v33 = vpop.f32.mrf.mxu0 }
0x1940   :  { %11406 = vrot.lane.b32.xlu1 %v20042_v30, %s18135_s9 }
0x1941   :  { %v20614_v49 = vpop.f32.mrf.mxu0 }
0x1943   :  { %v20616_v12 = vpop.f32.mrf.mxu0 }
0x1944   :  { %11454 = vrot.lane.b32.xlu1 %v20142_v8, %s18135_s9  ;;  %v11262_v23 = vsel %vm1907_vm5, %v20616_v12, -inf }
0x1945   :  { %v17318_v42 = vpop.f32.mrf.mxu0  ;;  %11263 = vmax.xlane.f32.xlu0 %v11262_v23 }
0x1947   :  { %v10909_v5 = vpop.f32.mrf.mxu0 }
0x1948   :  { %11502 = vrot.lane.b32.xlu1 %v20167_v6, %s18135_s9 }
0x1949   :  { %v17319_v22 = vpop.f32.mrf.mxu0 }
0x194b   :  { %v20624_v11 = vpop.f32.mrf.mxu0 }
0x194c   :  { %11598 = vrot.lane.b32.xlu1 %v20192_v31, %s18135_s9  ;;  %v11268_v15 = vsel %vm1907_vm5, %v20624_v11, -inf }
0x194d   :  { %v17330_v10 = vpop.f32.mrf.mxu0  ;;  %11269 = vmax.xlane.f32.xlu0 %v11268_v15 }
0x194f   :  { %v11009_v20 = vpop.f32.mrf.mxu0 }
0x1950   :  { %11694 = vrot.lane.b32.xlu1 %v20228_v34, %s18135_s9 }
0x1951   :  { %v17331_v7 = vpop.f32.mrf.mxu0 }
0x1953   :  { %v20632_v41 = vpop.f32.mrf.mxu0 }
0x1954   :  { %12201 = vrot.lane.b32.xlu1 %v19908_v44, %s18136_s17  ;;  %v11274_v54 = vsel %vm1907_vm5, %v20632_v41, -inf }
0x1955   :  { %v17342_v63 = vpop.f32.mrf.mxu0  ;;  %11275 = vmax.xlane.f32.xlu0 %v11274_v54 }
0x1957   :  { %v11109_v57 = vpop.f32.mrf.mxu0 }
0x1958   :  { %12199 = vrot.lane.b32.xlu1 %v19966_v55, %s18136_s17 }
0x1959   :  { %v17343_v16 = vpop.f32.mrf.mxu0 }
0x195b   :  { %v20640_v24 = vpop.f32.mrf.mxu0 }
0x195c   :  { %12301 = vrot.lane.b32.xlu1 %v19960_v37, %s18136_s17  ;;  %v11280_v0 = vsel %vm1907_vm5, %v20640_v24, -inf }
0x195d   :  { %v17354_v59 = vpop.f32.mrf.mxu0  ;;  %11281 = vmax.xlane.f32.xlu0 %v11280_v0 }
0x195f   :  { %v11209_v44 = vpop.f32.mrf.mxu0 }
0x1960   :  { %12299 = vrot.lane.b32.xlu1 %v20006_v40, %s18136_s17 }
0x1961   :  { %v17355_v46 = vpop.f32.mrf.mxu0 }
0x1964   :  { %12401 = vrot.lane.b32.xlu1 %v20002_v4, %s18136_s17 }
0x1968   :  { %12399 = vrot.lane.b32.xlu1 %v20031_v48, %s18136_s17 }
0x196c   :  { %12501 = vrot.lane.b32.xlu1 %v20029_v26, %s18136_s17 }
0x1970   :  { %12499 = vrot.lane.b32.xlu1 %v20044_v29, %s18136_s17 }
0x1973   :  { %11358 = vrot.lane.b32.xlu0 %v19995_v21, %s18135_s9 }
0x19a0   :  { %v11315_v37 = vpop.xlane.xlu1 %11314 }
0x19a1   :  { %17968 = vrcp.f32 %v11315_v37 }
0x19a8   :  { %v11321_v55 = vpop.xlane.xlu1 %11320 }
0x19a9   :  { %17970 = vrcp.f32 %v11321_v55 }
0x19ae   :  { %v17969_v14 = vpop.eup %17968 }
0x19af   :  { %v11343_v4 = vmul.f32 %v17969_v14, %v20592_v1 }
0x19b0   :  { %v11327_v40 = vpop.xlane.xlu1 %11326 }
0x19b1   :  { %17972 = vrcp.f32 %v11327_v40  ;;  %v11351_v26 = vpack.c.bf16 %v11343_v4, %v11343_v4 }
0x19b6   :  { %v17971_v29 = vpop.eup %17970 }
0x19b7   :  { %v11345_v33 = vmul.f32 %v17971_v29, %v20596_v51 }
0x19b8   :  { %v11333_v38 = vpop.xlane.xlu1 %11332 }
0x19b9   :  { %17974 = vrcp.f32 %v11333_v38  ;;  %v11353_v42 = vpack.c.bf16 %v11345_v33, %v11345_v33 }
0x19bc   :  { %v11407_v48 = vpop.permute.xlu1 %11406 }
0x19bd   :  { %v11412_v9 = vand.u32 %v11407_v48, %v18675_v50 }
0x19be   :  { %v17973_v22 = vpop.eup %17972 }
0x19bf   :  { %17369 = vmatpush3.bf16.msra.mxu1 %v11412_v9  ;;  %v11347_v51 = vmul.f32 %v17973_v22, %v20600_v13 }
0x19c0   :  { %v20660_v62 = vpop.permute.xlu1 %11454  ;;  %17380 = vmatprep.subr.bf16.mxu1 %v18130_v19 }
0x19c1   :  { %v11355_v54 = vpack.c.bf16 %v11347_v51, %v11347_v51 }
0x19c2   :  { %17371 = vmatmul.mubr.msk.bf16.vlgmr.msra.gmra.mxu1 %vm2004_vm6, %v11351_v26 }
0x19c3   :  { %17382 = vmatprep.mubr.msk.bf16.mxu1 %vm18131_vm1, %v18130_v19 }
0x19c4   :  { %v11503_v1 = vpop.permute.xlu1 %11502 }
0x19c5   :  { %v11508_v23 = vand.u32 %v11503_v1, %v18675_v50 }
0x19c6   :  { %v17975_v63 = vpop.eup %17974 }
0x19c7   :  { %17381 = vmatpush3.bf16.msra.mxu1 %v11508_v23  ;;  %v11349_v13 = vmul.f32 %v17975_v63, %v20604_v53 }
0x19c8   :  { %v11599_v5 = vpop.permute.xlu1 %11598  ;;  %17392 = vmatprep.subr.bf16.mxu1 %v18130_v19 }
0x19c9   :  { %v11604_v15 = vand.u32 %v11599_v5, %v18675_v50 }
0x19ca   :  { %17383 = vmatmul.mubr.msk.bf16.vlgmr.msra.gmra.mxu1 %vm2004_vm6, %v11353_v42 }
0x19cb   :  { %17393 = vmatpush3.bf16.msra.mxu1 %v11604_v15  ;;  %17394 = vmatprep.mubr.msk.bf16.mxu1 %vm18131_vm1, %v18130_v19 }
0x19cc   :  { %17404 = vmatprep.subr.bf16.mxu1 %v18130_v19  ;;  %v11695_v10 = vpop.permute.xlu1 %11694 }
0x19cd   :  { %v11700_v57 = vand.u32 %v11695_v10, %v18675_v50 }
0x19ce   :  { %v11264_v20 = vpop.xlane.xlu0 %11263 }
0x19cf   :  { %v11286_v7 = vsub.f32 %v20616_v12, %v11264_v20  ;;  %v11357_v12 = vpack.c.bf16 %v11349_v13, %v11349_v13 }
0x19d1   :  { %v11294_v16 = vmul.f32 1.442695, %v11286_v7 }
0x19d2   :  { %17395 = vmatmul.mubr.msk.bf16.vlgmr.msra.gmra.mxu1 %vm2004_vm6, %v11355_v54 }
0x19d3   :  { %17976 = vpow2.f32 %v11294_v16  ;;  %17405 = vmatpush3.bf16.msra.mxu1 %v11700_v57  ;;  %17406 = vmatprep.mubr.msk.bf16.mxu1 %vm18131_vm1, %v18130_v19 }
0x19d4   :  { %17416 = vmatprep.subr.bf16.mxu1 %v18130_v19 }
0x19d6   :  { %v11270_v0 = vpop.xlane.xlu0 %11269 }
0x19d7   :  { %v11288_v59 = vsub.f32 %v20624_v11, %v11270_v0 }
0x19d9   :  { %v11298_v44 = vmul.f32 1.442695, %v11288_v59 }
0x19da   :  { %17407 = vmatmul.mubr.msk.bf16.vlgmr.msra.gmra.mxu1 %vm2004_vm6, %v11357_v12 }
0x19db   :  { %17978 = vpow2.f32 %v11298_v44  ;;  %17418 = vmatprep.mubr.msk.bf16.mxu1 %vm18131_vm1, %v18130_v19 }
0x19de   :  { %v11276_v55 = vpop.xlane.xlu0 %11275 }
0x19df   :  { %v11290_v4 = vsub.f32 %v20632_v41, %v11276_v55 }
0x19e0   :  { %v17977_v46 = vpop.eup %17976 }
0x19e1   :  { %v11310_v37 = vsel %vm1907_vm5, %v17977_v46, 0.0  ;;  %v11302_v48 = vmul.f32 1.442695, %v11290_v4 }
0x19e2   :  { %11311 = vadd.xlane.f32.xlu0 %v11310_v37 }
0x19e3   :  { %17980 = vpow2.f32 %v11302_v48 }
0x19e6   :  { %v11282_v40 = vpop.xlane.xlu0 %11281 }
0x19e7   :  { %v11292_v9 = vsub.f32 %v20640_v24, %v11282_v40 }
0x19e8   :  { %v17979_v53 = vpop.eup %17978 }
0x19e9   :  { %v11316_v38 = vsel %vm1907_vm5, %v17979_v53, 0.0  ;;  %v11306_v26 = vmul.f32 1.442695, %v11292_v9 }
0x19ea   :  { %11317 = vadd.xlane.f32.xlu0 %v11316_v38  ;;  %v11359_v14 = vpop.permute.xlu0 %11358 }
0x19eb   :  { %v11364_v11 = vand.u32 %v11359_v14, %v18675_v50  ;;  %17982 = vpow2.f32 %v11306_v26 }
0x19ed   :  { %17363 = vmatpush3.bf16.msra.mxu0 %v11364_v11 }
0x19ee   :  { %17374 = vmatprep.subr.bf16.mxu0 %v18130_v19 }
0x19f0   :  { %v17981_v29 = vpop.eup %17980 }
0x19f1   :  { %v11322_v33 = vsel %vm1907_vm5, %v17981_v29, 0.0 }
0x19f8   :  { %v20695_v1 = vpop.eup %17982 }
0x19f9   :  { %v11328_v23 = vsel %vm1907_vm5, %v20695_v1, 0.0 }
0x1a00   :  { %11550 = vrot.lane.b32.xlu0 %v20169_v52, %s18135_s9 }
0x1a1f   :  { %11323 = vadd.xlane.f32.xlu0 %v11322_v33 }
0x1a23   :  { %11329 = vadd.xlane.f32.xlu0 %v11328_v23 }
0x1a39   :  { %11646 = vrot.lane.b32.xlu0 %v20187_v47, %s18135_s9  ;;  %s21633_s9 = sld [smem:[#allocation8_spill]] }
0x1a3d   :  { %12151 = vrot.lane.b32.xlu0 %v19863_v39, %s18136_s17 }
0x1a41   :  { %12149 = vrot.lane.b32.xlu0 %v19915_v17, %s18136_s17 }
0x1a45   :  { %12251 = vrot.lane.b32.xlu0 %v19854_v61, %s18136_s17 }
0x1a49   :  { %12249 = vrot.lane.b32.xlu0 %v19919_v56, %s18136_s17  ;;  %v11460_v56 = vand.u32 %v20660_v62, %v18675_v50 }
0x1a4d   :  { %12351 = vrot.lane.b32.xlu0 %v19917_v27, %s18136_s17 }
0x1a51   :  { %12349 = vrot.lane.b32.xlu0 %v19969_v43, %s18136_s17 }
0x1a55   :  { %12451 = vrot.lane.b32.xlu0 %v19962_v60, %s18136_s17 }
0x1a59   :  { %12449 = vrot.lane.b32.xlu0 %v20004_v36, %s18136_s17 }
0x1a6b   :  { %v11312_v39 = vpop.xlane.xlu0 %11311 }
0x1a6c   :  { %17984 = vrcp.f32 %v11312_v39 }
0x1a73   :  { %v11318_v17 = vpop.xlane.xlu0 %11317 }
0x1a74   :  { %17986 = vrcp.f32 %v11318_v17 }
0x1a77   :  { %v11551_v43 = vpop.permute.xlu0 %11550 }
0x1a78   :  { %v11556_v22 = vand.u32 %v11551_v43, %v18675_v50 }
0x1a79   :  { %v17985_v61 = vpop.eup %17984 }
0x1a7a   :  { %v11342_v41 = vmul.f32 %v17985_v61, %v17977_v46 }
0x1a7c   :  { %v11350_v24 = vpack.c.bf16 %v11342_v41, %v11342_v41 }
0x1a7e   :  { %17365 = vmatmul.mubr.msk.bf16.vlgmr.msra.gmra.mxu0 %vm2004_vm6, %v11350_v24 }
0x1a7f   :  { %17375 = vmatpush3.bf16.msra.mxu0 %v11460_v56  ;;  %17376 = vmatprep.mubr.msk.bf16.mxu0 %vm18131_vm1, %v18130_v19  ;;  %v17719_v56 = vld [vmem:[%s21617_s6 + $0x10] sm:$0xff]  }
0x1a80   :  { %17386 = vmatprep.subr.bf16.mxu0 %v18130_v19 }
0x1a81   :  { %v17987_v27 = vpop.eup %17986 }
0x1a82   :  { %v11344_v60 = vmul.f32 %v17987_v27, %v17979_v53  ;;  %v20723_v36 = vpop.f32.mrf.mxu1 }
0x1a84   :  { %v11352_v42 = vpack.c.bf16 %v11344_v60, %v11344_v60  ;;  %v17372_v5 = vpop.f32.mrf.mxu1 }
0x1a86   :  { %v11451_v15 = vpop.f32.mrf.mxu1  ;;  %17377 = vmatmul.mubr.msk.bf16.vlgmr.msra.gmra.mxu0 %vm2004_vm6, %v11352_v42 }
0x1a87   :  { %17387 = vmatpush3.bf16.msra.mxu0 %v11556_v22  ;;  %17388 = vmatprep.mubr.msk.bf16.mxu0 %vm18131_vm1, %v18130_v19 }
0x1a88   :  { %v17373_v62 = vpop.f32.mrf.mxu1  ;;  %17398 = vmatprep.subr.bf16.mxu0 %v18130_v19 }
0x1a8a   :  { %v20730_v51 = vpop.f32.mrf.mxu1 }
0x1a8c   :  { %v17384_v10 = vpop.f32.mrf.mxu1 }
0x1a8d   :  { %v11779_v10 = vrot.slane %v20723_v36, %v18400_v32 }
0x1a8e   :  { %v11547_v20 = vpop.f32.mrf.mxu1 }
0x1a90   :  { %v17385_v7 = vpop.f32.mrf.mxu1 }
0x1a92   :  { %v20732_v54 = vpop.f32.mrf.mxu1 }
0x1a94   :  { %v17396_v63 = vpop.f32.mrf.mxu1 }
0x1a95   :  { %v11780_v63 = vcombine.high %v11779_v10, %v11779_v10 }
0x1a96   :  { %v11643_v57 = vpop.f32.mrf.mxu1 }
0x1a97   :  { %v11787_v57 = vrot.slane %v11779_v10, %v18400_v32 }
0x1a98   :  { %v17397_v16 = vpop.f32.mrf.mxu1 }
0x1a99   :  { %v11825_v16 = vrot.slane %v20730_v51, %v18400_v32 }
0x1a9a   :  { %v20734_v13 = vpop.f32.mrf.mxu1 }
0x1a9b   :  { %v11826_v36 = vcombine.high %v11825_v16, %v11825_v16 }
0x1a9c   :  { %v17408_v0 = vpop.f32.mrf.mxu1 }
0x1a9d   :  { %v11840_v51 = vrot.slane %v11826_v36, %v18400_v32 }
0x1a9e   :  { %v11739_v59 = vpop.f32.mrf.mxu1 }
0x1aa0   :  { %v17409_v12 = vpop.f32.mrf.mxu1 }
0x1aa8   :  { %v11324_v44 = vpop.xlane.xlu0 %11323 }
0x1aa9   :  { %17988 = vrcp.f32 %v11324_v44  ;;  %v11794_v44 = vrot.slane %v11780_v63, %v18400_v32 }
0x1aac   :  { %v11330_v46 = vpop.xlane.xlu0 %11329 }
0x1aad   :  { %17990 = vrcp.f32 %v11330_v46  ;;  %v11795_v46 = vcombine.high %v11787_v57, %v11787_v57 }
0x1ab0   :  { %v11647_v37 = vpop.permute.xlu0 %11646 }
0x1ab1   :  { %v11652_v48 = vand.u32 %v11647_v37, %v18675_v50 }
0x1ab4   :  { %v12152_v55 = vpop.permute.xlu0 %12151 }
0x1ab5   :  { %v12157_v40 = vsel %vm1538_vm2, %v12152_v55, 0  ;;  %v11833_v55 = vrot.slane %v11825_v16, %v18400_v32 }
0x1ab6   :  { %v17989_v53 = vpop.eup %17988  ;;  %17417 = vmatpush3.bf16.xpose.msra.mxu1 %v12157_v40 }
0x1ab7   :  { %v11346_v38 = vmul.f32 %v17989_v53, %v17981_v29  ;;  %17428 = vmatprep.subr.bf16.mxu1 %v18130_v19 }
0x1ab8   :  { %v12150_v14 = vpop.permute.xlu0 %12149 }
0x1ab9   :  { %v11354_v11 = vpack.c.bf16 %v11346_v38, %v11346_v38 }
0x1aba   :  { %v17991_v4 = vpop.eup %17990 }
0x1abb   :  { %17389 = vmatmul.mubr.msk.bf16.vlgmr.msra.gmra.mxu0 %vm2004_vm6, %v11354_v11  ;;  %v11348_v26 = vmul.f32 %v17991_v4, %v20695_v1  ;;  %v11841_v4 = vcombine.high %v11833_v55, %v11833_v55 }
0x1abc   :  { %17399 = vmatpush3.bf16.msra.mxu0 %v11652_v48  ;;  %v12252_v9 = vpop.permute.xlu0 %12251  ;;  %17400 = vmatprep.mubr.msk.bf16.mxu0 %vm18131_vm1, %v18130_v19  ;;  %v11871_v48 = vrot.slane %v20732_v54, %v18400_v32 }
0x1abd   :  { %v12257_v33 = vsel %vm1538_vm2, %v12252_v9, 0  ;;  %17419 = vmatmul.mubr.msk.bf16.vlgmr.msra.gmra.mxu1 %vm1538_vm2, %v12150_v14  ;;  %v11356_v23 = vpack.c.bf16 %v11348_v26, %v11348_v26  ;;  %17410 = vmatprep.subr.bf16.mxu0 %v17719_v56  ;;  %v11936_v14 = vcombine.low %v11794_v44, %v11795_v46  ;;  %v11917_v26 = vrot.slane %v20734_v13, %v18400_v32 }
0x1abe   :  { %17429 = vmatpush3.bf16.xpose.msra.mxu1 %v12257_v33  ;;  %17430 = vmatprep.mubr.msk.bf16.mxu1 %vm18131_vm1, %v18130_v19  ;;  %v11879_v54 = vrot.slane %v11871_v48, %v18400_v32 }
0x1abf   :  { %17440 = vmatprep.subr.bf16.mxu1 %v18130_v19 }
0x1ac0   :  { %v12250_v29 = vpop.permute.xlu0 %12249 }
0x1ac3   :  { %17401 = vmatmul.mubr.msk.bf16.vlgmr.msra.gmra.mxu0 %vm2004_vm6, %v11356_v23 }
0x1ac4   :  { %v12352_v39 = vpop.permute.xlu0 %12351  ;;  %17411 = vmatpush3.bf16.msra.mxu0 %v17719_v56 }
0x1ac5   :  { %v12357_v17 = vsel %vm1538_vm2, %v12352_v39, 0  ;;  %17431 = vmatmul.mubr.msk.bf16.vlgmr.msra.gmra.mxu1 %vm1538_vm2, %v12250_v29  ;;  %17422 = vmatprep.subr.bf16.mxu0 %v18130_v19 }
0x1ac6   :  { %17441 = vmatpush3.bf16.xpose.msra.mxu1 %v12357_v17  ;;  %17442 = vmatprep.mubr.msk.bf16.mxu1 %vm18131_vm1, %v18130_v19 }
0x1ac7   :  { %17452 = vmatprep.subr.bf16.mxu1 %v18130_v19 }
0x1ac8   :  { %v12350_v1 = vpop.permute.xlu0 %12349 }
0x1acc   :  { %v12452_v61 = vpop.permute.xlu0 %12451 }
0x1acd   :  { %v12457_v41 = vsel %vm1538_vm2, %v12452_v61, 0  ;;  %17443 = vmatmul.mubr.msk.bf16.vlgmr.msra.gmra.mxu1 %vm1538_vm2, %v12350_v1  ;;  %v11958_v1 = vrot.slane %v11936_v14, %v18400_v32  ;;  %v11984_v61 = vcombine.low %v11840_v51, %v11841_v4 }
0x1ace   :  { %17453 = vmatpush3.bf16.xpose.msra.mxu1 %v12457_v41  ;;  %17454 = vmatprep.mubr.msk.bf16.mxu1 %vm18131_vm1, %v18130_v19  ;;  %v11872_v41 = vcombine.high %v11871_v48, %v11871_v48 }
0x1acf   :  { %17464 = vmatprep.subr.bf16.mxu1 %v18130_v19 }
0x1ad0   :  { %v12450_v24 = vpop.permute.xlu0 %12449 }
0x1ad5   :  { %17455 = vmatmul.mubr.msk.bf16.vlgmr.msra.gmra.mxu1 %vm1538_vm2, %v12450_v24 }
0x1ad6   :  { %17466 = vmatprep.mubr.msk.bf16.mxu1 %vm18131_vm1, %v18130_v19 }
0x1b3e   :  { %v11400_v27 = vpop.f32.mrf.mxu0 }
0x1b3f   :  { %v11756_v7 = vrot.slane %v11400_v27, %v18400_v32 }
0x1b40   :  { %v17366_v60 = vpop.f32.mrf.mxu0 }
0x1b41   :  { %v11757_v59 = vcombine.high %v11756_v7, %v11756_v7  ;;  %v11764_v12 = vrot.slane %v11756_v7, %v18400_v32 }
0x1b42   :  { %v11403_v43 = vpop.f32.mrf.mxu0 }
0x1b43   :  { %v11771_v53 = vrot.slane %v11757_v59, %v18400_v32  ;;  %v11772_v38 = vcombine.high %v11764_v12, %v11764_v12  ;;  %v12000_v59 = vrot.slane %v11984_v61, %v18400_v32 }
0x1b44   :  { %v17367_v42 = vpop.f32.mrf.mxu0 }
0x1b45   :  { %v11934_v33 = vcombine.low %v11764_v12, %v11771_v53  ;;  %v11935_v29 = vcombine.low %v11772_v38, %v11787_v57  ;;  %v11918_v42 = vcombine.high %v11917_v26, %v11917_v26  ;;  %v11886_v12 = vrot.slane %v11872_v41, %v18400_v32 }
0x1b46   :  { %v11496_v5 = vpop.f32.mrf.mxu0 }
0x1b47   :  { %v11802_v20 = vrot.slane %v11496_v5, %v18400_v32  ;;  %v11925_v5 = vrot.slane %v11917_v26, %v18400_v32  ;;  %v11932_v36 = vrot.slane %v11918_v42, %v18400_v32 }
0x1b48   :  { %v17378_v22 = vpop.f32.mrf.mxu0 }
0x1b49   :  { %v11803_v0 = vcombine.high %v11802_v20, %v11802_v20  ;;  %v11810_v37 = vrot.slane %v11802_v20, %v18400_v32  ;;  %v11944_v22 = vrot.slane %v11934_v33, %v18400_v32  ;;  %v12202_v33 = vpop.permute.xlu1 %12201 }
0x1b4a   :  { %v11499_v15 = vpop.f32.mrf.mxu0 }
0x1b4b   :  { %v11817_v40 = vrot.slane %v11803_v0, %v18400_v32  ;;  %v11818_v11 = vcombine.high %v11810_v37, %v11810_v37  ;;  %v11951_v15 = vrot.slane %v11935_v29, %v18400_v32 }
0x1b4c   :  { %v17379_v62 = vpop.f32.mrf.mxu0 }
0x1b4d   :  { %v11937_v9 = vcombine.low %v11810_v37, %v11817_v40  ;;  %v11983_v39 = vcombine.low %v11818_v11, %v11833_v55  ;;  %v11887_v37 = vcombine.high %v11879_v54, %v11879_v54  ;;  %v11933_v55 = vcombine.high %v11925_v5, %v11925_v5 }
0x1b4e   :  { %v11966_v40 = vcombine.low %v11944_v22, %v11951_v15 }
0x1b4f   :  { %v11965_v24 = vrot.slane %v11937_v9, %v18400_v32  ;;  %v11993_v20 = vrot.slane %v11983_v39, %v18400_v32  ;;  %v12035_v61 = vcombine.low %v11932_v36, %v11933_v55 }
0x1b50   :  { %v11974_v41 = vrot.slane %v11966_v40, %v18400_v32 }
0x1b51   :  { %v11967_v57 = vcombine.low %v11958_v1, %v11965_v24  ;;  %v12015_v14 = vcombine.low %v11993_v20, %v12000_v59  ;;  %v12032_v1 = vcombine.low %v11886_v12, %v11887_v37  ;;  %v12200_v12 = vpop.permute.xlu1 %12199 }
0x1b53   :  { %v11981_v48 = vrot.slane %v11967_v57, %v18400_v32  ;;  %v12063_v57 = vrot.slane %v12035_v61, %v18400_v32 }
0x1b7b   :  { %v11592_v23 = vpop.f32.mrf.mxu0 }
0x1b7c   :  { %v11848_v17 = vrot.slane %v11592_v23, %v18400_v32 }
0x1b7d   :  { %v17390_v56 = vpop.f32.mrf.mxu0  ;;  %v20785_v27 = vpop.f32.mrf.mxu1 }
0x1b7e   :  { %v11849_v60 = vcombine.high %v11848_v17, %v11848_v17  ;;  %v11856_v13 = vrot.slane %v11848_v17, %v18400_v32  ;;  %v12549_v43 = vsel %vm1907_vm5, %v20785_v27, -inf }
0x1b7f   :  { %v11595_v62 = vpop.f32.mrf.mxu0  ;;  %12550 = vmax.xlane.f32.xlu0 %v12549_v43  ;;  %v17420_v10 = vpop.f32.mrf.mxu1  ;;  %v12023_v43 = vrot.slane %v12015_v14, %v18400_v32 }
0x1b80   :  { %v11863_v7 = vrot.slane %v11849_v60, %v18400_v32  ;;  %v11864_v63 = vcombine.high %v11856_v13, %v11856_v13  ;;  %v11982_v10 = vcombine.low %v11974_v41, %v11981_v48 }
0x1b81   :  { %v17391_v16 = vpop.f32.mrf.mxu0  ;;  %v12196_v0 = vpop.f32.mrf.mxu1 }
0x1b82   :  { %v11985_v44 = vcombine.low %v11856_v13, %v11863_v7  ;;  %v11986_v46 = vcombine.low %v11864_v63, %v11879_v54  ;;  %v12042_v7 = vrot.slane %v12032_v1, %v18400_v32 }
0x1b83   :  { %v11688_v53 = vpop.f32.mrf.mxu0  ;;  %v17421_v38 = vpop.f32.mrf.mxu1 }
0x1b84   :  { %v12007_v11 = vrot.slane %v11985_v44, %v18400_v32  ;;  %v12014_v51 = vrot.slane %v11986_v46, %v18400_v32  ;;  %v11894_v4 = vrot.slane %v11688_v53, %v18400_v32  ;;  %v12302_v38 = vpop.permute.xlu1 %12301 }
0x1b85   :  { %v17402_v9 = vpop.f32.mrf.mxu0  ;;  %v20803_v26 = vpop.f32.mrf.mxu1 }
0x1b86   :  { %v12016_v29 = vcombine.low %v12007_v11, %v12014_v51  ;;  %v11895_v23 = vcombine.high %v11894_v4, %v11894_v4  ;;  %v11902_v39 = vrot.slane %v11894_v4, %v18400_v32  ;;  %v12555_v17 = vsel %vm1907_vm5, %v20803_v26, -inf }
0x1b87   :  { %v11691_v24 = vpop.f32.mrf.mxu0  ;;  %12556 = vmax.xlane.f32.xlu0 %v12555_v17  ;;  %v17432_v56 = vpop.f32.mrf.mxu1  ;;  %v12207_v4 = vsel %vm1538_vm2, %v12202_v33, 0 }
0x1b88   :  { %v12030_v54 = vrot.slane %v12016_v29, %v18400_v32  ;;  %v11909_v60 = vrot.slane %v11895_v23, %v18400_v32  ;;  %v11910_v13 = vcombine.high %v11902_v39, %v11902_v39  ;;  %v12300_v9 = vpop.permute.xlu1 %12299  ;;  %v10857_v56 = vadd.f32 %v20555_v35, %v20608_v28 }
0x1b89   :  { %v17403_v42 = vpop.f32.mrf.mxu0  ;;  %v12296_v22 = vpop.f32.mrf.mxu1 }
0x1b8a   :  { %v12033_v15 = vcombine.low %v11902_v39, %v11909_v60  ;;  %v12034_v62 = vcombine.low %v11910_v13, %v11925_v5  ;;  %v12031_v20 = vcombine.low %v12023_v43, %v12030_v54  ;;  %v12307_v39 = vsel %vm1538_vm2, %v12302_v38, 0 }
0x1b8b   :  { %v17433_v63 = vpop.f32.mrf.mxu1  ;;  %v10849_v60 = vadd.f32 %v20559_v25, %v20610_v2 }
0x1b8c   :  { %v12049_v16 = vrot.slane %v12033_v15, %v18400_v32  ;;  %v12056_v0 = vrot.slane %v12034_v62, %v18400_v32  ;;  %v12084_v59 = vpack.c.bf16 %v12031_v20, %v11982_v10  ;;  %v12402_v17 = vpop.permute.xlu1 %12401  ;;  %v10852_v62 = vadd.f32 %v20563_v45, %v20614_v49 }
0x1b8d   :  { %v20816_v44 = vpop.f32.mrf.mxu1  ;;  %v12407_v1 = vsel %vm1538_vm2, %v12402_v17, 0 }
0x1b8e   :  { %v12064_v46 = vcombine.low %v12042_v7, %v12049_v16  ;;  %v12065_v37 = vcombine.low %v12056_v0, %v12063_v57  ;;  %17412 = vmatprep.mubr.msk.bf16.mxu0 %vm1538_vm2, %v12084_v59 }
0x1b8f   :  { %v17444_v5 = vpop.f32.mrf.mxu1 }
0x1b90   :  { %v12072_v36 = vrot.slane %v12064_v46, %v18400_v32  ;;  %v12079_v55 = vrot.slane %v12065_v37, %v18400_v32  ;;  %v12400_v33 = vpop.permute.xlu1 %12399  ;;  %v12561_v46 = vsel %vm1907_vm5, %v20816_v44, -inf }
0x1b91   :  { %v12396_v40 = vpop.f32.mrf.mxu1 }
0x1b92   :  { %v12080_v53 = vcombine.low %v12072_v36, %v12079_v55 }
0x1b93   :  { %v17445_v14 = vpop.f32.mrf.mxu1 }
0x1b94   :  { %v12085_v11 = vpack.c.bf16 %v12080_v53, %v12080_v53  ;;  %v12502_v61 = vpop.permute.xlu1 %12501 }
0x1b95   :  { %v20821_v51 = vpop.f32.mrf.mxu1  ;;  %v12507_v41 = vsel %vm1538_vm2, %v12502_v61, 0 }
0x1b96   :  { %17413 = vmatmul.mubr.msk.bf16.vlgmr.msra.gmra.mxu0 %vm1538_vm2, %v12085_v11  ;;  %v12567_v5 = vsel %vm1907_vm5, %v20821_v51, -inf }
0x1b97   :  { %17423 = vmatpush3.bf16.xpose.msra.mxu0 %v12207_v4  ;;  %v17456_v48 = vpop.f32.mrf.mxu1  ;;  %17424 = vmatprep.mubr.msk.bf16.mxu0 %vm18131_vm1, %v18130_v19 }
0x1b98   :  { %17434 = vmatprep.subr.bf16.mxu0 %v18130_v19  ;;  %v12500_v24 = vpop.permute.xlu1 %12499 }
0x1b99   :  { %v12496_v29 = vpop.f32.mrf.mxu1 }
0x1b9b   :  { %v17457_v23 = vpop.f32.mrf.mxu1 }
0x1b9e   :  { %17425 = vmatmul.mubr.msk.bf16.vlgmr.msra.gmra.mxu0 %vm1538_vm2, %v12200_v12 }
0x1b9f   :  { %17435 = vmatpush3.bf16.xpose.msra.mxu0 %v12307_v39  ;;  %17436 = vmatprep.mubr.msk.bf16.mxu0 %vm18131_vm1, %v18130_v19 }
0x1ba0   :  { %17446 = vmatprep.subr.bf16.mxu0 %v18130_v19 }
0x1ba6   :  { %17437 = vmatmul.mubr.msk.bf16.vlgmr.msra.gmra.mxu0 %vm1538_vm2, %v12300_v9 }
0x1ba7   :  { %17447 = vmatpush3.bf16.xpose.msra.mxu0 %v12407_v1  ;;  %17448 = vmatprep.mubr.msk.bf16.mxu0 %vm18131_vm1, %v18130_v19 }
0x1ba8   :  { %17458 = vmatprep.subr.bf16.mxu0 %v18130_v19 }
0x1bae   :  { %17449 = vmatmul.mubr.msk.bf16.vlgmr.msra.gmra.mxu0 %vm1538_vm2, %v12400_v33 }
0x1baf   :  { %17459 = vmatpush3.bf16.xpose.msra.mxu0 %v12507_v41  ;;  %17460 = vmatprep.mubr.msk.bf16.mxu0 %vm18131_vm1, %v18130_v19 }
0x1bb0   :  { %17470 = vmatprep.subr.bf16.mxu0 %v18130_v19 }
0x1bb6   :  { %17461 = vmatmul.mubr.msk.bf16.vlgmr.msra.gmra.mxu0 %vm1538_vm2, %v12500_v24 }
0x1bb7   :  { %17472 = vmatprep.mubr.msk.bf16.mxu0 %vm18131_vm1, %v18130_v19 }
0x1c08   :  { %v12551_v43 = vpop.xlane.xlu0 %12550 }
0x1c09   :  { %v12573_v10 = vsub.f32 %v20785_v27, %v12551_v43 }
0x1c0b   :  { %v12581_v28 = vmul.f32 1.442695, %v12573_v10 }
0x1c0d   :  { %17992 = vpow2.f32 %v12581_v28 }
0x1c10   :  { %v12557_v20 = vpop.xlane.xlu0 %12556 }
0x1c11   :  { %v12575_v25 = vsub.f32 %v20803_v26, %v12557_v20 }
0x1c13   :  { %v12585_v0 = vmul.f32 1.442695, %v12575_v25 }
0x1c15   :  { %17994 = vpow2.f32 %v12585_v0 }
0x1c1a   :  { %v20866_v36 = vpop.eup %17992 }
0x1c1b   :  { %v12597_v53 = vsel %vm1907_vm5, %v20866_v36, 0.0 }
0x1c22   :  { %v20872_v38 = vpop.eup %17994 }
0x1c23   :  { %v12603_v4 = vsel %vm1907_vm5, %v20872_v38, 0.0 }
0x1c56   :  { %v17414_v54 = vpop.f32.mrf.mxu0 }
0x1c57   :  { %v20850_v13 = vadd.f32 %v17414_v54, %v10857_v56 }
0x1c58   :  { %v12132_v42 = vpop.f32.mrf.mxu0 }
0x1c59   :  { %v20852_v22 = vadd.f32 %v12132_v42, %v10849_v60 }
0x1c5a   :  { %v17415_v15 = vpop.f32.mrf.mxu0 }
0x1c5c   :  { %v12135_v7 = vpop.f32.mrf.mxu0 }
0x1c5d   :  { %v20857_v63 = vadd.f32 %v12135_v7, %v10852_v62 }
0x1c5e   :  { %v12243_v35 = vpop.f32.mrf.mxu0 }
0x1c5f   :  { %v12552_v2 = vsel %vm1907_vm5, %v12243_v35, -inf }
0x1c60   :  { %12553 = vmax.xlane.f32.xlu1 %v12552_v2  ;;  %v17426_v57 = vpop.f32.mrf.mxu0 }
0x1c62   :  { %v12246_v16 = vpop.f32.mrf.mxu0 }
0x1c64   :  { %v17427_v59 = vpop.f32.mrf.mxu0 }
0x1c66   :  { %v12343_v12 = vpop.f32.mrf.mxu0 }
0x1c67   :  { %v12558_v45 = vsel %vm1907_vm5, %v12343_v12, -inf }
0x1c68   :  { %v17438_v49 = vpop.f32.mrf.mxu0  ;;  %12559 = vmax.xlane.f32.xlu0 %v12558_v45 }
0x1c6a   :  { %v12346_v27 = vpop.f32.mrf.mxu0 }
0x1c6c   :  { %v17439_v37 = vpop.f32.mrf.mxu0  ;;  %12562 = vmax.xlane.f32.xlu0 %v12561_v46 }
0x1c6e   :  { %v12443_v26 = vpop.f32.mrf.mxu0 }
0x1c70   :  { %v17450_v55 = vpop.f32.mrf.mxu0  ;;  %12568 = vmax.xlane.f32.xlu0 %v12567_v5 }
0x1c71   :  { %12693 = vrot.lane.b32.xlu1 %v20042_v30, %s18136_s17  ;;  %v12564_v30 = vsel %vm1907_vm5, %v12443_v26, -inf }
0x1c72   :  { %v12446_v40 = vpop.f32.mrf.mxu0 }
0x1c74   :  { %v17451_v14 = vpop.f32.mrf.mxu0  ;;  %12598 = vadd.xlane.f32.xlu0 %v12597_v53 }
0x1c75   :  { %12741 = vrot.lane.b32.xlu1 %v20142_v8, %s18136_s17 }
0x1c76   :  { %v12543_v11 = vpop.f32.mrf.mxu0 }
0x1c77   :  { %v12570_v23 = vsel %vm1907_vm5, %v12543_v11, -inf }
0x1c78   :  { %v17462_v48 = vpop.f32.mrf.mxu0  ;;  %12604 = vadd.xlane.f32.xlu0 %v12603_v4 }
0x1c7a   :  { %v12546_v9 = vpop.f32.mrf.mxu0 }
0x1c7c   :  { %v17463_v29 = vpop.f32.mrf.mxu0 }
0x1c99   :  { %12565 = vmax.xlane.f32.xlu1 %v12564_v30 }
0x1c9d   :  { %12571 = vmax.xlane.f32.xlu1 %v12570_v23 }
0x1cae   :  { %12789 = vrot.lane.b32.xlu1 %v20167_v6, %s18136_s17 }
0x1ce9   :  { %v12554_v39 = vpop.xlane.xlu1 %12553 }
0x1cea   :  { %v12574_v17 = vsub.f32 %v12243_v35, %v12554_v39 }
0x1cec   :  { %v12583_v8 = vmul.f32 1.442695, %v12574_v17 }
0x1ced   :  { %v12694_v33 = vpop.permute.xlu1 %12693 }
0x1cee   :  { %17996 = vpow2.f32 %v12583_v8  ;;  %v12699_v1 = vand.u32 %v12694_v33, %v18675_v50 }
0x1cf0   :  { %17471 = vmatpush3.bf16.msra.mxu0 %v12699_v1 }
0x1cf1   :  { %v12560_v61 = vpop.xlane.xlu0 %12559  ;;  %17482 = vmatprep.subr.bf16.mxu0 %v18130_v19  ;;  %v12742_v7 = vpop.permute.xlu1 %12741 }
0x1cf2   :  { %v12747_v9 = vand.u32 %v12742_v7, %v18675_v50 }
0x1cf5   :  { %v12563_v41 = vpop.xlane.xlu0 %12562 }
0x1cf6   :  { %v12577_v24 = vsub.f32 %v20816_v44, %v12563_v41 }
0x1cf8   :  { %v12589_v56 = vmul.f32 1.442695, %v12577_v24 }
0x1cf9   :  { %v12569_v54 = vpop.xlane.xlu0 %12568 }
0x1cfa   :  { %17998 = vpow2.f32 %v12589_v56  ;;  %v12579_v60 = vsub.f32 %v20821_v51, %v12569_v54  ;;  %v12576_v51 = vsub.f32 %v12343_v12, %v12560_v61 }
0x1cfb   :  { %v17997_v6 = vpop.eup %17996 }
0x1cfc   :  { %v12593_v43 = vmul.f32 1.442695, %v12579_v60  ;;  %v12600_v42 = vsel %vm1907_vm5, %v17997_v6, 0.0  ;;  %v12587_v20 = vmul.f32 1.442695, %v12576_v51 }
0x1cfd   :  { %12601 = vadd.xlane.f32.xlu1 %v12600_v42  ;;  %v12599_v49 = vpop.xlane.xlu0 %12598 }
0x1cfe   :  { %18000 = vpow2.f32 %v12593_v43 }
0x1cff   :  { %18002 = vpow2.f32 %v12587_v20 }
0x1d01   :  { %v12605_v27 = vpop.xlane.xlu0 %12604 }
0x1d07   :  { %v20887_v15 = vpop.eup %17998 }
0x1d08   :  { %v12609_v62 = vsel %vm1907_vm5, %v20887_v15, 0.0 }
0x1d09   :  { %12610 = vadd.xlane.f32.xlu0 %v12609_v62 }
0x1d0b   :  { %v20891_v10 = vpop.eup %18000 }
0x1d0c   :  { %v12615_v44 = vsel %vm1907_vm5, %v20891_v10, 0.0 }
0x1d0d   :  { %12616 = vadd.xlane.f32.xlu0 %v12615_v44 }
0x1d0e   :  { %12885 = vrot.lane.b32.xlu1 %v20192_v31, %s18136_s17  ;;  %v20903_v31 = vpop.eup %18002 }
0x1d0f   :  { %v12606_v0 = vsel %vm1907_vm5, %v20903_v31, 0.0 }
0x1d22   :  { %v12566_v35 = vpop.xlane.xlu1 %12565 }
0x1d23   :  { %v12578_v28 = vsub.f32 %v12443_v26, %v12566_v35  ;;  %12645 = vrot.lane.b32.xlu0 %v19995_v21, %s18136_s17 }
0x1d25   :  { %v12591_v25 = vmul.f32 1.442695, %v12578_v28 }
0x1d26   :  { %v12572_v2 = vpop.xlane.xlu1 %12571 }
0x1d27   :  { %18004 = vpow2.f32 %v12591_v25  ;;  %v12580_v57 = vsub.f32 %v12543_v11, %v12572_v2  ;;  %12837 = vrot.lane.b32.xlu0 %v20169_v52, %s18136_s17  ;;  %v17720_v25 = vld [vmem:[%s21617_s6 + $0x18] sm:$0xff]  }
0x1d29   :  { %v12595_v16 = vmul.f32 1.442695, %v12580_v57 }
0x1d2b   :  { %18006 = vpow2.f32 %v12595_v16  ;;  %12933 = vrot.lane.b32.xlu0 %v20187_v47, %s18136_s17  ;;  %v12790_v47 = vpop.permute.xlu1 %12789 }
0x1d2c   :  { %v12795_v53 = vand.u32 %v12790_v47, %v18675_v50 }
0x1d32   :  { %12607 = vadd.xlane.f32.xlu1 %v12606_v0 }
0x1d34   :  { %v20907_v59 = vpop.eup %18004 }
0x1d35   :  { %v12612_v21 = vsel %vm1907_vm5, %v20907_v59, 0.0 }
0x1d36   :  { %12613 = vadd.xlane.f32.xlu1 %v12612_v21 }
0x1d38   :  { %v20911_v12 = vpop.eup %18006 }
0x1d39   :  { %v12618_v52 = vsel %vm1907_vm5, %v20911_v12, 0.0 }
0x1d3a   :  { %12619 = vadd.xlane.f32.xlu1 %v12618_v52 }
0x1d4b   :  { %12981 = vrot.lane.b32.xlu1 %v20228_v34, %s18136_s17  ;;  %s21634_s17 = sld [smem:[#allocation34_spill]] }
0x1d86   :  { %v12602_v45 = vpop.xlane.xlu1 %12601 }
0x1d87   :  { %18008 = vrcp.f32 %v12602_v45 }
0x1d88   :  { %18010 = vrcp.f32 %v12599_v49 }
0x1d89   :  { %18012 = vrcp.f32 %v12605_v27 }
0x1d8a   :  { %v12886_v24 = vpop.permute.xlu1 %12885 }
0x1d8b   :  { %v12891_v62 = vand.u32 %v12886_v24, %v18675_v50 }
0x1d92   :  { %v12611_v46 = vpop.xlane.xlu0 %12610 }
0x1d93   :  { %18014 = vrcp.f32 %v12611_v46 }
0x1d94   :  { %v18009_v37 = vpop.eup %18008 }
0x1d95   :  { %v12630_v26 = vmul.f32 %v18009_v37, %v17997_v6  ;;  %v18011_v55 = vpop.eup %18010 }
0x1d96   :  { %v12617_v5 = vpop.xlane.xlu0 %12616  ;;  %v12629_v14 = vmul.f32 %v18011_v55, %v20866_v36  ;;  %v18013_v48 = vpop.eup %18012 }
0x1d97   :  { %v12638_v40 = vpack.c.bf16 %v12630_v26, %v12630_v26  ;;  %v12631_v36 = vmul.f32 %v18013_v48, %v20872_v38  ;;  %18016 = vrcp.f32 %v12617_v5 }
0x1d98   :  { %v12637_v4 = vpack.c.bf16 %v12629_v14, %v12629_v14 }
0x1d99   :  { %17473 = vmatmul.mubr.msk.bf16.vlgmr.msra.gmra.mxu0 %vm2004_vm6, %v12638_v40  ;;  %v12639_v30 = vpack.c.bf16 %v12631_v36, %v12631_v36 }
0x1d9a   :  { %17483 = vmatpush3.bf16.msra.mxu0 %v12795_v53  ;;  %v12646_v34 = vpop.permute.xlu0 %12645  ;;  %17484 = vmatprep.mubr.msk.bf16.mxu0 %vm18131_vm1, %v18130_v19 }
0x1d9b   :  { %v12651_v11 = vand.u32 %v12646_v34, %v18675_v50  ;;  %17494 = vmatprep.subr.bf16.mxu0 %v18130_v19 }
0x1d9d   :  { %17465 = vmatpush3.bf16.msra.mxu1 %v12651_v11 }
0x1d9e   :  { %17476 = vmatprep.subr.bf16.mxu1 %v18130_v19  ;;  %v12838_v29 = vpop.permute.xlu0 %12837 }
0x1d9f   :  { %v12843_v39 = vand.u32 %v12838_v29, %v18675_v50 }
0x1da0   :  { %17467 = vmatmul.mubr.msk.bf16.vlgmr.msra.gmra.mxu1 %vm2004_vm6, %v12637_v4  ;;  %v18015_v23 = vpop.eup %18014 }
0x1da1   :  { %17477 = vmatpush3.bf16.msra.mxu1 %v12747_v9  ;;  %17478 = vmatprep.mubr.msk.bf16.mxu1 %vm18131_vm1, %v18130_v19  ;;  %v12633_v17 = vmul.f32 %v18015_v23, %v20887_v15 }
0x1da2   :  { %17488 = vmatprep.subr.bf16.mxu1 %v18130_v19  ;;  %v12934_v8 = vpop.permute.xlu0 %12933 }
0x1da3   :  { %v12641_v38 = vpack.c.bf16 %v12633_v17, %v12633_v17  ;;  %v12939_v1 = vand.u32 %v12934_v8, %v18675_v50 }
0x1da4   :  { %v18017_v33 = vpop.eup %18016 }
0x1da5   :  { %v12635_v61 = vmul.f32 %v18017_v33, %v20891_v10 }
0x1da7   :  { %v12643_v41 = vpack.c.bf16 %v12635_v61, %v12635_v61 }
0x1da8   :  { %17479 = vmatmul.mubr.msk.bf16.vlgmr.msra.gmra.mxu1 %vm2004_vm6, %v12639_v30 }
0x1da9   :  { %17489 = vmatpush3.bf16.msra.mxu1 %v12843_v39  ;;  %17490 = vmatprep.mubr.msk.bf16.mxu1 %vm18131_vm1, %v18130_v19 }
0x1daa   :  { %17500 = vmatprep.subr.bf16.mxu1 %v18130_v19 }
0x1db0   :  { %17491 = vmatmul.mubr.msk.bf16.vlgmr.msra.gmra.mxu1 %vm2004_vm6, %v12641_v38 }
0x1db1   :  { %17501 = vmatpush3.bf16.msra.mxu1 %v12939_v1  ;;  %17502 = vmatprep.mubr.msk.bf16.mxu1 %vm18131_vm1, %v18130_v19 }
0x1db2   :  { %17512 = vmatprep.subr.bf16.mxu1 %v17720_v25 }
0x1db8   :  { %17503 = vmatmul.mubr.msk.bf16.vlgmr.msra.gmra.mxu1 %vm2004_vm6, %v12643_v41 }
0x1db9   :  { %17513 = vmatpush3.bf16.msra.mxu1 %v17720_v25 }
0x1dbb   :  { %v12608_v56 = vpop.xlane.xlu1 %12607 }
0x1dbc   :  { %18018 = vrcp.f32 %v12608_v56 }
0x1dbf   :  { %v12614_v54 = vpop.xlane.xlu1 %12613 }
0x1dc0   :  { %18020 = vrcp.f32 %v12614_v54 }
0x1dc3   :  { %v12620_v60 = vpop.xlane.xlu1 %12619 }
0x1dc4   :  { %18022 = vrcp.f32 %v12620_v60 }
0x1dc7   :  { %v12982_v44 = vpop.permute.xlu1 %12981 }
0x1dc8   :  { %v12987_v7 = vand.u32 %v12982_v44, %v18675_v50 }
0x1dc9   :  { %v18019_v6 = vpop.eup %18018 }
0x1dca   :  { %v12632_v43 = vmul.f32 %v18019_v6, %v20903_v31 }
0x1dcc   :  { %v12640_v42 = vpack.c.bf16 %v12632_v43, %v12632_v43 }
0x1dcd   :  { %v18021_v15 = vpop.eup %18020 }
0x1dce   :  { %17485 = vmatmul.mubr.msk.bf16.vlgmr.msra.gmra.mxu0 %vm2004_vm6, %v12640_v42  ;;  %v12634_v10 = vmul.f32 %v18021_v15, %v20907_v59 }
0x1dcf   :  { %17495 = vmatpush3.bf16.msra.mxu0 %v12891_v62  ;;  %17496 = vmatprep.mubr.msk.bf16.mxu0 %vm18131_vm1, %v18130_v19 }
0x1dd0   :  { %17506 = vmatprep.subr.bf16.mxu0 %v18130_v19  ;;  %v12642_v51 = vpack.c.bf16 %v12634_v10, %v12634_v10 }
0x1dd1   :  { %v18023_v20 = vpop.eup %18022 }
0x1dd2   :  { %v12636_v35 = vmul.f32 %v18023_v20, %v20911_v12 }
0x1dd4   :  { %v12644_v28 = vpack.c.bf16 %v12636_v35, %v12636_v35 }
0x1dd6   :  { %17497 = vmatmul.mubr.msk.bf16.vlgmr.msra.gmra.mxu0 %vm2004_vm6, %v12642_v51 }
0x1dd7   :  { %17507 = vmatpush3.bf16.msra.mxu0 %v12987_v7  ;;  %17508 = vmatprep.mubr.msk.bf16.mxu0 %vm18131_vm1, %v18130_v19 }
0x1dde   :  { %17509 = vmatmul.mubr.msk.bf16.vlgmr.msra.gmra.mxu0 %vm2004_vm6, %v12644_v28 }
0x1e59   :  { %v12735_v2 = vpop.f32.mrf.mxu0 }
0x1e5a   :  { %v13066_v53 = vrot.slane %v12735_v2, %v18400_v32 }
0x1e5b   :  { %v17474_v57 = vpop.f32.mrf.mxu0 }
0x1e5c   :  { %v13067_v11 = vcombine.high %v13066_v53, %v13066_v53  ;;  %v13074_v48 = vrot.slane %v13066_v53, %v18400_v32 }
0x1e5d   :  { %v12738_v16 = vpop.f32.mrf.mxu0 }
0x1e5e   :  { %v13081_v39 = vrot.slane %v13067_v11, %v18400_v32  ;;  %v13082_v38 = vcombine.high %v13074_v48, %v13074_v48 }
0x1e5f   :  { %v17475_v31 = vpop.f32.mrf.mxu0 }
0x1e60   :  { %v12687_v0 = vpop.f32.mrf.mxu1  ;;  %v13223_v62 = vcombine.low %v13081_v39, %v13082_v38 }
0x1e61   :  { %v13043_v34 = vrot.slane %v12687_v0, %v18400_v32 }
0x1e62   :  { %v17468_v50 = vpop.f32.mrf.mxu1 }
0x1e63   :  { %v13044_v36 = vcombine.high %v13043_v34, %v13043_v34  ;;  %v13051_v29 = vrot.slane %v13043_v34, %v18400_v32 }
0x1e64   :  { %v12690_v59 = vpop.f32.mrf.mxu1 }
0x1e65   :  { %v13058_v41 = vrot.slane %v13044_v36, %v18400_v32  ;;  %v13059_v24 = vcombine.high %v13051_v29, %v13051_v29 }
0x1e66   :  { %v17469_v21 = vpop.f32.mrf.mxu1 }
0x1e67   :  { %v13221_v51 = vcombine.low %v13051_v29, %v13058_v41  ;;  %v13222_v20 = vcombine.low %v13059_v24, %v13074_v48 }
0x1e68   :  { %v12783_v52 = vpop.f32.mrf.mxu1 }
0x1e69   :  { %v13089_v14 = vrot.slane %v12783_v52, %v18400_v32  ;;  %v13245_v52 = vrot.slane %v13223_v62, %v18400_v32 }
0x1e6a   :  { %v17480_v47 = vpop.f32.mrf.mxu1 }
0x1e6b   :  { %v13090_v4 = vcombine.high %v13089_v14, %v13089_v14  ;;  %v13097_v56 = vrot.slane %v13089_v14, %v18400_v32  ;;  %v13231_v47 = vrot.slane %v13221_v51, %v18400_v32 }
0x1e6c   :  { %v12786_v45 = vpop.f32.mrf.mxu1 }
0x1e6d   :  { %v13104_v17 = vrot.slane %v13090_v4, %v18400_v32  ;;  %v13105_v7 = vcombine.high %v13097_v56, %v13097_v56  ;;  %v13238_v45 = vrot.slane %v13222_v20, %v18400_v32 }
0x1e6e   :  { %v17481_v49 = vpop.f32.mrf.mxu1 }
0x1e6f   :  { %v13224_v43 = vcombine.low %v13097_v56, %v13104_v17  ;;  %v13253_v11 = vcombine.low %v13231_v47, %v13238_v45 }
0x1e70   :  { %v12879_v27 = vpop.f32.mrf.mxu1 }
0x1e71   :  { %v13135_v9 = vrot.slane %v12879_v27, %v18400_v32  ;;  %v13252_v2 = vrot.slane %v13224_v43, %v18400_v32 }
0x1e72   :  { %v17492_v12 = vpop.f32.mrf.mxu1 }
0x1e73   :  { %v13136_v33 = vcombine.high %v13135_v9, %v13135_v9  ;;  %v13143_v42 = vrot.slane %v13135_v9, %v18400_v32 }
0x1e74   :  { %v12882_v46 = vpop.f32.mrf.mxu1 }
0x1e75   :  { %v13150_v10 = vrot.slane %v13136_v33, %v18400_v32  ;;  %v13151_v57 = vcombine.high %v13143_v42, %v13143_v42 }
0x1e76   :  { %v17493_v37 = vpop.f32.mrf.mxu1 }
0x1e77   :  { %v13272_v0 = vcombine.low %v13143_v42, %v13150_v10 }
0x1e78   :  { %v12975_v26 = vpop.f32.mrf.mxu1 }
0x1e79   :  { %v13181_v44 = vrot.slane %v12975_v26, %v18400_v32  ;;  %v13254_v26 = vcombine.low %v13245_v52, %v13252_v2  ;;  %v13294_v53 = vrot.slane %v13272_v0, %v18400_v32 }
0x1e7a   :  { %v17504_v5 = vpop.f32.mrf.mxu1 }
0x1e7b   :  { %v13182_v50 = vcombine.high %v13181_v44, %v13181_v44  ;;  %v13189_v5 = vrot.slane %v13181_v44, %v18400_v32 }
0x1e7c   :  { %v12978_v55 = vpop.f32.mrf.mxu1 }
0x1e7d   :  { %v13196_v14 = vrot.slane %v13182_v50, %v18400_v32 }
0x1e7e   :  { %v17505_v40 = vpop.f32.mrf.mxu1 }
0x1e7f   :  { %v13320_v17 = vcombine.low %v13189_v5, %v13196_v14 }
0x1e8e   :  { %v12831_v30 = vpop.f32.mrf.mxu0 }
0x1e8f   :  { %v13112_v23 = vrot.slane %v12831_v30, %v18400_v32  ;;  %v13268_v30 = vrot.slane %v13254_v26, %v18400_v32 }
0x1e90   :  { %v17486_v8 = vpop.f32.mrf.mxu0 }
0x1e91   :  { %v13113_v1 = vcombine.high %v13112_v23, %v13112_v23  ;;  %v13120_v61 = vrot.slane %v13112_v23, %v18400_v32  ;;  %v13197_v23 = vcombine.high %v13189_v5, %v13189_v5 }
0x1e92   :  { %v12834_v54 = vpop.f32.mrf.mxu0 }
0x1e93   :  { %v13127_v60 = vrot.slane %v13113_v1, %v18400_v32  ;;  %v13128_v6 = vcombine.high %v13120_v61, %v13120_v61  ;;  %v13270_v16 = vcombine.low %v13105_v7, %v13120_v61  ;;  %v13261_v1 = vrot.slane %v13253_v11, %v18400_v32 }
0x1e94   :  { %v17487_v15 = vpop.f32.mrf.mxu0 }
0x1e95   :  { %v13271_v35 = vcombine.low %v13127_v60, %v13128_v6  ;;  %v13280_v55 = vrot.slane %v13270_v16, %v18400_v32  ;;  %v13269_v43 = vcombine.low %v13261_v1, %v13268_v30  ;;  %v13336_v15 = vrot.slane %v13320_v17, %v18400_v32  ;;  %v17723_v30 = vld [vmem:[%s21619_s27 + $0x8] sm:$0xff]  }
0x1e96   :  { %v12927_v28 = vpop.f32.mrf.mxu0 }
0x1e97   :  { %v13158_v25 = vrot.slane %v12927_v28, %v18400_v32  ;;  %v13287_v49 = vrot.slane %v13271_v35, %v18400_v32 }
0x1e98   :  { %v17498_v31 = vpop.f32.mrf.mxu0 }
0x1e99   :  { %v13159_v59 = vcombine.high %v13158_v25, %v13158_v25  ;;  %v13166_v21 = vrot.slane %v13158_v25, %v18400_v32  ;;  %v13302_v4 = vcombine.low %v13280_v55, %v13287_v49  ;;  %v16160_v31 = vld [vmem:[%s21618_s12] ss:$0 sm:$0xff] }
0x1e9a   :  { %v12930_v27 = vpop.f32.mrf.mxu0 }
0x1e9b   :  { %v13173_v12 = vrot.slane %v13159_v59, %v18400_v32  ;;  %v13174_v46 = vcombine.high %v13166_v21, %v13166_v21  ;;  %v13273_v37 = vcombine.low %v13151_v57, %v13166_v21  ;;  %v13310_v61 = vrot.slane %v13302_v4, %v18400_v32 }
0x1e9c   :  { %v17499_v40 = vpop.f32.mrf.mxu0 }
0x1e9d   :  { %v13301_v34 = vrot.slane %v13273_v37, %v18400_v32  ;;  %v13319_v36 = vcombine.low %v13173_v12, %v13174_v46 }
0x1e9e   :  { %v13023_v48 = vpop.f32.mrf.mxu0 }
0x1e9f   :  { %v13303_v9 = vcombine.low %v13294_v53, %v13301_v34  ;;  %v13204_v29 = vrot.slane %v13023_v48, %v18400_v32  ;;  %v13329_v24 = vrot.slane %v13319_v36, %v18400_v32  ;;  %v17721_v36 = vld [vmem:[%s21619_s27 + $0x18] sm:$0xff]  }
0x1ea0   :  { %v17510_v39 = vpop.f32.mrf.mxu0  ;;  %17518 = vmatprep.subr.bf16.mxu0 %v17721_v36 }
0x1ea1   :  { %v13317_v8 = vrot.slane %v13303_v9, %v18400_v32  ;;  %v13205_v38 = vcombine.high %v13204_v29, %v13204_v29  ;;  %v13212_v33 = vrot.slane %v13204_v29, %v18400_v32  ;;  %v13351_v44 = vcombine.low %v13329_v24, %v13336_v15  ;;  %v17722_v29 = vld [vmem:[%s21619_s27 + $0x10] sm:$0xff]   ;;  %17519 = vmatpush3.bf16.msra.mxu0 %v17721_v36  ;;  %v17725_v39 = vld [vmem:[%s21620_s26 + $0x18] sm:$0xff]  }
0x1ea2   :  { %v13026_v41 = vpop.f32.mrf.mxu0  ;;  %17520 = vmatprep.subr.bf16.mxu0 %v17722_v29  ;;  %17530 = vmatprep.subr.bf16.mxu1 %v17725_v39 }
0x1ea3   :  { %v13219_v56 = vrot.slane %v13205_v38, %v18400_v32  ;;  %v13220_v54 = vcombine.high %v13212_v33, %v13212_v33  ;;  %v13321_v60 = vcombine.low %v13197_v23, %v13212_v33  ;;  %v13318_v42 = vcombine.low %v13310_v61, %v13317_v8  ;;  %v17724_v23 = vld [vmem:[%s21619_s27] sm:$0xff]  }
0x1ea4   :  { %v17511_v6 = vpop.f32.mrf.mxu0  ;;  %v13359_v35 = vrot.slane %v13351_v44, %v18400_v32 }
0x1ea5   :  { %v13322_v62 = vcombine.low %v13219_v56, %v13220_v54  ;;  %v13371_v10 = vpack.c.bf16 %v13318_v42, %v13269_v43  ;;  %v13343_v51 = vrot.slane %v13321_v60, %v18400_v32  ;;  %17521 = vmatpush3.bf16.msra.mxu0 %v17722_v29  ;;  %v16161_v6 = vld [vmem:[%s21621_s28] ss:$0 sm:$0xff] }
0x1ea6   :  { %17522 = vmatprep.subr.bf16.mxu0 %v17723_v30 }
0x1ea7   :  { %v13350_v20 = vrot.slane %v13322_v62, %v18400_v32  ;;  %17514 = vmatprep.mubr.msk.bf16.mxu1 %vm1538_vm2, %v13371_v10 }
0x1ea9   :  { %v13352_v7 = vcombine.low %v13343_v51, %v13350_v20  ;;  %17523 = vmatpush3.bf16.msra.mxu0 %v17723_v30  ;;  %v16162_v51 = vld [vmem:[%s21622_s1] ss:$0 sm:$0xff] }
0x1eaa   :  { %17524 = vmatprep.subr.bf16.mxu0 %v17724_v23 }
0x1eab   :  { %v13366_v28 = vrot.slane %v13352_v7, %v18400_v32 }
0x1ead   :  { %v13367_v25 = vcombine.low %v13359_v35, %v13366_v28  ;;  %17525 = vmatpush3.bf16.msra.mxu0 %v17724_v23 }
0x1eaf   :  { %v13372_v2 = vpack.c.bf16 %v13367_v25, %v13367_v25 }
0x1eb1   :  { %17515 = vmatmul.mubr.msk.bf16.vlgmr.msra.gmra.mxu1 %vm1538_vm2, %v13372_v2 }
0x1eb2   :  { %17531 = vmatpush3.bf16.msra.mxu1 %v17725_v39 }
0x1f71   :  { %v17516_v57 = vpop.f32.mrf.mxu1 }
0x1f72   :  { %v13435_v16 = vadd.f32 %v17516_v57, %v20850_v13  ;;  %v17726_v57 = vld [vmem:[%s21620_s26 + $0x10] sm:$0xff]  }
0x1f73   :  { %v13419_v0 = vpop.f32.mrf.mxu1  ;;  %17532 = vmatprep.subr.bf16.mxu1 %v17726_v57 }
0x1f74   :  { %v13433_v50 = vadd.f32 %v13419_v0, %v20852_v22  ;;  %v13445_v21 = vadd.f32 %v16160_v31, %v13435_v16  ;;  %17533 = vmatpush3.bf16.msra.mxu1 %v17726_v57  ;;  %v17727_v16 = vld [vmem:[%s21620_s26 + $0x8] sm:$0xff]   ;;  %v17735_v57 = vld [vmem:[%s21625_s7] sm:$0xff]  }
0x1f75   :  { %v17517_v59 = vpop.f32.mrf.mxu1  ;;  %17534 = vmatprep.subr.bf16.mxu1 %v17727_v16 }
0x1f76   :  { %v13443_v52 = vadd.f32 %v16160_v31, %v13433_v50  ;;  %v13448_v46 = vadd.f32 %v13445_v21, %v19682_v58  ;;  %v16163_v50 = vld [vmem:[%s21623_s2] ss:$0 sm:$0xff] }
0x1f77   :  { %v13422_v47 = vpop.f32.mrf.mxu1 }
0x1f78   :  { %v13434_v45 = vadd.f32 %v13422_v47, %v20857_v63  ;;  %v13446_v49 = vadd.f32 %v13443_v52, %v19684_v3  ;;  %v13455_v22 = vsel %vm251_vm0, %v13448_v46, 0.0  ;;  %17535 = vmatpush3.bf16.msra.mxu1 %v17727_v16 }
0x1f7a   :  { %v13444_v27 = vadd.f32 %v16160_v31, %v13434_v45  ;;  %v13449_v12 = vsel %vm251_vm0, %v13446_v49, 0.0  ;;  %v17728_v31 = vld [vmem:[%s21620_s26] sm:$0xff]  }
0x1f7b   :  { %13450 = vadd.xlane.f32.xlu0 %v13449_v12  ;;  %17536 = vmatprep.subr.bf16.mxu1 %v17728_v31 }
0x1f7c   :  { %v13447_v13 = vadd.f32 %v13444_v27, %v19686_v18  ;;  %17537 = vmatpush3.bf16.msra.mxu1 %v17728_v31 }
0x1f7e   :  { %v13452_v37 = vsel %vm251_vm0, %v13447_v13, 0.0 }
0x1f7f   :  { %13453 = vadd.xlane.f32.xlu1 %v13452_v37  ;;  %13456 = vadd.xlane.f32.xlu0 %v13455_v22 }
0x2004   :  { %v13451_v26 = vpop.xlane.xlu0 %13450 }
0x2005   :  { %v13458_v5 = vmul.f32 0.015625, %v13451_v26  ;;  %v16170_v26 = vld [vmem:[%s21624_s10] ss:$0 sm:$0xff] }
0x2007   :  { %v13461_v55 = vsub.f32 %v13446_v49, %v13458_v5 }
0x2008   :  { %v13454_v63 = vpop.xlane.xlu1 %13453  ;;  %v13457_v3 = vpop.xlane.xlu0 %13456 }
0x2009   :  { %v13459_v40 = vmul.f32 0.015625, %v13454_v63  ;;  %v13460_v53 = vmul.f32 0.015625, %v13457_v3  ;;  %v13464_v14 = vmul.f32 %v13461_v55, %v13461_v55 }
0x200b   :  { %v13462_v58 = vsub.f32 %v13447_v13, %v13459_v40  ;;  %v13463_v34 = vsub.f32 %v13448_v46, %v13460_v53  ;;  %v13467_v18 = vsel %vm251_vm0, %v13464_v14, 0.0 }
0x200c   :  { %13468 = vadd.xlane.f32.xlu0 %v13467_v18 }
0x200d   :  { %v13465_v11 = vmul.f32 %v13462_v58, %v13462_v58  ;;  %v13466_v4 = vmul.f32 %v13463_v34, %v13463_v34 }
0x200f   :  { %v13470_v48 = vsel %vm251_vm0, %v13465_v11, 0.0  ;;  %v13473_v9 = vsel %vm251_vm0, %v13466_v4, 0.0 }
0x2010   :  { %13471 = vadd.xlane.f32.xlu0 %v13470_v48  ;;  %13474 = vadd.xlane.f32.xlu1 %v13473_v9 }
0x2095   :  { %v13469_v17 = vpop.xlane.xlu0 %13468 }
0x2096   :  { %v13476_v8 = vmul.f32 0.015625, %v13469_v17 }
0x2098   :  { %v13479_v38 = vadd.f32 1e-05, %v13476_v8 }
0x2099   :  { %v13475_v33 = vpop.xlane.xlu1 %13474  ;;  %v13472_v1 = vpop.xlane.xlu0 %13471 }
0x209a   :  { %18024 = vrsqrt.f32 %v13479_v38  ;;  %v13478_v61 = vmul.f32 0.015625, %v13475_v33  ;;  %v13477_v41 = vmul.f32 0.015625, %v13472_v1 }
0x209c   :  { %v13481_v24 = vadd.f32 1e-05, %v13478_v61  ;;  %v13480_v56 = vadd.f32 1e-05, %v13477_v41 }
0x209e   :  { %18026 = vrsqrt.f32 %v13481_v24 }
0x209f   :  { %18028 = vrsqrt.f32 %v13480_v56  ;;  %v17729_v56 = vld [vmem:[%s21625_s7 + $0x18] sm:$0xff]  }
0x20a0   :  { %17542 = vmatprep.subr.bf16.mxu0 %v17729_v56 }
0x20a7   :  { %v18025_v54 = vpop.eup %18024 }
0x20a8   :  { %v13485_v60 = vmul.f32 %v18025_v54, %v13461_v55  ;;  %v16179_v54 = vld.sshfl [vmem:[%s21626_s11] sm:$0x13 pattern:$0x75316420] }
0x20aa   :  { %v13495_v10 = vmul.f32 %v16161_v6, %v13485_v60  ;;  %v13922_v60 = vcombine.high %v16179_v54, %v16179_v54 }
0x20ab   :  { %v18027_v43 = vpop.eup %18026 }
0x20ac   :  { %v18029_v42 = vpop.eup %18028  ;;  %v13487_v15 = vmul.f32 %v18027_v43, %v13463_v34  ;;  %v13505_v35 = vadd.f32 %v16162_v51, %v13495_v10  ;;  %v17730_v43 = vld [vmem:[%s21625_s7 + $0x38] sm:$0xff]  }
0x20ad   :  { %v13486_v62 = vmul.f32 %v18029_v42, %v13462_v58  ;;  %v17731_v42 = vld [vmem:[%s21625_s7 + $0x10] sm:$0xff]   ;;  %17554 = vmatprep.subr.bf16.mxu1 %v17730_v43 }
0x20ae   :  { %v13497_v44 = vmul.f32 %v16161_v6, %v13487_v15  ;;  %v17732_v15 = vld [vmem:[%s21625_s7 + $0x30] sm:$0xff]  }
0x20af   :  { %v13496_v20 = vmul.f32 %v16161_v6, %v13486_v62  ;;  %v21051_v6 = vrot.slane %v16179_v54, %v18400_v32  ;;  %v21057_v62 = vrot.slane %v13922_v60, %v18400_v32 }
0x20b0   :  { %v13507_v7 = vadd.f32 %v16162_v51, %v13497_v44  ;;  %v17733_v44 = vld [vmem:[%s21625_s7 + $0x8] sm:$0xff]  }
0x20b1   :  { %v13506_v28 = vadd.f32 %v16162_v51, %v13496_v20  ;;  %v21061_v10 = vcombine.high %v21051_v6, %v21051_v6  ;;  %v14046_v51 = vcombine.low %v21051_v6, %v21057_v62 }
0x20b2   :  { %v13509_v25 = vpack.c.bf16 %v13507_v7, %v13507_v7 }
0x20b3   :  { %v13508_v2 = vpack.c.bf16 %v13506_v28, %v13505_v35  ;;  %v14047_v20 = vcombine.low %v21061_v10, %v21051_v6 }
0x20b5   :  { %17526 = vmatprep.mubr.msk.bf16.mxu0 %vm251_vm0, %v13508_v2 }
0x20b6   :  { %17527 = vmatmul.mubr.msk.bf16.vlgmr.msra.gmra.mxu0 %vm251_vm0, %v13509_v25  ;;  %v14062_v25 = vrot.slane %v14047_v20, %v18400_v32 }
0x20b7   :  { %17543 = vmatpush3.bf16.msra.mxu0 %v17729_v56 }
0x20b8   :  { %17544 = vmatprep.subr.bf16.mxu0 %v17731_v42 }
0x20bb   :  { %17545 = vmatpush3.bf16.msra.mxu0 %v17731_v42 }
0x20bc   :  { %17546 = vmatprep.subr.bf16.mxu0 %v17733_v44 }
0x20bf   :  { %17547 = vmatpush3.bf16.msra.mxu0 %v17733_v44 }
0x20c0   :  { %17548 = vmatprep.subr.bf16.mxu0 %v17735_v57 }
0x20c3   :  { %17549 = vmatpush3.bf16.msra.mxu0 %v17735_v57 }
0x2176   :  { %v17528_v0 = vpop.f32.mrf.mxu0 }
0x2177   :  { %v13598_v21 = vadd.f32 %v17528_v0, %v16163_v50 }
0x2178   :  { %v13589_v59 = vpop.f32.mrf.mxu0 }
0x2179   :  { %v13590_v47 = vadd.f32 %v16163_v50, %v13589_v59  ;;  %v13605_v27 = vmax.f32 %v13598_v21, 0.0 }
0x217a   :  { %v17529_v52 = vpop.f32.mrf.mxu0 }
0x217b   :  { %v13603_v12 = vmax.f32 %v13590_v47, 0.0  ;;  %v13607_v37 = vpack.c.bf16 %v13605_v27, %v13605_v27  ;;  %v17737_v27 = vld [vmem:[%s21625_s7 + $0x58] sm:$0xff]  }
0x217c   :  { %v13592_v45 = vpop.f32.mrf.mxu0  ;;  %17566 = vmatprep.subr.bf16.mxu0 %v17737_v27 }
0x217d   :  { %v13593_v49 = vadd.f32 %v16163_v50, %v13592_v45  ;;  %v17736_v50 = vld [vmem:[%s21625_s7 + $0x20] sm:$0xff]  }
0x217f   :  { %v13604_v46 = vmax.f32 %v13593_v49, 0.0 }
0x2181   :  { %v13606_v13 = vpack.c.bf16 %v13604_v46, %v13603_v12  ;;  %v21081_v12 = vld [vmem:[%s21625_s7 + $0x78] sm:$0xff]  }
0x2183   :  { %17538 = vmatprep.mubr.msk.bf16.mxu1 %vm251_vm0, %v13606_v13 }
0x2184   :  { %17539 = vmatmul.mubr.msk.bf16.vlgmr.msra.gmra.mxu1 %vm251_vm0, %v13607_v37  ;;  %v17739_v37 = vld [vmem:[%s21625_s7 + $0x50] sm:$0xff]  }
0x2185   :  { %17555 = vmatpush3.bf16.msra.mxu1 %v17730_v43 }
0x2186   :  { %17556 = vmatprep.subr.bf16.mxu1 %v17732_v15 }
0x2189   :  { %17557 = vmatpush3.bf16.msra.mxu1 %v17732_v15 }
0x2244   :  { %v17540_v22 = vpop.f32.mrf.mxu1 }
0x2245   :  { %v13696_v55 = vadd.f32 %v17540_v22, %v16170_v26  ;;  %v17741_v22 = vld [vmem:[%s21625_s7 + $0x48] sm:$0xff]  }
0x2246   :  { %v13687_v5 = vpop.f32.mrf.mxu1 }
0x2247   :  { %v13688_v63 = vadd.f32 %v16170_v26, %v13687_v5  ;;  %v13703_v14 = vadd.f32 %v13696_v55, %v13507_v7  ;;  %v14048_v7 = vcombine.low %v21057_v62, %v21061_v10 }
0x2248   :  { %v17541_v3 = vpop.f32.mrf.mxu1 }
0x2249   :  { %v13701_v40 = vadd.f32 %v13688_v63, %v13505_v35  ;;  %v13710_v4 = vsel %vm251_vm0, %v13703_v14, 0.0  ;;  %v17734_v35 = vld [vmem:[%s21625_s7 + $0x28] sm:$0xff]   ;;  %v14069_v2 = vrot.slane %v14048_v7, %v18400_v32 }
0x224a   :  { %v13690_v53 = vpop.f32.mrf.mxu1  ;;  %17558 = vmatprep.subr.bf16.mxu1 %v17734_v35 }
0x224b   :  { %v13691_v58 = vadd.f32 %v16170_v26, %v13690_v53  ;;  %v13704_v34 = vsel %vm251_vm0, %v13701_v40, 0.0  ;;  %v14087_v0 = vcombine.low %v14062_v25, %v14069_v2  ;;  %17559 = vmatpush3.bf16.msra.mxu1 %v17734_v35  ;;  %v17743_v26 = vld [vmem:[%s21625_s7 + $0x40] sm:$0xff]  }
0x224c   :  { %13705 = vadd.xlane.f32.xlu0 %v13704_v34  ;;  %17560 = vmatprep.subr.bf16.mxu1 %v17736_v50 }
0x224d   :  { %v13702_v18 = vadd.f32 %v13691_v58, %v13506_v28  ;;  %v14055_v28 = vrot.slane %v14046_v51, %v18400_v32  ;;  %v14094_v52 = vrot.slane %v14087_v0, %v18400_v32 }
0x224f   :  { %v13707_v11 = vsel %vm251_vm0, %v13702_v18, 0.0  ;;  %v14070_v16 = vcombine.low %v14055_v28, %v14062_v25  ;;  %v14071_v31 = vcombine.low %v14069_v2, %v14055_v28  ;;  %17561 = vmatpush3.bf16.msra.mxu1 %v17736_v50  ;;  %v17740_v25 = vld [vmem:[%s21625_s7 + $0x70] sm:$0xff]  }
0x2250   :  { %13708 = vadd.xlane.f32.xlu1 %v13707_v11  ;;  %13711 = vadd.xlane.f32.xlu0 %v13710_v4  ;;  %v16177_v11 = vld [vmem:[%s21627_s15] ss:$0 sm:$0xff] }
0x2251   :  { %v14078_v59 = vrot.slane %v14070_v16, %v18400_v32  ;;  %v14085_v21 = vrot.slane %v14071_v31, %v18400_v32  ;;  %17578 = vmatprep.subr.bf16.mxu1 %v21081_v12 }
0x2253   :  { %v14086_v47 = vcombine.low %v14078_v59, %v14085_v21  ;;  %v14095_v45 = vcombine.low %v14094_v52, %v14078_v59  ;;  %v14096_v49 = vcombine.low %v14085_v21, %v14094_v52 }
0x2255   :  { %v14100_v46 = vpack.c.bf16 %v14095_v45, %v14086_v47  ;;  %v14101_v13 = vpack.c.bf16 %v14096_v49, %v14096_v49 }
0x2257   :  { %17550 = vmatprep.mubr.msk.bf16.mxu0 %vm251_vm0, %v14100_v46 }
0x2258   :  { %17551 = vmatmul.mubr.msk.bf16.vlgmr.msra.gmra.mxu0 %vm251_vm0, %v14101_v13  ;;  %v17742_v13 = vld [vmem:[%s21625_s7 + $0x68] sm:$0xff]  }
0x2259   :  { %17567 = vmatpush3.bf16.msra.mxu0 %v17737_v27 }
0x225a   :  { %17568 = vmatprep.subr.bf16.mxu0 %v17739_v37 }
0x225d   :  { %17569 = vmatpush3.bf16.msra.mxu0 %v17739_v37 }
0x225e   :  { %17570 = vmatprep.subr.bf16.mxu0 %v17741_v22 }
0x2261   :  { %17571 = vmatpush3.bf16.msra.mxu0 %v17741_v22 }
0x2262   :  { %17572 = vmatprep.subr.bf16.mxu0 %v17743_v26 }
0x2265   :  { %17573 = vmatpush3.bf16.msra.mxu0 %v17743_v26 }
0x2266   :  { %17590 = vmatprep.subr.bf16.mxu0 %v18130_v19 }
0x22d5   :  { %v13706_v48 = vpop.xlane.xlu0 %13705 }
0x22d6   :  { %v13713_v9 = vmul.f32 0.015625, %v13706_v48  ;;  %v16178_v48 = vld [vmem:[%s21628_s16] ss:$0 sm:$0xff] }
0x22d8   :  { %v21033_v36 = vsub.f32 %v13701_v40, %v13713_v9 }
0x22d9   :  { %v13709_v29 = vpop.xlane.xlu1 %13708  ;;  %v13712_v30 = vpop.xlane.xlu0 %13711 }
0x22da   :  { %v13714_v23 = vmul.f32 0.015625, %v13709_v29  ;;  %v13715_v39 = vmul.f32 0.015625, %v13712_v30  ;;  %v13719_v17 = vmul.f32 %v21033_v36, %v21033_v36 }
0x22dc   :  { %v21037_v8 = vsub.f32 %v13702_v18, %v13714_v23  ;;  %v21039_v38 = vsub.f32 %v13703_v14, %v13715_v39  ;;  %v13722_v33 = vsel %vm251_vm0, %v13719_v17, 0.0 }
0x22dd   :  { %13723 = vadd.xlane.f32.xlu1 %v13722_v33 }
0x22de   :  { %v13720_v1 = vmul.f32 %v21037_v8, %v21037_v8  ;;  %v13721_v61 = vmul.f32 %v21039_v38, %v21039_v38 }
0x22e0   :  { %v13725_v41 = vsel %vm251_vm0, %v13720_v1, 0.0  ;;  %v13728_v24 = vsel %vm251_vm0, %v13721_v61, 0.0 }
0x22e1   :  { %13726 = vadd.xlane.f32.xlu0 %v13725_v41  ;;  %13729 = vadd.xlane.f32.xlu1 %v13728_v24 }
0x2366   :  { %v13724_v5 = vpop.xlane.xlu1 %13723 }
0x2367   :  { %v13731_v55 = vmul.f32 0.015625, %v13724_v5 }
0x2369   :  { %v13734_v63 = vadd.f32 1e-05, %v13731_v55 }
0x236a   :  { %v13730_v3 = vpop.xlane.xlu1 %13729  ;;  %v13727_v40 = vpop.xlane.xlu0 %13726 }
0x236b   :  { %18030 = vrsqrt.f32 %v13734_v63  ;;  %v13733_v53 = vmul.f32 0.015625, %v13730_v3  ;;  %v13732_v14 = vmul.f32 0.015625, %v13727_v40 }
0x236d   :  { %v13736_v58 = vadd.f32 1e-05, %v13733_v53  ;;  %v13735_v34 = vadd.f32 1e-05, %v13732_v14 }
0x236f   :  { %18032 = vrsqrt.f32 %v13736_v58 }
0x2370   :  { %18034 = vrsqrt.f32 %v13735_v34 }
0x2378   :  { %v18031_v18 = vpop.eup %18030 }
0x2379   :  { %v13740_v4 = vmul.f32 %v18031_v18, %v21033_v36 }
0x237b   :  { %v13750_v9 = vmul.f32 %v16177_v11, %v13740_v4  ;;  %v17744_v4 = vld [vmem:[%s21625_s7 + $0x60] sm:$0xff]  }
0x237c   :  { %v18033_v29 = vpop.eup %18032 }
0x237d   :  { %v18035_v30 = vpop.eup %18034  ;;  %v13742_v23 = vmul.f32 %v18033_v29, %v21039_v38  ;;  %v13760_v39 = vadd.f32 %v16178_v48, %v13750_v9 }
0x237e   :  { %v13741_v17 = vmul.f32 %v18035_v30, %v21037_v8 }
0x237f   :  { %v13752_v33 = vmul.f32 %v16177_v11, %v13742_v23  ;;  %v13766_v1 = vcombine.high %v13760_v39, %v13760_v39  ;;  %v13773_v61 = vrot.slane %v13760_v39, %v18400_v32 }
0x2380   :  { %v13751_v41 = vmul.f32 %v16177_v11, %v13741_v17 }
0x2381   :  { %v13762_v24 = vadd.f32 %v16178_v48, %v13752_v33  ;;  %v13780_v56 = vrot.slane %v13766_v1, %v18400_v32  ;;  %v13781_v54 = vcombine.high %v13773_v61, %v13773_v61  ;;  %v21098_v36 = vrot.slane %v13773_v61, %v18400_v32 }
0x2382   :  { %v13761_v60 = vadd.f32 %v16178_v48, %v13751_v41 }
0x2383   :  { %v13782_v43 = vcombine.high %v13780_v56, %v13780_v56  ;;  %v21101_v38 = vrot.slane %v13780_v56, %v18400_v32  ;;  %v21104_v8 = vrot.slane %v13781_v54, %v18400_v32  ;;  %v13864_v42 = vcombine.high %v13762_v24, %v13762_v24 }
0x2384   :  { %v13815_v15 = vcombine.high %v13761_v60, %v13761_v60  ;;  %v13822_v44 = vrot.slane %v13761_v60, %v18400_v32  ;;  %v13871_v51 = vrot.slane %v13762_v24, %v18400_v32  ;;  %v14189_v20 = vpack.c.bf16 %v13761_v60, %v13760_v39 }
0x2385   :  { %v21109_v7 = vrot.slane %v13782_v43, %v18400_v32  ;;  %v13878_v35 = vrot.slane %v13864_v42, %v18400_v32  ;;  %v14190_v28 = vpack.c.bf16 %v13762_v24, %v13762_v24  ;;  %v21115_v2 = vcombine.high %v21098_v36, %v21098_v36 }
0x2386   :  { %v13829_v57 = vrot.slane %v13815_v15, %v18400_v32  ;;  %v13830_v16 = vcombine.high %v13822_v44, %v13822_v44  ;;  %v21119_v31 = vrot.slane %v13822_v44, %v18400_v32  ;;  %v13879_v0 = vcombine.high %v13871_v51, %v13871_v51  ;;  %17562 = vmatprep.mubr.msk.bf16.mxu1 %vm251_vm0, %v14189_v20 }
0x2387   :  { %v13880_v50 = vcombine.high %v13878_v35, %v13878_v35  ;;  %v21123_v59 = vrot.slane %v13871_v51, %v18400_v32  ;;  %v21126_v21 = vrot.slane %v13878_v35, %v18400_v32  ;;  %17563 = vmatmul.mubr.msk.bf16.vlgmr.msra.gmra.mxu1 %vm251_vm0, %v14190_v28  ;;  %v21131_v52 = vcombine.high %v21101_v38, %v21101_v38 }
0x2388   :  { %v13831_v47 = vcombine.high %v13829_v57, %v13829_v57  ;;  %v21134_v45 = vrot.slane %v13829_v57, %v18400_v32  ;;  %v21137_v49 = vrot.slane %v13830_v16, %v18400_v32  ;;  %v21140_v27 = vrot.slane %v13879_v0, %v18400_v32  ;;  %17579 = vmatpush3.bf16.msra.mxu1 %v21081_v12 }
0x2389   :  { %v21144_v46 = vrot.slane %v13880_v50, %v18400_v32  ;;  %17580 = vmatprep.subr.bf16.mxu1 %v17740_v25  ;;  %v21149_v37 = vcombine.high %v21104_v8, %v21104_v8  ;;  %v13814_v22 = vcombine.high %v21109_v7, %v21109_v7  ;;  %v21155_v26 = vcombine.high %v21119_v31, %v21119_v31 }
0x238a   :  { %v21158_v5 = vrot.slane %v13831_v47, %v18400_v32  ;;  %v21162_v12 = vcombine.high %v21134_v45, %v21134_v45  ;;  %v21166_v55 = vcombine.high %v21137_v49, %v21137_v49  ;;  %v13997_v63 = vsub.f32 %v21051_v6, %v21098_v36 }
0x238b   :  { %v13998_v3 = vsub.f32 %v21057_v62, %v21104_v8  ;;  %v13999_v40 = vsub.f32 %v21061_v10, %v21115_v2  ;;  %v14000_v53 = vsub.f32 %v21051_v6, %v21149_v37  ;;  %v14001_v14 = vsub.f32 %v21057_v62, %v21101_v38 }
0x238c   :  { %17581 = vmatpush3.bf16.msra.mxu1 %v17740_v25  ;;  %v21180_v58 = vcombine.high %v21158_v5, %v21158_v5  ;;  %v14002_v34 = vsub.f32 %v21061_v10, %v21109_v7  ;;  %v14003_v18 = vsub.f32 %v21051_v6, %v21131_v52  ;;  %v14004_v11 = vsub.f32 %v21057_v62, %v13814_v22 }
0x238d   :  { %17582 = vmatprep.subr.bf16.mxu1 %v17742_v13  ;;  %v14005_v48 = vsub.f32 %v21061_v10, %v21119_v31  ;;  %v14006_v9 = vsub.f32 %v21051_v6, %v21137_v49  ;;  %v14007_v29 = vsub.f32 %v21057_v62, %v21155_v26  ;;  %v14008_v30 = vsub.f32 %v21061_v10, %v21166_v55 }
0x238e   :  { %v14009_v23 = vsub.f32 %v21051_v6, %v21134_v45  ;;  %v14010_v39 = vsub.f32 %v21057_v62, %v21158_v5  ;;  %v14011_v17 = vsub.f32 %v21061_v10, %v21162_v12  ;;  %v14012_v33 = vsub.f32 %v21051_v6, %v21180_v58 }
0x238f   :  { %v14296_v1 = vcombine.low %v13997_v63, %v13998_v3  ;;  %v14297_v61 = vcombine.low %v13999_v40, %v14000_v53  ;;  %v14298_v41 = vcombine.low %v14001_v14, %v14002_v34  ;;  %v14299_v24 = vcombine.low %v14003_v18, %v14004_v11 }
0x2390   :  { %17583 = vmatpush3.bf16.msra.mxu1 %v17742_v13  ;;  %v14345_v56 = vcombine.low %v14005_v48, %v14006_v9  ;;  %v14346_v54 = vcombine.low %v14007_v29, %v14008_v30  ;;  %v14347_v60 = vcombine.low %v14009_v23, %v14010_v39  ;;  %v14348_v43 = vcombine.low %v14011_v17, %v14012_v33 }
0x2391   :  { %17584 = vmatprep.subr.bf16.mxu1 %v17744_v4  ;;  %v14306_v42 = vrot.slane %v14296_v1, %v18400_v32  ;;  %v14313_v15 = vrot.slane %v14297_v61, %v18400_v32  ;;  %v14320_v44 = vrot.slane %v14298_v41, %v18400_v32  ;;  %v14327_v51 = vrot.slane %v14299_v24, %v18400_v32 }
0x2392   :  { %v14355_v20 = vrot.slane %v14345_v56, %v18400_v32  ;;  %v14362_v35 = vrot.slane %v14346_v54, %v18400_v32  ;;  %v14369_v28 = vrot.slane %v14347_v60, %v18400_v32  ;;  %v14376_v25 = vrot.slane %v14348_v43, %v18400_v32 }
0x2393   :  { %v14328_v57 = vcombine.low %v14306_v42, %v14313_v15  ;;  %v14329_v16 = vcombine.low %v14320_v44, %v14327_v51  ;;  %v14021_v0 = vmul.f32 %v21051_v6, %v21098_v36  ;;  %v14022_v50 = vmul.f32 %v21057_v62, %v21104_v8 }
0x2394   :  { %17585 = vmatpush3.bf16.msra.mxu1 %v17744_v4  ;;  %v14377_v47 = vcombine.low %v14355_v20, %v14362_v35  ;;  %v14378_v13 = vcombine.low %v14369_v28, %v14376_v25  ;;  %v14023_v63 = vmul.f32 %v21061_v10, %v21115_v2  ;;  %v14024_v3 = vmul.f32 %v21051_v6, %v21149_v37 }
0x2395   :  { %v14336_v40 = vrot.slane %v14328_v57, %v18400_v32  ;;  %v14343_v53 = vrot.slane %v14329_v16, %v18400_v32  ;;  %v14025_v14 = vmul.f32 %v21057_v62, %v21101_v38  ;;  %v14026_v34 = vmul.f32 %v21061_v10, %v21109_v7  ;;  %17602 = vmatprep.subr.bf16.mxu1 %v18130_v19 }
0x2396   :  { %v14385_v18 = vrot.slane %v14377_v47, %v18400_v32  ;;  %v14392_v11 = vrot.slane %v14378_v13, %v18400_v32  ;;  %v14027_v4 = vmul.f32 %v21051_v6, %v21131_v52  ;;  %v14028_v48 = vmul.f32 %v21057_v62, %v13814_v22 }
0x2397   :  { %v14344_v9 = vcombine.low %v14336_v40, %v14343_v53  ;;  %v14029_v29 = vmul.f32 %v21061_v10, %v21119_v31  ;;  %v14030_v30 = vmul.f32 %v21051_v6, %v21137_v49  ;;  %v14031_v23 = vmul.f32 %v21057_v62, %v21155_v26 }
0x2398   :  { %v14393_v39 = vcombine.low %v14385_v18, %v14392_v11  ;;  %v14032_v17 = vmul.f32 %v21061_v10, %v21166_v55  ;;  %v14033_v33 = vmul.f32 %v21051_v6, %v21134_v45  ;;  %v14034_v52 = vmul.f32 %v21057_v62, %v21158_v5 }
0x2399   :  { %v14035_v22 = vmul.f32 %v21061_v10, %v21162_v12  ;;  %v14036_v1 = vmul.f32 %v21051_v6, %v21180_v58  ;;  %v14553_v61 = vcombine.low %v14021_v0, %v14022_v50  ;;  %v14554_v41 = vcombine.low %v14023_v63, %v14024_v3 }
0x239a   :  { %v14446_v24 = vpack.c.bf16 %v14393_v39, %v14344_v9  ;;  %v14555_v56 = vcombine.low %v14025_v14, %v14026_v34  ;;  %v14556_v54 = vcombine.low %v14027_v4, %v14028_v48  ;;  %v14602_v60 = vcombine.low %v14029_v29, %v14030_v30 }
0x239b   :  { %v14563_v43 = vrot.slane %v14553_v61, %v18400_v32  ;;  %v14570_v42 = vrot.slane %v14554_v41, %v18400_v32  ;;  %v14603_v15 = vcombine.low %v14031_v23, %v14032_v17  ;;  %v14604_v44 = vcombine.low %v14033_v33, %v14034_v52 }
0x239c   :  { %17574 = vmatprep.mubr.msk.bf16.mxu0 %vm251_vm0, %v14446_v24  ;;  %v14577_v51 = vrot.slane %v14555_v56, %v18400_v32  ;;  %v14584_v20 = vrot.slane %v14556_v54, %v18400_v32  ;;  %v14605_v35 = vcombine.low %v14035_v22, %v14036_v1  ;;  %v14612_v28 = vrot.slane %v14602_v60, %v18400_v32 }
0x239d   :  { %v14585_v25 = vcombine.low %v14563_v43, %v14570_v42  ;;  %v14619_v57 = vrot.slane %v14603_v15, %v18400_v32  ;;  %v14626_v16 = vrot.slane %v14604_v44, %v18400_v32  ;;  %v13909_v0 = vcombine.high %v21123_v59, %v21123_v59 }
0x239e   :  { %v14586_v50 = vcombine.low %v14577_v51, %v14584_v20  ;;  %v14633_v47 = vrot.slane %v14605_v35, %v18400_v32  ;;  %v21261_v13 = vcombine.high %v21126_v21, %v21126_v21  ;;  %v13911_v63 = vcombine.high %v21140_v27, %v21140_v27 }
0x239f   :  { %v14593_v3 = vrot.slane %v14585_v25, %v18400_v32  ;;  %v14634_v40 = vcombine.low %v14612_v28, %v14619_v57  ;;  %v21268_v53 = vcombine.high %v21144_v46, %v21144_v46  ;;  %v14013_v14 = vsub.f32 %v21057_v62, %v21123_v59 }
0x23a0   :  { %v14600_v34 = vrot.slane %v14586_v50, %v18400_v32  ;;  %v14635_v18 = vcombine.low %v14626_v16, %v14633_v47  ;;  %v14014_v11 = vsub.f32 %v21061_v10, %v21140_v27  ;;  %v14015_v4 = vsub.f32 %v21051_v6, %v13909_v0 }
0x23a1   :  { %v14642_v48 = vrot.slane %v14634_v40, %v18400_v32  ;;  %v14016_v9 = vsub.f32 %v21057_v62, %v13911_v63  ;;  %v14017_v29 = vsub.f32 %v21061_v10, %v21126_v21  ;;  %v14018_v30 = vsub.f32 %v21051_v6, %v21144_v46 }
0x23a2   :  { %v14601_v23 = vcombine.low %v14593_v3, %v14600_v34  ;;  %v14649_v39 = vrot.slane %v14635_v18, %v18400_v32  ;;  %v14019_v17 = vsub.f32 %v21057_v62, %v21261_v13  ;;  %v14020_v33 = vsub.f32 %v21061_v10, %v21268_v53 }
0x23a3   :  { %v14394_v52 = vcombine.low %v14013_v14, %v14014_v11  ;;  %v14395_v22 = vcombine.low %v14015_v4, %v14016_v9  ;;  %v14396_v1 = vcombine.low %v14017_v29, %v14018_v30  ;;  %v14037_v61 = vmul.f32 %v21057_v62, %v21123_v59 }
0x23a4   :  { %v14650_v41 = vcombine.low %v14642_v48, %v14649_v39  ;;  %v14397_v24 = vcombine.low %v14019_v17, %v14020_v33  ;;  %v14038_v56 = vmul.f32 %v21061_v10, %v21140_v27  ;;  %v14039_v54 = vmul.f32 %v21051_v6, %v13909_v0 }
0x23a5   :  { %v14404_v60 = vrot.slane %v14394_v52, %v18400_v32  ;;  %v14411_v43 = vrot.slane %v14395_v22, %v18400_v32  ;;  %v14418_v42 = vrot.slane %v14396_v1, %v18400_v32  ;;  %v14040_v15 = vmul.f32 %v21057_v62, %v13911_v63 }
0x23a6   :  { %v14703_v44 = vpack.c.bf16 %v14650_v41, %v14601_v23  ;;  %v14425_v51 = vrot.slane %v14397_v24, %v18400_v32  ;;  %v14041_v20 = vmul.f32 %v21061_v10, %v21126_v21  ;;  %v14042_v35 = vmul.f32 %v21051_v6, %v21144_v46 }
0x23a7   :  { %v14426_v28 = vcombine.low %v14404_v60, %v14411_v43  ;;  %v14043_v25 = vmul.f32 %v21057_v62, %v21261_v13  ;;  %v14044_v57 = vmul.f32 %v21061_v10, %v21268_v53  ;;  %v14651_v16 = vcombine.low %v14037_v61, %v14038_v56 }
0x23a8   :  { %17586 = vmatprep.mubr.msk.bf16.mxu1 %vm251_vm0, %v14703_v44  ;;  %v14427_v0 = vcombine.low %v14418_v42, %v14425_v51  ;;  %v14652_v50 = vcombine.low %v14039_v54, %v14040_v15  ;;  %v14653_v47 = vcombine.low %v14041_v20, %v14042_v35  ;;  %v15426_v63 = vcombine.low %v21149_v37, %v21101_v38  ;;  %v16186_v35 = vld [vmem:[%s21629_s18] ss:$0 sm:$0xff] }
0x23a9   :  { %v14434_v3 = vrot.slane %v14426_v28, %v18400_v32  ;;  %v14654_v40 = vcombine.low %v14043_v25, %v14044_v57  ;;  %v14661_v6 = vrot.slane %v14651_v16, %v18400_v32  ;;  %v15440_v62 = vrot.slane %v21109_v7, %v18400_v32 }
0x23aa   :  { %v14441_v14 = vrot.slane %v14427_v0, %v18400_v32  ;;  %v14668_v10 = vrot.slane %v14652_v50, %v18400_v32  ;;  %v14675_v34 = vrot.slane %v14653_v47, %v18400_v32  ;;  %v15433_v18 = vrot.slane %v15426_v63, %v18400_v32  ;;  %v16205_v0 = vld [vmem:[%s21630_s23] ss:$0 sm:$0xff] }
0x23ab   :  { %v14682_v11 = vrot.slane %v14654_v40, %v18400_v32  ;;  %v15403_v37 = vcombine.low %v21098_v36, %v21104_v8  ;;  %v15417_v4 = vrot.slane %v21115_v2, %v18400_v32  ;;  %v16207_v48 = vcombine.high %v21101_v38, %v21109_v7 }
0x23ac   :  { %v14442_v9 = vcombine.low %v14434_v3, %v14441_v14  ;;  %v14683_v29 = vcombine.low %v14661_v6, %v14668_v10  ;;  %v21323_v30 = vcombine.low %v15433_v18, %v15440_v62  ;;  %v15463_v23 = vrot.slane %v21119_v31, %v18400_v32 }
0x23ad   :  { %v14684_v39 = vcombine.low %v14675_v34, %v14682_v11  ;;  %v15410_v17 = vrot.slane %v15403_v37, %v18400_v32  ;;  %v15456_v33 = vrot.slane %v16207_v48, %v18400_v32  ;;  %v15472_v36 = vcombine.low %v21137_v49, %v21155_v26 }
0x23ae   :  { %v14447_v8 = vpack.c.bf16 %v14442_v9, %v14442_v9  ;;  %v14691_v2 = vrot.slane %v14683_v29, %v18400_v32  ;;  %v15486_v38 = vrot.slane %v21166_v55, %v18400_v32  ;;  %v15495_v1 = vcombine.low %v21134_v45, %v21158_v5 }
0x23af   :  { %v14698_v7 = vrot.slane %v14684_v39, %v18400_v32  ;;  %v21335_v52 = vcombine.low %v15410_v17, %v15417_v4  ;;  %v21337_v22 = vcombine.low %v15456_v33, %v15463_v23  ;;  %v15479_v31 = vrot.slane %v15472_v36, %v18400_v32 }
0x23b0   :  { %17575 = vmatmul.mubr.msk.bf16.vlgmr.msra.gmra.mxu0 %vm251_vm0, %v14447_v8  ;;  %v15518_v49 = vcombine.low %v21180_v58, %v21123_v59  ;;  %v15509_v55 = vrot.slane %v21162_v12, %v18400_v32  ;;  %v15502_v41 = vrot.slane %v15495_v1, %v18400_v32  ;;  %v15532_v56 = vrot.slane %v21140_v27, %v18400_v32 }
0x23b1   :  { %v14699_v26 = vcombine.low %v14691_v2, %v14698_v7  ;;  %v21345_v61 = vcombine.low %v15479_v31, %v15486_v38  ;;  %17598 = vmatprep.mubr.msk.bf16.mxu0 %vm18131_vm1, %v18130_v19  ;;  %v16208_v45 = vcombine.high %v21123_v59, %v21140_v27  ;;  %v15564_v58 = vcombine.low %v21144_v46, %v21261_v13  ;;  %v17552_v13 = vpop.f32.mrf.mxu0 }
0x23b2   :  { %v15525_v24 = vrot.slane %v15518_v49, %v18400_v32  ;;  %v15578_v12 = vrot.slane %v21268_v53, %v18400_v32  ;;  %v21361_v54 = vcombine.low %v15502_v41, %v15509_v55  ;;  %v15555_v42 = vrot.slane %v21126_v21, %v18400_v32 }
0x23b3   :  { %v14704_v5 = vpack.c.bf16 %v14699_v26, %v14699_v26  ;;  %v15548_v43 = vrot.slane %v16208_v45, %v18400_v32  ;;  %v15571_v59 = vrot.slane %v15564_v58, %v18400_v32  ;;  %v14166_v53 = vpop.f32.mrf.mxu0  ;;  %v14188_v21 = vadd.f32 %v17552_v13, %v16186_v35 }
0x23b4   :  { %v21363_v60 = vcombine.low %v15525_v24, %v15532_v56  ;;  %v14186_v28 = vadd.f32 %v16186_v35, %v14166_v53  ;;  %v14975_v40 = vrot.slane %v16205_v0, %v18400_v32 }
0x23b5   :  { %17587 = vmatmul.mubr.msk.bf16.vlgmr.msra.gmra.mxu1 %vm251_vm0, %v14704_v5  ;;  %v21370_v27 = vcombine.low %v15548_v43, %v15555_v42  ;;  %v21374_v46 = vcombine.low %v15571_v59, %v15578_v12  ;;  %v17553_v15 = vpop.f32.mrf.mxu0 }
0x23b6   :  { %17614 = vmatprep.mubr.msk.bf16.mxu1 %vm18131_vm1, %v18130_v19  ;;  %v14976_v18 = vcombine.high %v14975_v40, %v14975_v40  ;;  %v21380_v29 = vrot.slane %v14975_v40, %v18400_v32 }
0x23b7   :  { %v14169_v25 = vpop.f32.mrf.mxu0 }
0x23b8   :  { %v14187_v14 = vadd.f32 %v16186_v35, %v14169_v25  ;;  %v21384_v36 = vrot.slane %v14976_v18, %v18400_v32  ;;  %v21390_v1 = vcombine.high %v21380_v29, %v21380_v29 }
0x2447   :  { %v17564_v44 = vpop.f32.mrf.mxu1 }
0x2448   :  { %v14271_v57 = vadd.f32 %v17564_v44, %v14188_v21 }
0x2449   :  { %v14255_v51 = vpop.f32.mrf.mxu1 }
0x244a   :  { %v14269_v50 = vadd.f32 %v14255_v51, %v14186_v28 }
0x244b   :  { %v17565_v20 = vpop.f32.mrf.mxu1 }
0x244d   :  { %v14258_v3 = vpop.f32.mrf.mxu1 }
0x244e   :  { %v14270_v9 = vadd.f32 %v14258_v3, %v14187_v14 }
0x2470   :  { %v17576_v16 = vpop.f32.mrf.mxu0 }
0x2471   :  { %v14528_v47 = vadd.f32 %v17576_v16, %v14271_v57 }
0x2472   :  { %v14512_v63 = vpop.f32.mrf.mxu0 }
0x2473   :  { %v14526_v6 = vadd.f32 %v14512_v63, %v14269_v50 }
0x2474   :  { %v17577_v62 = vpop.f32.mrf.mxu0 }
0x2475   :  { %v17588_v10 = vpop.f32.mrf.mxu1 }
0x2476   :  { %v14785_v34 = vadd.f32 %v17588_v10, %v14528_v47  ;;  %v14515_v48 = vpop.f32.mrf.mxu0 }
0x2477   :  { %v14769_v11 = vpop.f32.mrf.mxu1  ;;  %v14527_v8 = vadd.f32 %v14515_v48, %v14270_v9 }
0x2478   :  { %v14788_v37 = vmax.f32 %v14785_v34, 0.0  ;;  %v14783_v4 = vadd.f32 %v14769_v11, %v14526_v6 }
0x2479   :  { %v17589_v23 = vpop.f32.mrf.mxu1 }
0x247a   :  { %v14890_v39 = vcombine.high %v14788_v37, %v14788_v37  ;;  %v14897_v17 = vrot.slane %v14788_v37, %v18400_v32  ;;  %v14786_v33 = vmax.f32 %v14783_v4, 0.0 }
0x247b   :  { %v14772_v56 = vpop.f32.mrf.mxu1 }
0x247c   :  { %v14904_v2 = vrot.slane %v14890_v39, %v18400_v32  ;;  %v14905_v38 = vcombine.high %v14897_v17, %v14897_v17  ;;  %v14913_v7 = vrot.slane %v14897_v17, %v18400_v32  ;;  %v14792_v31 = vcombine.high %v14786_v33, %v14786_v33 }
0x247d   :  { %v14799_v49 = vrot.slane %v14786_v33, %v18400_v32  ;;  %v14784_v12 = vadd.f32 %v14772_v56, %v14527_v8 }
0x247e   :  { %v14906_v26 = vcombine.high %v14904_v2, %v14904_v2  ;;  %v14920_v55 = vrot.slane %v14904_v2, %v18400_v32  ;;  %v14927_v41 = vrot.slane %v14905_v38, %v18400_v32  ;;  %v14935_v24 = vcombine.high %v14913_v7, %v14913_v7 }
0x247f   :  { %v14806_v45 = vrot.slane %v14792_v31, %v18400_v32  ;;  %v14807_v5 = vcombine.high %v14799_v49, %v14799_v49  ;;  %v14815_v58 = vrot.slane %v14799_v49, %v18400_v32  ;;  %v21401_v13 = vmul.f32 %v21384_v36, %v14913_v7 }
0x2480   :  { %v21398_v43 = vrot.slane %v14906_v26, %v18400_v32  ;;  %v14936_v42 = vcombine.high %v14920_v55, %v14920_v55  ;;  %v14937_v59 = vcombine.high %v14927_v41, %v14927_v41  ;;  %v21404_v53 = vmul.f32 %v21390_v1, %v14927_v41 }
0x2481   :  { %v21407_v15 = vmul.f32 %v21380_v29, %v14935_v24  ;;  %v14808_v44 = vcombine.high %v14806_v45, %v14806_v45  ;;  %v14822_v51 = vrot.slane %v14806_v45, %v18400_v32  ;;  %v21416_v21 = vmul.f32 %v21390_v1, %v14920_v55 }
0x2482   :  { %v14938_v20 = vcombine.high %v21398_v43, %v21398_v43  ;;  %v21413_v35 = vmul.f32 %v21384_v36, %v14937_v59  ;;  %v21420_v28 = vmul.f32 %v21380_v29, %v21398_v43  ;;  %v14829_v25 = vrot.slane %v14807_v5, %v18400_v32 }
0x2483   :  { %v14836_v57 = vrot.slane %v14808_v44, %v18400_v32  ;;  %v14837_v16 = vcombine.high %v14815_v58, %v14815_v58  ;;  %v14838_v0 = vcombine.high %v14822_v51, %v14822_v51  ;;  %v21425_v50 = vmul.f32 %v21384_v36, %v14936_v42 }
0x2484   :  { %v14995_v47 = vmul.f32 %v21380_v29, %v14815_v58  ;;  %v14999_v63 = vmul.f32 %v21384_v36, %v14822_v51  ;;  %v14787_v3 = vmax.f32 %v14784_v12, 0.0  ;;  %v14839_v40 = vcombine.high %v14829_v25, %v14829_v25 }
0x2485   :  { %v14840_v6 = vcombine.high %v14836_v57, %v14836_v57  ;;  %v14996_v62 = vmul.f32 %v21384_v36, %v14829_v25  ;;  %v14997_v14 = vmul.f32 %v21390_v1, %v14837_v16  ;;  %v15001_v10 = vmul.f32 %v21380_v29, %v14838_v0 }
0x2486   :  { %v14841_v34 = vcombine.high %v14787_v3, %v14787_v3  ;;  %v14848_v18 = vrot.slane %v14787_v3, %v18400_v32  ;;  %v15000_v11 = vmul.f32 %v21390_v1, %v14836_v57  ;;  %v14998_v37 = vmul.f32 %v21380_v29, %v14839_v40 }
0x2487   :  { %v15043_v4 = vcombine.low %v14995_v47, %v14996_v62  ;;  %v15057_v48 = vrot.slane %v14997_v14, %v18400_v32  ;;  %v15002_v9 = vmul.f32 %v21384_v36, %v14840_v6  ;;  %v15181_v7 = vcombine.low %v21407_v15, %v21413_v35 }
0x2488   :  { %v14855_v23 = vrot.slane %v14841_v34, %v18400_v32  ;;  %v14856_v39 = vcombine.high %v14848_v18, %v14848_v18  ;;  %v14864_v17 = vrot.slane %v14848_v18, %v18400_v32  ;;  %v15080_v33 = vrot.slane %v15000_v11, %v18400_v32 }
0x2489   :  { %v15050_v8 = vrot.slane %v15043_v4, %v18400_v32  ;;  %v15066_v2 = vcombine.low %v14998_v37, %v14999_v63  ;;  %v15089_v38 = vcombine.low %v15001_v10, %v15002_v9  ;;  %v15188_v18 = vrot.slane %v15181_v7, %v18400_v32 }
0x248a   :  { %v14857_v31 = vcombine.high %v14855_v23, %v14855_v23  ;;  %v14871_v49 = vrot.slane %v14855_v23, %v18400_v32  ;;  %v14878_v26 = vrot.slane %v14856_v39, %v18400_v32  ;;  %v14886_v55 = vcombine.high %v14864_v17, %v14864_v17 }
0x248b   :  { %v15003_v41 = vmul.f32 %v21390_v1, %v14864_v17  ;;  %v15058_v24 = vcombine.low %v15050_v8, %v15057_v48  ;;  %v15073_v56 = vrot.slane %v15066_v2, %v18400_v32  ;;  %v15096_v45 = vrot.slane %v15089_v38, %v18400_v32 }
0x248c   :  { %v14885_v5 = vrot.slane %v14857_v31, %v18400_v32  ;;  %v14887_v58 = vcombine.high %v14871_v49, %v14871_v49  ;;  %v14888_v12 = vcombine.high %v14878_v26, %v14878_v26  ;;  %v15004_v42 = vmul.f32 %v21380_v29, %v14878_v26 }
0x248d   :  { %v15005_v59 = vmul.f32 %v21384_v36, %v14886_v55  ;;  %v15007_v15 = vmul.f32 %v21380_v29, %v14871_v49  ;;  %v15065_v44 = vrot.slane %v15058_v24, %v18400_v32  ;;  %v15081_v51 = vcombine.low %v15073_v56, %v15080_v33 }
0x248e   :  { %v14889_v35 = vcombine.high %v14885_v5, %v14885_v5  ;;  %v15008_v25 = vmul.f32 %v21384_v36, %v14885_v5  ;;  %v15103_v57 = vrot.slane %v15003_v41, %v18400_v32  ;;  %v15006_v16 = vmul.f32 %v21390_v1, %v14888_v12  ;;  %v15276_v5 = vld [vmem:[%s21631_s22 + $0x4] sm:$0x7]  ;;  %v15279_v12 = vld [vmem:[%s21631_s22 + $0x10] sm:$0x7] }
0x248f   :  { %v15236_v0 = vsel %vm15235_vm7, %v15065_v44, 0.0  ;;  %v15088_v47 = vrot.slane %v15081_v51, %v18400_v32  ;;  %v15112_v63 = vcombine.low %v15004_v42, %v15005_v59  ;;  %v15009_v3 = vmul.f32 %v21390_v1, %v14887_v58  ;;  %v15280_v59 = vld [vmem:[%s21631_s22 + $0x14] sm:$0x7]  ;;  %v16206_v44 = vld [vmem:[#allocation2] ss:$0 sm:$0xff] }
0x2490   :  { %15237 = vadd.xlane.f32.xlu0 %v15236_v0  ;;  %v15104_v40 = vcombine.low %v15096_v45, %v15103_v57  ;;  %v15126_v6 = vrot.slane %v15006_v16, %v18400_v32  ;;  %v15135_v62 = vcombine.low %v15007_v15, %v15008_v25  ;;  %v15010_v14 = vmul.f32 %v21380_v29, %v14889_v35  ;;  %v15281_v15 = vld [vmem:[%s21631_s22 + $0x18] sm:$0x7]  ;;  %v15275_v51 = vld [vmem:[%s21631_s22] sm:$0x7]  ;;  %v15277_v25 = vld [vmem:[%s21631_s22 + $0x8] sm:$0x7] }
0x2491   :  { %v15239_v36 = vsel %vm15235_vm7, %v15088_v47, 0.0  ;;  %v15119_v10 = vrot.slane %v15112_v63, %v18400_v32  ;;  %v15149_v34 = vrot.slane %v15009_v3, %v18400_v32  ;;  %v15195_v48 = vrot.slane %v21416_v21, %v18400_v32  ;;  %v15278_v57 = vld [vmem:[%s21631_s22 + $0xc] sm:$0x7] }
0x2492   :  { %15240 = vadd.xlane.f32.xlu1 %v15239_v36  ;;  %v15111_v11 = vrot.slane %v15104_v40, %v18400_v32  ;;  %v15142_v37 = vrot.slane %v15135_v62, %v18400_v32  ;;  %v15158_v4 = vcombine.low %v15010_v14, %v21401_v13  ;;  %v15172_v29 = vrot.slane %v21404_v53, %v18400_v32  ;;  %v15282_v62 = vld [vmem:[%s21631_s22 + $0x1c] sm:$0x7] }
0x2493   :  { %v15127_v9 = vcombine.low %v15119_v10, %v15126_v6  ;;  %v15018_v23 = vmul.f32 %v21390_v1, %v14938_v20  ;;  %v15204_v39 = vcombine.low %v21420_v28, %v21425_v50  ;;  %v15196_v8 = vcombine.low %v15188_v18, %v15195_v48 }
0x2494   :  { %v15242_v17 = vsel %vm15235_vm7, %v15111_v11, 0.0  ;;  %v15150_v33 = vcombine.low %v15142_v37, %v15149_v34  ;;  %v15165_v13 = vrot.slane %v15158_v4, %v18400_v32  ;;  %v18137_v41 = vmov 0  }
0x2495   :  { %15243 = vadd.xlane.f32.xlu0 %v15242_v17  ;;  %v15134_v21 = vrot.slane %v15127_v9, %v18400_v32  ;;  %v15211_v2 = vrot.slane %v15204_v39, %v18400_v32  ;;  %v15218_v53 = vrot.slane %v15018_v23, %v18400_v32  ;;  %v15203_v7 = vrot.slane %v15196_v8, %v18400_v32 }
0x2496   :  { %v15157_v43 = vrot.slane %v15150_v33, %v18400_v32  ;;  %v15173_v38 = vcombine.low %v15165_v13, %v15172_v29  ;;  %17680 = vset.pattern.permute.xlu1 %v18137_v41  ;;  %17679 = vset.pattern.permute.xlu0 %v18137_v41  ;;  %vm15284_vm9 = vcmp.gt.f32.partialorder %v15276_v5, 0.5  ;;  %vm15287_vm10 = vcmp.gt.f32.partialorder %v15279_v12, 0.5 }
0x2497   :  { %v15245_v1 = vsel %vm15235_vm7, %v15134_v21, 0.0  ;;  %v15219_v20 = vcombine.low %v15211_v2, %v15218_v53  ;;  %v15254_v26 = vsel %vm15235_vm7, %v15203_v7, 0.0  ;;  %vm15288_vm11 = vcmp.gt.f32.partialorder %v15280_v59, 0.5 }
0x2498   :  { %15246 = vadd.xlane.f32.xlu1 %v15245_v1  ;;  %v15248_v28 = vsel %vm15235_vm7, %v15157_v43, 0.0  ;;  %v15180_v50 = vrot.slane %v15173_v38, %v18400_v32  ;;  %vm15289_vm12 = vcmp.gt.f32.partialorder %v15281_v15, 0.5  ;;  %vm15283_vm13 = vcmp.gt.f32.partialorder %v15275_v51, 0.5 }
0x2499   :  { %15249 = vadd.xlane.f32.xlu0 %v15248_v28  ;;  %v15226_v49 = vrot.slane %v15219_v20, %v18400_v32  ;;  %vm15285_vm14 = vcmp.gt.f32.partialorder %v15277_v25, 0.5  ;;  %vm15286_vm15 = vcmp.gt.f32.partialorder %v15278_v57, 0.5  ;;  %vm15290_vm3 = vcmp.gt.f32.partialorder %v15282_v62, 0.5 }
0x249a   :  { %v15251_v31 = vsel %vm15235_vm7, %v15180_v50, 0.0 }
0x249b   :  { %v15257_v55 = vsel %vm15235_vm7, %v15226_v49, 0.0 }
0x249c   :  { %15252 = vadd.xlane.f32.xlu1 %v15251_v31 }
0x249d   :  { %15255 = vadd.xlane.f32.xlu0 %v15254_v26 }
0x24a0   :  { %15258 = vadd.xlane.f32.xlu1 %v15257_v55 }
0x2519   :  { %v15238_v24 = vpop.xlane.xlu0 %15237 }
0x251a   :  { %v15267_v47 = vadd.f32 %v16206_v44, %v15238_v24 }
0x251b   :  { %v15241_v56 = vpop.xlane.xlu1 %15240 }
0x251c   :  { %v15268_v35 = vadd.f32 %v16206_v44, %v15241_v56  ;;  %v15291_v4 = vsel %vm15283_vm13, -1e+09, %v15267_v47 }
0x251d   :  { %v15300_v8 = vsel %vm15299_vm8, %v15291_v4, -inf }
0x251e   :  { %v15244_v45 = vpop.xlane.xlu0 %15243  ;;  %v15292_v36 = vsel %vm15284_vm9, -1e+09, %v15268_v35 }
0x251f   :  { %v15269_v63 = vadd.f32 %v16206_v44, %v15244_v45  ;;  %v15301_v23 = vsel %vm15299_vm8, %v15292_v36, -inf }
0x2521   :  { %v15247_v58 = vpop.xlane.xlu1 %15246  ;;  %v15293_v48 = vsel %vm15285_vm14, -1e+09, %v15269_v63 }
0x2522   :  { %v15250_v42 = vpop.xlane.xlu0 %15249  ;;  %v15270_v3 = vadd.f32 %v16206_v44, %v15247_v58  ;;  %v15302_v21 = vsel %vm15299_vm8, %v15293_v48, -inf }
0x2523   :  { %v15271_v16 = vadd.f32 %v16206_v44, %v15250_v42 }
0x2524   :  { %v15294_v9 = vsel %vm15286_vm15, -1e+09, %v15270_v3 }
0x2525   :  { %v15253_v0 = vpop.xlane.xlu1 %15252  ;;  %v15295_v10 = vsel %vm15287_vm10, -1e+09, %v15271_v16  ;;  %v15303_v2 = vsel %vm15299_vm8, %v15294_v9, -inf }
0x2526   :  { %v15272_v40 = vadd.f32 %v16206_v44, %v15253_v0  ;;  %v15256_v6 = vpop.xlane.xlu0 %15255  ;;  %v15304_v39 = vsel %vm15299_vm8, %v15295_v10, -inf }
0x2527   :  { %v15273_v14 = vadd.f32 %v16206_v44, %v15256_v6  ;;  %v15305_v43 = vmax.f32 %v15300_v8, %v15304_v39  ;;  %v17746_v8 = vld [vmem:[%s21632_s0 + $0x20] sm:$0xff]  }
0x2528   :  { %v15296_v34 = vsel %vm15288_vm11, -1e+09, %v15272_v40 }
0x2529   :  { %v15306_v18 = vsel %vm15299_vm8, %v15296_v34, -inf  ;;  %v15297_v11 = vsel %vm15289_vm12, -1e+09, %v15273_v14  ;;  %v15259_v37 = vpop.xlane.xlu1 %15258 }
0x252a   :  { %v15274_v29 = vadd.f32 %v16206_v44, %v15259_v37  ;;  %v15308_v17 = vsel %vm15299_vm8, %v15297_v11, -inf  ;;  %v15307_v33 = vmax.f32 %v15301_v23, %v15306_v18 }
0x252b   :  { %v15309_v38 = vmax.f32 %v15302_v21, %v15308_v17 }
0x252c   :  { %v15298_v13 = vsel %vm15290_vm3, -1e+09, %v15274_v29  ;;  %v15312_v20 = vmax.f32 %v15305_v43, %v15307_v33  ;;  %v17745_v33 = vld [vmem:[%s21632_s0 + $0x28] sm:$0xff]   ;;  %v17748_v43 = vld [vmem:[%s21632_s0 + $0x10] sm:$0xff]  }
0x252d   :  { %v15310_v53 = vsel %vm15299_vm8, %v15298_v13, -inf  ;;  %17603 = vmatpush3.bf16.msra.mxu1 %v17745_v33 }
0x252e   :  { %v15311_v1 = vmax.f32 %v15303_v2, %v15310_v53  ;;  %17604 = vmatprep.subr.bf16.mxu1 %v18130_v19  ;;  %v17747_v2 = vld [vmem:[%s21632_s0 + $0x18] sm:$0xff]  }
0x2530   :  { %v15313_v28 = vmax.f32 %v15309_v38, %v15311_v1  ;;  %v17749_v1 = vld [vmem:[%s21632_s0 + $0x48] sm:$0xff]  }
0x2531   :  { %17605 = vmatpush3.bf16.msra.mxu1 %v17746_v8  ;;  %17591 = vmatpush3.bf16.msra.mxu0 %v17749_v1 }
0x2532   :  { %v15314_v50 = vmax.f32 %v15312_v20, %v15313_v28  ;;  %17606 = vmatprep.subr.bf16.mxu1 %v18130_v19  ;;  %v17750_v20 = vld [vmem:[%s21632_s0 + $0x8] sm:$0xff]   ;;  %17592 = vmatprep.subr.bf16.mxu0 %v18130_v19 }
0x2534   :  { %v15315_v7 = vsub.f32 %v15291_v4, %v15314_v50  ;;  %v15316_v31 = vsub.f32 %v15292_v36, %v15314_v50  ;;  %v15317_v49 = vsub.f32 %v15293_v48, %v15314_v50  ;;  %v15318_v26 = vsub.f32 %v15294_v9, %v15314_v50 }
0x2535   :  { %v15319_v55 = vsub.f32 %v15295_v10, %v15314_v50  ;;  %v15320_v45 = vsub.f32 %v15296_v34, %v15314_v50  ;;  %v15321_v58 = vsub.f32 %v15297_v11, %v15314_v50  ;;  %v15322_v42 = vsub.f32 %v15298_v13, %v15314_v50  ;;  %17607 = vmatpush3.bf16.msra.mxu1 %v17747_v2  ;;  %v17751_v50 = vld [vmem:[%s21632_s0 + $0x40] sm:$0xff]  }
0x2536   :  { %v15323_v41 = vmul.f32 1.442695, %v15315_v7  ;;  %v15325_v24 = vmul.f32 1.442695, %v15316_v31  ;;  %v15327_v56 = vmul.f32 1.442695, %v15317_v49  ;;  %17608 = vmatprep.subr.bf16.mxu1 %v18130_v19  ;;  %17593 = vmatpush3.bf16.msra.mxu0 %v17751_v50 }
0x2537   :  { %v15329_v5 = vmul.f32 1.442695, %v15318_v26  ;;  %v15331_v12 = vmul.f32 1.442695, %v15319_v55  ;;  %v15333_v59 = vmul.f32 1.442695, %v15320_v45  ;;  %17594 = vmatprep.subr.bf16.mxu0 %v18130_v19 }
0x2538   :  { %18036 = vpow2.f32 %v15323_v41  ;;  %v15335_v15 = vmul.f32 1.442695, %v15321_v58  ;;  %v15337_v44 = vmul.f32 1.442695, %v15322_v42  ;;  %v17752_v7 = vld [vmem:[%s21632_s0] sm:$0xff]   ;;  %v17753_v49 = vld [vmem:[%s21632_s0 + $0x38] sm:$0xff]  }
0x2539   :  { %18038 = vpow2.f32 %v15325_v24  ;;  %17609 = vmatpush3.bf16.msra.mxu1 %v17748_v43  ;;  %v15618_v26 = vld [vmem:[%s21633_s9] sm:$0x7]  ;;  %v17754_v41 = vld [vmem:[%s21632_s0 + $0x30] sm:$0xff]   ;;  %v15448_v24 = vrot.slane %v21323_v30, %v18400_v32  ;;  %v15494_v30 = vrot.slane %v21345_v61, %v18400_v32 }
0x253a   :  { %18040 = vpow2.f32 %v15327_v56  ;;  %17610 = vmatprep.subr.bf16.mxu1 %v18130_v19  ;;  %v15639_v55 = vpack.c.bf16 %v15618_v26, %v15618_v26  ;;  %17595 = vmatpush3.bf16.msra.mxu0 %v17753_v49  ;;  %v15425_v56 = vrot.slane %v21335_v52, %v18400_v32  ;;  %v16225_v50 = vld [vmem:[#allocation4] ss:$0 sm:$0xff] }
0x253b   :  { %18042 = vpow2.f32 %v15329_v5  ;;  %17596 = vmatprep.subr.bf16.mxu0 %v18130_v19 }
0x253c   :  { %18044 = vpow2.f32 %v15331_v12 }
0x253d   :  { %18046 = vpow2.f32 %v15333_v59  ;;  %17611 = vmatpush3.bf16.msra.mxu1 %v17750_v20  ;;  %v16222_v20 = vld [vmem:[%s18359_s20] ss:$0 sm:$0xff] }
0x253e   :  { %18048 = vpow2.f32 %v15335_v15  ;;  %17612 = vmatprep.subr.bf16.mxu1 %v18130_v19  ;;  %17597 = vmatpush3.bf16.msra.mxu0 %v17754_v41  ;;  %v15471_v15 = vrot.slane %v21337_v22, %v18400_v32 }
0x253f   :  { %18050 = vpow2.f32 %v15337_v44  ;;  %17618 = vmatprep.subr.bf16.mxu0 %v18130_v19 }
0x2541   :  { %17613 = vmatpush3.bf16.msra.mxu1 %v17752_v7 }
0x2544   :  { %17615 = vmatmul.mubr.msk.bf16.vlgmr.msra.gmra.mxu1 %vm15744_vm4, %v15639_v55 }
0x2545   :  { %v18037_v51 = vpop.eup %18036 }
0x2546   :  { %v18039_v35 = vpop.eup %18038  ;;  %v15339_v25 = vsel %vm15299_vm8, %v18037_v51, 0.0 }
0x2547   :  { %v18041_v57 = vpop.eup %18040  ;;  %v15340_v16 = vsel %vm15299_vm8, %v18039_v35, 0.0 }
0x2548   :  { %v18043_v0 = vpop.eup %18042  ;;  %v15341_v47 = vadd.f32 %v15340_v16, %v15339_v25  ;;  %v15342_v63 = vsel %vm15299_vm8, %v18041_v57, 0.0 }
0x2549   :  { %v18045_v3 = vpop.eup %18044  ;;  %v15344_v6 = vsel %vm15299_vm8, %v18043_v0, 0.0 }
0x254a   :  { %v15343_v40 = vadd.f32 %v15342_v63, %v15341_v47  ;;  %v18047_v62 = vpop.eup %18046  ;;  %v15346_v36 = vsel %vm15299_vm8, %v18045_v3, 0.0  ;;  %v15517_v47 = vrot.slane %v21361_v54, %v18400_v32 }
0x254b   :  { %v18049_v10 = vpop.eup %18048  ;;  %v15348_v18 = vsel %vm15299_vm8, %v18047_v62, 0.0 }
0x254c   :  { %v15345_v14 = vadd.f32 %v15344_v6, %v15343_v40  ;;  %v18051_v11 = vpop.eup %18050  ;;  %v15350_v4 = vsel %vm15299_vm8, %v18049_v10, 0.0  ;;  %v15540_v6 = vrot.slane %v21363_v60, %v18400_v32 }
0x254d   :  { %v15352_v9 = vsel %vm15299_vm8, %v18051_v11, 0.0 }
0x254e   :  { %v15347_v34 = vadd.f32 %v15346_v36, %v15345_v14 }
0x2550   :  { %v15349_v37 = vadd.f32 %v15348_v18, %v15347_v34 }
0x2552   :  { %v15351_v48 = vadd.f32 %v15350_v4, %v15349_v37  ;;  %v15586_v37 = vrot.slane %v21374_v46, %v18400_v32  ;;  %v16221_v46 = vld [vmem:[%s21634_s17] ss:$0 sm:$0xff] }
0x2554   :  { %v15353_v29 = vadd.f32 %v15352_v9, %v15351_v48 }
0x2556   :  { %18052 = vrcp.f32 %v15353_v29 }
0x2563   :  { %v18053_v23 = vpop.eup %18052 }
0x2564   :  { %v15356_v39 = vmul.f32 %v18053_v23, %v18039_v35  ;;  %v15355_v17 = vmul.f32 %v18053_v23, %v18037_v51  ;;  %v15357_v13 = vmul.f32 %v18053_v23, %v18041_v57  ;;  %v15358_v21 = vmul.f32 %v18053_v23, %v18043_v0 }
0x2565   :  { %v15359_v53 = vmul.f32 %v18053_v23, %v18045_v3  ;;  %v15360_v38 = vmul.f32 %v18053_v23, %v18047_v62  ;;  %v15361_v28 = vmul.f32 %v18053_v23, %v18049_v10  ;;  %v15362_v31 = vmul.f32 %v18053_v23, %v18051_v11 }
0x2566   :  { %15370 = vperm.xlu1 %17680, %v15356_v39   ;;  %15365 = vperm.xlu0 %17679, %v15355_v17   ;;  %v15563_v10 = vrot.slane %v21370_v27, %v18400_v32 }
0x256a   :  { %15375 = vperm.xlu1 %17680, %v15357_v13   ;;  %v17755_v13 = vld [vmem:[%s18354_s13] sm:$0xff]  }
0x256e   :  { %15380 = vperm.xlu1 %17680, %v15358_v21  }
0x2572   :  { %15385 = vperm.xlu1 %17680, %v15359_v53  }
0x2576   :  { %15390 = vperm.xlu1 %17680, %v15360_v38  }
0x257a   :  { %15395 = vperm.xlu1 %17680, %v15361_v28  }
0x257e   :  { %15400 = vperm.xlu1 %17680, %v15362_v31  }
0x25e1   :  { %v15371_v45 = vpop.permute.xlu1 %15370  ;;  %v15366_v5 = vpop.permute.xlu0 %15365 }
0x25e2   :  { %v15596_v58 = vmul.f32 %v15448_v24, %v15371_v45  ;;  %v15595_v12 = vmul.f32 %v15425_v56, %v15366_v5  ;;  %v16226_v24 = vld [vmem:[#allocation3] ss:$0 sm:$0xff] }
0x25e4   :  { %v15604_v42 = vsel %vm15235_vm7, %v15596_v58, 0.0  ;;  %v15603_v59 = vsel %vm15235_vm7, %v15595_v12, 0.0 }
0x25e5   :  { %v15605_v44 = vadd.f32 %v15604_v42, %v15603_v59  ;;  %v15376_v51 = vpop.permute.xlu1 %15375 }
0x25e6   :  { %v15597_v35 = vmul.f32 %v15471_v15, %v15376_v51 }
0x25e8   :  { %v15606_v25 = vsel %vm15235_vm7, %v15597_v35, 0.0 }
0x25e9   :  { %v15607_v52 = vadd.f32 %v15606_v25, %v15605_v44  ;;  %v15381_v57 = vpop.permute.xlu1 %15380 }
0x25ea   :  { %v15598_v16 = vmul.f32 %v15494_v30, %v15381_v57 }
0x25ec   :  { %v15608_v0 = vsel %vm15235_vm7, %v15598_v16, 0.0 }
0x25ed   :  { %v15609_v63 = vadd.f32 %v15608_v0, %v15607_v52  ;;  %v15386_v3 = vpop.permute.xlu1 %15385 }
0x25ee   :  { %v15599_v40 = vmul.f32 %v15517_v47, %v15386_v3 }
0x25f0   :  { %v15610_v22 = vsel %vm15235_vm7, %v15599_v40, 0.0 }
0x25f1   :  { %v15611_v62 = vadd.f32 %v15610_v22, %v15609_v63  ;;  %v15391_v14 = vpop.permute.xlu1 %15390 }
0x25f2   :  { %v15600_v36 = vmul.f32 %v15540_v6, %v15391_v14 }
0x25f4   :  { %v15612_v61 = vsel %vm15235_vm7, %v15600_v36, 0.0 }
0x25f5   :  { %v15613_v34 = vadd.f32 %v15612_v61, %v15611_v62  ;;  %v15396_v18 = vpop.permute.xlu1 %15395 }
0x25f6   :  { %v15601_v54 = vmul.f32 %v15563_v10, %v15396_v18 }
0x25f8   :  { %v15614_v11 = vsel %vm15235_vm7, %v15601_v54, 0.0 }
0x25f9   :  { %v15615_v4 = vadd.f32 %v15614_v11, %v15613_v34  ;;  %v15401_v60 = vpop.permute.xlu1 %15400 }
0x25fa   :  { %v15602_v48 = vmul.f32 %v15586_v37, %v15401_v60 }
0x25fc   :  { %v15616_v9 = vsel %vm15235_vm7, %v15602_v48, 0.0 }
0x25fd   :  { %v15617_v29 = vadd.f32 %v15616_v9, %v15615_v4 }
0x25ff   :  { %v15640_v23 = vpack.c.bf16 %v15617_v29, %v15617_v29 }
0x2601   :  { %17599 = vmatmul.mubr.msk.bf16.vlgmr.msra.gmra.mxu0 %vm251_vm0, %v15640_v23  ;;  %vm15865_vm0 = vcmask 59392  }
0x2602   :  { %17620 = vmatprep.mubr.msk.bf16.mxu0 %vm18131_vm1, %v18130_v19  ;;  %17619 = vmatpush3.bf16.msra.mxu0 %v17755_v13 }
0x2604   :  { %v15782_v27 = vpop.f32.mrf.mxu1 }
0x2606   :  { %v17616_v39 = vpop.f32.mrf.mxu1 }
0x2608   :  { %v15785_v17 = vpop.f32.mrf.mxu1 }
0x260a   :  { %v17617_v33 = vpop.f32.mrf.mxu1 }
0x26c1   :  { %v15702_v32 = vpop.f32.mrf.mxu0 }
0x26c2   :  { %v15783_v8 = vadd.f32 %v15782_v27, %v15702_v32 }
0x26c3   :  { %v17600_v21 = vpop.f32.mrf.mxu0 }
0x26c4   :  { %v15795_v2 = vadd.f32 %v16221_v46, %v15783_v8 }
0x26c5   :  { %v15705_v53 = vpop.f32.mrf.mxu0 }
0x26c6   :  { %v15796_v43 = vmax.f32 %v15795_v2, 0.0 }
0x26c7   :  { %v17601_v38 = vpop.f32.mrf.mxu0 }
0x26c8   :  { %v15797_v1 = vpack.c.bf16 %v15796_v43, %v15796_v43 }
0x26ca   :  { %17621 = vmatmul.mubr.msk.bf16.vlgmr.msra.gmra.mxu0 %vm1538_vm2, %v15797_v1 }
0x278a   :  { %v15850_v19 = vpop.f32.mrf.mxu0 }
0x278b   :  { %v15851_v28 = vadd.f32 %v16222_v20, %v15850_v19 }
0x278c   :  { %v17622_v7 = vpop.f32.mrf.mxu0 }
0x278d   :  { %v15856_v31 = vmax.f32 %v15851_v28, 0.0 }
0x278e   :  { %v15853_v49 = vpop.f32.mrf.mxu0 }
0x278f   :  { %v15864_v26 = vmul.f32 %v16225_v50, %v15856_v31 }
0x2790   :  { %v17623_v55 = vpop.f32.mrf.mxu0 }
0x2791   :  { %v15866_v41 = vsel %vm15865_vm0, %v15864_v26, 0.0 }
0x2792   :  { %15867 = vadd.xlane.f32.xlu1 %v15866_v41 }
0x281b   :  { %v15868_v56 = vpop.xlane.xlu1 %15867 }
0x281c   :  { %v15876_v45 = vadd.f32 %v16226_v24, %v15868_v56 }
0x281e   :  { %v16227_v5 = vmul.f32 -1.442695, %v15876_v45 }
0x2820   :  { %18054 = vpow2.f32 %v16227_v5 }
0x282d   :  { %v18055_v58 = vpop.eup %18054 }
0x282e   :  { %v15880_v12 = vadd.f32 1.0, %v18055_v58 }
0x2830   :  { %18056 = vrcp.f32 %v15880_v12 }
0x283d   :  { %v18057_v42 = vpop.eup %18056 }
0x283e   :  { %15883 = vst.msk [vmem:[%s18367_s4] sm:$0x7] %vm15299_vm8, %v18057_v42 }
0x283f   :  { %15888 = vsyncpa [#allocation5], 1 }

</bundles_post_ra>
